<compile_context>
chip_gen: v6e
topology: v6e:2x2x1
jax: 0.10.0
libtpu: 0.0.40
codegen_flags: <defaults>
</compile_context>

<pallas_src>
import functools
import math

import jax
import jax.numpy as jnp
from jax import lax
from jax.experimental import pallas as pl
from jax.experimental.pallas import tpu as pltpu

INPUT_DIM = 84
OUTPUT_DIM = 128
ATTENTION_DIM = 256
NUM_BLOCKS = 6
NUM_HEADS = 4
HEAD_DIM = OUTPUT_DIM // NUM_HEADS
CNN_KERNEL = 15
EPS_LN = 1e-5
EPS_BN = 1e-5
MAX_ROW_TILE = 1024


def _round_up(x, m):
    return ((x + m - 1) // m) * m


def _ln(x, g, b):
    """LayerNorm over the last axis (f32 statistics)."""
    mean = jnp.mean(x, axis=-1, keepdims=True)
    var = jnp.mean((x - mean) ** 2, axis=-1, keepdims=True)
    return (x - mean) * lax.rsqrt(var + EPS_LN) * g + b


def _const_spec(shape):
    n = len(shape)
    return pl.BlockSpec(shape, lambda i, _n=n: (0,) * _n)


# --------------------------------------------------------------------------
# Embed kernel: (cmvn-folded) Linear(128pad -> 128) + LayerNorm + xscale
# --------------------------------------------------------------------------
def _embed_kernel(x_ref, w_ref, b_ref, g_ref, bb_ref, o_ref, *, xscale):
    x = x_ref[...].astype(jnp.bfloat16)
    h = jnp.dot(x, w_ref[...], preferred_element_type=jnp.float32) + b_ref[...]
    h = _ln(h, g_ref[...], bb_ref[...]) * xscale
    o_ref[...] = h.astype(o_ref.dtype)


def embed(x, w_bf16, b, ln_g, ln_b, xscale):
    M, K = x.shape
    D = w_bf16.shape[1]
    tm = min(MAX_ROW_TILE, _round_up(M, 8))
    Mp = _round_up(M, tm)
    xp = jnp.pad(x, ((0, Mp - M), (0, 0))) if Mp != M else x
    out = pl.pallas_call(
        functools.partial(_embed_kernel, xscale=xscale),
        out_shape=jax.ShapeDtypeStruct((Mp, D), jnp.bfloat16),
        grid=(Mp // tm,),
        in_specs=[
            pl.BlockSpec((tm, K), lambda i: (i, 0)),
            _const_spec((K, D)),
            _const_spec((1, D)),
            _const_spec((1, D)),
            _const_spec((1, D)),
        ],
        out_specs=pl.BlockSpec((tm, D), lambda i: (i, 0)),
        compiler_params=pltpu.CompilerParams(dimension_semantics=("parallel",)),
    )(xp, w_bf16, b.reshape(1, D), ln_g.reshape(1, D), ln_b.reshape(1, D))
    return out[:M] if Mp != M else out


# --------------------------------------------------------------------------
# One fused conformer block per pallas_call (grid over batch).
# --------------------------------------------------------------------------
def _block_kernel(x_ref, pproj_ref,
                  ffm_g, ffm_b, ffm_w1, ffm_b1, ffm_w2, ffm_b2,
                  mha_g, mha_b, wqkv, bqkv, bu, bv, wo, bo,
                  cv_g, cv_b, pw1w, pw1b, dww, dwb, bns, bnb, pw2w, pw2b,
                  ff_g, ff_b, ff_w1, ff_b1, ff_w2, ff_b2,
                  fin_g, fin_b,
                  o_ref, *, T, K):
    d, dh = OUTPUT_DIM, HEAD_DIM
    x = x_ref[0].astype(jnp.float32)                          # (T, d)

    # ---- macaron feed-forward (half-step residual) ----
    h = _ln(x, ffm_g[...], ffm_b[...])
    h = jnp.dot(h.astype(jnp.bfloat16), ffm_w1[...],
                preferred_element_type=jnp.float32) + ffm_b1[...]
    h = h * jax.nn.sigmoid(h)                                 # Swish (f32)
    h = jnp.dot(h.astype(jnp.bfloat16), ffm_w2[...],
                preferred_element_type=jnp.float32) + ffm_b2[...]
    x = x + 0.5 * h

    # ---- rel-pos MHSA: LN + fused QKV + per-head attention + out-proj ----
    h = _ln(x, mha_g[...], mha_b[...])
    qkv = jnp.dot(h.astype(jnp.bfloat16), wqkv[...],
                  preferred_element_type=jnp.float32) + bqkv[...]   # (T, 3d)
    q = qkv[:, :d]
    k = qkv[:, d:2 * d].astype(jnp.bfloat16)
    v = qkv[:, 2 * d:].astype(jnp.bfloat16)
    p = pproj_ref[...].astype(jnp.bfloat16)                   # (T, d)
    qu = (q + bu[...]).astype(jnp.bfloat16)
    qv = (q + bv[...]).astype(jnp.bfloat16)
    inv_sqrt = 1.0 / math.sqrt(dh)
    # TODO(synk): for long T, add a query-tile grid axis and a flash-style KV
    # loop so the (T, T) per-head scores stay within scoped VMEM (v7x: 64 MiB).
    ctx_heads = []
    for hd in range(NUM_HEADS):
        s0 = hd * dh
        ac = lax.dot_general(qu[:, s0:s0 + dh], k[:, s0:s0 + dh],
                             (((1,), (1,)), ((), ())),
                             preferred_element_type=jnp.float32)
        bd = lax.dot_general(qv[:, s0:s0 + dh], p[:, s0:s0 + dh],
                             (((1,), (1,)), ((), ())),
                             preferred_element_type=jnp.float32)
        sc = (ac + bd) * inv_sqrt
        m = jnp.max(sc, axis=-1, keepdims=True)
        e = jnp.exp(sc - m)
        attn = e * pl.reciprocal(jnp.sum(e, axis=-1, keepdims=True), approx=True)
        ctx_heads.append(jnp.dot(attn.astype(jnp.bfloat16), v[:, s0:s0 + dh],
                                 preferred_element_type=jnp.float32))
    ctx = jnp.concatenate(ctx_heads, axis=-1)                 # (T, d) lane-dense
    x = x + jnp.dot(ctx.astype(jnp.bfloat16), wo[...],
                    preferred_element_type=jnp.float32) + bo[...]

    # ---- convolution module: LN -> pw1 -> GLU -> depthwise(15) -> BN -> Swish -> pw2 ----
    h = _ln(x, cv_g[...], cv_b[...])
    h = jnp.dot(h.astype(jnp.bfloat16), pw1w[...],
                preferred_element_type=jnp.float32) + pw1b[...]     # (T, 2d)
    glu = h[:, :d] * jax.nn.sigmoid(h[:, d:])                 # GLU over channels
    pad = (K - 1) // 2
    zpad = jnp.zeros((pad, d), jnp.float32)
    gp = jnp.concatenate([zpad, glu, zpad], axis=0)           # (T + K - 1, d)
    # TODO(synk): for large T the 15 shifted slices could instead be staged in a
    # VMEM scratch (or pltpu.roll) to cut sublane-shift traffic; negligible here.
    w_dw = dww[...].astype(jnp.float32)                       # (K, d)
    acc = jnp.zeros((T, d), jnp.float32)
    for kk in range(K):                                       # static unrolled taps
        acc = acc + gp[kk:kk + T, :] * w_dw[kk:kk + 1, :]
    acc = acc + dwb[...]
    y = acc * bns[...] + bnb[...]                             # BatchNorm (eval)
    y = y * jax.nn.sigmoid(y)                                 # Swish
    y = jnp.dot(y.astype(jnp.bfloat16), pw2w[...],
                preferred_element_type=jnp.float32) + pw2b[...]
    x = x + y

    # ---- trailing feed-forward (half-step residual) + block-final LayerNorm ----
    h = _ln(x, ff_g[...], ff_b[...])
    h = jnp.dot(h.astype(jnp.bfloat16), ff_w1[...],
                preferred_element_type=jnp.float32) + ff_b1[...]
    h = h * jax.nn.sigmoid(h)
    h = jnp.dot(h.astype(jnp.bfloat16), ff_w2[...],
                preferred_element_type=jnp.float32) + ff_b2[...]
    x = x + 0.5 * h
    x = _ln(x, fin_g[...], fin_b[...])
    o_ref[0] = x.astype(o_ref.dtype)


def conformer_block(p, x, pproj, bn_s, bn_b):
    """x: (B, T, 128) bf16 -> (B, T, 128) bf16, one fused pallas_call."""
    B, T, D = x.shape
    LU = ATTENTION_DIM
    K = p["dw_w"].shape[0]
    vec = lambda v: v.reshape(1, -1)
    in_specs = [
        pl.BlockSpec((1, T, D), lambda b: (b, 0, 0)),          # x
        _const_spec((T, D)),                                   # pproj
        # macaron FFN
        _const_spec((1, D)), _const_spec((1, D)),
        _const_spec((D, LU)), _const_spec((1, LU)),
        _const_spec((LU, D)), _const_spec((1, D)),
        # MHA
        _const_spec((1, D)), _const_spec((1, D)),
        _const_spec((D, 3 * D)), _const_spec((1, 3 * D)),
        _const_spec((1, D)), _const_spec((1, D)),
        _const_spec((D, D)), _const_spec((1, D)),
        # conv module
        _const_spec((1, D)), _const_spec((1, D)),
        _const_spec((D, 2 * D)), _const_spec((1, 2 * D)),
        _const_spec((K, D)), _const_spec((1, D)),
        _const_spec((1, D)), _const_spec((1, D)),
        _const_spec((D, D)), _const_spec((1, D)),
        # trailing FFN
        _const_spec((1, D)), _const_spec((1, D)),
        _const_spec((D, LU)), _const_spec((1, LU)),
        _const_spec((LU, D)), _const_spec((1, D)),
        # block-final LN
        _const_spec((1, D)), _const_spec((1, D)),
    ]
    return pl.pallas_call(
        functools.partial(_block_kernel, T=T, K=K),
        out_shape=jax.ShapeDtypeStruct((B, T, D), jnp.bfloat16),
        grid=(B,),
        in_specs=in_specs,
        out_specs=pl.BlockSpec((1, T, D), lambda b: (b, 0, 0)),
        compiler_params=pltpu.CompilerParams(dimension_semantics=("parallel",)),
    )(
        x, pproj,
        vec(p["norm_ff_macaron_g"]), vec(p["norm_ff_macaron_b"]),
        p["ffm_w1"], vec(p["ffm_b1"]), p["ffm_w2"], vec(p["ffm_b2"]),
        vec(p["norm_mha_g"]), vec(p["norm_mha_b"]),
        p["wqkv"], vec(p["bqkv"]),
        vec(p["pos_bias_u"].reshape(-1)), vec(p["pos_bias_v"].reshape(-1)),
        p["wo"], vec(p["bo"]),
        vec(p["norm_conv_g"]), vec(p["norm_conv_b"]),
        p["pw1_w"], vec(p["pw1_b"]), p["dw_w"], vec(p["dw_b"]),
        vec(bn_s), vec(bn_b), p["pw2_w"], vec(p["pw2_b"]),
        vec(p["norm_ff_g"]), vec(p["norm_ff_b"]),
        p["ff_w1"], vec(p["ff_b1"]), p["ff_w2"], vec(p["ff_b2"]),
        vec(p["norm_final_g"]), vec(p["norm_final_b"]),
    )


# --------------------------------------------------------------------------
# Final encoder LayerNorm
# --------------------------------------------------------------------------
def _layernorm_kernel(x_ref, g_ref, bb_ref, o_ref):
    o_ref[...] = _ln(x_ref[...].astype(jnp.float32),
                     g_ref[...], bb_ref[...]).astype(o_ref.dtype)


def layernorm(x, gamma, beta):
    M, D = x.shape
    tm = min(MAX_ROW_TILE, _round_up(M, 8))
    Mp = _round_up(M, tm)
    xp = jnp.pad(x, ((0, Mp - M), (0, 0))) if Mp != M else x
    out = pl.pallas_call(
        _layernorm_kernel,
        out_shape=jax.ShapeDtypeStruct((Mp, D), jnp.float32),
        grid=(Mp // tm,),
        in_specs=[
            pl.BlockSpec((tm, D), lambda i: (i, 0)),
            _const_spec((1, D)),
            _const_spec((1, D)),
        ],
        out_specs=pl.BlockSpec((tm, D), lambda i: (i, 0)),
        compiler_params=pltpu.CompilerParams(dimension_semantics=("parallel",)),
    )(xp, gamma.reshape(1, D), beta.reshape(1, D))
    return out[:M] if Mp != M else out


# --------------------------------------------------------------------------
# Parameter initialization (deterministic, synthetic weights)
# --------------------------------------------------------------------------
def _dense(key, fan_in, fan_out, scale=0.02, dtype=jnp.float32):
    return (scale * jax.random.normal(key, (fan_in, fan_out),
                                      jnp.float32)).astype(dtype)


def init_params(key):
    d, lu, H, dh = OUTPUT_DIM, ATTENTION_DIM, NUM_HEADS, HEAD_DIM
    bf = jnp.bfloat16
    keys = iter(jax.random.split(key, 512))
    nk = lambda: next(keys)

    params = {
        "global_cmvn": {  # BatchNorm1d(84), eval-mode running stats
            "gamma": jnp.ones((INPUT_DIM,), jnp.float32)
                     + 0.05 * jax.random.normal(nk(), (INPUT_DIM,)),
            "beta": 0.05 * jax.random.normal(nk(), (INPUT_DIM,)),
            "running_mean": 0.1 * jax.random.normal(nk(), (INPUT_DIM,)),
            "running_var": jnp.ones((INPUT_DIM,), jnp.float32),
        },
        "embed": {  # LinearNoSubsampling: Linear(84,128) + LayerNorm(128)
            "w": _dense(nk(), INPUT_DIM, d),        # kept f32; cmvn folded at fwd
            "b": jnp.zeros((d,), jnp.float32),
            "ln_g": jnp.ones((d,), jnp.float32),
            "ln_b": jnp.zeros((d,), jnp.float32),
        },
        "after_norm_g": jnp.ones((d,), jnp.float32),
        "after_norm_b": jnp.zeros((d,), jnp.float32),
        "blocks": [],
    }
    for _ in range(NUM_BLOCKS):
        blk = {
            # macaron FFN
            "norm_ff_macaron_g": jnp.ones((d,)), "norm_ff_macaron_b": jnp.zeros((d,)),
            "ffm_w1": _dense(nk(), d, lu, dtype=bf), "ffm_b1": jnp.zeros((lu,)),
            "ffm_w2": _dense(nk(), lu, d, dtype=bf), "ffm_b2": jnp.zeros((d,)),
            # rel-pos MHSA (q|k|v fused into one projection)
            "norm_mha_g": jnp.ones((d,)), "norm_mha_b": jnp.zeros((d,)),
            "wqkv": _dense(nk(), d, 3 * d, dtype=bf), "bqkv": jnp.zeros((3 * d,)),
            "wp": _dense(nk(), d, d),               # linear_pos (no bias)
            "wo": _dense(nk(), d, d, dtype=bf), "bo": jnp.zeros((d,)),
            "pos_bias_u": 0.02 * jax.random.normal(nk(), (H, dh)),
            "pos_bias_v": 0.02 * jax.random.normal(nk(), (H, dh)),
            # convolution module
            "norm_conv_g": jnp.ones((d,)), "norm_conv_b": jnp.zeros((d,)),
            "pw1_w": _dense(nk(), d, 2 * d, dtype=bf), "pw1_b": jnp.zeros((2 * d,)),
            "dw_w": 0.02 * jax.random.normal(nk(), (CNN_KERNEL, d)),  # (K, C)
            "dw_b": jnp.zeros((d,)),
            "convbn_g": jnp.ones((d,)), "convbn_b": jnp.zeros((d,)),
            "convbn_rm": jnp.zeros((d,)), "convbn_rv": jnp.ones((d,)),
            "pw2_w": _dense(nk(), d, d, dtype=bf), "pw2_b": jnp.zeros((d,)),
            # trailing FFN + block-final layer norm
            "norm_ff_g": jnp.ones((d,)), "norm_ff_b": jnp.zeros((d,)),
            "ff_w1": _dense(nk(), d, lu, dtype=bf), "ff_b1": jnp.zeros((lu,)),
            "ff_w2": _dense(nk(), lu, d, dtype=bf), "ff_b2": jnp.zeros((d,)),
            "norm_final_g": jnp.ones((d,)), "norm_final_b": jnp.zeros((d,)),
        }
        params["blocks"].append(blk)
    return params


# --------------------------------------------------------------------------
# Model forward (thin JAX glue around the fused Pallas kernels)
# --------------------------------------------------------------------------
def sinusoidal_pos_emb(T, d):
    pos = jnp.arange(T, dtype=jnp.float32)[:, None]
    div = jnp.exp(jnp.arange(0, d, 2, dtype=jnp.float32) * (-math.log(10000.0) / d))
    pe = jnp.zeros((T, d), jnp.float32)
    pe = pe.at[:, 0::2].set(jnp.sin(pos * div))
    pe = pe.at[:, 1::2].set(jnp.cos(pos * div))
    return pe


def encoder_forward(params, x_ncl):
    """x_ncl: (B, 84, T) -> (B, T, 128)."""
    B, C_in, T = x_ncl.shape
    d = OUTPUT_DIM
    M = B * T

    # global_cmvn (eval BatchNorm1d) folded into the embed Linear weights,
    # with the 84-wide contraction zero-padded to a lane-dense K=128.
    bn = params["global_cmvn"]
    s = bn["gamma"] * lax.rsqrt(bn["running_var"] + EPS_BN)
    t = bn["beta"] - bn["running_mean"] * s
    emb = params["embed"]
    w_eff = s[:, None] * emb["w"]                              # (84, 128)
    b_eff = emb["b"] + t @ emb["w"]
    w_pad = jnp.zeros((d, d), jnp.float32).at[:C_in, :].set(w_eff).astype(jnp.bfloat16)

    # xs_lens are all == T (no padding) -> attention masks all-true; omitted.
    x = jnp.transpose(x_ncl, (0, 2, 1)).reshape(M, C_in)
    x = jnp.pad(x, ((0, 0), (0, d - C_in)))                    # lane-dense input
    x = embed(x, w_pad, b_eff, emb["ln_g"], emb["ln_b"], math.sqrt(d))   # bf16
    x = x.reshape(B, T, d)

    pos_emb = sinusoidal_pos_emb(T, d)
    for blk in params["blocks"]:
        pproj = jnp.dot(pos_emb, blk["wp"])                    # (T, d), tiny XLA op
        bn_s = blk["convbn_g"] * lax.rsqrt(blk["convbn_rv"] + EPS_BN)
        bn_b = blk["convbn_b"] - blk["convbn_rm"] * bn_s
        x = conformer_block(blk, x, pproj, bn_s, bn_b)

    x = layernorm(x.reshape(M, d), params["after_norm_g"], params["after_norm_b"])
    return x.reshape(B, T, d)


# TODO(synk): dropout layers and training-mode batch statistics are omitted
# (eval-mode forward); wenet's RelPositionMultiHeadedAttention computes the
# matrix_bd term without rel_shift, which is what is implemented here.

if __name__ == "__main__":
    key = jax.random.PRNGKey(0)
    pkey, xkey = jax.random.split(key)
    params = init_params(pkey)

    B, T = 2, 16
    x = jax.random.normal(xkey, (B, INPUT_DIM, T), dtype=jnp.float32)  # (B, 84, T)

    fwd = jax.jit(encoder_forward)
    out = fwd(params, x)
    out = jax.block_until_ready(out)

    assert out.shape == (B, T, OUTPUT_DIM), out.shape
    assert jnp.all(jnp.isfinite(out))
    print("KERNEL_OK")
</pallas_src>

<mosaic_0001>
module attributes {stable_mosaic.version = 11 : i64} {
  func.func @_embed_kernel(%arg0: i32, %arg1: memref<32x128xf32, #tpu.memory_space<vmem>>, %arg2: memref<128x128xbf16, #tpu.memory_space<vmem>>, %arg3: memref<1x128xf32, #tpu.memory_space<vmem>>, %arg4: memref<1x128xf32, #tpu.memory_space<vmem>>, %arg5: memref<1x128xf32, #tpu.memory_space<vmem>>, %arg6: memref<32x128xbf16, #tpu.memory_space<vmem>>) attributes {dimension_semantics = [#tpu.dimension_semantics<parallel>], iteration_bounds = array<i64: 1>, scalar_prefetch = 0 : i64, scratch_operands = 0 : i64, tpu.core_type = #tpu.core_type<tc>, window_params = [{transform_indices = @transform_0, window_bounds = array<i64: 32, 128>}, {pipeline_mode = #tpu.pipeline_mode<synchronous>, transform_indices = @transform_1, window_bounds = array<i64: 128, 128>}, {pipeline_mode = #tpu.pipeline_mode<synchronous>, transform_indices = @transform_2, window_bounds = array<i64: 1, 128>}, {pipeline_mode = #tpu.pipeline_mode<synchronous>, transform_indices = @transform_3, window_bounds = array<i64: 1, 128>}, {pipeline_mode = #tpu.pipeline_mode<synchronous>, transform_indices = @transform_4, window_bounds = array<i64: 1, 128>}, {transform_indices = @transform_5, window_bounds = array<i64: 32, 128>}]} {
    %c0 = arith.constant 0 : index
    %c0_0 = arith.constant 0 : index
    %0 = vector.load %arg1[%c0, %c0_0] : memref<32x128xf32, #tpu.memory_space<vmem>>, vector<32x128xf32>
    %1 = arith.truncf %0 : vector<32x128xf32> to vector<32x128xbf16>
    %c0_1 = arith.constant 0 : index
    %c0_2 = arith.constant 0 : index
    %2 = vector.load %arg2[%c0_1, %c0_2] : memref<128x128xbf16, #tpu.memory_space<vmem>>, vector<128x128xbf16>
    %cst = arith.constant dense<0.000000e+00> : vector<32x128xf32>
    %3 = tpu.matmul %1, %2, %cst {dimension_numbers = #tpu.dot_dimension_numbers<[1], [0], [0], [1], [0, 0, 1, 1], [], []>} : vector<32x128xbf16>, vector<128x128xbf16>, vector<32x128xf32> -> vector<32x128xf32>
    %c0_3 = arith.constant 0 : index
    %c0_4 = arith.constant 0 : index
    %4 = vector.load %arg3[%c0_3, %c0_4] : memref<1x128xf32, #tpu.memory_space<vmem>>, vector<1x128xf32>
    %5 = vector.broadcast %4 : vector<1x128xf32> to vector<32x128xf32>
    %6 = arith.addf %3, %5 : vector<32x128xf32>
    %c0_5 = arith.constant 0 : index
    %c0_6 = arith.constant 0 : index
    %7 = vector.load %arg4[%c0_5, %c0_6] : memref<1x128xf32, #tpu.memory_space<vmem>>, vector<1x128xf32>
    %c0_7 = arith.constant 0 : index
    %c0_8 = arith.constant 0 : index
    %8 = vector.load %arg5[%c0_7, %c0_8] : memref<1x128xf32, #tpu.memory_space<vmem>>, vector<1x128xf32>
    %cst_9 = arith.constant dense<0.000000e+00> : vector<32xf32>
    %9 = vector.multi_reduction <add>, %6, %cst_9 [1] : vector<32x128xf32> to vector<32xf32>
    %10 = vector.shape_cast %9 : vector<32xf32> to vector<32x1xf32>
    %cst_10 = arith.constant 1.280000e+02 : f32
    %11 = vector.broadcast %cst_10 : f32 to vector<32x1xf32>
    %12 = arith.divf %10, %11 : vector<32x1xf32>
    %13 = vector.broadcast %12 : vector<32x1xf32> to vector<32x128xf32>
    %14 = arith.subf %6, %13 : vector<32x128xf32>
    %15 = arith.mulf %14, %14 : vector<32x128xf32>
    %cst_11 = arith.constant dense<0.000000e+00> : vector<32xf32>
    %16 = vector.multi_reduction <add>, %15, %cst_11 [1] : vector<32x128xf32> to vector<32xf32>
    %17 = vector.shape_cast %16 : vector<32xf32> to vector<32x1xf32>
    %cst_12 = arith.constant 1.280000e+02 : f32
    %18 = vector.broadcast %cst_12 : f32 to vector<32x1xf32>
    %19 = arith.divf %17, %18 : vector<32x1xf32>
    %20 = vector.broadcast %12 : vector<32x1xf32> to vector<32x128xf32>
    %21 = arith.subf %6, %20 : vector<32x128xf32>
    %cst_13 = arith.constant 9.99999974E-6 : f32
    %22 = vector.broadcast %cst_13 : f32 to vector<32x1xf32>
    %23 = arith.addf %19, %22 : vector<32x1xf32>
    %24 = math.rsqrt %23 : vector<32x1xf32>
    %25 = vector.broadcast %24 : vector<32x1xf32> to vector<32x128xf32>
    %26 = arith.mulf %21, %25 : vector<32x128xf32>
    %27 = vector.broadcast %7 : vector<1x128xf32> to vector<32x128xf32>
    %28 = arith.mulf %26, %27 : vector<32x128xf32>
    %29 = vector.broadcast %8 : vector<1x128xf32> to vector<32x128xf32>
    %30 = arith.addf %28, %29 : vector<32x128xf32>
    %cst_14 = arith.constant 11.3137083 : f32
    %31 = vector.broadcast %cst_14 : f32 to vector<32x128xf32>
    %32 = arith.mulf %30, %31 : vector<32x128xf32>
    %33 = arith.truncf %32 : vector<32x128xf32> to vector<32x128xbf16>
    %c0_15 = arith.constant 0 : index
    %c0_16 = arith.constant 0 : index
    %34 = vector.load %arg6[%c0_15, %c0_16] : memref<32x128xbf16, #tpu.memory_space<vmem>>, vector<32x128xbf16>
    tpu.vector_store %arg6[%c0_15, %c0_16], %33 {strides = array<i32>} : memref<32x128xbf16, #tpu.memory_space<vmem>>, vector<32x128xbf16>,
    return
  }
  func.func @transform_0(%arg0: i32) -> (i32, i32) {
    %c0_i32 = arith.constant 0 : i32
    %c0_i32_0 = arith.constant 0 : i32
    return %arg0, %c0_i32 : i32, i32
  }
  func.func @transform_1(%arg0: i32) -> (i32, i32) {
    %c0_i32 = arith.constant 0 : i32
    %c0_i32_0 = arith.constant 0 : i32
    %c0_i32_1 = arith.constant 0 : i32
    return %c0_i32, %c0_i32_0 : i32, i32
  }
  func.func @transform_2(%arg0: i32) -> (i32, i32) {
    %c0_i32 = arith.constant 0 : i32
    %c0_i32_0 = arith.constant 0 : i32
    %c0_i32_1 = arith.constant 0 : i32
    return %c0_i32, %c0_i32_0 : i32, i32
  }
  func.func @transform_3(%arg0: i32) -> (i32, i32) {
    %c0_i32 = arith.constant 0 : i32
    %c0_i32_0 = arith.constant 0 : i32
    %c0_i32_1 = arith.constant 0 : i32
    return %c0_i32, %c0_i32_0 : i32, i32
  }
  func.func @transform_4(%arg0: i32) -> (i32, i32) {
    %c0_i32 = arith.constant 0 : i32
    %c0_i32_0 = arith.constant 0 : i32
    %c0_i32_1 = arith.constant 0 : i32
    return %c0_i32, %c0_i32_0 : i32, i32
  }
  func.func @transform_5(%arg0: i32) -> (i32, i32) {
    %c0_i32 = arith.constant 0 : i32
    %c0_i32_0 = arith.constant 0 : i32
    return %arg0, %c0_i32 : i32, i32
  }
}

module attributes {stable_mosaic.version = 11 : i64} {
  func.func @_block_kernel(%arg0: i32, %arg1: memref<1x16x128xbf16, #tpu.memory_space<vmem>>, %arg2: memref<16x128xf32, #tpu.memory_space<vmem>>, %arg3: memref<1x128xf32, #tpu.memory_space<vmem>>, %arg4: memref<1x128xf32, #tpu.memory_space<vmem>>, %arg5: memref<128x256xbf16, #tpu.memory_space<vmem>>, %arg6: memref<1x256xf32, #tpu.memory_space<vmem>>, %arg7: memref<256x128xbf16, #tpu.memory_space<vmem>>, %arg8: memref<1x128xf32, #tpu.memory_space<vmem>>, %arg9: memref<1x128xf32, #tpu.memory_space<vmem>>, %arg10: memref<1x128xf32, #tpu.memory_space<vmem>>, %arg11: memref<128x384xbf16, #tpu.memory_space<vmem>>, %arg12: memref<1x384xf32, #tpu.memory_space<vmem>>, %arg13: memref<1x128xf32, #tpu.memory_space<vmem>>, %arg14: memref<1x128xf32, #tpu.memory_space<vmem>>, %arg15: memref<128x128xbf16, #tpu.memory_space<vmem>>, %arg16: memref<1x128xf32, #tpu.memory_space<vmem>>, %arg17: memref<1x128xf32, #tpu.memory_space<vmem>>, %arg18: memref<1x128xf32, #tpu.memory_space<vmem>>, %arg19: memref<128x256xbf16, #tpu.memory_space<vmem>>, %arg20: memref<1x256xf32, #tpu.memory_space<vmem>>, %arg21: memref<15x128xf32, #tpu.memory_space<vmem>>, %arg22: memref<1x128xf32, #tpu.memory_space<vmem>>, %arg23: memref<1x128xf32, #tpu.memory_space<vmem>>, %arg24: memref<1x128xf32, #tpu.memory_space<vmem>>, %arg25: memref<128x128xbf16, #tpu.memory_space<vmem>>, %arg26: memref<1x128xf32, #tpu.memory_space<vmem>>, %arg27: memref<1x128xf32, #tpu.memory_space<vmem>>, %arg28: memref<1x128xf32, #tpu.memory_space<vmem>>, %arg29: memref<128x256xbf16, #tpu.memory_space<vmem>>, %arg30: memref<1x256xf32, #tpu.memory_space<vmem>>, %arg31: memref<256x128xbf16, #tpu.memory_space<vmem>>, %arg32: memref<1x128xf32, #tpu.memory_space<vmem>>, %arg33: memref<1x128xf32, #tpu.memory_space<vmem>>, %arg34: memref<1x128xf32, #tpu.memory_space<vmem>>, %arg35: memref<1x16x128xbf16, #tpu.memory_space<vmem>>) attributes {dimension_semantics = [#tpu.dimension_semantics<parallel>], iteration_bounds = array<i64: 2>, scalar_prefetch = 0 : i64, scratch_operands = 0 : i64, tpu.core_type = #tpu.core_type<tc>, window_params = [{transform_indices = @transform_0, window_bounds = array<i64: 1, 16, 128>}, {pipeline_mode = #tpu.pipeline_mode<synchronous>, transform_indices = @transform_1, window_bounds = array<i64: 16, 128>}, {pipeline_mode = #tpu.pipeline_mode<synchronous>, transform_indices = @transform_2, window_bounds = array<i64: 1, 128>}, {pipeline_mode = #tpu.pipeline_mode<synchronous>, transform_indices = @transform_3, window_bounds = array<i64: 1, 128>}, {pipeline_mode = #tpu.pipeline_mode<synchronous>, transform_indices = @transform_4, window_bounds = array<i64: 128, 256>}, {pipeline_mode = #tpu.pipeline_mode<synchronous>, transform_indices = @transform_5, window_bounds = array<i64: 1, 256>}, {pipeline_mode = #tpu.pipeline_mode<synchronous>, transform_indices = @transform_6, window_bounds = array<i64: 256, 128>}, {pipeline_mode = #tpu.pipeline_mode<synchronous>, transform_indices = @transform_7, window_bounds = array<i64: 1, 128>}, {pipeline_mode = #tpu.pipeline_mode<synchronous>, transform_indices = @transform_8, window_bounds = array<i64: 1, 128>}, {pipeline_mode = #tpu.pipeline_mode<synchronous>, transform_indices = @transform_9, window_bounds = array<i64: 1, 128>}, {pipeline_mode = #tpu.pipeline_mode<synchronous>, transform_indices = @transform_10, window_bounds = array<i64: 128, 384>}, {pipeline_mode = #tpu.pipeline_mode<synchronous>, transform_indices = @transform_11, window_bounds = array<i64: 1, 384>}, {pipeline_mode = #tpu.pipeline_mode<synchronous>, transform_indices = @transform_12, window_bounds = array<i64: 1, 128>}, {pipeline_mode = #tpu.pipeline_mode<synchronous>, transform_indices = @transform_13, window_bounds = array<i64: 1, 128>}, {pipeline_mode = #tpu.pipeline_mode<synchronous>, transform_indices = @transform_14, window_bounds = array<i64: 128, 128>}, {pipeline_mode = #tpu.pipeline_mode<synchronous>, transform_indices = @transform_15, window_bounds = array<i64: 1, 128>}, {pipeline_mode = #tpu.pipeline_mode<synchronous>, transform_indices = @transform_16, window_bounds = array<i64: 1, 128>}, {pipeline_mode = #tpu.pipeline_mode<synchronous>, transform_indices = @transform_17, window_bounds = array<i64: 1, 128>}, {pipeline_mode = #tpu.pipeline_mode<synchronous>, transform_indices = @transform_18, window_bounds = array<i64: 128, 256>}, {pipeline_mode = #tpu.pipeline_mode<synchronous>, transform_indices = @transform_19, window_bounds = array<i64: 1, 256>}, {pipeline_mode = #tpu.pipeline_mode<synchronous>, transform_indices = @transform_20, window_bounds = array<i64: 15, 128>}, {pipeline_mode = #tpu.pipeline_mode<synchronous>, transform_indices = @transform_21, window_bounds = array<i64: 1, 128>}, {pipeline_mode = #tpu.pipeline_mode<synchronous>, transform_indices = @transform_22, window_bounds = array<i64: 1, 128>}, {pipeline_mode = #tpu.pipeline_mode<synchronous>, transform_indices = @transform_23, window_bounds = array<i64: 1, 128>}, {pipeline_mode = #tpu.pipeline_mode<synchronous>, transform_indices = @transform_24, window_bounds = array<i64: 128, 128>}, {pipeline_mode = #tpu.pipeline_mode<synchronous>, transform_indices = @transform_25, window_bounds = array<i64: 1, 128>}, {pipeline_mode = #tpu.pipeline_mode<synchronous>, transform_indices = @transform_26, window_bounds = array<i64: 1, 128>}, {pipeline_mode = #tpu.pipeline_mode<synchronous>, transform_indices = @transform_27, window_bounds = array<i64: 1, 128>}, {pipeline_mode = #tpu.pipeline_mode<synchronous>, transform_indices = @transform_28, window_bounds = array<i64: 128, 256>}, {pipeline_mode = #tpu.pipeline_mode<synchronous>, transform_indices = @transform_29, window_bounds = array<i64: 1, 256>}, {pipeline_mode = #tpu.pipeline_mode<synchronous>, transform_indices = @transform_30, window_bounds = array<i64: 256, 128>}, {pipeline_mode = #tpu.pipeline_mode<synchronous>, transform_indices = @transform_31, window_bounds = array<i64: 1, 128>}, {pipeline_mode = #tpu.pipeline_mode<synchronous>, transform_indices = @transform_32, window_bounds = array<i64: 1, 128>}, {pipeline_mode = #tpu.pipeline_mode<synchronous>, transform_indices = @transform_33, window_bounds = array<i64: 1, 128>}, {transform_indices = @transform_34, window_bounds = array<i64: 1, 16, 128>}]} {
    %c0 = arith.constant 0 : index
    %c0_0 = arith.constant 0 : index
    %c0_1 = arith.constant 0 : index
    %0 = vector.load %arg1[%c0, %c0_0, %c0_1] : memref<1x16x128xbf16, #tpu.memory_space<vmem>>, vector<1x16x128xbf16>
    %1 = vector.shape_cast %0 : vector<1x16x128xbf16> to vector<16x128xbf16>
    %2 = arith.extf %1 : vector<16x128xbf16> to vector<16x128xf32>
    %c0_2 = arith.constant 0 : index
    %c0_3 = arith.constant 0 : index
    %3 = vector.load %arg3[%c0_2, %c0_3] : memref<1x128xf32, #tpu.memory_space<vmem>>, vector<1x128xf32>
    %c0_4 = arith.constant 0 : index
    %c0_5 = arith.constant 0 : index
    %4 = vector.load %arg4[%c0_4, %c0_5] : memref<1x128xf32, #tpu.memory_space<vmem>>, vector<1x128xf32>
    %cst = arith.constant dense<0.000000e+00> : vector<16xf32>
    %5 = vector.multi_reduction <add>, %2, %cst [1] : vector<16x128xf32> to vector<16xf32>
    %6 = vector.shape_cast %5 : vector<16xf32> to vector<16x1xf32>
    %cst_6 = arith.constant 1.280000e+02 : f32
    %7 = vector.broadcast %cst_6 : f32 to vector<16x1xf32>
    %8 = arith.divf %6, %7 : vector<16x1xf32>
    %9 = vector.broadcast %8 : vector<16x1xf32> to vector<16x128xf32>
    %10 = arith.subf %2, %9 : vector<16x128xf32>
    %11 = arith.mulf %10, %10 : vector<16x128xf32>
    %cst_7 = arith.constant dense<0.000000e+00> : vector<16xf32>
    %12 = vector.multi_reduction <add>, %11, %cst_7 [1] : vector<16x128xf32> to vector<16xf32>
    %13 = vector.shape_cast %12 : vector<16xf32> to vector<16x1xf32>
    %cst_8 = arith.constant 1.280000e+02 : f32
    %14 = vector.broadcast %cst_8 : f32 to vector<16x1xf32>
    %15 = arith.divf %13, %14 : vector<16x1xf32>
    %16 = vector.broadcast %8 : vector<16x1xf32> to vector<16x128xf32>
    %17 = arith.subf %2, %16 : vector<16x128xf32>
    %cst_9 = arith.constant 9.99999974E-6 : f32
    %18 = vector.broadcast %cst_9 : f32 to vector<16x1xf32>
    %19 = arith.addf %15, %18 : vector<16x1xf32>
    %20 = math.rsqrt %19 : vector<16x1xf32>
    %21 = vector.broadcast %20 : vector<16x1xf32> to vector<16x128xf32>
    %22 = arith.mulf %17, %21 : vector<16x128xf32>
    %23 = vector.broadcast %3 : vector<1x128xf32> to vector<16x128xf32>
    %24 = arith.mulf %22, %23 : vector<16x128xf32>
    %25 = vector.broadcast %4 : vector<1x128xf32> to vector<16x128xf32>
    %26 = arith.addf %24, %25 : vector<16x128xf32>
    %27 = arith.truncf %26 : vector<16x128xf32> to vector<16x128xbf16>
    %c0_10 = arith.constant 0 : index
    %c0_11 = arith.constant 0 : index
    %28 = vector.load %arg5[%c0_10, %c0_11] : memref<128x256xbf16, #tpu.memory_space<vmem>>, vector<128x256xbf16>
    %cst_12 = arith.constant dense<0.000000e+00> : vector<16x256xf32>
    %29 = tpu.matmul %27, %28, %cst_12 {dimension_numbers = #tpu.dot_dimension_numbers<[1], [0], [0], [1], [0, 0, 1, 1], [], []>} : vector<16x128xbf16>, vector<128x256xbf16>, vector<16x256xf32> -> vector<16x256xf32>
    %c0_13 = arith.constant 0 : index
    %c0_14 = arith.constant 0 : index
    %30 = vector.load %arg6[%c0_13, %c0_14] : memref<1x256xf32, #tpu.memory_space<vmem>>, vector<1x256xf32>
    %31 = vector.broadcast %30 : vector<1x256xf32> to vector<16x256xf32>
    %32 = arith.addf %29, %31 : vector<16x256xf32>
    %33 = arith.negf %32 : vector<16x256xf32>
    %34 = math.exp %33 : vector<16x256xf32>
    %cst_15 = arith.constant 1.000000e+00 : f32
    %35 = vector.broadcast %cst_15 : f32 to vector<16x256xf32>
    %36 = arith.addf %35, %34 : vector<16x256xf32>
    %37 = arith.divf %35, %36 : vector<16x256xf32>
    %38 = arith.mulf %32, %37 : vector<16x256xf32>
    %39 = arith.truncf %38 : vector<16x256xf32> to vector<16x256xbf16>
    %c0_16 = arith.constant 0 : index
    %c0_17 = arith.constant 0 : index
    %40 = vector.load %arg7[%c0_16, %c0_17] : memref<256x128xbf16, #tpu.memory_space<vmem>>, vector<256x128xbf16>
    %cst_18 = arith.constant dense<0.000000e+00> : vector<16x128xf32>
    %41 = tpu.matmul %39, %40, %cst_18 {dimension_numbers = #tpu.dot_dimension_numbers<[1], [0], [0], [1], [0, 0, 1, 1], [], []>} : vector<16x256xbf16>, vector<256x128xbf16>, vector<16x128xf32> -> vector<16x128xf32>
    %c0_19 = arith.constant 0 : index
    %c0_20 = arith.constant 0 : index
    %42 = vector.load %arg8[%c0_19, %c0_20] : memref<1x128xf32, #tpu.memory_space<vmem>>, vector<1x128xf32>
    %43 = vector.broadcast %42 : vector<1x128xf32> to vector<16x128xf32>
    %44 = arith.addf %41, %43 : vector<16x128xf32>
    %cst_21 = arith.constant 5.000000e-01 : f32
    %45 = vector.broadcast %cst_21 : f32 to vector<16x128xf32>
    %46 = arith.mulf %45, %44 : vector<16x128xf32>
    %47 = arith.addf %2, %46 : vector<16x128xf32>
    %c0_22 = arith.constant 0 : index
    %c0_23 = arith.constant 0 : index
    %48 = vector.load %arg9[%c0_22, %c0_23] : memref<1x128xf32, #tpu.memory_space<vmem>>, vector<1x128xf32>
    %c0_24 = arith.constant 0 : index
    %c0_25 = arith.constant 0 : index
    %49 = vector.load %arg10[%c0_24, %c0_25] : memref<1x128xf32, #tpu.memory_space<vmem>>, vector<1x128xf32>
    %cst_26 = arith.constant dense<0.000000e+00> : vector<16xf32>
    %50 = vector.multi_reduction <add>, %47, %cst_26 [1] : vector<16x128xf32> to vector<16xf32>
    %51 = vector.shape_cast %50 : vector<16xf32> to vector<16x1xf32>
    %cst_27 = arith.constant 1.280000e+02 : f32
    %52 = vector.broadcast %cst_27 : f32 to vector<16x1xf32>
    %53 = arith.divf %51, %52 : vector<16x1xf32>
    %54 = vector.broadcast %53 : vector<16x1xf32> to vector<16x128xf32>
    %55 = arith.subf %47, %54 : vector<16x128xf32>
    %56 = arith.mulf %55, %55 : vector<16x128xf32>
    %cst_28 = arith.constant dense<0.000000e+00> : vector<16xf32>
    %57 = vector.multi_reduction <add>, %56, %cst_28 [1] : vector<16x128xf32> to vector<16xf32>
    %58 = vector.shape_cast %57 : vector<16xf32> to vector<16x1xf32>
    %cst_29 = arith.constant 1.280000e+02 : f32
    %59 = vector.broadcast %cst_29 : f32 to vector<16x1xf32>
    %60 = arith.divf %58, %59 : vector<16x1xf32>
    %61 = vector.broadcast %53 : vector<16x1xf32> to vector<16x128xf32>
    %62 = arith.subf %47, %61 : vector<16x128xf32>
    %cst_30 = arith.constant 9.99999974E-6 : f32
    %63 = vector.broadcast %cst_30 : f32 to vector<16x1xf32>
    %64 = arith.addf %60, %63 : vector<16x1xf32>
    %65 = math.rsqrt %64 : vector<16x1xf32>
    %66 = vector.broadcast %65 : vector<16x1xf32> to vector<16x128xf32>
    %67 = arith.mulf %62, %66 : vector<16x128xf32>
    %68 = vector.broadcast %48 : vector<1x128xf32> to vector<16x128xf32>
    %69 = arith.mulf %67, %68 : vector<16x128xf32>
    %70 = vector.broadcast %49 : vector<1x128xf32> to vector<16x128xf32>
    %71 = arith.addf %69, %70 : vector<16x128xf32>
    %72 = arith.truncf %71 : vector<16x128xf32> to vector<16x128xbf16>
    %c0_31 = arith.constant 0 : index
    %c0_32 = arith.constant 0 : index
    %73 = vector.load %arg11[%c0_31, %c0_32] : memref<128x384xbf16, #tpu.memory_space<vmem>>, vector<128x384xbf16>
    %cst_33 = arith.constant dense<0.000000e+00> : vector<16x384xf32>
    %74 = tpu.matmul %72, %73, %cst_33 {dimension_numbers = #tpu.dot_dimension_numbers<[1], [0], [0], [1], [0, 0, 1, 1], [], []>} : vector<16x128xbf16>, vector<128x384xbf16>, vector<16x384xf32> -> vector<16x384xf32>
    %c0_34 = arith.constant 0 : index
    %c0_35 = arith.constant 0 : index
    %75 = vector.load %arg12[%c0_34, %c0_35] : memref<1x384xf32, #tpu.memory_space<vmem>>, vector<1x384xf32>
    %76 = vector.broadcast %75 : vector<1x384xf32> to vector<16x384xf32>
    %77 = arith.addf %74, %76 : vector<16x384xf32>
    %78 = vector.extract_strided_slice %77 {offsets = [0, 0], sizes = [16, 128], strides = [1, 1]} : vector<16x384xf32> to vector<16x128xf32>
    %79 = vector.extract_strided_slice %77 {offsets = [0, 128], sizes = [16, 128], strides = [1, 1]} : vector<16x384xf32> to vector<16x128xf32>
    %80 = arith.truncf %79 : vector<16x128xf32> to vector<16x128xbf16>
    %81 = vector.extract_strided_slice %77 {offsets = [0, 256], sizes = [16, 128], strides = [1, 1]} : vector<16x384xf32> to vector<16x128xf32>
    %82 = arith.truncf %81 : vector<16x128xf32> to vector<16x128xbf16>
    %c0_36 = arith.constant 0 : index
    %c0_37 = arith.constant 0 : index
    %83 = vector.load %arg2[%c0_36, %c0_37] : memref<16x128xf32, #tpu.memory_space<vmem>>, vector<16x128xf32>
    %84 = arith.truncf %83 : vector<16x128xf32> to vector<16x128xbf16>
    %c0_38 = arith.constant 0 : index
    %c0_39 = arith.constant 0 : index
    %85 = vector.load %arg13[%c0_38, %c0_39] : memref<1x128xf32, #tpu.memory_space<vmem>>, vector<1x128xf32>
    %86 = vector.broadcast %85 : vector<1x128xf32> to vector<16x128xf32>
    %87 = arith.addf %78, %86 : vector<16x128xf32>
    %88 = arith.truncf %87 : vector<16x128xf32> to vector<16x128xbf16>
    %c0_40 = arith.constant 0 : index
    %c0_41 = arith.constant 0 : index
    %89 = vector.load %arg14[%c0_40, %c0_41] : memref<1x128xf32, #tpu.memory_space<vmem>>, vector<1x128xf32>
    %90 = vector.broadcast %89 : vector<1x128xf32> to vector<16x128xf32>
    %91 = arith.addf %78, %90 : vector<16x128xf32>
    %92 = arith.truncf %91 : vector<16x128xf32> to vector<16x128xbf16>
    %93 = vector.extract_strided_slice %88 {offsets = [0, 0], sizes = [16, 32], strides = [1, 1]} : vector<16x128xbf16> to vector<16x32xbf16>
    %94 = vector.extract_strided_slice %80 {offsets = [0, 0], sizes = [16, 32], strides = [1, 1]} : vector<16x128xbf16> to vector<16x32xbf16>
    %cst_42 = arith.constant dense<0.000000e+00> : vector<16x16xf32>
    %95 = tpu.matmul %93, %94, %cst_42 {dimension_numbers = #tpu.dot_dimension_numbers<[1], [1], [0], [0], [0, 0, 1, 0], [], []>} : vector<16x32xbf16>, vector<16x32xbf16>, vector<16x16xf32> -> vector<16x16xf32>
    %96 = vector.extract_strided_slice %92 {offsets = [0, 0], sizes = [16, 32], strides = [1, 1]} : vector<16x128xbf16> to vector<16x32xbf16>
    %97 = vector.extract_strided_slice %84 {offsets = [0, 0], sizes = [16, 32], strides = [1, 1]} : vector<16x128xbf16> to vector<16x32xbf16>
    %cst_43 = arith.constant dense<0.000000e+00> : vector<16x16xf32>
    %98 = tpu.matmul %96, %97, %cst_43 {dimension_numbers = #tpu.dot_dimension_numbers<[1], [1], [0], [0], [0, 0, 1, 0], [], []>} : vector<16x32xbf16>, vector<16x32xbf16>, vector<16x16xf32> -> vector<16x16xf32>
    %99 = arith.addf %95, %98 : vector<16x16xf32>
    %cst_44 = arith.constant 0.176776692 : f32
    %100 = vector.broadcast %cst_44 : f32 to vector<16x16xf32>
    %101 = arith.mulf %99, %100 : vector<16x16xf32>
    %cst_45 = arith.constant dense<0xFF800000> : vector<16xf32>
    %102 = vector.multi_reduction <maximumf>, %101, %cst_45 [1] : vector<16x16xf32> to vector<16xf32>
    %103 = vector.shape_cast %102 : vector<16xf32> to vector<16x1xf32>
    %104 = vector.broadcast %103 : vector<16x1xf32> to vector<16x16xf32>
    %105 = arith.subf %101, %104 : vector<16x16xf32>
    %106 = math.exp %105 : vector<16x16xf32>
    %cst_46 = arith.constant dense<0.000000e+00> : vector<16xf32>
    %107 = vector.multi_reduction <add>, %106, %cst_46 [1] : vector<16x16xf32> to vector<16xf32>
    %108 = vector.shape_cast %107 : vector<16xf32> to vector<16x1xf32>
    %109 = tpu.reciprocal %108 {approx = true} : vector<16x1xf32> -> vector<16x1xf32>
    %110 = vector.broadcast %109 : vector<16x1xf32> to vector<16x16xf32>
    %111 = arith.mulf %106, %110 : vector<16x16xf32>
    %112 = arith.truncf %111 : vector<16x16xf32> to vector<16x16xbf16>
    %113 = vector.extract_strided_slice %82 {offsets = [0, 0], sizes = [16, 32], strides = [1, 1]} : vector<16x128xbf16> to vector<16x32xbf16>
    %cst_47 = arith.constant dense<0.000000e+00> : vector<16x32xf32>
    %114 = tpu.matmul %112, %113, %cst_47 {dimension_numbers = #tpu.dot_dimension_numbers<[1], [0], [0], [1], [0, 0, 1, 1], [], []>} : vector<16x16xbf16>, vector<16x32xbf16>, vector<16x32xf32> -> vector<16x32xf32>
    %115 = vector.extract_strided_slice %88 {offsets = [0, 32], sizes = [16, 32], strides = [1, 1]} : vector<16x128xbf16> to vector<16x32xbf16>
    %116 = vector.extract_strided_slice %80 {offsets = [0, 32], sizes = [16, 32], strides = [1, 1]} : vector<16x128xbf16> to vector<16x32xbf16>
    %cst_48 = arith.constant dense<0.000000e+00> : vector<16x16xf32>
    %117 = tpu.matmul %115, %116, %cst_48 {dimension_numbers = #tpu.dot_dimension_numbers<[1], [1], [0], [0], [0, 0, 1, 0], [], []>} : vector<16x32xbf16>, vector<16x32xbf16>, vector<16x16xf32> -> vector<16x16xf32>
    %118 = vector.extract_strided_slice %92 {offsets = [0, 32], sizes = [16, 32], strides = [1, 1]} : vector<16x128xbf16> to vector<16x32xbf16>
    %119 = vector.extract_strided_slice %84 {offsets = [0, 32], sizes = [16, 32], strides = [1, 1]} : vector<16x128xbf16> to vector<16x32xbf16>
    %cst_49 = arith.constant dense<0.000000e+00> : vector<16x16xf32>
    %120 = tpu.matmul %118, %119, %cst_49 {dimension_numbers = #tpu.dot_dimension_numbers<[1], [1], [0], [0], [0, 0, 1, 0], [], []>} : vector<16x32xbf16>, vector<16x32xbf16>, vector<16x16xf32> -> vector<16x16xf32>
    %121 = arith.addf %117, %120 : vector<16x16xf32>
    %cst_50 = arith.constant 0.176776692 : f32
    %122 = vector.broadcast %cst_50 : f32 to vector<16x16xf32>
    %123 = arith.mulf %121, %122 : vector<16x16xf32>
    %cst_51 = arith.constant dense<0xFF800000> : vector<16xf32>
    %124 = vector.multi_reduction <maximumf>, %123, %cst_51 [1] : vector<16x16xf32> to vector<16xf32>
    %125 = vector.shape_cast %124 : vector<16xf32> to vector<16x1xf32>
    %126 = vector.broadcast %125 : vector<16x1xf32> to vector<16x16xf32>
    %127 = arith.subf %123, %126 : vector<16x16xf32>
    %128 = math.exp %127 : vector<16x16xf32>
    %cst_52 = arith.constant dense<0.000000e+00> : vector<16xf32>
    %129 = vector.multi_reduction <add>, %128, %cst_52 [1] : vector<16x16xf32> to vector<16xf32>
    %130 = vector.shape_cast %129 : vector<16xf32> to vector<16x1xf32>
    %131 = tpu.reciprocal %130 {approx = true} : vector<16x1xf32> -> vector<16x1xf32>
    %132 = vector.broadcast %131 : vector<16x1xf32> to vector<16x16xf32>
    %133 = arith.mulf %128, %132 : vector<16x16xf32>
    %134 = arith.truncf %133 : vector<16x16xf32> to vector<16x16xbf16>
    %135 = vector.extract_strided_slice %82 {offsets = [0, 32], sizes = [16, 32], strides = [1, 1]} : vector<16x128xbf16> to vector<16x32xbf16>
    %cst_53 = arith.constant dense<0.000000e+00> : vector<16x32xf32>
    %136 = tpu.matmul %134, %135, %cst_53 {dimension_numbers = #tpu.dot_dimension_numbers<[1], [0], [0], [1], [0, 0, 1, 1], [], []>} : vector<16x16xbf16>, vector<16x32xbf16>, vector<16x32xf32> -> vector<16x32xf32>
    %137 = vector.extract_strided_slice %88 {offsets = [0, 64], sizes = [16, 32], strides = [1, 1]} : vector<16x128xbf16> to vector<16x32xbf16>
    %138 = vector.extract_strided_slice %80 {offsets = [0, 64], sizes = [16, 32], strides = [1, 1]} : vector<16x128xbf16> to vector<16x32xbf16>
    %cst_54 = arith.constant dense<0.000000e+00> : vector<16x16xf32>
    %139 = tpu.matmul %137, %138, %cst_54 {dimension_numbers = #tpu.dot_dimension_numbers<[1], [1], [0], [0], [0, 0, 1, 0], [], []>} : vector<16x32xbf16>, vector<16x32xbf16>, vector<16x16xf32> -> vector<16x16xf32>
    %140 = vector.extract_strided_slice %92 {offsets = [0, 64], sizes = [16, 32], strides = [1, 1]} : vector<16x128xbf16> to vector<16x32xbf16>
    %141 = vector.extract_strided_slice %84 {offsets = [0, 64], sizes = [16, 32], strides = [1, 1]} : vector<16x128xbf16> to vector<16x32xbf16>
    %cst_55 = arith.constant dense<0.000000e+00> : vector<16x16xf32>
    %142 = tpu.matmul %140, %141, %cst_55 {dimension_numbers = #tpu.dot_dimension_numbers<[1], [1], [0], [0], [0, 0, 1, 0], [], []>} : vector<16x32xbf16>, vector<16x32xbf16>, vector<16x16xf32> -> vector<16x16xf32>
    %143 = arith.addf %139, %142 : vector<16x16xf32>
    %cst_56 = arith.constant 0.176776692 : f32
    %144 = vector.broadcast %cst_56 : f32 to vector<16x16xf32>
    %145 = arith.mulf %143, %144 : vector<16x16xf32>
    %cst_57 = arith.constant dense<0xFF800000> : vector<16xf32>
    %146 = vector.multi_reduction <maximumf>, %145, %cst_57 [1] : vector<16x16xf32> to vector<16xf32>
    %147 = vector.shape_cast %146 : vector<16xf32> to vector<16x1xf32>
    %148 = vector.broadcast %147 : vector<16x1xf32> to vector<16x16xf32>
    %149 = arith.subf %145, %148 : vector<16x16xf32>
    %150 = math.exp %149 : vector<16x16xf32>
    %cst_58 = arith.constant dense<0.000000e+00> : vector<16xf32>
    %151 = vector.multi_reduction <add>, %150, %cst_58 [1] : vector<16x16xf32> to vector<16xf32>
    %152 = vector.shape_cast %151 : vector<16xf32> to vector<16x1xf32>
    %153 = tpu.reciprocal %152 {approx = true} : vector<16x1xf32> -> vector<16x1xf32>
    %154 = vector.broadcast %153 : vector<16x1xf32> to vector<16x16xf32>
    %155 = arith.mulf %150, %154 : vector<16x16xf32>
    %156 = arith.truncf %155 : vector<16x16xf32> to vector<16x16xbf16>
    %157 = vector.extract_strided_slice %82 {offsets = [0, 64], sizes = [16, 32], strides = [1, 1]} : vector<16x128xbf16> to vector<16x32xbf16>
    %cst_59 = arith.constant dense<0.000000e+00> : vector<16x32xf32>
    %158 = tpu.matmul %156, %157, %cst_59 {dimension_numbers = #tpu.dot_dimension_numbers<[1], [0], [0], [1], [0, 0, 1, 1], [], []>} : vector<16x16xbf16>, vector<16x32xbf16>, vector<16x32xf32> -> vector<16x32xf32>
    %159 = vector.extract_strided_slice %88 {offsets = [0, 96], sizes = [16, 32], strides = [1, 1]} : vector<16x128xbf16> to vector<16x32xbf16>
    %160 = vector.extract_strided_slice %80 {offsets = [0, 96], sizes = [16, 32], strides = [1, 1]} : vector<16x128xbf16> to vector<16x32xbf16>
    %cst_60 = arith.constant dense<0.000000e+00> : vector<16x16xf32>
    %161 = tpu.matmul %159, %160, %cst_60 {dimension_numbers = #tpu.dot_dimension_numbers<[1], [1], [0], [0], [0, 0, 1, 0], [], []>} : vector<16x32xbf16>, vector<16x32xbf16>, vector<16x16xf32> -> vector<16x16xf32>
    %162 = vector.extract_strided_slice %92 {offsets = [0, 96], sizes = [16, 32], strides = [1, 1]} : vector<16x128xbf16> to vector<16x32xbf16>
    %163 = vector.extract_strided_slice %84 {offsets = [0, 96], sizes = [16, 32], strides = [1, 1]} : vector<16x128xbf16> to vector<16x32xbf16>
    %cst_61 = arith.constant dense<0.000000e+00> : vector<16x16xf32>
    %164 = tpu.matmul %162, %163, %cst_61 {dimension_numbers = #tpu.dot_dimension_numbers<[1], [1], [0], [0], [0, 0, 1, 0], [], []>} : vector<16x32xbf16>, vector<16x32xbf16>, vector<16x16xf32> -> vector<16x16xf32>
    %165 = arith.addf %161, %164 : vector<16x16xf32>
    %cst_62 = arith.constant 0.176776692 : f32
    %166 = vector.broadcast %cst_62 : f32 to vector<16x16xf32>
    %167 = arith.mulf %165, %166 : vector<16x16xf32>
    %cst_63 = arith.constant dense<0xFF800000> : vector<16xf32>
    %168 = vector.multi_reduction <maximumf>, %167, %cst_63 [1] : vector<16x16xf32> to vector<16xf32>
    %169 = vector.shape_cast %168 : vector<16xf32> to vector<16x1xf32>
    %170 = vector.broadcast %169 : vector<16x1xf32> to vector<16x16xf32>
    %171 = arith.subf %167, %170 : vector<16x16xf32>
    %172 = math.exp %171 : vector<16x16xf32>
    %cst_64 = arith.constant dense<0.000000e+00> : vector<16xf32>
    %173 = vector.multi_reduction <add>, %172, %cst_64 [1] : vector<16x16xf32> to vector<16xf32>
    %174 = vector.shape_cast %173 : vector<16xf32> to vector<16x1xf32>
    %175 = tpu.reciprocal %174 {approx = true} : vector<16x1xf32> -> vector<16x1xf32>
    %176 = vector.broadcast %175 : vector<16x1xf32> to vector<16x16xf32>
    %177 = arith.mulf %172, %176 : vector<16x16xf32>
    %178 = arith.truncf %177 : vector<16x16xf32> to vector<16x16xbf16>
    %179 = vector.extract_strided_slice %82 {offsets = [0, 96], sizes = [16, 32], strides = [1, 1]} : vector<16x128xbf16> to vector<16x32xbf16>
    %cst_65 = arith.constant dense<0.000000e+00> : vector<16x32xf32>
    %180 = tpu.matmul %178, %179, %cst_65 {dimension_numbers = #tpu.dot_dimension_numbers<[1], [0], [0], [1], [0, 0, 1, 1], [], []>} : vector<16x16xbf16>, vector<16x32xbf16>, vector<16x32xf32> -> vector<16x32xf32>
    %181 = tpu.concatenate %114, %136, %158, %180 in 1 : vector<16x32xf32>, vector<16x32xf32>, vector<16x32xf32>, vector<16x32xf32> -> vector<16x128xf32>
    %182 = arith.truncf %181 : vector<16x128xf32> to vector<16x128xbf16>
    %c0_66 = arith.constant 0 : index
    %c0_67 = arith.constant 0 : index
    %183 = vector.load %arg15[%c0_66, %c0_67] : memref<128x128xbf16, #tpu.memory_space<vmem>>, vector<128x128xbf16>
    %cst_68 = arith.constant dense<0.000000e+00> : vector<16x128xf32>
    %184 = tpu.matmul %182, %183, %cst_68 {dimension_numbers = #tpu.dot_dimension_numbers<[1], [0], [0], [1], [0, 0, 1, 1], [], []>} : vector<16x128xbf16>, vector<128x128xbf16>, vector<16x128xf32> -> vector<16x128xf32>
    %185 = arith.addf %47, %184 : vector<16x128xf32>
    %c0_69 = arith.constant 0 : index
    %c0_70 = arith.constant 0 : index
    %186 = vector.load %arg16[%c0_69, %c0_70] : memref<1x128xf32, #tpu.memory_space<vmem>>, vector<1x128xf32>
    %187 = vector.broadcast %186 : vector<1x128xf32> to vector<16x128xf32>
    %188 = arith.addf %185, %187 : vector<16x128xf32>
    %c0_71 = arith.constant 0 : index
    %c0_72 = arith.constant 0 : index
    %189 = vector.load %arg17[%c0_71, %c0_72] : memref<1x128xf32, #tpu.memory_space<vmem>>, vector<1x128xf32>
    %c0_73 = arith.constant 0 : index
    %c0_74 = arith.constant 0 : index
    %190 = vector.load %arg18[%c0_73, %c0_74] : memref<1x128xf32, #tpu.memory_space<vmem>>, vector<1x128xf32>
    %cst_75 = arith.constant dense<0.000000e+00> : vector<16xf32>
    %191 = vector.multi_reduction <add>, %188, %cst_75 [1] : vector<16x128xf32> to vector<16xf32>
    %192 = vector.shape_cast %191 : vector<16xf32> to vector<16x1xf32>
    %cst_76 = arith.constant 1.280000e+02 : f32
    %193 = vector.broadcast %cst_76 : f32 to vector<16x1xf32>
    %194 = arith.divf %192, %193 : vector<16x1xf32>
    %195 = vector.broadcast %194 : vector<16x1xf32> to vector<16x128xf32>
    %196 = arith.subf %188, %195 : vector<16x128xf32>
    %197 = arith.mulf %196, %196 : vector<16x128xf32>
    %cst_77 = arith.constant dense<0.000000e+00> : vector<16xf32>
    %198 = vector.multi_reduction <add>, %197, %cst_77 [1] : vector<16x128xf32> to vector<16xf32>
    %199 = vector.shape_cast %198 : vector<16xf32> to vector<16x1xf32>
    %cst_78 = arith.constant 1.280000e+02 : f32
    %200 = vector.broadcast %cst_78 : f32 to vector<16x1xf32>
    %201 = arith.divf %199, %200 : vector<16x1xf32>
    %202 = vector.broadcast %194 : vector<16x1xf32> to vector<16x128xf32>
    %203 = arith.subf %188, %202 : vector<16x128xf32>
    %cst_79 = arith.constant 9.99999974E-6 : f32
    %204 = vector.broadcast %cst_79 : f32 to vector<16x1xf32>
    %205 = arith.addf %201, %204 : vector<16x1xf32>
    %206 = math.rsqrt %205 : vector<16x1xf32>
    %207 = vector.broadcast %206 : vector<16x1xf32> to vector<16x128xf32>
    %208 = arith.mulf %203, %207 : vector<16x128xf32>
    %209 = vector.broadcast %189 : vector<1x128xf32> to vector<16x128xf32>
    %210 = arith.mulf %208, %209 : vector<16x128xf32>
    %211 = vector.broadcast %190 : vector<1x128xf32> to vector<16x128xf32>
    %212 = arith.addf %210, %211 : vector<16x128xf32>
    %213 = arith.truncf %212 : vector<16x128xf32> to vector<16x128xbf16>
    %c0_80 = arith.constant 0 : index
    %c0_81 = arith.constant 0 : index
    %214 = vector.load %arg19[%c0_80, %c0_81] : memref<128x256xbf16, #tpu.memory_space<vmem>>, vector<128x256xbf16>
    %cst_82 = arith.constant dense<0.000000e+00> : vector<16x256xf32>
    %215 = tpu.matmul %213, %214, %cst_82 {dimension_numbers = #tpu.dot_dimension_numbers<[1], [0], [0], [1], [0, 0, 1, 1], [], []>} : vector<16x128xbf16>, vector<128x256xbf16>, vector<16x256xf32> -> vector<16x256xf32>
    %c0_83 = arith.constant 0 : index
    %c0_84 = arith.constant 0 : index
    %216 = vector.load %arg20[%c0_83, %c0_84] : memref<1x256xf32, #tpu.memory_space<vmem>>, vector<1x256xf32>
    %217 = vector.broadcast %216 : vector<1x256xf32> to vector<16x256xf32>
    %218 = arith.addf %215, %217 : vector<16x256xf32>
    %219 = vector.extract_strided_slice %218 {offsets = [0, 0], sizes = [16, 128], strides = [1, 1]} : vector<16x256xf32> to vector<16x128xf32>
    %220 = vector.extract_strided_slice %218 {offsets = [0, 128], sizes = [16, 128], strides = [1, 1]} : vector<16x256xf32> to vector<16x128xf32>
    %221 = arith.negf %220 : vector<16x128xf32>
    %222 = math.exp %221 : vector<16x128xf32>
    %cst_85 = arith.constant 1.000000e+00 : f32
    %223 = vector.broadcast %cst_85 : f32 to vector<16x128xf32>
    %224 = arith.addf %223, %222 : vector<16x128xf32>
    %225 = arith.divf %223, %224 : vector<16x128xf32>
    %226 = arith.mulf %219, %225 : vector<16x128xf32>
    %cst_86 = arith.constant 0.000000e+00 : f32
    %227 = vector.broadcast %cst_86 : f32 to vector<7x128xf32>
    %228 = tpu.concatenate %227, %226, %227 in 0 : vector<7x128xf32>, vector<16x128xf32>, vector<7x128xf32> -> vector<30x128xf32>
    %c0_87 = arith.constant 0 : index
    %c0_88 = arith.constant 0 : index
    %229 = vector.load %arg21[%c0_87, %c0_88] : memref<15x128xf32, #tpu.memory_space<vmem>>, vector<15x128xf32>
    %cst_89 = arith.constant 0.000000e+00 : f32
    %230 = vector.broadcast %cst_89 : f32 to vector<16x128xf32>
    %231 = vector.extract_strided_slice %228 {offsets = [0, 0], sizes = [16, 128], strides = [1, 1]} : vector<30x128xf32> to vector<16x128xf32>
    %232 = vector.extract_strided_slice %229 {offsets = [0, 0], sizes = [1, 128], strides = [1, 1]} : vector<15x128xf32> to vector<1x128xf32>
    %233 = vector.broadcast %232 : vector<1x128xf32> to vector<16x128xf32>
    %234 = arith.mulf %231, %233 : vector<16x128xf32>
    %235 = arith.addf %230, %234 : vector<16x128xf32>
    %236 = vector.extract_strided_slice %228 {offsets = [1, 0], sizes = [16, 128], strides = [1, 1]} : vector<30x128xf32> to vector<16x128xf32>
    %237 = vector.extract_strided_slice %229 {offsets = [1, 0], sizes = [1, 128], strides = [1, 1]} : vector<15x128xf32> to vector<1x128xf32>
    %238 = vector.broadcast %237 : vector<1x128xf32> to vector<16x128xf32>
    %239 = arith.mulf %236, %238 : vector<16x128xf32>
    %240 = arith.addf %235, %239 : vector<16x128xf32>
    %241 = vector.extract_strided_slice %228 {offsets = [2, 0], sizes = [16, 128], strides = [1, 1]} : vector<30x128xf32> to vector<16x128xf32>
    %242 = vector.extract_strided_slice %229 {offsets = [2, 0], sizes = [1, 128], strides = [1, 1]} : vector<15x128xf32> to vector<1x128xf32>
    %243 = vector.broadcast %242 : vector<1x128xf32> to vector<16x128xf32>
    %244 = arith.mulf %241, %243 : vector<16x128xf32>
    %245 = arith.addf %240, %244 : vector<16x128xf32>
    %246 = vector.extract_strided_slice %228 {offsets = [3, 0], sizes = [16, 128], strides = [1, 1]} : vector<30x128xf32> to vector<16x128xf32>
    %247 = vector.extract_strided_slice %229 {offsets = [3, 0], sizes = [1, 128], strides = [1, 1]} : vector<15x128xf32> to vector<1x128xf32>
    %248 = vector.broadcast %247 : vector<1x128xf32> to vector<16x128xf32>
    %249 = arith.mulf %246, %248 : vector<16x128xf32>
    %250 = arith.addf %245, %249 : vector<16x128xf32>
    %251 = vector.extract_strided_slice %228 {offsets = [4, 0], sizes = [16, 128], strides = [1, 1]} : vector<30x128xf32> to vector<16x128xf32>
    %252 = vector.extract_strided_slice %229 {offsets = [4, 0], sizes = [1, 128], strides = [1, 1]} : vector<15x128xf32> to vector<1x128xf32>
    %253 = vector.broadcast %252 : vector<1x128xf32> to vector<16x128xf32>
    %254 = arith.mulf %251, %253 : vector<16x128xf32>
    %255 = arith.addf %250, %254 : vector<16x128xf32>
    %256 = vector.extract_strided_slice %228 {offsets = [5, 0], sizes = [16, 128], strides = [1, 1]} : vector<30x128xf32> to vector<16x128xf32>
    %257 = vector.extract_strided_slice %229 {offsets = [5, 0], sizes = [1, 128], strides = [1, 1]} : vector<15x128xf32> to vector<1x128xf32>
    %258 = vector.broadcast %257 : vector<1x128xf32> to vector<16x128xf32>
    %259 = arith.mulf %256, %258 : vector<16x128xf32>
    %260 = arith.addf %255, %259 : vector<16x128xf32>
    %261 = vector.extract_strided_slice %228 {offsets = [6, 0], sizes = [16, 128], strides = [1, 1]} : vector<30x128xf32> to vector<16x128xf32>
    %262 = vector.extract_strided_slice %229 {offsets = [6, 0], sizes = [1, 128], strides = [1, 1]} : vector<15x128xf32> to vector<1x128xf32>
    %263 = vector.broadcast %262 : vector<1x128xf32> to vector<16x128xf32>
    %264 = arith.mulf %261, %263 : vector<16x128xf32>
    %265 = arith.addf %260, %264 : vector<16x128xf32>
    %266 = vector.extract_strided_slice %228 {offsets = [7, 0], sizes = [16, 128], strides = [1, 1]} : vector<30x128xf32> to vector<16x128xf32>
    %267 = vector.extract_strided_slice %229 {offsets = [7, 0], sizes = [1, 128], strides = [1, 1]} : vector<15x128xf32> to vector<1x128xf32>
    %268 = vector.broadcast %267 : vector<1x128xf32> to vector<16x128xf32>
    %269 = arith.mulf %266, %268 : vector<16x128xf32>
    %270 = arith.addf %265, %269 : vector<16x128xf32>
    %271 = vector.extract_strided_slice %228 {offsets = [8, 0], sizes = [16, 128], strides = [1, 1]} : vector<30x128xf32> to vector<16x128xf32>
    %272 = vector.extract_strided_slice %229 {offsets = [8, 0], sizes = [1, 128], strides = [1, 1]} : vector<15x128xf32> to vector<1x128xf32>
    %273 = vector.broadcast %272 : vector<1x128xf32> to vector<16x128xf32>
    %274 = arith.mulf %271, %273 : vector<16x128xf32>
    %275 = arith.addf %270, %274 : vector<16x128xf32>
    %276 = vector.extract_strided_slice %228 {offsets = [9, 0], sizes = [16, 128], strides = [1, 1]} : vector<30x128xf32> to vector<16x128xf32>
    %277 = vector.extract_strided_slice %229 {offsets = [9, 0], sizes = [1, 128], strides = [1, 1]} : vector<15x128xf32> to vector<1x128xf32>
    %278 = vector.broadcast %277 : vector<1x128xf32> to vector<16x128xf32>
    %279 = arith.mulf %276, %278 : vector<16x128xf32>
    %280 = arith.addf %275, %279 : vector<16x128xf32>
    %281 = vector.extract_strided_slice %228 {offsets = [10, 0], sizes = [16, 128], strides = [1, 1]} : vector<30x128xf32> to vector<16x128xf32>
    %282 = vector.extract_strided_slice %229 {offsets = [10, 0], sizes = [1, 128], strides = [1, 1]} : vector<15x128xf32> to vector<1x128xf32>
    %283 = vector.broadcast %282 : vector<1x128xf32> to vector<16x128xf32>
    %284 = arith.mulf %281, %283 : vector<16x128xf32>
    %285 = arith.addf %280, %284 : vector<16x128xf32>
    %286 = vector.extract_strided_slice %228 {offsets = [11, 0], sizes = [16, 128], strides = [1, 1]} : vector<30x128xf32> to vector<16x128xf32>
    %287 = vector.extract_strided_slice %229 {offsets = [11, 0], sizes = [1, 128], strides = [1, 1]} : vector<15x128xf32> to vector<1x128xf32>
    %288 = vector.broadcast %287 : vector<1x128xf32> to vector<16x128xf32>
    %289 = arith.mulf %286, %288 : vector<16x128xf32>
    %290 = arith.addf %285, %289 : vector<16x128xf32>
    %291 = vector.extract_strided_slice %228 {offsets = [12, 0], sizes = [16, 128], strides = [1, 1]} : vector<30x128xf32> to vector<16x128xf32>
    %292 = vector.extract_strided_slice %229 {offsets = [12, 0], sizes = [1, 128], strides = [1, 1]} : vector<15x128xf32> to vector<1x128xf32>
    %293 = vector.broadcast %292 : vector<1x128xf32> to vector<16x128xf32>
    %294 = arith.mulf %291, %293 : vector<16x128xf32>
    %295 = arith.addf %290, %294 : vector<16x128xf32>
    %296 = vector.extract_strided_slice %228 {offsets = [13, 0], sizes = [16, 128], strides = [1, 1]} : vector<30x128xf32> to vector<16x128xf32>
    %297 = vector.extract_strided_slice %229 {offsets = [13, 0], sizes = [1, 128], strides = [1, 1]} : vector<15x128xf32> to vector<1x128xf32>
    %298 = vector.broadcast %297 : vector<1x128xf32> to vector<16x128xf32>
    %299 = arith.mulf %296, %298 : vector<16x128xf32>
    %300 = arith.addf %295, %299 : vector<16x128xf32>
    %301 = vector.extract_strided_slice %228 {offsets = [14, 0], sizes = [16, 128], strides = [1, 1]} : vector<30x128xf32> to vector<16x128xf32>
    %302 = vector.extract_strided_slice %229 {offsets = [14, 0], sizes = [1, 128], strides = [1, 1]} : vector<15x128xf32> to vector<1x128xf32>
    %303 = vector.broadcast %302 : vector<1x128xf32> to vector<16x128xf32>
    %304 = arith.mulf %301, %303 : vector<16x128xf32>
    %305 = arith.addf %300, %304 : vector<16x128xf32>
    %c0_90 = arith.constant 0 : index
    %c0_91 = arith.constant 0 : index
    %306 = vector.load %arg22[%c0_90, %c0_91] : memref<1x128xf32, #tpu.memory_space<vmem>>, vector<1x128xf32>
    %307 = vector.broadcast %306 : vector<1x128xf32> to vector<16x128xf32>
    %308 = arith.addf %305, %307 : vector<16x128xf32>
    %c0_92 = arith.constant 0 : index
    %c0_93 = arith.constant 0 : index
    %309 = vector.load %arg23[%c0_92, %c0_93] : memref<1x128xf32, #tpu.memory_space<vmem>>, vector<1x128xf32>
    %310 = vector.broadcast %309 : vector<1x128xf32> to vector<16x128xf32>
    %311 = arith.mulf %308, %310 : vector<16x128xf32>
    %c0_94 = arith.constant 0 : index
    %c0_95 = arith.constant 0 : index
    %312 = vector.load %arg24[%c0_94, %c0_95] : memref<1x128xf32, #tpu.memory_space<vmem>>, vector<1x128xf32>
    %313 = vector.broadcast %312 : vector<1x128xf32> to vector<16x128xf32>
    %314 = arith.addf %311, %313 : vector<16x128xf32>
    %315 = arith.negf %314 : vector<16x128xf32>
    %316 = math.exp %315 : vector<16x128xf32>
    %cst_96 = arith.constant 1.000000e+00 : f32
    %317 = vector.broadcast %cst_96 : f32 to vector<16x128xf32>
    %318 = arith.addf %317, %316 : vector<16x128xf32>
    %319 = arith.divf %317, %318 : vector<16x128xf32>
    %320 = arith.mulf %314, %319 : vector<16x128xf32>
    %321 = arith.truncf %320 : vector<16x128xf32> to vector<16x128xbf16>
    %c0_97 = arith.constant 0 : index
    %c0_98 = arith.constant 0 : index
    %322 = vector.load %arg25[%c0_97, %c0_98] : memref<128x128xbf16, #tpu.memory_space<vmem>>, vector<128x128xbf16>
    %cst_99 = arith.constant dense<0.000000e+00> : vector<16x128xf32>
    %323 = tpu.matmul %321, %322, %cst_99 {dimension_numbers = #tpu.dot_dimension_numbers<[1], [0], [0], [1], [0, 0, 1, 1], [], []>} : vector<16x128xbf16>, vector<128x128xbf16>, vector<16x128xf32> -> vector<16x128xf32>
    %c0_100 = arith.constant 0 : index
    %c0_101 = arith.constant 0 : index
    %324 = vector.load %arg26[%c0_100, %c0_101] : memref<1x128xf32, #tpu.memory_space<vmem>>, vector<1x128xf32>
    %325 = vector.broadcast %324 : vector<1x128xf32> to vector<16x128xf32>
    %326 = arith.addf %323, %325 : vector<16x128xf32>
    %327 = arith.addf %188, %326 : vector<16x128xf32>
    %c0_102 = arith.constant 0 : index
    %c0_103 = arith.constant 0 : index
    %328 = vector.load %arg27[%c0_102, %c0_103] : memref<1x128xf32, #tpu.memory_space<vmem>>, vector<1x128xf32>
    %c0_104 = arith.constant 0 : index
    %c0_105 = arith.constant 0 : index
    %329 = vector.load %arg28[%c0_104, %c0_105] : memref<1x128xf32, #tpu.memory_space<vmem>>, vector<1x128xf32>
    %cst_106 = arith.constant dense<0.000000e+00> : vector<16xf32>
    %330 = vector.multi_reduction <add>, %327, %cst_106 [1] : vector<16x128xf32> to vector<16xf32>
    %331 = vector.shape_cast %330 : vector<16xf32> to vector<16x1xf32>
    %cst_107 = arith.constant 1.280000e+02 : f32
    %332 = vector.broadcast %cst_107 : f32 to vector<16x1xf32>
    %333 = arith.divf %331, %332 : vector<16x1xf32>
    %334 = vector.broadcast %333 : vector<16x1xf32> to vector<16x128xf32>
    %335 = arith.subf %327, %334 : vector<16x128xf32>
    %336 = arith.mulf %335, %335 : vector<16x128xf32>
    %cst_108 = arith.constant dense<0.000000e+00> : vector<16xf32>
    %337 = vector.multi_reduction <add>, %336, %cst_108 [1] : vector<16x128xf32> to vector<16xf32>
    %338 = vector.shape_cast %337 : vector<16xf32> to vector<16x1xf32>
    %cst_109 = arith.constant 1.280000e+02 : f32
    %339 = vector.broadcast %cst_109 : f32 to vector<16x1xf32>
    %340 = arith.divf %338, %339 : vector<16x1xf32>
    %341 = vector.broadcast %333 : vector<16x1xf32> to vector<16x128xf32>
    %342 = arith.subf %327, %341 : vector<16x128xf32>
    %cst_110 = arith.constant 9.99999974E-6 : f32
    %343 = vector.broadcast %cst_110 : f32 to vector<16x1xf32>
    %344 = arith.addf %340, %343 : vector<16x1xf32>
    %345 = math.rsqrt %344 : vector<16x1xf32>
    %346 = vector.broadcast %345 : vector<16x1xf32> to vector<16x128xf32>
    %347 = arith.mulf %342, %346 : vector<16x128xf32>
    %348 = vector.broadcast %328 : vector<1x128xf32> to vector<16x128xf32>
    %349 = arith.mulf %347, %348 : vector<16x128xf32>
    %350 = vector.broadcast %329 : vector<1x128xf32> to vector<16x128xf32>
    %351 = arith.addf %349, %350 : vector<16x128xf32>
    %352 = arith.truncf %351 : vector<16x128xf32> to vector<16x128xbf16>
    %c0_111 = arith.constant 0 : index
    %c0_112 = arith.constant 0 : index
    %353 = vector.load %arg29[%c0_111, %c0_112] : memref<128x256xbf16, #tpu.memory_space<vmem>>, vector<128x256xbf16>
    %cst_113 = arith.constant dense<0.000000e+00> : vector<16x256xf32>
    %354 = tpu.matmul %352, %353, %cst_113 {dimension_numbers = #tpu.dot_dimension_numbers<[1], [0], [0], [1], [0, 0, 1, 1], [], []>} : vector<16x128xbf16>, vector<128x256xbf16>, vector<16x256xf32> -> vector<16x256xf32>
    %c0_114 = arith.constant 0 : index
    %c0_115 = arith.constant 0 : index
    %355 = vector.load %arg30[%c0_114, %c0_115] : memref<1x256xf32, #tpu.memory_space<vmem>>, vector<1x256xf32>
    %356 = vector.broadcast %355 : vector<1x256xf32> to vector<16x256xf32>
    %357 = arith.addf %354, %356 : vector<16x256xf32>
    %358 = arith.negf %357 : vector<16x256xf32>
    %359 = math.exp %358 : vector<16x256xf32>
    %cst_116 = arith.constant 1.000000e+00 : f32
    %360 = vector.broadcast %cst_116 : f32 to vector<16x256xf32>
    %361 = arith.addf %360, %359 : vector<16x256xf32>
    %362 = arith.divf %360, %361 : vector<16x256xf32>
    %363 = arith.mulf %357, %362 : vector<16x256xf32>
    %364 = arith.truncf %363 : vector<16x256xf32> to vector<16x256xbf16>
    %c0_117 = arith.constant 0 : index
    %c0_118 = arith.constant 0 : index
    %365 = vector.load %arg31[%c0_117, %c0_118] : memref<256x128xbf16, #tpu.memory_space<vmem>>, vector<256x128xbf16>
    %cst_119 = arith.constant dense<0.000000e+00> : vector<16x128xf32>
    %366 = tpu.matmul %364, %365, %cst_119 {dimension_numbers = #tpu.dot_dimension_numbers<[1], [0], [0], [1], [0, 0, 1, 1], [], []>} : vector<16x256xbf16>, vector<256x128xbf16>, vector<16x128xf32> -> vector<16x128xf32>
    %c0_120 = arith.constant 0 : index
    %c0_121 = arith.constant 0 : index
    %367 = vector.load %arg32[%c0_120, %c0_121] : memref<1x128xf32, #tpu.memory_space<vmem>>, vector<1x128xf32>
    %368 = vector.broadcast %367 : vector<1x128xf32> to vector<16x128xf32>
    %369 = arith.addf %366, %368 : vector<16x128xf32>
    %cst_122 = arith.constant 5.000000e-01 : f32
    %370 = vector.broadcast %cst_122 : f32 to vector<16x128xf32>
    %371 = arith.mulf %370, %369 : vector<16x128xf32>
    %372 = arith.addf %327, %371 : vector<16x128xf32>
    %c0_123 = arith.constant 0 : index
    %c0_124 = arith.constant 0 : index
    %373 = vector.load %arg33[%c0_123, %c0_124] : memref<1x128xf32, #tpu.memory_space<vmem>>, vector<1x128xf32>
    %c0_125 = arith.constant 0 : index
    %c0_126 = arith.constant 0 : index
    %374 = vector.load %arg34[%c0_125, %c0_126] : memref<1x128xf32, #tpu.memory_space<vmem>>, vector<1x128xf32>
    %cst_127 = arith.constant dense<0.000000e+00> : vector<16xf32>
    %375 = vector.multi_reduction <add>, %372, %cst_127 [1] : vector<16x128xf32> to vector<16xf32>
    %376 = vector.shape_cast %375 : vector<16xf32> to vector<16x1xf32>
    %cst_128 = arith.constant 1.280000e+02 : f32
    %377 = vector.broadcast %cst_128 : f32 to vector<16x1xf32>
    %378 = arith.divf %376, %377 : vector<16x1xf32>
    %379 = vector.broadcast %378 : vector<16x1xf32> to vector<16x128xf32>
    %380 = arith.subf %372, %379 : vector<16x128xf32>
    %381 = arith.mulf %380, %380 : vector<16x128xf32>
    %cst_129 = arith.constant dense<0.000000e+00> : vector<16xf32>
    %382 = vector.multi_reduction <add>, %381, %cst_129 [1] : vector<16x128xf32> to vector<16xf32>
    %383 = vector.shape_cast %382 : vector<16xf32> to vector<16x1xf32>
    %cst_130 = arith.constant 1.280000e+02 : f32
    %384 = vector.broadcast %cst_130 : f32 to vector<16x1xf32>
    %385 = arith.divf %383, %384 : vector<16x1xf32>
    %386 = vector.broadcast %378 : vector<16x1xf32> to vector<16x128xf32>
    %387 = arith.subf %372, %386 : vector<16x128xf32>
    %cst_131 = arith.constant 9.99999974E-6 : f32
    %388 = vector.broadcast %cst_131 : f32 to vector<16x1xf32>
    %389 = arith.addf %385, %388 : vector<16x1xf32>
    %390 = math.rsqrt %389 : vector<16x1xf32>
    %391 = vector.broadcast %390 : vector<16x1xf32> to vector<16x128xf32>
    %392 = arith.mulf %387, %391 : vector<16x128xf32>
    %393 = vector.broadcast %373 : vector<1x128xf32> to vector<16x128xf32>
    %394 = arith.mulf %392, %393 : vector<16x128xf32>
    %395 = vector.broadcast %374 : vector<1x128xf32> to vector<16x128xf32>
    %396 = arith.addf %394, %395 : vector<16x128xf32>
    %397 = arith.truncf %396 : vector<16x128xf32> to vector<16x128xbf16>
    %c0_132 = arith.constant 0 : index
    %c0_133 = arith.constant 0 : index
    %c0_134 = arith.constant 0 : index
    %398 = vector.load %arg35[%c0_132, %c0_133, %c0_134] : memref<1x16x128xbf16, #tpu.memory_space<vmem>>, vector<1x16x128xbf16>
    %399 = vector.shape_cast %398 : vector<1x16x128xbf16> to vector<16x128xbf16>
    %400 = vector.shape_cast %397 : vector<16x128xbf16> to vector<1x16x128xbf16>
    tpu.vector_store %arg35[%c0_132, %c0_133, %c0_134], %400 {strides = array<i32>} : memref<1x16x128xbf16, #tpu.memory_space<vmem>>, vector<1x16x128xbf16>,
    return
  }
  func.func @transform_0(%arg0: i32) -> (i32, i32, i32) {
    %c0_i32 = arith.constant 0 : i32
    %c0_i32_0 = arith.constant 0 : i32
    %c0_i32_1 = arith.constant 0 : i32
    return %arg0, %c0_i32, %c0_i32_0 : i32, i32, i32
  }
  func.func @transform_1(%arg0: i32) -> (i32, i32) {
    %c0_i32 = arith.constant 0 : i32
    %c0_i32_0 = arith.constant 0 : i32
    %c0_i32_1 = arith.constant 0 : i32
    return %c0_i32, %c0_i32_0 : i32, i32
  }
  func.func @transform_2(%arg0: i32) -> (i32, i32) {
    %c0_i32 = arith.constant 0 : i32
    %c0_i32_0 = arith.constant 0 : i32
    %c0_i32_1 = arith.constant 0 : i32
    return %c0_i32, %c0_i32_0 : i32, i32
  }
  func.func @transform_3(%arg0: i32) -> (i32, i32) {
    %c0_i32 = arith.constant 0 : i32
    %c0_i32_0 = arith.constant 0 : i32
    %c0_i32_1 = arith.constant 0 : i32
    return %c0_i32, %c0_i32_0 : i32, i32
  }
  func.func @transform_4(%arg0: i32) -> (i32, i32) {
    %c0_i32 = arith.constant 0 : i32
    %c0_i32_0 = arith.constant 0 : i32
    %c0_i32_1 = arith.constant 0 : i32
    return %c0_i32, %c0_i32_0 : i32, i32
  }
  func.func @transform_5(%arg0: i32) -> (i32, i32) {
    %c0_i32 = arith.constant 0 : i32
    %c0_i32_0 = arith.constant 0 : i32
    %c0_i32_1 = arith.constant 0 : i32
    return %c0_i32, %c0_i32_0 : i32, i32
  }
  func.func @transform_6(%arg0: i32) -> (i32, i32) {
    %c0_i32 = arith.constant 0 : i32
    %c0_i32_0 = arith.constant 0 : i32
    %c0_i32_1 = arith.constant 0 : i32
    return %c0_i32, %c0_i32_0 : i32, i32
  }
  func.func @transform_7(%arg0: i32) -> (i32, i32) {
    %c0_i32 = arith.constant 0 : i32
    %c0_i32_0 = arith.constant 0 : i32
    %c0_i32_1 = arith.constant 0 : i32
    return %c0_i32, %c0_i32_0 : i32, i32
  }
  func.func @transform_8(%arg0: i32) -> (i32, i32) {
    %c0_i32 = arith.constant 0 : i32
    %c0_i32_0 = arith.constant 0 : i32
    %c0_i32_1 = arith.constant 0 : i32
    return %c0_i32, %c0_i32_0 : i32, i32
  }
  func.func @transform_9(%arg0: i32) -> (i32, i32) {
    %c0_i32 = arith.constant 0 : i32
    %c0_i32_0 = arith.constant 0 : i32
    %c0_i32_1 = arith.constant 0 : i32
    return %c0_i32, %c0_i32_0 : i32, i32
  }
  func.func @transform_10(%arg0: i32) -> (i32, i32) {
    %c0_i32 = arith.constant 0 : i32
    %c0_i32_0 = arith.constant 0 : i32
    %c0_i32_1 = arith.constant 0 : i32
    return %c0_i32, %c0_i32_0 : i32, i32
  }
  func.func @transform_11(%arg0: i32) -> (i32, i32) {
    %c0_i32 = arith.constant 0 : i32
    %c0_i32_0 = arith.constant 0 : i32
    %c0_i32_1 = arith.constant 0 : i32
    return %c0_i32, %c0_i32_0 : i32, i32
  }
  func.func @transform_12(%arg0: i32) -> (i32, i32) {
    %c0_i32 = arith.constant 0 : i32
    %c0_i32_0 = arith.constant 0 : i32
    %c0_i32_1 = arith.constant 0 : i32
    return %c0_i32, %c0_i32_0 : i32, i32
  }
  func.func @transform_13(%arg0: i32) -> (i32, i32) {
    %c0_i32 = arith.constant 0 : i32
    %c0_i32_0 = arith.constant 0 : i32
    %c0_i32_1 = arith.constant 0 : i32
    return %c0_i32, %c0_i32_0 : i32, i32
  }
  func.func @transform_14(%arg0: i32) -> (i32, i32) {
    %c0_i32 = arith.constant 0 : i32
    %c0_i32_0 = arith.constant 0 : i32
    %c0_i32_1 = arith.constant 0 : i32
    return %c0_i32, %c0_i32_0 : i32, i32
  }
  func.func @transform_15(%arg0: i32) -> (i32, i32) {
    %c0_i32 = arith.constant 0 : i32
    %c0_i32_0 = arith.constant 0 : i32
    %c0_i32_1 = arith.constant 0 : i32
    return %c0_i32, %c0_i32_0 : i32, i32
  }
  func.func @transform_16(%arg0: i32) -> (i32, i32) {
    %c0_i32 = arith.constant 0 : i32
    %c0_i32_0 = arith.constant 0 : i32
    %c0_i32_1 = arith.constant 0 : i32
    return %c0_i32, %c0_i32_0 : i32, i32
  }
  func.func @transform_17(%arg0: i32) -> (i32, i32) {
    %c0_i32 = arith.constant 0 : i32
    %c0_i32_0 = arith.constant 0 : i32
    %c0_i32_1 = arith.constant 0 : i32
    return %c0_i32, %c0_i32_0 : i32, i32
  }
  func.func @transform_18(%arg0: i32) -> (i32, i32) {
    %c0_i32 = arith.constant 0 : i32
    %c0_i32_0 = arith.constant 0 : i32
    %c0_i32_1 = arith.constant 0 : i32
    return %c0_i32, %c0_i32_0 : i32, i32
  }
  func.func @transform_19(%arg0: i32) -> (i32, i32) {
    %c0_i32 = arith.constant 0 : i32
    %c0_i32_0 = arith.constant 0 : i32
    %c0_i32_1 = arith.constant 0 : i32
    return %c0_i32, %c0_i32_0 : i32, i32
  }
  func.func @transform_20(%arg0: i32) -> (i32, i32) {
    %c0_i32 = arith.constant 0 : i32
    %c0_i32_0 = arith.constant 0 : i32
    %c0_i32_1 = arith.constant 0 : i32
    return %c0_i32, %c0_i32_0 : i32, i32
  }
  func.func @transform_21(%arg0: i32) -> (i32, i32) {
    %c0_i32 = arith.constant 0 : i32
    %c0_i32_0 = arith.constant 0 : i32
    %c0_i32_1 = arith.constant 0 : i32
    return %c0_i32, %c0_i32_0 : i32, i32
  }
  func.func @transform_22(%arg0: i32) -> (i32, i32) {
    %c0_i32 = arith.constant 0 : i32
    %c0_i32_0 = arith.constant 0 : i32
    %c0_i32_1 = arith.constant 0 : i32
    return %c0_i32, %c0_i32_0 : i32, i32
  }
  func.func @transform_23(%arg0: i32) -> (i32, i32) {
    %c0_i32 = arith.constant 0 : i32
    %c0_i32_0 = arith.constant 0 : i32
    %c0_i32_1 = arith.constant 0 : i32
    return %c0_i32, %c0_i32_0 : i32, i32
  }
  func.func @transform_24(%arg0: i32) -> (i32, i32) {
    %c0_i32 = arith.constant 0 : i32
    %c0_i32_0 = arith.constant 0 : i32
    %c0_i32_1 = arith.constant 0 : i32
    return %c0_i32, %c0_i32_0 : i32, i32
  }
  func.func @transform_25(%arg0: i32) -> (i32, i32) {
    %c0_i32 = arith.constant 0 : i32
    %c0_i32_0 = arith.constant 0 : i32
    %c0_i32_1 = arith.constant 0 : i32
    return %c0_i32, %c0_i32_0 : i32, i32
  }
  func.func @transform_26(%arg0: i32) -> (i32, i32) {
    %c0_i32 = arith.constant 0 : i32
    %c0_i32_0 = arith.constant 0 : i32
    %c0_i32_1 = arith.constant 0 : i32
    return %c0_i32, %c0_i32_0 : i32, i32
  }
  func.func @transform_27(%arg0: i32) -> (i32, i32) {
    %c0_i32 = arith.constant 0 : i32
    %c0_i32_0 = arith.constant 0 : i32
    %c0_i32_1 = arith.constant 0 : i32
    return %c0_i32, %c0_i32_0 : i32, i32
  }
  func.func @transform_28(%arg0: i32) -> (i32, i32) {
    %c0_i32 = arith.constant 0 : i32
    %c0_i32_0 = arith.constant 0 : i32
    %c0_i32_1 = arith.constant 0 : i32
    return %c0_i32, %c0_i32_0 : i32, i32
  }
  func.func @transform_29(%arg0: i32) -> (i32, i32) {
    %c0_i32 = arith.constant 0 : i32
    %c0_i32_0 = arith.constant 0 : i32
    %c0_i32_1 = arith.constant 0 : i32
    return %c0_i32, %c0_i32_0 : i32, i32
  }
  func.func @transform_30(%arg0: i32) -> (i32, i32) {
    %c0_i32 = arith.constant 0 : i32
    %c0_i32_0 = arith.constant 0 : i32
    %c0_i32_1 = arith.constant 0 : i32
    return %c0_i32, %c0_i32_0 : i32, i32
  }
  func.func @transform_31(%arg0: i32) -> (i32, i32) {
    %c0_i32 = arith.constant 0 : i32
    %c0_i32_0 = arith.constant 0 : i32
    %c0_i32_1 = arith.constant 0 : i32
    return %c0_i32, %c0_i32_0 : i32, i32
  }
  func.func @transform_32(%arg0: i32) -> (i32, i32) {
    %c0_i32 = arith.constant 0 : i32
    %c0_i32_0 = arith.constant 0 : i32
    %c0_i32_1 = arith.constant 0 : i32
    return %c0_i32, %c0_i32_0 : i32, i32
  }
  func.func @transform_33(%arg0: i32) -> (i32, i32) {
    %c0_i32 = arith.constant 0 : i32
    %c0_i32_0 = arith.constant 0 : i32
    %c0_i32_1 = arith.constant 0 : i32
    return %c0_i32, %c0_i32_0 : i32, i32
  }
  func.func @transform_34(%arg0: i32) -> (i32, i32, i32) {
    %c0_i32 = arith.constant 0 : i32
    %c0_i32_0 = arith.constant 0 : i32
    %c0_i32_1 = arith.constant 0 : i32
    return %arg0, %c0_i32, %c0_i32_0 : i32, i32, i32
  }
}

module attributes {stable_mosaic.version = 11 : i64} {
  func.func @_block_kernel(%arg0: i32, %arg1: memref<1x16x128xbf16, #tpu.memory_space<vmem>>, %arg2: memref<16x128xf32, #tpu.memory_space<vmem>>, %arg3: memref<1x128xf32, #tpu.memory_space<vmem>>, %arg4: memref<1x128xf32, #tpu.memory_space<vmem>>, %arg5: memref<128x256xbf16, #tpu.memory_space<vmem>>, %arg6: memref<1x256xf32, #tpu.memory_space<vmem>>, %arg7: memref<256x128xbf16, #tpu.memory_space<vmem>>, %arg8: memref<1x128xf32, #tpu.memory_space<vmem>>, %arg9: memref<1x128xf32, #tpu.memory_space<vmem>>, %arg10: memref<1x128xf32, #tpu.memory_space<vmem>>, %arg11: memref<128x384xbf16, #tpu.memory_space<vmem>>, %arg12: memref<1x384xf32, #tpu.memory_space<vmem>>, %arg13: memref<1x128xf32, #tpu.memory_space<vmem>>, %arg14: memref<1x128xf32, #tpu.memory_space<vmem>>, %arg15: memref<128x128xbf16, #tpu.memory_space<vmem>>, %arg16: memref<1x128xf32, #tpu.memory_space<vmem>>, %arg17: memref<1x128xf32, #tpu.memory_space<vmem>>, %arg18: memref<1x128xf32, #tpu.memory_space<vmem>>, %arg19: memref<128x256xbf16, #tpu.memory_space<vmem>>, %arg20: memref<1x256xf32, #tpu.memory_space<vmem>>, %arg21: memref<15x128xf32, #tpu.memory_space<vmem>>, %arg22: memref<1x128xf32, #tpu.memory_space<vmem>>, %arg23: memref<1x128xf32, #tpu.memory_space<vmem>>, %arg24: memref<1x128xf32, #tpu.memory_space<vmem>>, %arg25: memref<128x128xbf16, #tpu.memory_space<vmem>>, %arg26: memref<1x128xf32, #tpu.memory_space<vmem>>, %arg27: memref<1x128xf32, #tpu.memory_space<vmem>>, %arg28: memref<1x128xf32, #tpu.memory_space<vmem>>, %arg29: memref<128x256xbf16, #tpu.memory_space<vmem>>, %arg30: memref<1x256xf32, #tpu.memory_space<vmem>>, %arg31: memref<256x128xbf16, #tpu.memory_space<vmem>>, %arg32: memref<1x128xf32, #tpu.memory_space<vmem>>, %arg33: memref<1x128xf32, #tpu.memory_space<vmem>>, %arg34: memref<1x128xf32, #tpu.memory_space<vmem>>, %arg35: memref<1x16x128xbf16, #tpu.memory_space<vmem>>) attributes {dimension_semantics = [#tpu.dimension_semantics<parallel>], iteration_bounds = array<i64: 2>, scalar_prefetch = 0 : i64, scratch_operands = 0 : i64, tpu.core_type = #tpu.core_type<tc>, window_params = [{transform_indices = @transform_0, window_bounds = array<i64: 1, 16, 128>}, {pipeline_mode = #tpu.pipeline_mode<synchronous>, transform_indices = @transform_1, window_bounds = array<i64: 16, 128>}, {pipeline_mode = #tpu.pipeline_mode<synchronous>, transform_indices = @transform_2, window_bounds = array<i64: 1, 128>}, {pipeline_mode = #tpu.pipeline_mode<synchronous>, transform_indices = @transform_3, window_bounds = array<i64: 1, 128>}, {pipeline_mode = #tpu.pipeline_mode<synchronous>, transform_indices = @transform_4, window_bounds = array<i64: 128, 256>}, {pipeline_mode = #tpu.pipeline_mode<synchronous>, transform_indices = @transform_5, window_bounds = array<i64: 1, 256>}, {pipeline_mode = #tpu.pipeline_mode<synchronous>, transform_indices = @transform_6, window_bounds = array<i64: 256, 128>}, {pipeline_mode = #tpu.pipeline_mode<synchronous>, transform_indices = @transform_7, window_bounds = array<i64: 1, 128>}, {pipeline_mode = #tpu.pipeline_mode<synchronous>, transform_indices = @transform_8, window_bounds = array<i64: 1, 128>}, {pipeline_mode = #tpu.pipeline_mode<synchronous>, transform_indices = @transform_9, window_bounds = array<i64: 1, 128>}, {pipeline_mode = #tpu.pipeline_mode<synchronous>, transform_indices = @transform_10, window_bounds = array<i64: 128, 384>}, {pipeline_mode = #tpu.pipeline_mode<synchronous>, transform_indices = @transform_11, window_bounds = array<i64: 1, 384>}, {pipeline_mode = #tpu.pipeline_mode<synchronous>, transform_indices = @transform_12, window_bounds = array<i64: 1, 128>}, {pipeline_mode = #tpu.pipeline_mode<synchronous>, transform_indices = @transform_13, window_bounds = array<i64: 1, 128>}, {pipeline_mode = #tpu.pipeline_mode<synchronous>, transform_indices = @transform_14, window_bounds = array<i64: 128, 128>}, {pipeline_mode = #tpu.pipeline_mode<synchronous>, transform_indices = @transform_15, window_bounds = array<i64: 1, 128>}, {pipeline_mode = #tpu.pipeline_mode<synchronous>, transform_indices = @transform_16, window_bounds = array<i64: 1, 128>}, {pipeline_mode = #tpu.pipeline_mode<synchronous>, transform_indices = @transform_17, window_bounds = array<i64: 1, 128>}, {pipeline_mode = #tpu.pipeline_mode<synchronous>, transform_indices = @transform_18, window_bounds = array<i64: 128, 256>}, {pipeline_mode = #tpu.pipeline_mode<synchronous>, transform_indices = @transform_19, window_bounds = array<i64: 1, 256>}, {pipeline_mode = #tpu.pipeline_mode<synchronous>, transform_indices = @transform_20, window_bounds = array<i64: 15, 128>}, {pipeline_mode = #tpu.pipeline_mode<synchronous>, transform_indices = @transform_21, window_bounds = array<i64: 1, 128>}, {pipeline_mode = #tpu.pipeline_mode<synchronous>, transform_indices = @transform_22, window_bounds = array<i64: 1, 128>}, {pipeline_mode = #tpu.pipeline_mode<synchronous>, transform_indices = @transform_23, window_bounds = array<i64: 1, 128>}, {pipeline_mode = #tpu.pipeline_mode<synchronous>, transform_indices = @transform_24, window_bounds = array<i64: 128, 128>}, {pipeline_mode = #tpu.pipeline_mode<synchronous>, transform_indices = @transform_25, window_bounds = array<i64: 1, 128>}, {pipeline_mode = #tpu.pipeline_mode<synchronous>, transform_indices = @transform_26, window_bounds = array<i64: 1, 128>}, {pipeline_mode = #tpu.pipeline_mode<synchronous>, transform_indices = @transform_27, window_bounds = array<i64: 1, 128>}, {pipeline_mode = #tpu.pipeline_mode<synchronous>, transform_indices = @transform_28, window_bounds = array<i64: 128, 256>}, {pipeline_mode = #tpu.pipeline_mode<synchronous>, transform_indices = @transform_29, window_bounds = array<i64: 1, 256>}, {pipeline_mode = #tpu.pipeline_mode<synchronous>, transform_indices = @transform_30, window_bounds = array<i64: 256, 128>}, {pipeline_mode = #tpu.pipeline_mode<synchronous>, transform_indices = @transform_31, window_bounds = array<i64: 1, 128>}, {pipeline_mode = #tpu.pipeline_mode<synchronous>, transform_indices = @transform_32, window_bounds = array<i64: 1, 128>}, {pipeline_mode = #tpu.pipeline_mode<synchronous>, transform_indices = @transform_33, window_bounds = array<i64: 1, 128>}, {transform_indices = @transform_34, window_bounds = array<i64: 1, 16, 128>}]} {
    %c0 = arith.constant 0 : index
    %c0_0 = arith.constant 0 : index
    %c0_1 = arith.constant 0 : index
    %0 = vector.load %arg1[%c0, %c0_0, %c0_1] : memref<1x16x128xbf16, #tpu.memory_space<vmem>>, vector<1x16x128xbf16>
    %1 = vector.shape_cast %0 : vector<1x16x128xbf16> to vector<16x128xbf16>
    %2 = arith.extf %1 : vector<16x128xbf16> to vector<16x128xf32>
    %c0_2 = arith.constant 0 : index
    %c0_3 = arith.constant 0 : index
    %3 = vector.load %arg3[%c0_2, %c0_3] : memref<1x128xf32, #tpu.memory_space<vmem>>, vector<1x128xf32>
    %c0_4 = arith.constant 0 : index
    %c0_5 = arith.constant 0 : index
    %4 = vector.load %arg4[%c0_4, %c0_5] : memref<1x128xf32, #tpu.memory_space<vmem>>, vector<1x128xf32>
    %cst = arith.constant dense<0.000000e+00> : vector<16xf32>
    %5 = vector.multi_reduction <add>, %2, %cst [1] : vector<16x128xf32> to vector<16xf32>
    %6 = vector.shape_cast %5 : vector<16xf32> to vector<16x1xf32>
    %cst_6 = arith.constant 1.280000e+02 : f32
    %7 = vector.broadcast %cst_6 : f32 to vector<16x1xf32>
    %8 = arith.divf %6, %7 : vector<16x1xf32>
    %9 = vector.broadcast %8 : vector<16x1xf32> to vector<16x128xf32>
    %10 = arith.subf %2, %9 : vector<16x128xf32>
    %11 = arith.mulf %10, %10 : vector<16x128xf32>
    %cst_7 = arith.constant dense<0.000000e+00> : vector<16xf32>
    %12 = vector.multi_reduction <add>, %11, %cst_7 [1] : vector<16x128xf32> to vector<16xf32>
    %13 = vector.shape_cast %12 : vector<16xf32> to vector<16x1xf32>
    %cst_8 = arith.constant 1.280000e+02 : f32
    %14 = vector.broadcast %cst_8 : f32 to vector<16x1xf32>
    %15 = arith.divf %13, %14 : vector<16x1xf32>
    %16 = vector.broadcast %8 : vector<16x1xf32> to vector<16x128xf32>
    %17 = arith.subf %2, %16 : vector<16x128xf32>
    %cst_9 = arith.constant 9.99999974E-6 : f32
    %18 = vector.broadcast %cst_9 : f32 to vector<16x1xf32>
    %19 = arith.addf %15, %18 : vector<16x1xf32>
    %20 = math.rsqrt %19 : vector<16x1xf32>
    %21 = vector.broadcast %20 : vector<16x1xf32> to vector<16x128xf32>
    %22 = arith.mulf %17, %21 : vector<16x128xf32>
    %23 = vector.broadcast %3 : vector<1x128xf32> to vector<16x128xf32>
    %24 = arith.mulf %22, %23 : vector<16x128xf32>
    %25 = vector.broadcast %4 : vector<1x128xf32> to vector<16x128xf32>
    %26 = arith.addf %24, %25 : vector<16x128xf32>
    %27 = arith.truncf %26 : vector<16x128xf32> to vector<16x128xbf16>
    %c0_10 = arith.constant 0 : index
    %c0_11 = arith.constant 0 : index
    %28 = vector.load %arg5[%c0_10, %c0_11] : memref<128x256xbf16, #tpu.memory_space<vmem>>, vector<128x256xbf16>
    %cst_12 = arith.constant dense<0.000000e+00> : vector<16x256xf32>
    %29 = tpu.matmul %27, %28, %cst_12 {dimension_numbers = #tpu.dot_dimension_numbers<[1], [0], [0], [1], [0, 0, 1, 1], [], []>} : vector<16x128xbf16>, vector<128x256xbf16>, vector<16x256xf32> -> vector<16x256xf32>
    %c0_13 = arith.constant 0 : index
    %c0_14 = arith.constant 0 : index
    %30 = vector.load %arg6[%c0_13, %c0_14] : memref<1x256xf32, #tpu.memory_space<vmem>>, vector<1x256xf32>
    %31 = vector.broadcast %30 : vector<1x256xf32> to vector<16x256xf32>
    %32 = arith.addf %29, %31 : vector<16x256xf32>
    %33 = arith.negf %32 : vector<16x256xf32>
    %34 = math.exp %33 : vector<16x256xf32>
    %cst_15 = arith.constant 1.000000e+00 : f32
    %35 = vector.broadcast %cst_15 : f32 to vector<16x256xf32>
    %36 = arith.addf %35, %34 : vector<16x256xf32>
    %37 = arith.divf %35, %36 : vector<16x256xf32>
    %38 = arith.mulf %32, %37 : vector<16x256xf32>
    %39 = arith.truncf %38 : vector<16x256xf32> to vector<16x256xbf16>
    %c0_16 = arith.constant 0 : index
    %c0_17 = arith.constant 0 : index
    %40 = vector.load %arg7[%c0_16, %c0_17] : memref<256x128xbf16, #tpu.memory_space<vmem>>, vector<256x128xbf16>
    %cst_18 = arith.constant dense<0.000000e+00> : vector<16x128xf32>
    %41 = tpu.matmul %39, %40, %cst_18 {dimension_numbers = #tpu.dot_dimension_numbers<[1], [0], [0], [1], [0, 0, 1, 1], [], []>} : vector<16x256xbf16>, vector<256x128xbf16>, vector<16x128xf32> -> vector<16x128xf32>
    %c0_19 = arith.constant 0 : index
    %c0_20 = arith.constant 0 : index
    %42 = vector.load %arg8[%c0_19, %c0_20] : memref<1x128xf32, #tpu.memory_space<vmem>>, vector<1x128xf32>
    %43 = vector.broadcast %42 : vector<1x128xf32> to vector<16x128xf32>
    %44 = arith.addf %41, %43 : vector<16x128xf32>
    %cst_21 = arith.constant 5.000000e-01 : f32
    %45 = vector.broadcast %cst_21 : f32 to vector<16x128xf32>
    %46 = arith.mulf %45, %44 : vector<16x128xf32>
    %47 = arith.addf %2, %46 : vector<16x128xf32>
    %c0_22 = arith.constant 0 : index
    %c0_23 = arith.constant 0 : index
    %48 = vector.load %arg9[%c0_22, %c0_23] : memref<1x128xf32, #tpu.memory_space<vmem>>, vector<1x128xf32>
    %c0_24 = arith.constant 0 : index
    %c0_25 = arith.constant 0 : index
    %49 = vector.load %arg10[%c0_24, %c0_25] : memref<1x128xf32, #tpu.memory_space<vmem>>, vector<1x128xf32>
    %cst_26 = arith.constant dense<0.000000e+00> : vector<16xf32>
    %50 = vector.multi_reduction <add>, %47, %cst_26 [1] : vector<16x128xf32> to vector<16xf32>
    %51 = vector.shape_cast %50 : vector<16xf32> to vector<16x1xf32>
    %cst_27 = arith.constant 1.280000e+02 : f32
    %52 = vector.broadcast %cst_27 : f32 to vector<16x1xf32>
    %53 = arith.divf %51, %52 : vector<16x1xf32>
    %54 = vector.broadcast %53 : vector<16x1xf32> to vector<16x128xf32>
    %55 = arith.subf %47, %54 : vector<16x128xf32>
    %56 = arith.mulf %55, %55 : vector<16x128xf32>
    %cst_28 = arith.constant dense<0.000000e+00> : vector<16xf32>
    %57 = vector.multi_reduction <add>, %56, %cst_28 [1] : vector<16x128xf32> to vector<16xf32>
    %58 = vector.shape_cast %57 : vector<16xf32> to vector<16x1xf32>
    %cst_29 = arith.constant 1.280000e+02 : f32
    %59 = vector.broadcast %cst_29 : f32 to vector<16x1xf32>
    %60 = arith.divf %58, %59 : vector<16x1xf32>
    %61 = vector.broadcast %53 : vector<16x1xf32> to vector<16x128xf32>
    %62 = arith.subf %47, %61 : vector<16x128xf32>
    %cst_30 = arith.constant 9.99999974E-6 : f32
    %63 = vector.broadcast %cst_30 : f32 to vector<16x1xf32>
    %64 = arith.addf %60, %63 : vector<16x1xf32>
    %65 = math.rsqrt %64 : vector<16x1xf32>
    %66 = vector.broadcast %65 : vector<16x1xf32> to vector<16x128xf32>
    %67 = arith.mulf %62, %66 : vector<16x128xf32>
    %68 = vector.broadcast %48 : vector<1x128xf32> to vector<16x128xf32>
    %69 = arith.mulf %67, %68 : vector<16x128xf32>
    %70 = vector.broadcast %49 : vector<1x128xf32> to vector<16x128xf32>
    %71 = arith.addf %69, %70 : vector<16x128xf32>
    %72 = arith.truncf %71 : vector<16x128xf32> to vector<16x128xbf16>
    %c0_31 = arith.constant 0 : index
    %c0_32 = arith.constant 0 : index
    %73 = vector.load %arg11[%c0_31, %c0_32] : memref<128x384xbf16, #tpu.memory_space<vmem>>, vector<128x384xbf16>
    %cst_33 = arith.constant dense<0.000000e+00> : vector<16x384xf32>
    %74 = tpu.matmul %72, %73, %cst_33 {dimension_numbers = #tpu.dot_dimension_numbers<[1], [0], [0], [1], [0, 0, 1, 1], [], []>} : vector<16x128xbf16>, vector<128x384xbf16>, vector<16x384xf32> -> vector<16x384xf32>
    %c0_34 = arith.constant 0 : index
    %c0_35 = arith.constant 0 : index
    %75 = vector.load %arg12[%c0_34, %c0_35] : memref<1x384xf32, #tpu.memory_space<vmem>>, vector<1x384xf32>
    %76 = vector.broadcast %75 : vector<1x384xf32> to vector<16x384xf32>
    %77 = arith.addf %74, %76 : vector<16x384xf32>
    %78 = vector.extract_strided_slice %77 {offsets = [0, 0], sizes = [16, 128], strides = [1, 1]} : vector<16x384xf32> to vector<16x128xf32>
    %79 = vector.extract_strided_slice %77 {offsets = [0, 128], sizes = [16, 128], strides = [1, 1]} : vector<16x384xf32> to vector<16x128xf32>
    %80 = arith.truncf %79 : vector<16x128xf32> to vector<16x128xbf16>
    %81 = vector.extract_strided_slice %77 {offsets = [0, 256], sizes = [16, 128], strides = [1, 1]} : vector<16x384xf32> to vector<16x128xf32>
    %82 = arith.truncf %81 : vector<16x128xf32> to vector<16x128xbf16>
    %c0_36 = arith.constant 0 : index
    %c0_37 = arith.constant 0 : index
    %83 = vector.load %arg2[%c0_36, %c0_37] : memref<16x128xf32, #tpu.memory_space<vmem>>, vector<16x128xf32>
    %84 = arith.truncf %83 : vector<16x128xf32> to vector<16x128xbf16>
    %c0_38 = arith.constant 0 : index
    %c0_39 = arith.constant 0 : index
    %85 = vector.load %arg13[%c0_38, %c0_39] : memref<1x128xf32, #tpu.memory_space<vmem>>, vector<1x128xf32>
    %86 = vector.broadcast %85 : vector<1x128xf32> to vector<16x128xf32>
    %87 = arith.addf %78, %86 : vector<16x128xf32>
    %88 = arith.truncf %87 : vector<16x128xf32> to vector<16x128xbf16>
    %c0_40 = arith.constant 0 : index
    %c0_41 = arith.constant 0 : index
    %89 = vector.load %arg14[%c0_40, %c0_41] : memref<1x128xf32, #tpu.memory_space<vmem>>, vector<1x128xf32>
    %90 = vector.broadcast %89 : vector<1x128xf32> to vector<16x128xf32>
    %91 = arith.addf %78, %90 : vector<16x128xf32>
    %92 = arith.truncf %91 : vector<16x128xf32> to vector<16x128xbf16>
    %93 = vector.extract_strided_slice %88 {offsets = [0, 0], sizes = [16, 32], strides = [1, 1]} : vector<16x128xbf16> to vector<16x32xbf16>
    %94 = vector.extract_strided_slice %80 {offsets = [0, 0], sizes = [16, 32], strides = [1, 1]} : vector<16x128xbf16> to vector<16x32xbf16>
    %cst_42 = arith.constant dense<0.000000e+00> : vector<16x16xf32>
    %95 = tpu.matmul %93, %94, %cst_42 {dimension_numbers = #tpu.dot_dimension_numbers<[1], [1], [0], [0], [0, 0, 1, 0], [], []>} : vector<16x32xbf16>, vector<16x32xbf16>, vector<16x16xf32> -> vector<16x16xf32>
    %96 = vector.extract_strided_slice %92 {offsets = [0, 0], sizes = [16, 32], strides = [1, 1]} : vector<16x128xbf16> to vector<16x32xbf16>
    %97 = vector.extract_strided_slice %84 {offsets = [0, 0], sizes = [16, 32], strides = [1, 1]} : vector<16x128xbf16> to vector<16x32xbf16>
    %cst_43 = arith.constant dense<0.000000e+00> : vector<16x16xf32>
    %98 = tpu.matmul %96, %97, %cst_43 {dimension_numbers = #tpu.dot_dimension_numbers<[1], [1], [0], [0], [0, 0, 1, 0], [], []>} : vector<16x32xbf16>, vector<16x32xbf16>, vector<16x16xf32> -> vector<16x16xf32>
    %99 = arith.addf %95, %98 : vector<16x16xf32>
    %cst_44 = arith.constant 0.176776692 : f32
    %100 = vector.broadcast %cst_44 : f32 to vector<16x16xf32>
    %101 = arith.mulf %99, %100 : vector<16x16xf32>
    %cst_45 = arith.constant dense<0xFF800000> : vector<16xf32>
    %102 = vector.multi_reduction <maximumf>, %101, %cst_45 [1] : vector<16x16xf32> to vector<16xf32>
    %103 = vector.shape_cast %102 : vector<16xf32> to vector<16x1xf32>
    %104 = vector.broadcast %103 : vector<16x1xf32> to vector<16x16xf32>
    %105 = arith.subf %101, %104 : vector<16x16xf32>
    %106 = math.exp %105 : vector<16x16xf32>
    %cst_46 = arith.constant dense<0.000000e+00> : vector<16xf32>
    %107 = vector.multi_reduction <add>, %106, %cst_46 [1] : vector<16x16xf32> to vector<16xf32>
    %108 = vector.shape_cast %107 : vector<16xf32> to vector<16x1xf32>
    %109 = tpu.reciprocal %108 {approx = true} : vector<16x1xf32> -> vector<16x1xf32>
    %110 = vector.broadcast %109 : vector<16x1xf32> to vector<16x16xf32>
    %111 = arith.mulf %106, %110 : vector<16x16xf32>
    %112 = arith.truncf %111 : vector<16x16xf32> to vector<16x16xbf16>
    %113 = vector.extract_strided_slice %82 {offsets = [0, 0], sizes = [16, 32], strides = [1, 1]} : vector<16x128xbf16> to vector<16x32xbf16>
    %cst_47 = arith.constant dense<0.000000e+00> : vector<16x32xf32>
    %114 = tpu.matmul %112, %113, %cst_47 {dimension_numbers = #tpu.dot_dimension_numbers<[1], [0], [0], [1], [0, 0, 1, 1], [], []>} : vector<16x16xbf16>, vector<16x32xbf16>, vector<16x32xf32> -> vector<16x32xf32>
    %115 = vector.extract_strided_slice %88 {offsets = [0, 32], sizes = [16, 32], strides = [1, 1]} : vector<16x128xbf16> to vector<16x32xbf16>
    %116 = vector.extract_strided_slice %80 {offsets = [0, 32], sizes = [16, 32], strides = [1, 1]} : vector<16x128xbf16> to vector<16x32xbf16>
    %cst_48 = arith.constant dense<0.000000e+00> : vector<16x16xf32>
    %117 = tpu.matmul %115, %116, %cst_48 {dimension_numbers = #tpu.dot_dimension_numbers<[1], [1], [0], [0], [0, 0, 1, 0], [], []>} : vector<16x32xbf16>, vector<16x32xbf16>, vector<16x16xf32> -> vector<16x16xf32>
    %118 = vector.extract_strided_slice %92 {offsets = [0, 32], sizes = [16, 32], strides = [1, 1]} : vector<16x128xbf16> to vector<16x32xbf16>
    %119 = vector.extract_strided_slice %84 {offsets = [0, 32], sizes = [16, 32], strides = [1, 1]} : vector<16x128xbf16> to vector<16x32xbf16>
    %cst_49 = arith.constant dense<0.000000e+00> : vector<16x16xf32>
    %120 = tpu.matmul %118, %119, %cst_49 {dimension_numbers = #tpu.dot_dimension_numbers<[1], [1], [0], [0], [0, 0, 1, 0], [], []>} : vector<16x32xbf16>, vector<16x32xbf16>, vector<16x16xf32> -> vector<16x16xf32>
    %121 = arith.addf %117, %120 : vector<16x16xf32>
    %cst_50 = arith.constant 0.176776692 : f32
    %122 = vector.broadcast %cst_50 : f32 to vector<16x16xf32>
    %123 = arith.mulf %121, %122 : vector<16x16xf32>
    %cst_51 = arith.constant dense<0xFF800000> : vector<16xf32>
    %124 = vector.multi_reduction <maximumf>, %123, %cst_51 [1] : vector<16x16xf32> to vector<16xf32>
    %125 = vector.shape_cast %124 : vector<16xf32> to vector<16x1xf32>
    %126 = vector.broadcast %125 : vector<16x1xf32> to vector<16x16xf32>
    %127 = arith.subf %123, %126 : vector<16x16xf32>
    %128 = math.exp %127 : vector<16x16xf32>
    %cst_52 = arith.constant dense<0.000000e+00> : vector<16xf32>
    %129 = vector.multi_reduction <add>, %128, %cst_52 [1] : vector<16x16xf32> to vector<16xf32>
    %130 = vector.shape_cast %129 : vector<16xf32> to vector<16x1xf32>
    %131 = tpu.reciprocal %130 {approx = true} : vector<16x1xf32> -> vector<16x1xf32>
    %132 = vector.broadcast %131 : vector<16x1xf32> to vector<16x16xf32>
    %133 = arith.mulf %128, %132 : vector<16x16xf32>
    %134 = arith.truncf %133 : vector<16x16xf32> to vector<16x16xbf16>
    %135 = vector.extract_strided_slice %82 {offsets = [0, 32], sizes = [16, 32], strides = [1, 1]} : vector<16x128xbf16> to vector<16x32xbf16>
    %cst_53 = arith.constant dense<0.000000e+00> : vector<16x32xf32>
    %136 = tpu.matmul %134, %135, %cst_53 {dimension_numbers = #tpu.dot_dimension_numbers<[1], [0], [0], [1], [0, 0, 1, 1], [], []>} : vector<16x16xbf16>, vector<16x32xbf16>, vector<16x32xf32> -> vector<16x32xf32>
    %137 = vector.extract_strided_slice %88 {offsets = [0, 64], sizes = [16, 32], strides = [1, 1]} : vector<16x128xbf16> to vector<16x32xbf16>
    %138 = vector.extract_strided_slice %80 {offsets = [0, 64], sizes = [16, 32], strides = [1, 1]} : vector<16x128xbf16> to vector<16x32xbf16>
    %cst_54 = arith.constant dense<0.000000e+00> : vector<16x16xf32>
    %139 = tpu.matmul %137, %138, %cst_54 {dimension_numbers = #tpu.dot_dimension_numbers<[1], [1], [0], [0], [0, 0, 1, 0], [], []>} : vector<16x32xbf16>, vector<16x32xbf16>, vector<16x16xf32> -> vector<16x16xf32>
    %140 = vector.extract_strided_slice %92 {offsets = [0, 64], sizes = [16, 32], strides = [1, 1]} : vector<16x128xbf16> to vector<16x32xbf16>
    %141 = vector.extract_strided_slice %84 {offsets = [0, 64], sizes = [16, 32], strides = [1, 1]} : vector<16x128xbf16> to vector<16x32xbf16>
    %cst_55 = arith.constant dense<0.000000e+00> : vector<16x16xf32>
    %142 = tpu.matmul %140, %141, %cst_55 {dimension_numbers = #tpu.dot_dimension_numbers<[1], [1], [0], [0], [0, 0, 1, 0], [], []>} : vector<16x32xbf16>, vector<16x32xbf16>, vector<16x16xf32> -> vector<16x16xf32>
    %143 = arith.addf %139, %142 : vector<16x16xf32>
    %cst_56 = arith.constant 0.176776692 : f32
    %144 = vector.broadcast %cst_56 : f32 to vector<16x16xf32>
    %145 = arith.mulf %143, %144 : vector<16x16xf32>
    %cst_57 = arith.constant dense<0xFF800000> : vector<16xf32>
    %146 = vector.multi_reduction <maximumf>, %145, %cst_57 [1] : vector<16x16xf32> to vector<16xf32>
    %147 = vector.shape_cast %146 : vector<16xf32> to vector<16x1xf32>
    %148 = vector.broadcast %147 : vector<16x1xf32> to vector<16x16xf32>
    %149 = arith.subf %145, %148 : vector<16x16xf32>
    %150 = math.exp %149 : vector<16x16xf32>
    %cst_58 = arith.constant dense<0.000000e+00> : vector<16xf32>
    %151 = vector.multi_reduction <add>, %150, %cst_58 [1] : vector<16x16xf32> to vector<16xf32>
    %152 = vector.shape_cast %151 : vector<16xf32> to vector<16x1xf32>
    %153 = tpu.reciprocal %152 {approx = true} : vector<16x1xf32> -> vector<16x1xf32>
    %154 = vector.broadcast %153 : vector<16x1xf32> to vector<16x16xf32>
    %155 = arith.mulf %150, %154 : vector<16x16xf32>
    %156 = arith.truncf %155 : vector<16x16xf32> to vector<16x16xbf16>
    %157 = vector.extract_strided_slice %82 {offsets = [0, 64], sizes = [16, 32], strides = [1, 1]} : vector<16x128xbf16> to vector<16x32xbf16>
    %cst_59 = arith.constant dense<0.000000e+00> : vector<16x32xf32>
    %158 = tpu.matmul %156, %157, %cst_59 {dimension_numbers = #tpu.dot_dimension_numbers<[1], [0], [0], [1], [0, 0, 1, 1], [], []>} : vector<16x16xbf16>, vector<16x32xbf16>, vector<16x32xf32> -> vector<16x32xf32>
    %159 = vector.extract_strided_slice %88 {offsets = [0, 96], sizes = [16, 32], strides = [1, 1]} : vector<16x128xbf16> to vector<16x32xbf16>
    %160 = vector.extract_strided_slice %80 {offsets = [0, 96], sizes = [16, 32], strides = [1, 1]} : vector<16x128xbf16> to vector<16x32xbf16>
    %cst_60 = arith.constant dense<0.000000e+00> : vector<16x16xf32>
    %161 = tpu.matmul %159, %160, %cst_60 {dimension_numbers = #tpu.dot_dimension_numbers<[1], [1], [0], [0], [0, 0, 1, 0], [], []>} : vector<16x32xbf16>, vector<16x32xbf16>, vector<16x16xf32> -> vector<16x16xf32>
    %162 = vector.extract_strided_slice %92 {offsets = [0, 96], sizes = [16, 32], strides = [1, 1]} : vector<16x128xbf16> to vector<16x32xbf16>
    %163 = vector.extract_strided_slice %84 {offsets = [0, 96], sizes = [16, 32], strides = [1, 1]} : vector<16x128xbf16> to vector<16x32xbf16>
    %cst_61 = arith.constant dense<0.000000e+00> : vector<16x16xf32>
    %164 = tpu.matmul %162, %163, %cst_61 {dimension_numbers = #tpu.dot_dimension_numbers<[1], [1], [0], [0], [0, 0, 1, 0], [], []>} : vector<16x32xbf16>, vector<16x32xbf16>, vector<16x16xf32> -> vector<16x16xf32>
    %165 = arith.addf %161, %164 : vector<16x16xf32>
    %cst_62 = arith.constant 0.176776692 : f32
    %166 = vector.broadcast %cst_62 : f32 to vector<16x16xf32>
    %167 = arith.mulf %165, %166 : vector<16x16xf32>
    %cst_63 = arith.constant dense<0xFF800000> : vector<16xf32>
    %168 = vector.multi_reduction <maximumf>, %167, %cst_63 [1] : vector<16x16xf32> to vector<16xf32>
    %169 = vector.shape_cast %168 : vector<16xf32> to vector<16x1xf32>
    %170 = vector.broadcast %169 : vector<16x1xf32> to vector<16x16xf32>
    %171 = arith.subf %167, %170 : vector<16x16xf32>
    %172 = math.exp %171 : vector<16x16xf32>
    %cst_64 = arith.constant dense<0.000000e+00> : vector<16xf32>
    %173 = vector.multi_reduction <add>, %172, %cst_64 [1] : vector<16x16xf32> to vector<16xf32>
    %174 = vector.shape_cast %173 : vector<16xf32> to vector<16x1xf32>
    %175 = tpu.reciprocal %174 {approx = true} : vector<16x1xf32> -> vector<16x1xf32>
    %176 = vector.broadcast %175 : vector<16x1xf32> to vector<16x16xf32>
    %177 = arith.mulf %172, %176 : vector<16x16xf32>
    %178 = arith.truncf %177 : vector<16x16xf32> to vector<16x16xbf16>
    %179 = vector.extract_strided_slice %82 {offsets = [0, 96], sizes = [16, 32], strides = [1, 1]} : vector<16x128xbf16> to vector<16x32xbf16>
    %cst_65 = arith.constant dense<0.000000e+00> : vector<16x32xf32>
    %180 = tpu.matmul %178, %179, %cst_65 {dimension_numbers = #tpu.dot_dimension_numbers<[1], [0], [0], [1], [0, 0, 1, 1], [], []>} : vector<16x16xbf16>, vector<16x32xbf16>, vector<16x32xf32> -> vector<16x32xf32>
    %181 = tpu.concatenate %114, %136, %158, %180 in 1 : vector<16x32xf32>, vector<16x32xf32>, vector<16x32xf32>, vector<16x32xf32> -> vector<16x128xf32>
    %182 = arith.truncf %181 : vector<16x128xf32> to vector<16x128xbf16>
    %c0_66 = arith.constant 0 : index
    %c0_67 = arith.constant 0 : index
    %183 = vector.load %arg15[%c0_66, %c0_67] : memref<128x128xbf16, #tpu.memory_space<vmem>>, vector<128x128xbf16>
    %cst_68 = arith.constant dense<0.000000e+00> : vector<16x128xf32>
    %184 = tpu.matmul %182, %183, %cst_68 {dimension_numbers = #tpu.dot_dimension_numbers<[1], [0], [0], [1], [0, 0, 1, 1], [], []>} : vector<16x128xbf16>, vector<128x128xbf16>, vector<16x128xf32> -> vector<16x128xf32>
    %185 = arith.addf %47, %184 : vector<16x128xf32>
    %c0_69 = arith.constant 0 : index
    %c0_70 = arith.constant 0 : index
    %186 = vector.load %arg16[%c0_69, %c0_70] : memref<1x128xf32, #tpu.memory_space<vmem>>, vector<1x128xf32>
    %187 = vector.broadcast %186 : vector<1x128xf32> to vector<16x128xf32>
    %188 = arith.addf %185, %187 : vector<16x128xf32>
    %c0_71 = arith.constant 0 : index
    %c0_72 = arith.constant 0 : index
    %189 = vector.load %arg17[%c0_71, %c0_72] : memref<1x128xf32, #tpu.memory_space<vmem>>, vector<1x128xf32>
    %c0_73 = arith.constant 0 : index
    %c0_74 = arith.constant 0 : index
    %190 = vector.load %arg18[%c0_73, %c0_74] : memref<1x128xf32, #tpu.memory_space<vmem>>, vector<1x128xf32>
    %cst_75 = arith.constant dense<0.000000e+00> : vector<16xf32>
    %191 = vector.multi_reduction <add>, %188, %cst_75 [1] : vector<16x128xf32> to vector<16xf32>
    %192 = vector.shape_cast %191 : vector<16xf32> to vector<16x1xf32>
    %cst_76 = arith.constant 1.280000e+02 : f32
    %193 = vector.broadcast %cst_76 : f32 to vector<16x1xf32>
    %194 = arith.divf %192, %193 : vector<16x1xf32>
    %195 = vector.broadcast %194 : vector<16x1xf32> to vector<16x128xf32>
    %196 = arith.subf %188, %195 : vector<16x128xf32>
    %197 = arith.mulf %196, %196 : vector<16x128xf32>
    %cst_77 = arith.constant dense<0.000000e+00> : vector<16xf32>
    %198 = vector.multi_reduction <add>, %197, %cst_77 [1] : vector<16x128xf32> to vector<16xf32>
    %199 = vector.shape_cast %198 : vector<16xf32> to vector<16x1xf32>
    %cst_78 = arith.constant 1.280000e+02 : f32
    %200 = vector.broadcast %cst_78 : f32 to vector<16x1xf32>
    %201 = arith.divf %199, %200 : vector<16x1xf32>
    %202 = vector.broadcast %194 : vector<16x1xf32> to vector<16x128xf32>
    %203 = arith.subf %188, %202 : vector<16x128xf32>
    %cst_79 = arith.constant 9.99999974E-6 : f32
    %204 = vector.broadcast %cst_79 : f32 to vector<16x1xf32>
    %205 = arith.addf %201, %204 : vector<16x1xf32>
    %206 = math.rsqrt %205 : vector<16x1xf32>
    %207 = vector.broadcast %206 : vector<16x1xf32> to vector<16x128xf32>
    %208 = arith.mulf %203, %207 : vector<16x128xf32>
    %209 = vector.broadcast %189 : vector<1x128xf32> to vector<16x128xf32>
    %210 = arith.mulf %208, %209 : vector<16x128xf32>
    %211 = vector.broadcast %190 : vector<1x128xf32> to vector<16x128xf32>
    %212 = arith.addf %210, %211 : vector<16x128xf32>
    %213 = arith.truncf %212 : vector<16x128xf32> to vector<16x128xbf16>
    %c0_80 = arith.constant 0 : index
    %c0_81 = arith.constant 0 : index
    %214 = vector.load %arg19[%c0_80, %c0_81] : memref<128x256xbf16, #tpu.memory_space<vmem>>, vector<128x256xbf16>
    %cst_82 = arith.constant dense<0.000000e+00> : vector<16x256xf32>
    %215 = tpu.matmul %213, %214, %cst_82 {dimension_numbers = #tpu.dot_dimension_numbers<[1], [0], [0], [1], [0, 0, 1, 1], [], []>} : vector<16x128xbf16>, vector<128x256xbf16>, vector<16x256xf32> -> vector<16x256xf32>
    %c0_83 = arith.constant 0 : index
    %c0_84 = arith.constant 0 : index
    %216 = vector.load %arg20[%c0_83, %c0_84] : memref<1x256xf32, #tpu.memory_space<vmem>>, vector<1x256xf32>
    %217 = vector.broadcast %216 : vector<1x256xf32> to vector<16x256xf32>
    %218 = arith.addf %215, %217 : vector<16x256xf32>
    %219 = vector.extract_strided_slice %218 {offsets = [0, 0], sizes = [16, 128], strides = [1, 1]} : vector<16x256xf32> to vector<16x128xf32>
    %220 = vector.extract_strided_slice %218 {offsets = [0, 128], sizes = [16, 128], strides = [1, 1]} : vector<16x256xf32> to vector<16x128xf32>
    %221 = arith.negf %220 : vector<16x128xf32>
    %222 = math.exp %221 : vector<16x128xf32>
    %cst_85 = arith.constant 1.000000e+00 : f32
    %223 = vector.broadcast %cst_85 : f32 to vector<16x128xf32>
    %224 = arith.addf %223, %222 : vector<16x128xf32>
    %225 = arith.divf %223, %224 : vector<16x128xf32>
    %226 = arith.mulf %219, %225 : vector<16x128xf32>
    %cst_86 = arith.constant 0.000000e+00 : f32
    %227 = vector.broadcast %cst_86 : f32 to vector<7x128xf32>
    %228 = tpu.concatenate %227, %226, %227 in 0 : vector<7x128xf32>, vector<16x128xf32>, vector<7x128xf32> -> vector<30x128xf32>
    %c0_87 = arith.constant 0 : index
    %c0_88 = arith.constant 0 : index
    %229 = vector.load %arg21[%c0_87, %c0_88] : memref<15x128xf32, #tpu.memory_space<vmem>>, vector<15x128xf32>
    %cst_89 = arith.constant 0.000000e+00 : f32
    %230 = vector.broadcast %cst_89 : f32 to vector<16x128xf32>
    %231 = vector.extract_strided_slice %228 {offsets = [0, 0], sizes = [16, 128], strides = [1, 1]} : vector<30x128xf32> to vector<16x128xf32>
    %232 = vector.extract_strided_slice %229 {offsets = [0, 0], sizes = [1, 128], strides = [1, 1]} : vector<15x128xf32> to vector<1x128xf32>
    %233 = vector.broadcast %232 : vector<1x128xf32> to vector<16x128xf32>
    %234 = arith.mulf %231, %233 : vector<16x128xf32>
    %235 = arith.addf %230, %234 : vector<16x128xf32>
    %236 = vector.extract_strided_slice %228 {offsets = [1, 0], sizes = [16, 128], strides = [1, 1]} : vector<30x128xf32> to vector<16x128xf32>
    %237 = vector.extract_strided_slice %229 {offsets = [1, 0], sizes = [1, 128], strides = [1, 1]} : vector<15x128xf32> to vector<1x128xf32>
    %238 = vector.broadcast %237 : vector<1x128xf32> to vector<16x128xf32>
    %239 = arith.mulf %236, %238 : vector<16x128xf32>
    %240 = arith.addf %235, %239 : vector<16x128xf32>
    %241 = vector.extract_strided_slice %228 {offsets = [2, 0], sizes = [16, 128], strides = [1, 1]} : vector<30x128xf32> to vector<16x128xf32>
    %242 = vector.extract_strided_slice %229 {offsets = [2, 0], sizes = [1, 128], strides = [1, 1]} : vector<15x128xf32> to vector<1x128xf32>
    %243 = vector.broadcast %242 : vector<1x128xf32> to vector<16x128xf32>
    %244 = arith.mulf %241, %243 : vector<16x128xf32>
    %245 = arith.addf %240, %244 : vector<16x128xf32>
    %246 = vector.extract_strided_slice %228 {offsets = [3, 0], sizes = [16, 128], strides = [1, 1]} : vector<30x128xf32> to vector<16x128xf32>
    %247 = vector.extract_strided_slice %229 {offsets = [3, 0], sizes = [1, 128], strides = [1, 1]} : vector<15x128xf32> to vector<1x128xf32>
    %248 = vector.broadcast %247 : vector<1x128xf32> to vector<16x128xf32>
    %249 = arith.mulf %246, %248 : vector<16x128xf32>
    %250 = arith.addf %245, %249 : vector<16x128xf32>
    %251 = vector.extract_strided_slice %228 {offsets = [4, 0], sizes = [16, 128], strides = [1, 1]} : vector<30x128xf32> to vector<16x128xf32>
    %252 = vector.extract_strided_slice %229 {offsets = [4, 0], sizes = [1, 128], strides = [1, 1]} : vector<15x128xf32> to vector<1x128xf32>
    %253 = vector.broadcast %252 : vector<1x128xf32> to vector<16x128xf32>
    %254 = arith.mulf %251, %253 : vector<16x128xf32>
    %255 = arith.addf %250, %254 : vector<16x128xf32>
    %256 = vector.extract_strided_slice %228 {offsets = [5, 0], sizes = [16, 128], strides = [1, 1]} : vector<30x128xf32> to vector<16x128xf32>
    %257 = vector.extract_strided_slice %229 {offsets = [5, 0], sizes = [1, 128], strides = [1, 1]} : vector<15x128xf32> to vector<1x128xf32>
    %258 = vector.broadcast %257 : vector<1x128xf32> to vector<16x128xf32>
    %259 = arith.mulf %256, %258 : vector<16x128xf32>
    %260 = arith.addf %255, %259 : vector<16x128xf32>
    %261 = vector.extract_strided_slice %228 {offsets = [6, 0], sizes = [16, 128], strides = [1, 1]} : vector<30x128xf32> to vector<16x128xf32>
    %262 = vector.extract_strided_slice %229 {offsets = [6, 0], sizes = [1, 128], strides = [1, 1]} : vector<15x128xf32> to vector<1x128xf32>
    %263 = vector.broadcast %262 : vector<1x128xf32> to vector<16x128xf32>
    %264 = arith.mulf %261, %263 : vector<16x128xf32>
    %265 = arith.addf %260, %264 : vector<16x128xf32>
    %266 = vector.extract_strided_slice %228 {offsets = [7, 0], sizes = [16, 128], strides = [1, 1]} : vector<30x128xf32> to vector<16x128xf32>
    %267 = vector.extract_strided_slice %229 {offsets = [7, 0], sizes = [1, 128], strides = [1, 1]} : vector<15x128xf32> to vector<1x128xf32>
    %268 = vector.broadcast %267 : vector<1x128xf32> to vector<16x128xf32>
    %269 = arith.mulf %266, %268 : vector<16x128xf32>
    %270 = arith.addf %265, %269 : vector<16x128xf32>
    %271 = vector.extract_strided_slice %228 {offsets = [8, 0], sizes = [16, 128], strides = [1, 1]} : vector<30x128xf32> to vector<16x128xf32>
    %272 = vector.extract_strided_slice %229 {offsets = [8, 0], sizes = [1, 128], strides = [1, 1]} : vector<15x128xf32> to vector<1x128xf32>
    %273 = vector.broadcast %272 : vector<1x128xf32> to vector<16x128xf32>
    %274 = arith.mulf %271, %273 : vector<16x128xf32>
    %275 = arith.addf %270, %274 : vector<16x128xf32>
    %276 = vector.extract_strided_slice %228 {offsets = [9, 0], sizes = [16, 128], strides = [1, 1]} : vector<30x128xf32> to vector<16x128xf32>
    %277 = vector.extract_strided_slice %229 {offsets = [9, 0], sizes = [1, 128], strides = [1, 1]} : vector<15x128xf32> to vector<1x128xf32>
    %278 = vector.broadcast %277 : vector<1x128xf32> to vector<16x128xf32>
    %279 = arith.mulf %276, %278 : vector<16x128xf32>
    %280 = arith.addf %275, %279 : vector<16x128xf32>
    %281 = vector.extract_strided_slice %228 {offsets = [10, 0], sizes = [16, 128], strides = [1, 1]} : vector<30x128xf32> to vector<16x128xf32>
    %282 = vector.extract_strided_slice %229 {offsets = [10, 0], sizes = [1, 128], strides = [1, 1]} : vector<15x128xf32> to vector<1x128xf32>
    %283 = vector.broadcast %282 : vector<1x128xf32> to vector<16x128xf32>
    %284 = arith.mulf %281, %283 : vector<16x128xf32>
    %285 = arith.addf %280, %284 : vector<16x128xf32>
    %286 = vector.extract_strided_slice %228 {offsets = [11, 0], sizes = [16, 128], strides = [1, 1]} : vector<30x128xf32> to vector<16x128xf32>
    %287 = vector.extract_strided_slice %229 {offsets = [11, 0], sizes = [1, 128], strides = [1, 1]} : vector<15x128xf32> to vector<1x128xf32>
    %288 = vector.broadcast %287 : vector<1x128xf32> to vector<16x128xf32>
    %289 = arith.mulf %286, %288 : vector<16x128xf32>
    %290 = arith.addf %285, %289 : vector<16x128xf32>
    %291 = vector.extract_strided_slice %228 {offsets = [12, 0], sizes = [16, 128], strides = [1, 1]} : vector<30x128xf32> to vector<16x128xf32>
    %292 = vector.extract_strided_slice %229 {offsets = [12, 0], sizes = [1, 128], strides = [1, 1]} : vector<15x128xf32> to vector<1x128xf32>
    %293 = vector.broadcast %292 : vector<1x128xf32> to vector<16x128xf32>
    %294 = arith.mulf %291, %293 : vector<16x128xf32>
    %295 = arith.addf %290, %294 : vector<16x128xf32>
    %296 = vector.extract_strided_slice %228 {offsets = [13, 0], sizes = [16, 128], strides = [1, 1]} : vector<30x128xf32> to vector<16x128xf32>
    %297 = vector.extract_strided_slice %229 {offsets = [13, 0], sizes = [1, 128], strides = [1, 1]} : vector<15x128xf32> to vector<1x128xf32>
    %298 = vector.broadcast %297 : vector<1x128xf32> to vector<16x128xf32>
    %299 = arith.mulf %296, %298 : vector<16x128xf32>
    %300 = arith.addf %295, %299 : vector<16x128xf32>
    %301 = vector.extract_strided_slice %228 {offsets = [14, 0], sizes = [16, 128], strides = [1, 1]} : vector<30x128xf32> to vector<16x128xf32>
    %302 = vector.extract_strided_slice %229 {offsets = [14, 0], sizes = [1, 128], strides = [1, 1]} : vector<15x128xf32> to vector<1x128xf32>
    %303 = vector.broadcast %302 : vector<1x128xf32> to vector<16x128xf32>
    %304 = arith.mulf %301, %303 : vector<16x128xf32>
    %305 = arith.addf %300, %304 : vector<16x128xf32>
    %c0_90 = arith.constant 0 : index
    %c0_91 = arith.constant 0 : index
    %306 = vector.load %arg22[%c0_90, %c0_91] : memref<1x128xf32, #tpu.memory_space<vmem>>, vector<1x128xf32>
    %307 = vector.broadcast %306 : vector<1x128xf32> to vector<16x128xf32>
    %308 = arith.addf %305, %307 : vector<16x128xf32>
    %c0_92 = arith.constant 0 : index
    %c0_93 = arith.constant 0 : index
    %309 = vector.load %arg23[%c0_92, %c0_93] : memref<1x128xf32, #tpu.memory_space<vmem>>, vector<1x128xf32>
    %310 = vector.broadcast %309 : vector<1x128xf32> to vector<16x128xf32>
    %311 = arith.mulf %308, %310 : vector<16x128xf32>
    %c0_94 = arith.constant 0 : index
    %c0_95 = arith.constant 0 : index
    %312 = vector.load %arg24[%c0_94, %c0_95] : memref<1x128xf32, #tpu.memory_space<vmem>>, vector<1x128xf32>
    %313 = vector.broadcast %312 : vector<1x128xf32> to vector<16x128xf32>
    %314 = arith.addf %311, %313 : vector<16x128xf32>
    %315 = arith.negf %314 : vector<16x128xf32>
    %316 = math.exp %315 : vector<16x128xf32>
    %cst_96 = arith.constant 1.000000e+00 : f32
    %317 = vector.broadcast %cst_96 : f32 to vector<16x128xf32>
    %318 = arith.addf %317, %316 : vector<16x128xf32>
    %319 = arith.divf %317, %318 : vector<16x128xf32>
    %320 = arith.mulf %314, %319 : vector<16x128xf32>
    %321 = arith.truncf %320 : vector<16x128xf32> to vector<16x128xbf16>
    %c0_97 = arith.constant 0 : index
    %c0_98 = arith.constant 0 : index
    %322 = vector.load %arg25[%c0_97, %c0_98] : memref<128x128xbf16, #tpu.memory_space<vmem>>, vector<128x128xbf16>
    %cst_99 = arith.constant dense<0.000000e+00> : vector<16x128xf32>
    %323 = tpu.matmul %321, %322, %cst_99 {dimension_numbers = #tpu.dot_dimension_numbers<[1], [0], [0], [1], [0, 0, 1, 1], [], []>} : vector<16x128xbf16>, vector<128x128xbf16>, vector<16x128xf32> -> vector<16x128xf32>
    %c0_100 = arith.constant 0 : index
    %c0_101 = arith.constant 0 : index
    %324 = vector.load %arg26[%c0_100, %c0_101] : memref<1x128xf32, #tpu.memory_space<vmem>>, vector<1x128xf32>
    %325 = vector.broadcast %324 : vector<1x128xf32> to vector<16x128xf32>
    %326 = arith.addf %323, %325 : vector<16x128xf32>
    %327 = arith.addf %188, %326 : vector<16x128xf32>
    %c0_102 = arith.constant 0 : index
    %c0_103 = arith.constant 0 : index
    %328 = vector.load %arg27[%c0_102, %c0_103] : memref<1x128xf32, #tpu.memory_space<vmem>>, vector<1x128xf32>
    %c0_104 = arith.constant 0 : index
    %c0_105 = arith.constant 0 : index
    %329 = vector.load %arg28[%c0_104, %c0_105] : memref<1x128xf32, #tpu.memory_space<vmem>>, vector<1x128xf32>
    %cst_106 = arith.constant dense<0.000000e+00> : vector<16xf32>
    %330 = vector.multi_reduction <add>, %327, %cst_106 [1] : vector<16x128xf32> to vector<16xf32>
    %331 = vector.shape_cast %330 : vector<16xf32> to vector<16x1xf32>
    %cst_107 = arith.constant 1.280000e+02 : f32
    %332 = vector.broadcast %cst_107 : f32 to vector<16x1xf32>
    %333 = arith.divf %331, %332 : vector<16x1xf32>
    %334 = vector.broadcast %333 : vector<16x1xf32> to vector<16x128xf32>
    %335 = arith.subf %327, %334 : vector<16x128xf32>
    %336 = arith.mulf %335, %335 : vector<16x128xf32>
    %cst_108 = arith.constant dense<0.000000e+00> : vector<16xf32>
    %337 = vector.multi_reduction <add>, %336, %cst_108 [1] : vector<16x128xf32> to vector<16xf32>
    %338 = vector.shape_cast %337 : vector<16xf32> to vector<16x1xf32>
    %cst_109 = arith.constant 1.280000e+02 : f32
    %339 = vector.broadcast %cst_109 : f32 to vector<16x1xf32>
    %340 = arith.divf %338, %339 : vector<16x1xf32>
    %341 = vector.broadcast %333 : vector<16x1xf32> to vector<16x128xf32>
    %342 = arith.subf %327, %341 : vector<16x128xf32>
    %cst_110 = arith.constant 9.99999974E-6 : f32
    %343 = vector.broadcast %cst_110 : f32 to vector<16x1xf32>
    %344 = arith.addf %340, %343 : vector<16x1xf32>
    %345 = math.rsqrt %344 : vector<16x1xf32>
    %346 = vector.broadcast %345 : vector<16x1xf32> to vector<16x128xf32>
    %347 = arith.mulf %342, %346 : vector<16x128xf32>
    %348 = vector.broadcast %328 : vector<1x128xf32> to vector<16x128xf32>
    %349 = arith.mulf %347, %348 : vector<16x128xf32>
    %350 = vector.broadcast %329 : vector<1x128xf32> to vector<16x128xf32>
    %351 = arith.addf %349, %350 : vector<16x128xf32>
    %352 = arith.truncf %351 : vector<16x128xf32> to vector<16x128xbf16>
    %c0_111 = arith.constant 0 : index
    %c0_112 = arith.constant 0 : index
    %353 = vector.load %arg29[%c0_111, %c0_112] : memref<128x256xbf16, #tpu.memory_space<vmem>>, vector<128x256xbf16>
    %cst_113 = arith.constant dense<0.000000e+00> : vector<16x256xf32>
    %354 = tpu.matmul %352, %353, %cst_113 {dimension_numbers = #tpu.dot_dimension_numbers<[1], [0], [0], [1], [0, 0, 1, 1], [], []>} : vector<16x128xbf16>, vector<128x256xbf16>, vector<16x256xf32> -> vector<16x256xf32>
    %c0_114 = arith.constant 0 : index
    %c0_115 = arith.constant 0 : index
    %355 = vector.load %arg30[%c0_114, %c0_115] : memref<1x256xf32, #tpu.memory_space<vmem>>, vector<1x256xf32>
    %356 = vector.broadcast %355 : vector<1x256xf32> to vector<16x256xf32>
    %357 = arith.addf %354, %356 : vector<16x256xf32>
    %358 = arith.negf %357 : vector<16x256xf32>
    %359 = math.exp %358 : vector<16x256xf32>
    %cst_116 = arith.constant 1.000000e+00 : f32
    %360 = vector.broadcast %cst_116 : f32 to vector<16x256xf32>
    %361 = arith.addf %360, %359 : vector<16x256xf32>
    %362 = arith.divf %360, %361 : vector<16x256xf32>
    %363 = arith.mulf %357, %362 : vector<16x256xf32>
    %364 = arith.truncf %363 : vector<16x256xf32> to vector<16x256xbf16>
    %c0_117 = arith.constant 0 : index
    %c0_118 = arith.constant 0 : index
    %365 = vector.load %arg31[%c0_117, %c0_118] : memref<256x128xbf16, #tpu.memory_space<vmem>>, vector<256x128xbf16>
    %cst_119 = arith.constant dense<0.000000e+00> : vector<16x128xf32>
    %366 = tpu.matmul %364, %365, %cst_119 {dimension_numbers = #tpu.dot_dimension_numbers<[1], [0], [0], [1], [0, 0, 1, 1], [], []>} : vector<16x256xbf16>, vector<256x128xbf16>, vector<16x128xf32> -> vector<16x128xf32>
    %c0_120 = arith.constant 0 : index
    %c0_121 = arith.constant 0 : index
    %367 = vector.load %arg32[%c0_120, %c0_121] : memref<1x128xf32, #tpu.memory_space<vmem>>, vector<1x128xf32>
    %368 = vector.broadcast %367 : vector<1x128xf32> to vector<16x128xf32>
    %369 = arith.addf %366, %368 : vector<16x128xf32>
    %cst_122 = arith.constant 5.000000e-01 : f32
    %370 = vector.broadcast %cst_122 : f32 to vector<16x128xf32>
    %371 = arith.mulf %370, %369 : vector<16x128xf32>
    %372 = arith.addf %327, %371 : vector<16x128xf32>
    %c0_123 = arith.constant 0 : index
    %c0_124 = arith.constant 0 : index
    %373 = vector.load %arg33[%c0_123, %c0_124] : memref<1x128xf32, #tpu.memory_space<vmem>>, vector<1x128xf32>
    %c0_125 = arith.constant 0 : index
    %c0_126 = arith.constant 0 : index
    %374 = vector.load %arg34[%c0_125, %c0_126] : memref<1x128xf32, #tpu.memory_space<vmem>>, vector<1x128xf32>
    %cst_127 = arith.constant dense<0.000000e+00> : vector<16xf32>
    %375 = vector.multi_reduction <add>, %372, %cst_127 [1] : vector<16x128xf32> to vector<16xf32>
    %376 = vector.shape_cast %375 : vector<16xf32> to vector<16x1xf32>
    %cst_128 = arith.constant 1.280000e+02 : f32
    %377 = vector.broadcast %cst_128 : f32 to vector<16x1xf32>
    %378 = arith.divf %376, %377 : vector<16x1xf32>
    %379 = vector.broadcast %378 : vector<16x1xf32> to vector<16x128xf32>
    %380 = arith.subf %372, %379 : vector<16x128xf32>
    %381 = arith.mulf %380, %380 : vector<16x128xf32>
    %cst_129 = arith.constant dense<0.000000e+00> : vector<16xf32>
    %382 = vector.multi_reduction <add>, %381, %cst_129 [1] : vector<16x128xf32> to vector<16xf32>
    %383 = vector.shape_cast %382 : vector<16xf32> to vector<16x1xf32>
    %cst_130 = arith.constant 1.280000e+02 : f32
    %384 = vector.broadcast %cst_130 : f32 to vector<16x1xf32>
    %385 = arith.divf %383, %384 : vector<16x1xf32>
    %386 = vector.broadcast %378 : vector<16x1xf32> to vector<16x128xf32>
    %387 = arith.subf %372, %386 : vector<16x128xf32>
    %cst_131 = arith.constant 9.99999974E-6 : f32
    %388 = vector.broadcast %cst_131 : f32 to vector<16x1xf32>
    %389 = arith.addf %385, %388 : vector<16x1xf32>
    %390 = math.rsqrt %389 : vector<16x1xf32>
    %391 = vector.broadcast %390 : vector<16x1xf32> to vector<16x128xf32>
    %392 = arith.mulf %387, %391 : vector<16x128xf32>
    %393 = vector.broadcast %373 : vector<1x128xf32> to vector<16x128xf32>
    %394 = arith.mulf %392, %393 : vector<16x128xf32>
    %395 = vector.broadcast %374 : vector<1x128xf32> to vector<16x128xf32>
    %396 = arith.addf %394, %395 : vector<16x128xf32>
    %397 = arith.truncf %396 : vector<16x128xf32> to vector<16x128xbf16>
    %c0_132 = arith.constant 0 : index
    %c0_133 = arith.constant 0 : index
    %c0_134 = arith.constant 0 : index
    %398 = vector.load %arg35[%c0_132, %c0_133, %c0_134] : memref<1x16x128xbf16, #tpu.memory_space<vmem>>, vector<1x16x128xbf16>
    %399 = vector.shape_cast %398 : vector<1x16x128xbf16> to vector<16x128xbf16>
    %400 = vector.shape_cast %397 : vector<16x128xbf16> to vector<1x16x128xbf16>
    tpu.vector_store %arg35[%c0_132, %c0_133, %c0_134], %400 {strides = array<i32>} : memref<1x16x128xbf16, #tpu.memory_space<vmem>>, vector<1x16x128xbf16>,
    return
  }
  func.func @transform_0(%arg0: i32) -> (i32, i32, i32) {
    %c0_i32 = arith.constant 0 : i32
    %c0_i32_0 = arith.constant 0 : i32
    %c0_i32_1 = arith.constant 0 : i32
    return %arg0, %c0_i32, %c0_i32_0 : i32, i32, i32
  }
  func.func @transform_1(%arg0: i32) -> (i32, i32) {
    %c0_i32 = arith.constant 0 : i32
    %c0_i32_0 = arith.constant 0 : i32
    %c0_i32_1 = arith.constant 0 : i32
    return %c0_i32, %c0_i32_0 : i32, i32
  }
  func.func @transform_2(%arg0: i32) -> (i32, i32) {
    %c0_i32 = arith.constant 0 : i32
    %c0_i32_0 = arith.constant 0 : i32
    %c0_i32_1 = arith.constant 0 : i32
    return %c0_i32, %c0_i32_0 : i32, i32
  }
  func.func @transform_3(%arg0: i32) -> (i32, i32) {
    %c0_i32 = arith.constant 0 : i32
    %c0_i32_0 = arith.constant 0 : i32
    %c0_i32_1 = arith.constant 0 : i32
    return %c0_i32, %c0_i32_0 : i32, i32
  }
  func.func @transform_4(%arg0: i32) -> (i32, i32) {
    %c0_i32 = arith.constant 0 : i32
    %c0_i32_0 = arith.constant 0 : i32
    %c0_i32_1 = arith.constant 0 : i32
    return %c0_i32, %c0_i32_0 : i32, i32
  }
  func.func @transform_5(%arg0: i32) -> (i32, i32) {
    %c0_i32 = arith.constant 0 : i32
    %c0_i32_0 = arith.constant 0 : i32
    %c0_i32_1 = arith.constant 0 : i32
    return %c0_i32, %c0_i32_0 : i32, i32
  }
  func.func @transform_6(%arg0: i32) -> (i32, i32) {
    %c0_i32 = arith.constant 0 : i32
    %c0_i32_0 = arith.constant 0 : i32
    %c0_i32_1 = arith.constant 0 : i32
    return %c0_i32, %c0_i32_0 : i32, i32
  }
  func.func @transform_7(%arg0: i32) -> (i32, i32) {
    %c0_i32 = arith.constant 0 : i32
    %c0_i32_0 = arith.constant 0 : i32
    %c0_i32_1 = arith.constant 0 : i32
    return %c0_i32, %c0_i32_0 : i32, i32
  }
  func.func @transform_8(%arg0: i32) -> (i32, i32) {
    %c0_i32 = arith.constant 0 : i32
    %c0_i32_0 = arith.constant 0 : i32
    %c0_i32_1 = arith.constant 0 : i32
    return %c0_i32, %c0_i32_0 : i32, i32
  }
  func.func @transform_9(%arg0: i32) -> (i32, i32) {
    %c0_i32 = arith.constant 0 : i32
    %c0_i32_0 = arith.constant 0 : i32
    %c0_i32_1 = arith.constant 0 : i32
    return %c0_i32, %c0_i32_0 : i32, i32
  }
  func.func @transform_10(%arg0: i32) -> (i32, i32) {
    %c0_i32 = arith.constant 0 : i32
    %c0_i32_0 = arith.constant 0 : i32
    %c0_i32_1 = arith.constant 0 : i32
    return %c0_i32, %c0_i32_0 : i32, i32
  }
  func.func @transform_11(%arg0: i32) -> (i32, i32) {
    %c0_i32 = arith.constant 0 : i32
    %c0_i32_0 = arith.constant 0 : i32
    %c0_i32_1 = arith.constant 0 : i32
    return %c0_i32, %c0_i32_0 : i32, i32
  }
  func.func @transform_12(%arg0: i32) -> (i32, i32) {
    %c0_i32 = arith.constant 0 : i32
    %c0_i32_0 = arith.constant 0 : i32
    %c0_i32_1 = arith.constant 0 : i32
    return %c0_i32, %c0_i32_0 : i32, i32
  }
  func.func @transform_13(%arg0: i32) -> (i32, i32) {
    %c0_i32 = arith.constant 0 : i32
    %c0_i32_0 = arith.constant 0 : i32
    %c0_i32_1 = arith.constant 0 : i32
    return %c0_i32, %c0_i32_0 : i32, i32
  }
  func.func @transform_14(%arg0: i32) -> (i32, i32) {
    %c0_i32 = arith.constant 0 : i32
    %c0_i32_0 = arith.constant 0 : i32
    %c0_i32_1 = arith.constant 0 : i32
    return %c0_i32, %c0_i32_0 : i32, i32
  }
  func.func @transform_15(%arg0: i32) -> (i32, i32) {
    %c0_i32 = arith.constant 0 : i32
    %c0_i32_0 = arith.constant 0 : i32
    %c0_i32_1 = arith.constant 0 : i32
    return %c0_i32, %c0_i32_0 : i32, i32
  }
  func.func @transform_16(%arg0: i32) -> (i32, i32) {
    %c0_i32 = arith.constant 0 : i32
    %c0_i32_0 = arith.constant 0 : i32
    %c0_i32_1 = arith.constant 0 : i32
    return %c0_i32, %c0_i32_0 : i32, i32
  }
  func.func @transform_17(%arg0: i32) -> (i32, i32) {
    %c0_i32 = arith.constant 0 : i32
    %c0_i32_0 = arith.constant 0 : i32
    %c0_i32_1 = arith.constant 0 : i32
    return %c0_i32, %c0_i32_0 : i32, i32
  }
  func.func @transform_18(%arg0: i32) -> (i32, i32) {
    %c0_i32 = arith.constant 0 : i32
    %c0_i32_0 = arith.constant 0 : i32
    %c0_i32_1 = arith.constant 0 : i32
    return %c0_i32, %c0_i32_0 : i32, i32
  }
  func.func @transform_19(%arg0: i32) -> (i32, i32) {
    %c0_i32 = arith.constant 0 : i32
    %c0_i32_0 = arith.constant 0 : i32
    %c0_i32_1 = arith.constant 0 : i32
    return %c0_i32, %c0_i32_0 : i32, i32
  }
  func.func @transform_20(%arg0: i32) -> (i32, i32) {
    %c0_i32 = arith.constant 0 : i32
    %c0_i32_0 = arith.constant 0 : i32
    %c0_i32_1 = arith.constant 0 : i32
    return %c0_i32, %c0_i32_0 : i32, i32
  }
  func.func @transform_21(%arg0: i32) -> (i32, i32) {
    %c0_i32 = arith.constant 0 : i32
    %c0_i32_0 = arith.constant 0 : i32
    %c0_i32_1 = arith.constant 0 : i32
    return %c0_i32, %c0_i32_0 : i32, i32
  }
  func.func @transform_22(%arg0: i32) -> (i32, i32) {
    %c0_i32 = arith.constant 0 : i32
    %c0_i32_0 = arith.constant 0 : i32
    %c0_i32_1 = arith.constant 0 : i32
    return %c0_i32, %c0_i32_0 : i32, i32
  }
  func.func @transform_23(%arg0: i32) -> (i32, i32) {
    %c0_i32 = arith.constant 0 : i32
    %c0_i32_0 = arith.constant 0 : i32
    %c0_i32_1 = arith.constant 0 : i32
    return %c0_i32, %c0_i32_0 : i32, i32
  }
  func.func @transform_24(%arg0: i32) -> (i32, i32) {
    %c0_i32 = arith.constant 0 : i32
    %c0_i32_0 = arith.constant 0 : i32
    %c0_i32_1 = arith.constant 0 : i32
    return %c0_i32, %c0_i32_0 : i32, i32
  }
  func.func @transform_25(%arg0: i32) -> (i32, i32) {
    %c0_i32 = arith.constant 0 : i32
    %c0_i32_0 = arith.constant 0 : i32
    %c0_i32_1 = arith.constant 0 : i32
    return %c0_i32, %c0_i32_0 : i32, i32
  }
  func.func @transform_26(%arg0: i32) -> (i32, i32) {
    %c0_i32 = arith.constant 0 : i32
    %c0_i32_0 = arith.constant 0 : i32
    %c0_i32_1 = arith.constant 0 : i32
    return %c0_i32, %c0_i32_0 : i32, i32
  }
  func.func @transform_27(%arg0: i32) -> (i32, i32) {
    %c0_i32 = arith.constant 0 : i32
    %c0_i32_0 = arith.constant 0 : i32
    %c0_i32_1 = arith.constant 0 : i32
    return %c0_i32, %c0_i32_0 : i32, i32
  }
  func.func @transform_28(%arg0: i32) -> (i32, i32) {
    %c0_i32 = arith.constant 0 : i32
    %c0_i32_0 = arith.constant 0 : i32
    %c0_i32_1 = arith.constant 0 : i32
    return %c0_i32, %c0_i32_0 : i32, i32
  }
  func.func @transform_29(%arg0: i32) -> (i32, i32) {
    %c0_i32 = arith.constant 0 : i32
    %c0_i32_0 = arith.constant 0 : i32
    %c0_i32_1 = arith.constant 0 : i32
    return %c0_i32, %c0_i32_0 : i32, i32
  }
  func.func @transform_30(%arg0: i32) -> (i32, i32) {
    %c0_i32 = arith.constant 0 : i32
    %c0_i32_0 = arith.constant 0 : i32
    %c0_i32_1 = arith.constant 0 : i32
    return %c0_i32, %c0_i32_0 : i32, i32
  }
  func.func @transform_31(%arg0: i32) -> (i32, i32) {
    %c0_i32 = arith.constant 0 : i32
    %c0_i32_0 = arith.constant 0 : i32
    %c0_i32_1 = arith.constant 0 : i32
    return %c0_i32, %c0_i32_0 : i32, i32
  }
  func.func @transform_32(%arg0: i32) -> (i32, i32) {
    %c0_i32 = arith.constant 0 : i32
    %c0_i32_0 = arith.constant 0 : i32
    %c0_i32_1 = arith.constant 0 : i32
    return %c0_i32, %c0_i32_0 : i32, i32
  }
  func.func @transform_33(%arg0: i32) -> (i32, i32) {
    %c0_i32 = arith.constant 0 : i32
    %c0_i32_0 = arith.constant 0 : i32
    %c0_i32_1 = arith.constant 0 : i32
    return %c0_i32, %c0_i32_0 : i32, i32
  }
  func.func @transform_34(%arg0: i32) -> (i32, i32, i32) {
    %c0_i32 = arith.constant 0 : i32
    %c0_i32_0 = arith.constant 0 : i32
    %c0_i32_1 = arith.constant 0 : i32
    return %arg0, %c0_i32, %c0_i32_0 : i32, i32, i32
  }
}

module attributes {stable_mosaic.version = 11 : i64} {
  func.func @_block_kernel(%arg0: i32, %arg1: memref<1x16x128xbf16, #tpu.memory_space<vmem>>, %arg2: memref<16x128xf32, #tpu.memory_space<vmem>>, %arg3: memref<1x128xf32, #tpu.memory_space<vmem>>, %arg4: memref<1x128xf32, #tpu.memory_space<vmem>>, %arg5: memref<128x256xbf16, #tpu.memory_space<vmem>>, %arg6: memref<1x256xf32, #tpu.memory_space<vmem>>, %arg7: memref<256x128xbf16, #tpu.memory_space<vmem>>, %arg8: memref<1x128xf32, #tpu.memory_space<vmem>>, %arg9: memref<1x128xf32, #tpu.memory_space<vmem>>, %arg10: memref<1x128xf32, #tpu.memory_space<vmem>>, %arg11: memref<128x384xbf16, #tpu.memory_space<vmem>>, %arg12: memref<1x384xf32, #tpu.memory_space<vmem>>, %arg13: memref<1x128xf32, #tpu.memory_space<vmem>>, %arg14: memref<1x128xf32, #tpu.memory_space<vmem>>, %arg15: memref<128x128xbf16, #tpu.memory_space<vmem>>, %arg16: memref<1x128xf32, #tpu.memory_space<vmem>>, %arg17: memref<1x128xf32, #tpu.memory_space<vmem>>, %arg18: memref<1x128xf32, #tpu.memory_space<vmem>>, %arg19: memref<128x256xbf16, #tpu.memory_space<vmem>>, %arg20: memref<1x256xf32, #tpu.memory_space<vmem>>, %arg21: memref<15x128xf32, #tpu.memory_space<vmem>>, %arg22: memref<1x128xf32, #tpu.memory_space<vmem>>, %arg23: memref<1x128xf32, #tpu.memory_space<vmem>>, %arg24: memref<1x128xf32, #tpu.memory_space<vmem>>, %arg25: memref<128x128xbf16, #tpu.memory_space<vmem>>, %arg26: memref<1x128xf32, #tpu.memory_space<vmem>>, %arg27: memref<1x128xf32, #tpu.memory_space<vmem>>, %arg28: memref<1x128xf32, #tpu.memory_space<vmem>>, %arg29: memref<128x256xbf16, #tpu.memory_space<vmem>>, %arg30: memref<1x256xf32, #tpu.memory_space<vmem>>, %arg31: memref<256x128xbf16, #tpu.memory_space<vmem>>, %arg32: memref<1x128xf32, #tpu.memory_space<vmem>>, %arg33: memref<1x128xf32, #tpu.memory_space<vmem>>, %arg34: memref<1x128xf32, #tpu.memory_space<vmem>>, %arg35: memref<1x16x128xbf16, #tpu.memory_space<vmem>>) attributes {dimension_semantics = [#tpu.dimension_semantics<parallel>], iteration_bounds = array<i64: 2>, scalar_prefetch = 0 : i64, scratch_operands = 0 : i64, tpu.core_type = #tpu.core_type<tc>, window_params = [{transform_indices = @transform_0, window_bounds = array<i64: 1, 16, 128>}, {pipeline_mode = #tpu.pipeline_mode<synchronous>, transform_indices = @transform_1, window_bounds = array<i64: 16, 128>}, {pipeline_mode = #tpu.pipeline_mode<synchronous>, transform_indices = @transform_2, window_bounds = array<i64: 1, 128>}, {pipeline_mode = #tpu.pipeline_mode<synchronous>, transform_indices = @transform_3, window_bounds = array<i64: 1, 128>}, {pipeline_mode = #tpu.pipeline_mode<synchronous>, transform_indices = @transform_4, window_bounds = array<i64: 128, 256>}, {pipeline_mode = #tpu.pipeline_mode<synchronous>, transform_indices = @transform_5, window_bounds = array<i64: 1, 256>}, {pipeline_mode = #tpu.pipeline_mode<synchronous>, transform_indices = @transform_6, window_bounds = array<i64: 256, 128>}, {pipeline_mode = #tpu.pipeline_mode<synchronous>, transform_indices = @transform_7, window_bounds = array<i64: 1, 128>}, {pipeline_mode = #tpu.pipeline_mode<synchronous>, transform_indices = @transform_8, window_bounds = array<i64: 1, 128>}, {pipeline_mode = #tpu.pipeline_mode<synchronous>, transform_indices = @transform_9, window_bounds = array<i64: 1, 128>}, {pipeline_mode = #tpu.pipeline_mode<synchronous>, transform_indices = @transform_10, window_bounds = array<i64: 128, 384>}, {pipeline_mode = #tpu.pipeline_mode<synchronous>, transform_indices = @transform_11, window_bounds = array<i64: 1, 384>}, {pipeline_mode = #tpu.pipeline_mode<synchronous>, transform_indices = @transform_12, window_bounds = array<i64: 1, 128>}, {pipeline_mode = #tpu.pipeline_mode<synchronous>, transform_indices = @transform_13, window_bounds = array<i64: 1, 128>}, {pipeline_mode = #tpu.pipeline_mode<synchronous>, transform_indices = @transform_14, window_bounds = array<i64: 128, 128>}, {pipeline_mode = #tpu.pipeline_mode<synchronous>, transform_indices = @transform_15, window_bounds = array<i64: 1, 128>}, {pipeline_mode = #tpu.pipeline_mode<synchronous>, transform_indices = @transform_16, window_bounds = array<i64: 1, 128>}, {pipeline_mode = #tpu.pipeline_mode<synchronous>, transform_indices = @transform_17, window_bounds = array<i64: 1, 128>}, {pipeline_mode = #tpu.pipeline_mode<synchronous>, transform_indices = @transform_18, window_bounds = array<i64: 128, 256>}, {pipeline_mode = #tpu.pipeline_mode<synchronous>, transform_indices = @transform_19, window_bounds = array<i64: 1, 256>}, {pipeline_mode = #tpu.pipeline_mode<synchronous>, transform_indices = @transform_20, window_bounds = array<i64: 15, 128>}, {pipeline_mode = #tpu.pipeline_mode<synchronous>, transform_indices = @transform_21, window_bounds = array<i64: 1, 128>}, {pipeline_mode = #tpu.pipeline_mode<synchronous>, transform_indices = @transform_22, window_bounds = array<i64: 1, 128>}, {pipeline_mode = #tpu.pipeline_mode<synchronous>, transform_indices = @transform_23, window_bounds = array<i64: 1, 128>}, {pipeline_mode = #tpu.pipeline_mode<synchronous>, transform_indices = @transform_24, window_bounds = array<i64: 128, 128>}, {pipeline_mode = #tpu.pipeline_mode<synchronous>, transform_indices = @transform_25, window_bounds = array<i64: 1, 128>}, {pipeline_mode = #tpu.pipeline_mode<synchronous>, transform_indices = @transform_26, window_bounds = array<i64: 1, 128>}, {pipeline_mode = #tpu.pipeline_mode<synchronous>, transform_indices = @transform_27, window_bounds = array<i64: 1, 128>}, {pipeline_mode = #tpu.pipeline_mode<synchronous>, transform_indices = @transform_28, window_bounds = array<i64: 128, 256>}, {pipeline_mode = #tpu.pipeline_mode<synchronous>, transform_indices = @transform_29, window_bounds = array<i64: 1, 256>}, {pipeline_mode = #tpu.pipeline_mode<synchronous>, transform_indices = @transform_30, window_bounds = array<i64: 256, 128>}, {pipeline_mode = #tpu.pipeline_mode<synchronous>, transform_indices = @transform_31, window_bounds = array<i64: 1, 128>}, {pipeline_mode = #tpu.pipeline_mode<synchronous>, transform_indices = @transform_32, window_bounds = array<i64: 1, 128>}, {pipeline_mode = #tpu.pipeline_mode<synchronous>, transform_indices = @transform_33, window_bounds = array<i64: 1, 128>}, {transform_indices = @transform_34, window_bounds = array<i64: 1, 16, 128>}]} {
    %c0 = arith.constant 0 : index
    %c0_0 = arith.constant 0 : index
    %c0_1 = arith.constant 0 : index
    %0 = vector.load %arg1[%c0, %c0_0, %c0_1] : memref<1x16x128xbf16, #tpu.memory_space<vmem>>, vector<1x16x128xbf16>
    %1 = vector.shape_cast %0 : vector<1x16x128xbf16> to vector<16x128xbf16>
    %2 = arith.extf %1 : vector<16x128xbf16> to vector<16x128xf32>
    %c0_2 = arith.constant 0 : index
    %c0_3 = arith.constant 0 : index
    %3 = vector.load %arg3[%c0_2, %c0_3] : memref<1x128xf32, #tpu.memory_space<vmem>>, vector<1x128xf32>
    %c0_4 = arith.constant 0 : index
    %c0_5 = arith.constant 0 : index
    %4 = vector.load %arg4[%c0_4, %c0_5] : memref<1x128xf32, #tpu.memory_space<vmem>>, vector<1x128xf32>
    %cst = arith.constant dense<0.000000e+00> : vector<16xf32>
    %5 = vector.multi_reduction <add>, %2, %cst [1] : vector<16x128xf32> to vector<16xf32>
    %6 = vector.shape_cast %5 : vector<16xf32> to vector<16x1xf32>
    %cst_6 = arith.constant 1.280000e+02 : f32
    %7 = vector.broadcast %cst_6 : f32 to vector<16x1xf32>
    %8 = arith.divf %6, %7 : vector<16x1xf32>
    %9 = vector.broadcast %8 : vector<16x1xf32> to vector<16x128xf32>
    %10 = arith.subf %2, %9 : vector<16x128xf32>
    %11 = arith.mulf %10, %10 : vector<16x128xf32>
    %cst_7 = arith.constant dense<0.000000e+00> : vector<16xf32>
    %12 = vector.multi_reduction <add>, %11, %cst_7 [1] : vector<16x128xf32> to vector<16xf32>
    %13 = vector.shape_cast %12 : vector<16xf32> to vector<16x1xf32>
    %cst_8 = arith.constant 1.280000e+02 : f32
    %14 = vector.broadcast %cst_8 : f32 to vector<16x1xf32>
    %15 = arith.divf %13, %14 : vector<16x1xf32>
    %16 = vector.broadcast %8 : vector<16x1xf32> to vector<16x128xf32>
    %17 = arith.subf %2, %16 : vector<16x128xf32>
    %cst_9 = arith.constant 9.99999974E-6 : f32
    %18 = vector.broadcast %cst_9 : f32 to vector<16x1xf32>
    %19 = arith.addf %15, %18 : vector<16x1xf32>
    %20 = math.rsqrt %19 : vector<16x1xf32>
    %21 = vector.broadcast %20 : vector<16x1xf32> to vector<16x128xf32>
    %22 = arith.mulf %17, %21 : vector<16x128xf32>
    %23 = vector.broadcast %3 : vector<1x128xf32> to vector<16x128xf32>
    %24 = arith.mulf %22, %23 : vector<16x128xf32>
    %25 = vector.broadcast %4 : vector<1x128xf32> to vector<16x128xf32>
    %26 = arith.addf %24, %25 : vector<16x128xf32>
    %27 = arith.truncf %26 : vector<16x128xf32> to vector<16x128xbf16>
    %c0_10 = arith.constant 0 : index
    %c0_11 = arith.constant 0 : index
    %28 = vector.load %arg5[%c0_10, %c0_11] : memref<128x256xbf16, #tpu.memory_space<vmem>>, vector<128x256xbf16>
    %cst_12 = arith.constant dense<0.000000e+00> : vector<16x256xf32>
    %29 = tpu.matmul %27, %28, %cst_12 {dimension_numbers = #tpu.dot_dimension_numbers<[1], [0], [0], [1], [0, 0, 1, 1], [], []>} : vector<16x128xbf16>, vector<128x256xbf16>, vector<16x256xf32> -> vector<16x256xf32>
    %c0_13 = arith.constant 0 : index
    %c0_14 = arith.constant 0 : index
    %30 = vector.load %arg6[%c0_13, %c0_14] : memref<1x256xf32, #tpu.memory_space<vmem>>, vector<1x256xf32>
    %31 = vector.broadcast %30 : vector<1x256xf32> to vector<16x256xf32>
    %32 = arith.addf %29, %31 : vector<16x256xf32>
    %33 = arith.negf %32 : vector<16x256xf32>
    %34 = math.exp %33 : vector<16x256xf32>
    %cst_15 = arith.constant 1.000000e+00 : f32
    %35 = vector.broadcast %cst_15 : f32 to vector<16x256xf32>
    %36 = arith.addf %35, %34 : vector<16x256xf32>
    %37 = arith.divf %35, %36 : vector<16x256xf32>
    %38 = arith.mulf %32, %37 : vector<16x256xf32>
    %39 = arith.truncf %38 : vector<16x256xf32> to vector<16x256xbf16>
    %c0_16 = arith.constant 0 : index
    %c0_17 = arith.constant 0 : index
    %40 = vector.load %arg7[%c0_16, %c0_17] : memref<256x128xbf16, #tpu.memory_space<vmem>>, vector<256x128xbf16>
    %cst_18 = arith.constant dense<0.000000e+00> : vector<16x128xf32>
    %41 = tpu.matmul %39, %40, %cst_18 {dimension_numbers = #tpu.dot_dimension_numbers<[1], [0], [0], [1], [0, 0, 1, 1], [], []>} : vector<16x256xbf16>, vector<256x128xbf16>, vector<16x128xf32> -> vector<16x128xf32>
    %c0_19 = arith.constant 0 : index
    %c0_20 = arith.constant 0 : index
    %42 = vector.load %arg8[%c0_19, %c0_20] : memref<1x128xf32, #tpu.memory_space<vmem>>, vector<1x128xf32>
    %43 = vector.broadcast %42 : vector<1x128xf32> to vector<16x128xf32>
    %44 = arith.addf %41, %43 : vector<16x128xf32>
    %cst_21 = arith.constant 5.000000e-01 : f32
    %45 = vector.broadcast %cst_21 : f32 to vector<16x128xf32>
    %46 = arith.mulf %45, %44 : vector<16x128xf32>
    %47 = arith.addf %2, %46 : vector<16x128xf32>
    %c0_22 = arith.constant 0 : index
    %c0_23 = arith.constant 0 : index
    %48 = vector.load %arg9[%c0_22, %c0_23] : memref<1x128xf32, #tpu.memory_space<vmem>>, vector<1x128xf32>
    %c0_24 = arith.constant 0 : index
    %c0_25 = arith.constant 0 : index
    %49 = vector.load %arg10[%c0_24, %c0_25] : memref<1x128xf32, #tpu.memory_space<vmem>>, vector<1x128xf32>
    %cst_26 = arith.constant dense<0.000000e+00> : vector<16xf32>
    %50 = vector.multi_reduction <add>, %47, %cst_26 [1] : vector<16x128xf32> to vector<16xf32>
    %51 = vector.shape_cast %50 : vector<16xf32> to vector<16x1xf32>
    %cst_27 = arith.constant 1.280000e+02 : f32
    %52 = vector.broadcast %cst_27 : f32 to vector<16x1xf32>
    %53 = arith.divf %51, %52 : vector<16x1xf32>
    %54 = vector.broadcast %53 : vector<16x1xf32> to vector<16x128xf32>
    %55 = arith.subf %47, %54 : vector<16x128xf32>
    %56 = arith.mulf %55, %55 : vector<16x128xf32>
    %cst_28 = arith.constant dense<0.000000e+00> : vector<16xf32>
    %57 = vector.multi_reduction <add>, %56, %cst_28 [1] : vector<16x128xf32> to vector<16xf32>
    %58 = vector.shape_cast %57 : vector<16xf32> to vector<16x1xf32>
    %cst_29 = arith.constant 1.280000e+02 : f32
    %59 = vector.broadcast %cst_29 : f32 to vector<16x1xf32>
    %60 = arith.divf %58, %59 : vector<16x1xf32>
    %61 = vector.broadcast %53 : vector<16x1xf32> to vector<16x128xf32>
    %62 = arith.subf %47, %61 : vector<16x128xf32>
    %cst_30 = arith.constant 9.99999974E-6 : f32
    %63 = vector.broadcast %cst_30 : f32 to vector<16x1xf32>
    %64 = arith.addf %60, %63 : vector<16x1xf32>
    %65 = math.rsqrt %64 : vector<16x1xf32>
    %66 = vector.broadcast %65 : vector<16x1xf32> to vector<16x128xf32>
    %67 = arith.mulf %62, %66 : vector<16x128xf32>
    %68 = vector.broadcast %48 : vector<1x128xf32> to vector<16x128xf32>
    %69 = arith.mulf %67, %68 : vector<16x128xf32>
    %70 = vector.broadcast %49 : vector<1x128xf32> to vector<16x128xf32>
    %71 = arith.addf %69, %70 : vector<16x128xf32>
    %72 = arith.truncf %71 : vector<16x128xf32> to vector<16x128xbf16>
    %c0_31 = arith.constant 0 : index
    %c0_32 = arith.constant 0 : index
    %73 = vector.load %arg11[%c0_31, %c0_32] : memref<128x384xbf16, #tpu.memory_space<vmem>>, vector<128x384xbf16>
    %cst_33 = arith.constant dense<0.000000e+00> : vector<16x384xf32>
    %74 = tpu.matmul %72, %73, %cst_33 {dimension_numbers = #tpu.dot_dimension_numbers<[1], [0], [0], [1], [0, 0, 1, 1], [], []>} : vector<16x128xbf16>, vector<128x384xbf16>, vector<16x384xf32> -> vector<16x384xf32>
    %c0_34 = arith.constant 0 : index
    %c0_35 = arith.constant 0 : index
    %75 = vector.load %arg12[%c0_34, %c0_35] : memref<1x384xf32, #tpu.memory_space<vmem>>, vector<1x384xf32>
    %76 = vector.broadcast %75 : vector<1x384xf32> to vector<16x384xf32>
    %77 = arith.addf %74, %76 : vector<16x384xf32>
    %78 = vector.extract_strided_slice %77 {offsets = [0, 0], sizes = [16, 128], strides = [1, 1]} : vector<16x384xf32> to vector<16x128xf32>
    %79 = vector.extract_strided_slice %77 {offsets = [0, 128], sizes = [16, 128], strides = [1, 1]} : vector<16x384xf32> to vector<16x128xf32>
    %80 = arith.truncf %79 : vector<16x128xf32> to vector<16x128xbf16>
    %81 = vector.extract_strided_slice %77 {offsets = [0, 256], sizes = [16, 128], strides = [1, 1]} : vector<16x384xf32> to vector<16x128xf32>
    %82 = arith.truncf %81 : vector<16x128xf32> to vector<16x128xbf16>
    %c0_36 = arith.constant 0 : index
    %c0_37 = arith.constant 0 : index
    %83 = vector.load %arg2[%c0_36, %c0_37] : memref<16x128xf32, #tpu.memory_space<vmem>>, vector<16x128xf32>
    %84 = arith.truncf %83 : vector<16x128xf32> to vector<16x128xbf16>
    %c0_38 = arith.constant 0 : index
    %c0_39 = arith.constant 0 : index
    %85 = vector.load %arg13[%c0_38, %c0_39] : memref<1x128xf32, #tpu.memory_space<vmem>>, vector<1x128xf32>
    %86 = vector.broadcast %85 : vector<1x128xf32> to vector<16x128xf32>
    %87 = arith.addf %78, %86 : vector<16x128xf32>
    %88 = arith.truncf %87 : vector<16x128xf32> to vector<16x128xbf16>
    %c0_40 = arith.constant 0 : index
    %c0_41 = arith.constant 0 : index
    %89 = vector.load %arg14[%c0_40, %c0_41] : memref<1x128xf32, #tpu.memory_space<vmem>>, vector<1x128xf32>
    %90 = vector.broadcast %89 : vector<1x128xf32> to vector<16x128xf32>
    %91 = arith.addf %78, %90 : vector<16x128xf32>
    %92 = arith.truncf %91 : vector<16x128xf32> to vector<16x128xbf16>
    %93 = vector.extract_strided_slice %88 {offsets = [0, 0], sizes = [16, 32], strides = [1, 1]} : vector<16x128xbf16> to vector<16x32xbf16>
    %94 = vector.extract_strided_slice %80 {offsets = [0, 0], sizes = [16, 32], strides = [1, 1]} : vector<16x128xbf16> to vector<16x32xbf16>
    %cst_42 = arith.constant dense<0.000000e+00> : vector<16x16xf32>
    %95 = tpu.matmul %93, %94, %cst_42 {dimension_numbers = #tpu.dot_dimension_numbers<[1], [1], [0], [0], [0, 0, 1, 0], [], []>} : vector<16x32xbf16>, vector<16x32xbf16>, vector<16x16xf32> -> vector<16x16xf32>
    %96 = vector.extract_strided_slice %92 {offsets = [0, 0], sizes = [16, 32], strides = [1, 1]} : vector<16x128xbf16> to vector<16x32xbf16>
    %97 = vector.extract_strided_slice %84 {offsets = [0, 0], sizes = [16, 32], strides = [1, 1]} : vector<16x128xbf16> to vector<16x32xbf16>
    %cst_43 = arith.constant dense<0.000000e+00> : vector<16x16xf32>
    %98 = tpu.matmul %96, %97, %cst_43 {dimension_numbers = #tpu.dot_dimension_numbers<[1], [1], [0], [0], [0, 0, 1, 0], [], []>} : vector<16x32xbf16>, vector<16x32xbf16>, vector<16x16xf32> -> vector<16x16xf32>
    %99 = arith.addf %95, %98 : vector<16x16xf32>
    %cst_44 = arith.constant 0.176776692 : f32
    %100 = vector.broadcast %cst_44 : f32 to vector<16x16xf32>
    %101 = arith.mulf %99, %100 : vector<16x16xf32>
    %cst_45 = arith.constant dense<0xFF800000> : vector<16xf32>
    %102 = vector.multi_reduction <maximumf>, %101, %cst_45 [1] : vector<16x16xf32> to vector<16xf32>
    %103 = vector.shape_cast %102 : vector<16xf32> to vector<16x1xf32>
    %104 = vector.broadcast %103 : vector<16x1xf32> to vector<16x16xf32>
    %105 = arith.subf %101, %104 : vector<16x16xf32>
    %106 = math.exp %105 : vector<16x16xf32>
    %cst_46 = arith.constant dense<0.000000e+00> : vector<16xf32>
    %107 = vector.multi_reduction <add>, %106, %cst_46 [1] : vector<16x16xf32> to vector<16xf32>
    %108 = vector.shape_cast %107 : vector<16xf32> to vector<16x1xf32>
    %109 = tpu.reciprocal %108 {approx = true} : vector<16x1xf32> -> vector<16x1xf32>
    %110 = vector.broadcast %109 : vector<16x1xf32> to vector<16x16xf32>
    %111 = arith.mulf %106, %110 : vector<16x16xf32>
    %112 = arith.truncf %111 : vector<16x16xf32> to vector<16x16xbf16>
    %113 = vector.extract_strided_slice %82 {offsets = [0, 0], sizes = [16, 32], strides = [1, 1]} : vector<16x128xbf16> to vector<16x32xbf16>
    %cst_47 = arith.constant dense<0.000000e+00> : vector<16x32xf32>
    %114 = tpu.matmul %112, %113, %cst_47 {dimension_numbers = #tpu.dot_dimension_numbers<[1], [0], [0], [1], [0, 0, 1, 1], [], []>} : vector<16x16xbf16>, vector<16x32xbf16>, vector<16x32xf32> -> vector<16x32xf32>
    %115 = vector.extract_strided_slice %88 {offsets = [0, 32], sizes = [16, 32], strides = [1, 1]} : vector<16x128xbf16> to vector<16x32xbf16>
    %116 = vector.extract_strided_slice %80 {offsets = [0, 32], sizes = [16, 32], strides = [1, 1]} : vector<16x128xbf16> to vector<16x32xbf16>
    %cst_48 = arith.constant dense<0.000000e+00> : vector<16x16xf32>
    %117 = tpu.matmul %115, %116, %cst_48 {dimension_numbers = #tpu.dot_dimension_numbers<[1], [1], [0], [0], [0, 0, 1, 0], [], []>} : vector<16x32xbf16>, vector<16x32xbf16>, vector<16x16xf32> -> vector<16x16xf32>
    %118 = vector.extract_strided_slice %92 {offsets = [0, 32], sizes = [16, 32], strides = [1, 1]} : vector<16x128xbf16> to vector<16x32xbf16>
    %119 = vector.extract_strided_slice %84 {offsets = [0, 32], sizes = [16, 32], strides = [1, 1]} : vector<16x128xbf16> to vector<16x32xbf16>
    %cst_49 = arith.constant dense<0.000000e+00> : vector<16x16xf32>
    %120 = tpu.matmul %118, %119, %cst_49 {dimension_numbers = #tpu.dot_dimension_numbers<[1], [1], [0], [0], [0, 0, 1, 0], [], []>} : vector<16x32xbf16>, vector<16x32xbf16>, vector<16x16xf32> -> vector<16x16xf32>
    %121 = arith.addf %117, %120 : vector<16x16xf32>
    %cst_50 = arith.constant 0.176776692 : f32
    %122 = vector.broadcast %cst_50 : f32 to vector<16x16xf32>
    %123 = arith.mulf %121, %122 : vector<16x16xf32>
    %cst_51 = arith.constant dense<0xFF800000> : vector<16xf32>
    %124 = vector.multi_reduction <maximumf>, %123, %cst_51 [1] : vector<16x16xf32> to vector<16xf32>
    %125 = vector.shape_cast %124 : vector<16xf32> to vector<16x1xf32>
    %126 = vector.broadcast %125 : vector<16x1xf32> to vector<16x16xf32>
    %127 = arith.subf %123, %126 : vector<16x16xf32>
    %128 = math.exp %127 : vector<16x16xf32>
    %cst_52 = arith.constant dense<0.000000e+00> : vector<16xf32>
    %129 = vector.multi_reduction <add>, %128, %cst_52 [1] : vector<16x16xf32> to vector<16xf32>
    %130 = vector.shape_cast %129 : vector<16xf32> to vector<16x1xf32>
    %131 = tpu.reciprocal %130 {approx = true} : vector<16x1xf32> -> vector<16x1xf32>
    %132 = vector.broadcast %131 : vector<16x1xf32> to vector<16x16xf32>
    %133 = arith.mulf %128, %132 : vector<16x16xf32>
    %134 = arith.truncf %133 : vector<16x16xf32> to vector<16x16xbf16>
    %135 = vector.extract_strided_slice %82 {offsets = [0, 32], sizes = [16, 32], strides = [1, 1]} : vector<16x128xbf16> to vector<16x32xbf16>
    %cst_53 = arith.constant dense<0.000000e+00> : vector<16x32xf32>
    %136 = tpu.matmul %134, %135, %cst_53 {dimension_numbers = #tpu.dot_dimension_numbers<[1], [0], [0], [1], [0, 0, 1, 1], [], []>} : vector<16x16xbf16>, vector<16x32xbf16>, vector<16x32xf32> -> vector<16x32xf32>
    %137 = vector.extract_strided_slice %88 {offsets = [0, 64], sizes = [16, 32], strides = [1, 1]} : vector<16x128xbf16> to vector<16x32xbf16>
    %138 = vector.extract_strided_slice %80 {offsets = [0, 64], sizes = [16, 32], strides = [1, 1]} : vector<16x128xbf16> to vector<16x32xbf16>
    %cst_54 = arith.constant dense<0.000000e+00> : vector<16x16xf32>
    %139 = tpu.matmul %137, %138, %cst_54 {dimension_numbers = #tpu.dot_dimension_numbers<[1], [1], [0], [0], [0, 0, 1, 0], [], []>} : vector<16x32xbf16>, vector<16x32xbf16>, vector<16x16xf32> -> vector<16x16xf32>
    %140 = vector.extract_strided_slice %92 {offsets = [0, 64], sizes = [16, 32], strides = [1, 1]} : vector<16x128xbf16> to vector<16x32xbf16>
    %141 = vector.extract_strided_slice %84 {offsets = [0, 64], sizes = [16, 32], strides = [1, 1]} : vector<16x128xbf16> to vector<16x32xbf16>
    %cst_55 = arith.constant dense<0.000000e+00> : vector<16x16xf32>
    %142 = tpu.matmul %140, %141, %cst_55 {dimension_numbers = #tpu.dot_dimension_numbers<[1], [1], [0], [0], [0, 0, 1, 0], [], []>} : vector<16x32xbf16>, vector<16x32xbf16>, vector<16x16xf32> -> vector<16x16xf32>
    %143 = arith.addf %139, %142 : vector<16x16xf32>
    %cst_56 = arith.constant 0.176776692 : f32
    %144 = vector.broadcast %cst_56 : f32 to vector<16x16xf32>
    %145 = arith.mulf %143, %144 : vector<16x16xf32>
    %cst_57 = arith.constant dense<0xFF800000> : vector<16xf32>
    %146 = vector.multi_reduction <maximumf>, %145, %cst_57 [1] : vector<16x16xf32> to vector<16xf32>
    %147 = vector.shape_cast %146 : vector<16xf32> to vector<16x1xf32>
    %148 = vector.broadcast %147 : vector<16x1xf32> to vector<16x16xf32>
    %149 = arith.subf %145, %148 : vector<16x16xf32>
    %150 = math.exp %149 : vector<16x16xf32>
    %cst_58 = arith.constant dense<0.000000e+00> : vector<16xf32>
    %151 = vector.multi_reduction <add>, %150, %cst_58 [1] : vector<16x16xf32> to vector<16xf32>
    %152 = vector.shape_cast %151 : vector<16xf32> to vector<16x1xf32>
    %153 = tpu.reciprocal %152 {approx = true} : vector<16x1xf32> -> vector<16x1xf32>
    %154 = vector.broadcast %153 : vector<16x1xf32> to vector<16x16xf32>
    %155 = arith.mulf %150, %154 : vector<16x16xf32>
    %156 = arith.truncf %155 : vector<16x16xf32> to vector<16x16xbf16>
    %157 = vector.extract_strided_slice %82 {offsets = [0, 64], sizes = [16, 32], strides = [1, 1]} : vector<16x128xbf16> to vector<16x32xbf16>
    %cst_59 = arith.constant dense<0.000000e+00> : vector<16x32xf32>
    %158 = tpu.matmul %156, %157, %cst_59 {dimension_numbers = #tpu.dot_dimension_numbers<[1], [0], [0], [1], [0, 0, 1, 1], [], []>} : vector<16x16xbf16>, vector<16x32xbf16>, vector<16x32xf32> -> vector<16x32xf32>
    %159 = vector.extract_strided_slice %88 {offsets = [0, 96], sizes = [16, 32], strides = [1, 1]} : vector<16x128xbf16> to vector<16x32xbf16>
    %160 = vector.extract_strided_slice %80 {offsets = [0, 96], sizes = [16, 32], strides = [1, 1]} : vector<16x128xbf16> to vector<16x32xbf16>
    %cst_60 = arith.constant dense<0.000000e+00> : vector<16x16xf32>
    %161 = tpu.matmul %159, %160, %cst_60 {dimension_numbers = #tpu.dot_dimension_numbers<[1], [1], [0], [0], [0, 0, 1, 0], [], []>} : vector<16x32xbf16>, vector<16x32xbf16>, vector<16x16xf32> -> vector<16x16xf32>
    %162 = vector.extract_strided_slice %92 {offsets = [0, 96], sizes = [16, 32], strides = [1, 1]} : vector<16x128xbf16> to vector<16x32xbf16>
    %163 = vector.extract_strided_slice %84 {offsets = [0, 96], sizes = [16, 32], strides = [1, 1]} : vector<16x128xbf16> to vector<16x32xbf16>
    %cst_61 = arith.constant dense<0.000000e+00> : vector<16x16xf32>
    %164 = tpu.matmul %162, %163, %cst_61 {dimension_numbers = #tpu.dot_dimension_numbers<[1], [1], [0], [0], [0, 0, 1, 0], [], []>} : vector<16x32xbf16>, vector<16x32xbf16>, vector<16x16xf32> -> vector<16x16xf32>
    %165 = arith.addf %161, %164 : vector<16x16xf32>
    %cst_62 = arith.constant 0.176776692 : f32
    %166 = vector.broadcast %cst_62 : f32 to vector<16x16xf32>
    %167 = arith.mulf %165, %166 : vector<16x16xf32>
    %cst_63 = arith.constant dense<0xFF800000> : vector<16xf32>
    %168 = vector.multi_reduction <maximumf>, %167, %cst_63 [1] : vector<16x16xf32> to vector<16xf32>
    %169 = vector.shape_cast %168 : vector<16xf32> to vector<16x1xf32>
    %170 = vector.broadcast %169 : vector<16x1xf32> to vector<16x16xf32>
    %171 = arith.subf %167, %170 : vector<16x16xf32>
    %172 = math.exp %171 : vector<16x16xf32>
    %cst_64 = arith.constant dense<0.000000e+00> : vector<16xf32>
    %173 = vector.multi_reduction <add>, %172, %cst_64 [1] : vector<16x16xf32> to vector<16xf32>
    %174 = vector.shape_cast %173 : vector<16xf32> to vector<16x1xf32>
    %175 = tpu.reciprocal %174 {approx = true} : vector<16x1xf32> -> vector<16x1xf32>
    %176 = vector.broadcast %175 : vector<16x1xf32> to vector<16x16xf32>
    %177 = arith.mulf %172, %176 : vector<16x16xf32>
    %178 = arith.truncf %177 : vector<16x16xf32> to vector<16x16xbf16>
    %179 = vector.extract_strided_slice %82 {offsets = [0, 96], sizes = [16, 32], strides = [1, 1]} : vector<16x128xbf16> to vector<16x32xbf16>
    %cst_65 = arith.constant dense<0.000000e+00> : vector<16x32xf32>
    %180 = tpu.matmul %178, %179, %cst_65 {dimension_numbers = #tpu.dot_dimension_numbers<[1], [0], [0], [1], [0, 0, 1, 1], [], []>} : vector<16x16xbf16>, vector<16x32xbf16>, vector<16x32xf32> -> vector<16x32xf32>
    %181 = tpu.concatenate %114, %136, %158, %180 in 1 : vector<16x32xf32>, vector<16x32xf32>, vector<16x32xf32>, vector<16x32xf32> -> vector<16x128xf32>
    %182 = arith.truncf %181 : vector<16x128xf32> to vector<16x128xbf16>
    %c0_66 = arith.constant 0 : index
    %c0_67 = arith.constant 0 : index
    %183 = vector.load %arg15[%c0_66, %c0_67] : memref<128x128xbf16, #tpu.memory_space<vmem>>, vector<128x128xbf16>
    %cst_68 = arith.constant dense<0.000000e+00> : vector<16x128xf32>
    %184 = tpu.matmul %182, %183, %cst_68 {dimension_numbers = #tpu.dot_dimension_numbers<[1], [0], [0], [1], [0, 0, 1, 1], [], []>} : vector<16x128xbf16>, vector<128x128xbf16>, vector<16x128xf32> -> vector<16x128xf32>
    %185 = arith.addf %47, %184 : vector<16x128xf32>
    %c0_69 = arith.constant 0 : index
    %c0_70 = arith.constant 0 : index
    %186 = vector.load %arg16[%c0_69, %c0_70] : memref<1x128xf32, #tpu.memory_space<vmem>>, vector<1x128xf32>
    %187 = vector.broadcast %186 : vector<1x128xf32> to vector<16x128xf32>
    %188 = arith.addf %185, %187 : vector<16x128xf32>
    %c0_71 = arith.constant 0 : index
    %c0_72 = arith.constant 0 : index
    %189 = vector.load %arg17[%c0_71, %c0_72] : memref<1x128xf32, #tpu.memory_space<vmem>>, vector<1x128xf32>
    %c0_73 = arith.constant 0 : index
    %c0_74 = arith.constant 0 : index
    %190 = vector.load %arg18[%c0_73, %c0_74] : memref<1x128xf32, #tpu.memory_space<vmem>>, vector<1x128xf32>
    %cst_75 = arith.constant dense<0.000000e+00> : vector<16xf32>
    %191 = vector.multi_reduction <add>, %188, %cst_75 [1] : vector<16x128xf32> to vector<16xf32>
    %192 = vector.shape_cast %191 : vector<16xf32> to vector<16x1xf32>
    %cst_76 = arith.constant 1.280000e+02 : f32
    %193 = vector.broadcast %cst_76 : f32 to vector<16x1xf32>
    %194 = arith.divf %192, %193 : vector<16x1xf32>
    %195 = vector.broadcast %194 : vector<16x1xf32> to vector<16x128xf32>
    %196 = arith.subf %188, %195 : vector<16x128xf32>
    %197 = arith.mulf %196, %196 : vector<16x128xf32>
    %cst_77 = arith.constant dense<0.000000e+00> : vector<16xf32>
    %198 = vector.multi_reduction <add>, %197, %cst_77 [1] : vector<16x128xf32> to vector<16xf32>
    %199 = vector.shape_cast %198 : vector<16xf32> to vector<16x1xf32>
    %cst_78 = arith.constant 1.280000e+02 : f32
    %200 = vector.broadcast %cst_78 : f32 to vector<16x1xf32>
    %201 = arith.divf %199, %200 : vector<16x1xf32>
    %202 = vector.broadcast %194 : vector<16x1xf32> to vector<16x128xf32>
    %203 = arith.subf %188, %202 : vector<16x128xf32>
    %cst_79 = arith.constant 9.99999974E-6 : f32
    %204 = vector.broadcast %cst_79 : f32 to vector<16x1xf32>
    %205 = arith.addf %201, %204 : vector<16x1xf32>
    %206 = math.rsqrt %205 : vector<16x1xf32>
    %207 = vector.broadcast %206 : vector<16x1xf32> to vector<16x128xf32>
    %208 = arith.mulf %203, %207 : vector<16x128xf32>
    %209 = vector.broadcast %189 : vector<1x128xf32> to vector<16x128xf32>
    %210 = arith.mulf %208, %209 : vector<16x128xf32>
    %211 = vector.broadcast %190 : vector<1x128xf32> to vector<16x128xf32>
    %212 = arith.addf %210, %211 : vector<16x128xf32>
    %213 = arith.truncf %212 : vector<16x128xf32> to vector<16x128xbf16>
    %c0_80 = arith.constant 0 : index
    %c0_81 = arith.constant 0 : index
    %214 = vector.load %arg19[%c0_80, %c0_81] : memref<128x256xbf16, #tpu.memory_space<vmem>>, vector<128x256xbf16>
    %cst_82 = arith.constant dense<0.000000e+00> : vector<16x256xf32>
    %215 = tpu.matmul %213, %214, %cst_82 {dimension_numbers = #tpu.dot_dimension_numbers<[1], [0], [0], [1], [0, 0, 1, 1], [], []>} : vector<16x128xbf16>, vector<128x256xbf16>, vector<16x256xf32> -> vector<16x256xf32>
    %c0_83 = arith.constant 0 : index
    %c0_84 = arith.constant 0 : index
    %216 = vector.load %arg20[%c0_83, %c0_84] : memref<1x256xf32, #tpu.memory_space<vmem>>, vector<1x256xf32>
    %217 = vector.broadcast %216 : vector<1x256xf32> to vector<16x256xf32>
    %218 = arith.addf %215, %217 : vector<16x256xf32>
    %219 = vector.extract_strided_slice %218 {offsets = [0, 0], sizes = [16, 128], strides = [1, 1]} : vector<16x256xf32> to vector<16x128xf32>
    %220 = vector.extract_strided_slice %218 {offsets = [0, 128], sizes = [16, 128], strides = [1, 1]} : vector<16x256xf32> to vector<16x128xf32>
    %221 = arith.negf %220 : vector<16x128xf32>
    %222 = math.exp %221 : vector<16x128xf32>
    %cst_85 = arith.constant 1.000000e+00 : f32
    %223 = vector.broadcast %cst_85 : f32 to vector<16x128xf32>
    %224 = arith.addf %223, %222 : vector<16x128xf32>
    %225 = arith.divf %223, %224 : vector<16x128xf32>
    %226 = arith.mulf %219, %225 : vector<16x128xf32>
    %cst_86 = arith.constant 0.000000e+00 : f32
    %227 = vector.broadcast %cst_86 : f32 to vector<7x128xf32>
    %228 = tpu.concatenate %227, %226, %227 in 0 : vector<7x128xf32>, vector<16x128xf32>, vector<7x128xf32> -> vector<30x128xf32>
    %c0_87 = arith.constant 0 : index
    %c0_88 = arith.constant 0 : index
    %229 = vector.load %arg21[%c0_87, %c0_88] : memref<15x128xf32, #tpu.memory_space<vmem>>, vector<15x128xf32>
    %cst_89 = arith.constant 0.000000e+00 : f32
    %230 = vector.broadcast %cst_89 : f32 to vector<16x128xf32>
    %231 = vector.extract_strided_slice %228 {offsets = [0, 0], sizes = [16, 128], strides = [1, 1]} : vector<30x128xf32> to vector<16x128xf32>
    %232 = vector.extract_strided_slice %229 {offsets = [0, 0], sizes = [1, 128], strides = [1, 1]} : vector<15x128xf32> to vector<1x128xf32>
    %233 = vector.broadcast %232 : vector<1x128xf32> to vector<16x128xf32>
    %234 = arith.mulf %231, %233 : vector<16x128xf32>
    %235 = arith.addf %230, %234 : vector<16x128xf32>
    %236 = vector.extract_strided_slice %228 {offsets = [1, 0], sizes = [16, 128], strides = [1, 1]} : vector<30x128xf32> to vector<16x128xf32>
    %237 = vector.extract_strided_slice %229 {offsets = [1, 0], sizes = [1, 128], strides = [1, 1]} : vector<15x128xf32> to vector<1x128xf32>
    %238 = vector.broadcast %237 : vector<1x128xf32> to vector<16x128xf32>
    %239 = arith.mulf %236, %238 : vector<16x128xf32>
    %240 = arith.addf %235, %239 : vector<16x128xf32>
    %241 = vector.extract_strided_slice %228 {offsets = [2, 0], sizes = [16, 128], strides = [1, 1]} : vector<30x128xf32> to vector<16x128xf32>
    %242 = vector.extract_strided_slice %229 {offsets = [2, 0], sizes = [1, 128], strides = [1, 1]} : vector<15x128xf32> to vector<1x128xf32>
    %243 = vector.broadcast %242 : vector<1x128xf32> to vector<16x128xf32>
    %244 = arith.mulf %241, %243 : vector<16x128xf32>
    %245 = arith.addf %240, %244 : vector<16x128xf32>
    %246 = vector.extract_strided_slice %228 {offsets = [3, 0], sizes = [16, 128], strides = [1, 1]} : vector<30x128xf32> to vector<16x128xf32>
    %247 = vector.extract_strided_slice %229 {offsets = [3, 0], sizes = [1, 128], strides = [1, 1]} : vector<15x128xf32> to vector<1x128xf32>
    %248 = vector.broadcast %247 : vector<1x128xf32> to vector<16x128xf32>
    %249 = arith.mulf %246, %248 : vector<16x128xf32>
    %250 = arith.addf %245, %249 : vector<16x128xf32>
    %251 = vector.extract_strided_slice %228 {offsets = [4, 0], sizes = [16, 128], strides = [1, 1]} : vector<30x128xf32> to vector<16x128xf32>
    %252 = vector.extract_strided_slice %229 {offsets = [4, 0], sizes = [1, 128], strides = [1, 1]} : vector<15x128xf32> to vector<1x128xf32>
    %253 = vector.broadcast %252 : vector<1x128xf32> to vector<16x128xf32>
    %254 = arith.mulf %251, %253 : vector<16x128xf32>
    %255 = arith.addf %250, %254 : vector<16x128xf32>
    %256 = vector.extract_strided_slice %228 {offsets = [5, 0], sizes = [16, 128], strides = [1, 1]} : vector<30x128xf32> to vector<16x128xf32>
    %257 = vector.extract_strided_slice %229 {offsets = [5, 0], sizes = [1, 128], strides = [1, 1]} : vector<15x128xf32> to vector<1x128xf32>
    %258 = vector.broadcast %257 : vector<1x128xf32> to vector<16x128xf32>
    %259 = arith.mulf %256, %258 : vector<16x128xf32>
    %260 = arith.addf %255, %259 : vector<16x128xf32>
    %261 = vector.extract_strided_slice %228 {offsets = [6, 0], sizes = [16, 128], strides = [1, 1]} : vector<30x128xf32> to vector<16x128xf32>
    %262 = vector.extract_strided_slice %229 {offsets = [6, 0], sizes = [1, 128], strides = [1, 1]} : vector<15x128xf32> to vector<1x128xf32>
    %263 = vector.broadcast %262 : vector<1x128xf32> to vector<16x128xf32>
    %264 = arith.mulf %261, %263 : vector<16x128xf32>
    %265 = arith.addf %260, %264 : vector<16x128xf32>
    %266 = vector.extract_strided_slice %228 {offsets = [7, 0], sizes = [16, 128], strides = [1, 1]} : vector<30x128xf32> to vector<16x128xf32>
    %267 = vector.extract_strided_slice %229 {offsets = [7, 0], sizes = [1, 128], strides = [1, 1]} : vector<15x128xf32> to vector<1x128xf32>
    %268 = vector.broadcast %267 : vector<1x128xf32> to vector<16x128xf32>
    %269 = arith.mulf %266, %268 : vector<16x128xf32>
    %270 = arith.addf %265, %269 : vector<16x128xf32>
    %271 = vector.extract_strided_slice %228 {offsets = [8, 0], sizes = [16, 128], strides = [1, 1]} : vector<30x128xf32> to vector<16x128xf32>
    %272 = vector.extract_strided_slice %229 {offsets = [8, 0], sizes = [1, 128], strides = [1, 1]} : vector<15x128xf32> to vector<1x128xf32>
    %273 = vector.broadcast %272 : vector<1x128xf32> to vector<16x128xf32>
    %274 = arith.mulf %271, %273 : vector<16x128xf32>
    %275 = arith.addf %270, %274 : vector<16x128xf32>
    %276 = vector.extract_strided_slice %228 {offsets = [9, 0], sizes = [16, 128], strides = [1, 1]} : vector<30x128xf32> to vector<16x128xf32>
    %277 = vector.extract_strided_slice %229 {offsets = [9, 0], sizes = [1, 128], strides = [1, 1]} : vector<15x128xf32> to vector<1x128xf32>
    %278 = vector.broadcast %277 : vector<1x128xf32> to vector<16x128xf32>
    %279 = arith.mulf %276, %278 : vector<16x128xf32>
    %280 = arith.addf %275, %279 : vector<16x128xf32>
    %281 = vector.extract_strided_slice %228 {offsets = [10, 0], sizes = [16, 128], strides = [1, 1]} : vector<30x128xf32> to vector<16x128xf32>
    %282 = vector.extract_strided_slice %229 {offsets = [10, 0], sizes = [1, 128], strides = [1, 1]} : vector<15x128xf32> to vector<1x128xf32>
    %283 = vector.broadcast %282 : vector<1x128xf32> to vector<16x128xf32>
    %284 = arith.mulf %281, %283 : vector<16x128xf32>
    %285 = arith.addf %280, %284 : vector<16x128xf32>
    %286 = vector.extract_strided_slice %228 {offsets = [11, 0], sizes = [16, 128], strides = [1, 1]} : vector<30x128xf32> to vector<16x128xf32>
    %287 = vector.extract_strided_slice %229 {offsets = [11, 0], sizes = [1, 128], strides = [1, 1]} : vector<15x128xf32> to vector<1x128xf32>
    %288 = vector.broadcast %287 : vector<1x128xf32> to vector<16x128xf32>
    %289 = arith.mulf %286, %288 : vector<16x128xf32>
    %290 = arith.addf %285, %289 : vector<16x128xf32>
    %291 = vector.extract_strided_slice %228 {offsets = [12, 0], sizes = [16, 128], strides = [1, 1]} : vector<30x128xf32> to vector<16x128xf32>
    %292 = vector.extract_strided_slice %229 {offsets = [12, 0], sizes = [1, 128], strides = [1, 1]} : vector<15x128xf32> to vector<1x128xf32>
    %293 = vector.broadcast %292 : vector<1x128xf32> to vector<16x128xf32>
    %294 = arith.mulf %291, %293 : vector<16x128xf32>
    %295 = arith.addf %290, %294 : vector<16x128xf32>
    %296 = vector.extract_strided_slice %228 {offsets = [13, 0], sizes = [16, 128], strides = [1, 1]} : vector<30x128xf32> to vector<16x128xf32>
    %297 = vector.extract_strided_slice %229 {offsets = [13, 0], sizes = [1, 128], strides = [1, 1]} : vector<15x128xf32> to vector<1x128xf32>
    %298 = vector.broadcast %297 : vector<1x128xf32> to vector<16x128xf32>
    %299 = arith.mulf %296, %298 : vector<16x128xf32>
    %300 = arith.addf %295, %299 : vector<16x128xf32>
    %301 = vector.extract_strided_slice %228 {offsets = [14, 0], sizes = [16, 128], strides = [1, 1]} : vector<30x128xf32> to vector<16x128xf32>
    %302 = vector.extract_strided_slice %229 {offsets = [14, 0], sizes = [1, 128], strides = [1, 1]} : vector<15x128xf32> to vector<1x128xf32>
    %303 = vector.broadcast %302 : vector<1x128xf32> to vector<16x128xf32>
    %304 = arith.mulf %301, %303 : vector<16x128xf32>
    %305 = arith.addf %300, %304 : vector<16x128xf32>
    %c0_90 = arith.constant 0 : index
    %c0_91 = arith.constant 0 : index
    %306 = vector.load %arg22[%c0_90, %c0_91] : memref<1x128xf32, #tpu.memory_space<vmem>>, vector<1x128xf32>
    %307 = vector.broadcast %306 : vector<1x128xf32> to vector<16x128xf32>
    %308 = arith.addf %305, %307 : vector<16x128xf32>
    %c0_92 = arith.constant 0 : index
    %c0_93 = arith.constant 0 : index
    %309 = vector.load %arg23[%c0_92, %c0_93] : memref<1x128xf32, #tpu.memory_space<vmem>>, vector<1x128xf32>
    %310 = vector.broadcast %309 : vector<1x128xf32> to vector<16x128xf32>
    %311 = arith.mulf %308, %310 : vector<16x128xf32>
    %c0_94 = arith.constant 0 : index
    %c0_95 = arith.constant 0 : index
    %312 = vector.load %arg24[%c0_94, %c0_95] : memref<1x128xf32, #tpu.memory_space<vmem>>, vector<1x128xf32>
    %313 = vector.broadcast %312 : vector<1x128xf32> to vector<16x128xf32>
    %314 = arith.addf %311, %313 : vector<16x128xf32>
    %315 = arith.negf %314 : vector<16x128xf32>
    %316 = math.exp %315 : vector<16x128xf32>
    %cst_96 = arith.constant 1.000000e+00 : f32
    %317 = vector.broadcast %cst_96 : f32 to vector<16x128xf32>
    %318 = arith.addf %317, %316 : vector<16x128xf32>
    %319 = arith.divf %317, %318 : vector<16x128xf32>
    %320 = arith.mulf %314, %319 : vector<16x128xf32>
    %321 = arith.truncf %320 : vector<16x128xf32> to vector<16x128xbf16>
    %c0_97 = arith.constant 0 : index
    %c0_98 = arith.constant 0 : index
    %322 = vector.load %arg25[%c0_97, %c0_98] : memref<128x128xbf16, #tpu.memory_space<vmem>>, vector<128x128xbf16>
    %cst_99 = arith.constant dense<0.000000e+00> : vector<16x128xf32>
    %323 = tpu.matmul %321, %322, %cst_99 {dimension_numbers = #tpu.dot_dimension_numbers<[1], [0], [0], [1], [0, 0, 1, 1], [], []>} : vector<16x128xbf16>, vector<128x128xbf16>, vector<16x128xf32> -> vector<16x128xf32>
    %c0_100 = arith.constant 0 : index
    %c0_101 = arith.constant 0 : index
    %324 = vector.load %arg26[%c0_100, %c0_101] : memref<1x128xf32, #tpu.memory_space<vmem>>, vector<1x128xf32>
    %325 = vector.broadcast %324 : vector<1x128xf32> to vector<16x128xf32>
    %326 = arith.addf %323, %325 : vector<16x128xf32>
    %327 = arith.addf %188, %326 : vector<16x128xf32>
    %c0_102 = arith.constant 0 : index
    %c0_103 = arith.constant 0 : index
    %328 = vector.load %arg27[%c0_102, %c0_103] : memref<1x128xf32, #tpu.memory_space<vmem>>, vector<1x128xf32>
    %c0_104 = arith.constant 0 : index
    %c0_105 = arith.constant 0 : index
    %329 = vector.load %arg28[%c0_104, %c0_105] : memref<1x128xf32, #tpu.memory_space<vmem>>, vector<1x128xf32>
    %cst_106 = arith.constant dense<0.000000e+00> : vector<16xf32>
    %330 = vector.multi_reduction <add>, %327, %cst_106 [1] : vector<16x128xf32> to vector<16xf32>
    %331 = vector.shape_cast %330 : vector<16xf32> to vector<16x1xf32>
    %cst_107 = arith.constant 1.280000e+02 : f32
    %332 = vector.broadcast %cst_107 : f32 to vector<16x1xf32>
    %333 = arith.divf %331, %332 : vector<16x1xf32>
    %334 = vector.broadcast %333 : vector<16x1xf32> to vector<16x128xf32>
    %335 = arith.subf %327, %334 : vector<16x128xf32>
    %336 = arith.mulf %335, %335 : vector<16x128xf32>
    %cst_108 = arith.constant dense<0.000000e+00> : vector<16xf32>
    %337 = vector.multi_reduction <add>, %336, %cst_108 [1] : vector<16x128xf32> to vector<16xf32>
    %338 = vector.shape_cast %337 : vector<16xf32> to vector<16x1xf32>
    %cst_109 = arith.constant 1.280000e+02 : f32
    %339 = vector.broadcast %cst_109 : f32 to vector<16x1xf32>
    %340 = arith.divf %338, %339 : vector<16x1xf32>
    %341 = vector.broadcast %333 : vector<16x1xf32> to vector<16x128xf32>
    %342 = arith.subf %327, %341 : vector<16x128xf32>
    %cst_110 = arith.constant 9.99999974E-6 : f32
    %343 = vector.broadcast %cst_110 : f32 to vector<16x1xf32>
    %344 = arith.addf %340, %343 : vector<16x1xf32>
    %345 = math.rsqrt %344 : vector<16x1xf32>
    %346 = vector.broadcast %345 : vector<16x1xf32> to vector<16x128xf32>
    %347 = arith.mulf %342, %346 : vector<16x128xf32>
    %348 = vector.broadcast %328 : vector<1x128xf32> to vector<16x128xf32>
    %349 = arith.mulf %347, %348 : vector<16x128xf32>
    %350 = vector.broadcast %329 : vector<1x128xf32> to vector<16x128xf32>
    %351 = arith.addf %349, %350 : vector<16x128xf32>
    %352 = arith.truncf %351 : vector<16x128xf32> to vector<16x128xbf16>
    %c0_111 = arith.constant 0 : index
    %c0_112 = arith.constant 0 : index
    %353 = vector.load %arg29[%c0_111, %c0_112] : memref<128x256xbf16, #tpu.memory_space<vmem>>, vector<128x256xbf16>
    %cst_113 = arith.constant dense<0.000000e+00> : vector<16x256xf32>
    %354 = tpu.matmul %352, %353, %cst_113 {dimension_numbers = #tpu.dot_dimension_numbers<[1], [0], [0], [1], [0, 0, 1, 1], [], []>} : vector<16x128xbf16>, vector<128x256xbf16>, vector<16x256xf32> -> vector<16x256xf32>
    %c0_114 = arith.constant 0 : index
    %c0_115 = arith.constant 0 : index
    %355 = vector.load %arg30[%c0_114, %c0_115] : memref<1x256xf32, #tpu.memory_space<vmem>>, vector<1x256xf32>
    %356 = vector.broadcast %355 : vector<1x256xf32> to vector<16x256xf32>
    %357 = arith.addf %354, %356 : vector<16x256xf32>
    %358 = arith.negf %357 : vector<16x256xf32>
    %359 = math.exp %358 : vector<16x256xf32>
    %cst_116 = arith.constant 1.000000e+00 : f32
    %360 = vector.broadcast %cst_116 : f32 to vector<16x256xf32>
    %361 = arith.addf %360, %359 : vector<16x256xf32>
    %362 = arith.divf %360, %361 : vector<16x256xf32>
    %363 = arith.mulf %357, %362 : vector<16x256xf32>
    %364 = arith.truncf %363 : vector<16x256xf32> to vector<16x256xbf16>
    %c0_117 = arith.constant 0 : index
    %c0_118 = arith.constant 0 : index
    %365 = vector.load %arg31[%c0_117, %c0_118] : memref<256x128xbf16, #tpu.memory_space<vmem>>, vector<256x128xbf16>
    %cst_119 = arith.constant dense<0.000000e+00> : vector<16x128xf32>
    %366 = tpu.matmul %364, %365, %cst_119 {dimension_numbers = #tpu.dot_dimension_numbers<[1], [0], [0], [1], [0, 0, 1, 1], [], []>} : vector<16x256xbf16>, vector<256x128xbf16>, vector<16x128xf32> -> vector<16x128xf32>
    %c0_120 = arith.constant 0 : index
    %c0_121 = arith.constant 0 : index
    %367 = vector.load %arg32[%c0_120, %c0_121] : memref<1x128xf32, #tpu.memory_space<vmem>>, vector<1x128xf32>
    %368 = vector.broadcast %367 : vector<1x128xf32> to vector<16x128xf32>
    %369 = arith.addf %366, %368 : vector<16x128xf32>
    %cst_122 = arith.constant 5.000000e-01 : f32
    %370 = vector.broadcast %cst_122 : f32 to vector<16x128xf32>
    %371 = arith.mulf %370, %369 : vector<16x128xf32>
    %372 = arith.addf %327, %371 : vector<16x128xf32>
    %c0_123 = arith.constant 0 : index
    %c0_124 = arith.constant 0 : index
    %373 = vector.load %arg33[%c0_123, %c0_124] : memref<1x128xf32, #tpu.memory_space<vmem>>, vector<1x128xf32>
    %c0_125 = arith.constant 0 : index
    %c0_126 = arith.constant 0 : index
    %374 = vector.load %arg34[%c0_125, %c0_126] : memref<1x128xf32, #tpu.memory_space<vmem>>, vector<1x128xf32>
    %cst_127 = arith.constant dense<0.000000e+00> : vector<16xf32>
    %375 = vector.multi_reduction <add>, %372, %cst_127 [1] : vector<16x128xf32> to vector<16xf32>
    %376 = vector.shape_cast %375 : vector<16xf32> to vector<16x1xf32>
    %cst_128 = arith.constant 1.280000e+02 : f32
    %377 = vector.broadcast %cst_128 : f32 to vector<16x1xf32>
    %378 = arith.divf %376, %377 : vector<16x1xf32>
    %379 = vector.broadcast %378 : vector<16x1xf32> to vector<16x128xf32>
    %380 = arith.subf %372, %379 : vector<16x128xf32>
    %381 = arith.mulf %380, %380 : vector<16x128xf32>
    %cst_129 = arith.constant dense<0.000000e+00> : vector<16xf32>
    %382 = vector.multi_reduction <add>, %381, %cst_129 [1] : vector<16x128xf32> to vector<16xf32>
    %383 = vector.shape_cast %382 : vector<16xf32> to vector<16x1xf32>
    %cst_130 = arith.constant 1.280000e+02 : f32
    %384 = vector.broadcast %cst_130 : f32 to vector<16x1xf32>
    %385 = arith.divf %383, %384 : vector<16x1xf32>
    %386 = vector.broadcast %378 : vector<16x1xf32> to vector<16x128xf32>
    %387 = arith.subf %372, %386 : vector<16x128xf32>
    %cst_131 = arith.constant 9.99999974E-6 : f32
    %388 = vector.broadcast %cst_131 : f32 to vector<16x1xf32>
    %389 = arith.addf %385, %388 : vector<16x1xf32>
    %390 = math.rsqrt %389 : vector<16x1xf32>
    %391 = vector.broadcast %390 : vector<16x1xf32> to vector<16x128xf32>
    %392 = arith.mulf %387, %391 : vector<16x128xf32>
    %393 = vector.broadcast %373 : vector<1x128xf32> to vector<16x128xf32>
    %394 = arith.mulf %392, %393 : vector<16x128xf32>
    %395 = vector.broadcast %374 : vector<1x128xf32> to vector<16x128xf32>
    %396 = arith.addf %394, %395 : vector<16x128xf32>
    %397 = arith.truncf %396 : vector<16x128xf32> to vector<16x128xbf16>
    %c0_132 = arith.constant 0 : index
    %c0_133 = arith.constant 0 : index
    %c0_134 = arith.constant 0 : index
    %398 = vector.load %arg35[%c0_132, %c0_133, %c0_134] : memref<1x16x128xbf16, #tpu.memory_space<vmem>>, vector<1x16x128xbf16>
    %399 = vector.shape_cast %398 : vector<1x16x128xbf16> to vector<16x128xbf16>
    %400 = vector.shape_cast %397 : vector<16x128xbf16> to vector<1x16x128xbf16>
    tpu.vector_store %arg35[%c0_132, %c0_133, %c0_134], %400 {strides = array<i32>} : memref<1x16x128xbf16, #tpu.memory_space<vmem>>, vector<1x16x128xbf16>,
    return
  }
  func.func @transform_0(%arg0: i32) -> (i32, i32, i32) {
    %c0_i32 = arith.constant 0 : i32
    %c0_i32_0 = arith.constant 0 : i32
    %c0_i32_1 = arith.constant 0 : i32
    return %arg0, %c0_i32, %c0_i32_0 : i32, i32, i32
  }
  func.func @transform_1(%arg0: i32) -> (i32, i32) {
    %c0_i32 = arith.constant 0 : i32
    %c0_i32_0 = arith.constant 0 : i32
    %c0_i32_1 = arith.constant 0 : i32
    return %c0_i32, %c0_i32_0 : i32, i32
  }
  func.func @transform_2(%arg0: i32) -> (i32, i32) {
    %c0_i32 = arith.constant 0 : i32
    %c0_i32_0 = arith.constant 0 : i32
    %c0_i32_1 = arith.constant 0 : i32
    return %c0_i32, %c0_i32_0 : i32, i32
  }
  func.func @transform_3(%arg0: i32) -> (i32, i32) {
    %c0_i32 = arith.constant 0 : i32
    %c0_i32_0 = arith.constant 0 : i32
    %c0_i32_1 = arith.constant 0 : i32
    return %c0_i32, %c0_i32_0 : i32, i32
  }
  func.func @transform_4(%arg0: i32) -> (i32, i32) {
    %c0_i32 = arith.constant 0 : i32
    %c0_i32_0 = arith.constant 0 : i32
    %c0_i32_1 = arith.constant 0 : i32
    return %c0_i32, %c0_i32_0 : i32, i32
  }
  func.func @transform_5(%arg0: i32) -> (i32, i32) {
    %c0_i32 = arith.constant 0 : i32
    %c0_i32_0 = arith.constant 0 : i32
    %c0_i32_1 = arith.constant 0 : i32
    return %c0_i32, %c0_i32_0 : i32, i32
  }
  func.func @transform_6(%arg0: i32) -> (i32, i32) {
    %c0_i32 = arith.constant 0 : i32
    %c0_i32_0 = arith.constant 0 : i32
    %c0_i32_1 = arith.constant 0 : i32
    return %c0_i32, %c0_i32_0 : i32, i32
  }
  func.func @transform_7(%arg0: i32) -> (i32, i32) {
    %c0_i32 = arith.constant 0 : i32
    %c0_i32_0 = arith.constant 0 : i32
    %c0_i32_1 = arith.constant 0 : i32
    return %c0_i32, %c0_i32_0 : i32, i32
  }
  func.func @transform_8(%arg0: i32) -> (i32, i32) {
    %c0_i32 = arith.constant 0 : i32
    %c0_i32_0 = arith.constant 0 : i32
    %c0_i32_1 = arith.constant 0 : i32
    return %c0_i32, %c0_i32_0 : i32, i32
  }
  func.func @transform_9(%arg0: i32) -> (i32, i32) {
    %c0_i32 = arith.constant 0 : i32
    %c0_i32_0 = arith.constant 0 : i32
    %c0_i32_1 = arith.constant 0 : i32
    return %c0_i32, %c0_i32_0 : i32, i32
  }
  func.func @transform_10(%arg0: i32) -> (i32, i32) {
    %c0_i32 = arith.constant 0 : i32
    %c0_i32_0 = arith.constant 0 : i32
    %c0_i32_1 = arith.constant 0 : i32
    return %c0_i32, %c0_i32_0 : i32, i32
  }
  func.func @transform_11(%arg0: i32) -> (i32, i32) {
    %c0_i32 = arith.constant 0 : i32
    %c0_i32_0 = arith.constant 0 : i32
    %c0_i32_1 = arith.constant 0 : i32
    return %c0_i32, %c0_i32_0 : i32, i32
  }
  func.func @transform_12(%arg0: i32) -> (i32, i32) {
    %c0_i32 = arith.constant 0 : i32
    %c0_i32_0 = arith.constant 0 : i32
    %c0_i32_1 = arith.constant 0 : i32
    return %c0_i32, %c0_i32_0 : i32, i32
  }
  func.func @transform_13(%arg0: i32) -> (i32, i32) {
    %c0_i32 = arith.constant 0 : i32
    %c0_i32_0 = arith.constant 0 : i32
    %c0_i32_1 = arith.constant 0 : i32
    return %c0_i32, %c0_i32_0 : i32, i32
  }
  func.func @transform_14(%arg0: i32) -> (i32, i32) {
    %c0_i32 = arith.constant 0 : i32
    %c0_i32_0 = arith.constant 0 : i32
    %c0_i32_1 = arith.constant 0 : i32
    return %c0_i32, %c0_i32_0 : i32, i32
  }
  func.func @transform_15(%arg0: i32) -> (i32, i32) {
    %c0_i32 = arith.constant 0 : i32
    %c0_i32_0 = arith.constant 0 : i32
    %c0_i32_1 = arith.constant 0 : i32
    return %c0_i32, %c0_i32_0 : i32, i32
  }
  func.func @transform_16(%arg0: i32) -> (i32, i32) {
    %c0_i32 = arith.constant 0 : i32
    %c0_i32_0 = arith.constant 0 : i32
    %c0_i32_1 = arith.constant 0 : i32
    return %c0_i32, %c0_i32_0 : i32, i32
  }
  func.func @transform_17(%arg0: i32) -> (i32, i32) {
    %c0_i32 = arith.constant 0 : i32
    %c0_i32_0 = arith.constant 0 : i32
    %c0_i32_1 = arith.constant 0 : i32
    return %c0_i32, %c0_i32_0 : i32, i32
  }
  func.func @transform_18(%arg0: i32) -> (i32, i32) {
    %c0_i32 = arith.constant 0 : i32
    %c0_i32_0 = arith.constant 0 : i32
    %c0_i32_1 = arith.constant 0 : i32
    return %c0_i32, %c0_i32_0 : i32, i32
  }
  func.func @transform_19(%arg0: i32) -> (i32, i32) {
    %c0_i32 = arith.constant 0 : i32
    %c0_i32_0 = arith.constant 0 : i32
    %c0_i32_1 = arith.constant 0 : i32
    return %c0_i32, %c0_i32_0 : i32, i32
  }
  func.func @transform_20(%arg0: i32) -> (i32, i32) {
    %c0_i32 = arith.constant 0 : i32
    %c0_i32_0 = arith.constant 0 : i32
    %c0_i32_1 = arith.constant 0 : i32
    return %c0_i32, %c0_i32_0 : i32, i32
  }
  func.func @transform_21(%arg0: i32) -> (i32, i32) {
    %c0_i32 = arith.constant 0 : i32
    %c0_i32_0 = arith.constant 0 : i32
    %c0_i32_1 = arith.constant 0 : i32
    return %c0_i32, %c0_i32_0 : i32, i32
  }
  func.func @transform_22(%arg0: i32) -> (i32, i32) {
    %c0_i32 = arith.constant 0 : i32
    %c0_i32_0 = arith.constant 0 : i32
    %c0_i32_1 = arith.constant 0 : i32
    return %c0_i32, %c0_i32_0 : i32, i32
  }
  func.func @transform_23(%arg0: i32) -> (i32, i32) {
    %c0_i32 = arith.constant 0 : i32
    %c0_i32_0 = arith.constant 0 : i32
    %c0_i32_1 = arith.constant 0 : i32
    return %c0_i32, %c0_i32_0 : i32, i32
  }
  func.func @transform_24(%arg0: i32) -> (i32, i32) {
    %c0_i32 = arith.constant 0 : i32
    %c0_i32_0 = arith.constant 0 : i32
    %c0_i32_1 = arith.constant 0 : i32
    return %c0_i32, %c0_i32_0 : i32, i32
  }
  func.func @transform_25(%arg0: i32) -> (i32, i32) {
    %c0_i32 = arith.constant 0 : i32
    %c0_i32_0 = arith.constant 0 : i32
    %c0_i32_1 = arith.constant 0 : i32
    return %c0_i32, %c0_i32_0 : i32, i32
  }
  func.func @transform_26(%arg0: i32) -> (i32, i32) {
    %c0_i32 = arith.constant 0 : i32
    %c0_i32_0 = arith.constant 0 : i32
    %c0_i32_1 = arith.constant 0 : i32
    return %c0_i32, %c0_i32_0 : i32, i32
  }
  func.func @transform_27(%arg0: i32) -> (i32, i32) {
    %c0_i32 = arith.constant 0 : i32
    %c0_i32_0 = arith.constant 0 : i32
    %c0_i32_1 = arith.constant 0 : i32
    return %c0_i32, %c0_i32_0 : i32, i32
  }
  func.func @transform_28(%arg0: i32) -> (i32, i32) {
    %c0_i32 = arith.constant 0 : i32
    %c0_i32_0 = arith.constant 0 : i32
    %c0_i32_1 = arith.constant 0 : i32
    return %c0_i32, %c0_i32_0 : i32, i32
  }
  func.func @transform_29(%arg0: i32) -> (i32, i32) {
    %c0_i32 = arith.constant 0 : i32
    %c0_i32_0 = arith.constant 0 : i32
    %c0_i32_1 = arith.constant 0 : i32
    return %c0_i32, %c0_i32_0 : i32, i32
  }
  func.func @transform_30(%arg0: i32) -> (i32, i32) {
    %c0_i32 = arith.constant 0 : i32
    %c0_i32_0 = arith.constant 0 : i32
    %c0_i32_1 = arith.constant 0 : i32
    return %c0_i32, %c0_i32_0 : i32, i32
  }
  func.func @transform_31(%arg0: i32) -> (i32, i32) {
    %c0_i32 = arith.constant 0 : i32
    %c0_i32_0 = arith.constant 0 : i32
    %c0_i32_1 = arith.constant 0 : i32
    return %c0_i32, %c0_i32_0 : i32, i32
  }
  func.func @transform_32(%arg0: i32) -> (i32, i32) {
    %c0_i32 = arith.constant 0 : i32
    %c0_i32_0 = arith.constant 0 : i32
    %c0_i32_1 = arith.constant 0 : i32
    return %c0_i32, %c0_i32_0 : i32, i32
  }
  func.func @transform_33(%arg0: i32) -> (i32, i32) {
    %c0_i32 = arith.constant 0 : i32
    %c0_i32_0 = arith.constant 0 : i32
    %c0_i32_1 = arith.constant 0 : i32
    return %c0_i32, %c0_i32_0 : i32, i32
  }
  func.func @transform_34(%arg0: i32) -> (i32, i32, i32) {
    %c0_i32 = arith.constant 0 : i32
    %c0_i32_0 = arith.constant 0 : i32
    %c0_i32_1 = arith.constant 0 : i32
    return %arg0, %c0_i32, %c0_i32_0 : i32, i32, i32
  }
}

module attributes {stable_mosaic.version = 11 : i64} {
  func.func @_layernorm_kernel(%arg0: i32, %arg1: memref<32x128xbf16, #tpu.memory_space<vmem>>, %arg2: memref<1x128xf32, #tpu.memory_space<vmem>>, %arg3: memref<1x128xf32, #tpu.memory_space<vmem>>, %arg4: memref<32x128xf32, #tpu.memory_space<vmem>>) attributes {dimension_semantics = [#tpu.dimension_semantics<parallel>], iteration_bounds = array<i64: 1>, scalar_prefetch = 0 : i64, scratch_operands = 0 : i64, tpu.core_type = #tpu.core_type<tc>, window_params = [{transform_indices = @transform_0, window_bounds = array<i64: 32, 128>}, {pipeline_mode = #tpu.pipeline_mode<synchronous>, transform_indices = @transform_1, window_bounds = array<i64: 1, 128>}, {pipeline_mode = #tpu.pipeline_mode<synchronous>, transform_indices = @transform_2, window_bounds = array<i64: 1, 128>}, {transform_indices = @transform_3, window_bounds = array<i64: 32, 128>}]} {
    %c0 = arith.constant 0 : index
    %c0_0 = arith.constant 0 : index
    %0 = vector.load %arg1[%c0, %c0_0] : memref<32x128xbf16, #tpu.memory_space<vmem>>, vector<32x128xbf16>
    %1 = arith.extf %0 : vector<32x128xbf16> to vector<32x128xf32>
    %c0_1 = arith.constant 0 : index
    %c0_2 = arith.constant 0 : index
    %2 = vector.load %arg2[%c0_1, %c0_2] : memref<1x128xf32, #tpu.memory_space<vmem>>, vector<1x128xf32>
    %c0_3 = arith.constant 0 : index
    %c0_4 = arith.constant 0 : index
    %3 = vector.load %arg3[%c0_3, %c0_4] : memref<1x128xf32, #tpu.memory_space<vmem>>, vector<1x128xf32>
    %cst = arith.constant dense<0.000000e+00> : vector<32xf32>
    %4 = vector.multi_reduction <add>, %1, %cst [1] : vector<32x128xf32> to vector<32xf32>
    %5 = vector.shape_cast %4 : vector<32xf32> to vector<32x1xf32>
    %cst_5 = arith.constant 1.280000e+02 : f32
    %6 = vector.broadcast %cst_5 : f32 to vector<32x1xf32>
    %7 = arith.divf %5, %6 : vector<32x1xf32>
    %8 = vector.broadcast %7 : vector<32x1xf32> to vector<32x128xf32>
    %9 = arith.subf %1, %8 : vector<32x128xf32>
    %10 = arith.mulf %9, %9 : vector<32x128xf32>
    %cst_6 = arith.constant dense<0.000000e+00> : vector<32xf32>
    %11 = vector.multi_reduction <add>, %10, %cst_6 [1] : vector<32x128xf32> to vector<32xf32>
    %12 = vector.shape_cast %11 : vector<32xf32> to vector<32x1xf32>
    %cst_7 = arith.constant 1.280000e+02 : f32
    %13 = vector.broadcast %cst_7 : f32 to vector<32x1xf32>
    %14 = arith.divf %12, %13 : vector<32x1xf32>
    %15 = vector.broadcast %7 : vector<32x1xf32> to vector<32x128xf32>
    %16 = arith.subf %1, %15 : vector<32x128xf32>
    %cst_8 = arith.constant 9.99999974E-6 : f32
    %17 = vector.broadcast %cst_8 : f32 to vector<32x1xf32>
    %18 = arith.addf %14, %17 : vector<32x1xf32>
    %19 = math.rsqrt %18 : vector<32x1xf32>
    %20 = vector.broadcast %19 : vector<32x1xf32> to vector<32x128xf32>
    %21 = arith.mulf %16, %20 : vector<32x128xf32>
    %22 = vector.broadcast %2 : vector<1x128xf32> to vector<32x128xf32>
    %23 = arith.mulf %21, %22 : vector<32x128xf32>
    %24 = vector.broadcast %3 : vector<1x128xf32> to vector<32x128xf32>
    %25 = arith.addf %23, %24 : vector<32x128xf32>
    %c0_9 = arith.constant 0 : index
    %c0_10 = arith.constant 0 : index
    %26 = vector.load %arg4[%c0_9, %c0_10] : memref<32x128xf32, #tpu.memory_space<vmem>>, vector<32x128xf32>
    tpu.vector_store %arg4[%c0_9, %c0_10], %25 {strides = array<i32>} : memref<32x128xf32, #tpu.memory_space<vmem>>, vector<32x128xf32>,
    return
  }
  func.func @transform_0(%arg0: i32) -> (i32, i32) {
    %c0_i32 = arith.constant 0 : i32
    %c0_i32_0 = arith.constant 0 : i32
    return %arg0, %c0_i32 : i32, i32
  }
  func.func @transform_1(%arg0: i32) -> (i32, i32) {
    %c0_i32 = arith.constant 0 : i32
    %c0_i32_0 = arith.constant 0 : i32
    %c0_i32_1 = arith.constant 0 : i32
    return %c0_i32, %c0_i32_0 : i32, i32
  }
  func.func @transform_2(%arg0: i32) -> (i32, i32) {
    %c0_i32 = arith.constant 0 : i32
    %c0_i32_0 = arith.constant 0 : i32
    %c0_i32_1 = arith.constant 0 : i32
    return %c0_i32, %c0_i32_0 : i32, i32
  }
  func.func @transform_3(%arg0: i32) -> (i32, i32) {
    %c0_i32 = arith.constant 0 : i32
    %c0_i32_0 = arith.constant 0 : i32
    return %arg0, %c0_i32 : i32, i32
  }
}

</mosaic_0001>

<bundles_post_ra>
// kernel: encoder_forward.8
= control target key start
LH: loop header
LB: loop body
LE: loop exit
PB: predicated region body
PF: predicated region fallthrough
CT: control target
= control target key end

     0   :  { %s399_s1 = inlined_call_operand.vmem [shape: bf16[128,128], index: 1, kind: input, shape index: {}]   ;;  %s400_s0 = inlined_call_operand.vmem [shape: f32[32,128], index: 0, kind: input, shape index: {}]   ;;  %s401_s2 = inlined_call_operand.vmem [shape: f32[1,128], index: 2, kind: input, shape index: {}]   ;;  %s402_s3 = inlined_call_operand.vmem [shape: f32[1,128], index: 3, kind: input, shape index: {}]   ;;  %s403_s4 = inlined_call_operand.vmem [shape: f32[1,128], index: 4, kind: input, shape index: {}]   ;;  %s404_s5 = inlined_call_operand.vmem [shape: bf16[32,128], index: 5, kind: output, shape index: {}]  }
   0x1   :  { %v302_v0 = vld [vmem:[%s399_s1 + $0x38] sm:$0xff]   ;;  %v303_v1 = vld [vmem:[%s399_s1 + $0x30] sm:$0xff]   ;;  %v304_v2 = vld [vmem:[%s399_s1 + $0x28] sm:$0xff]  }
   0x2   :  { %282 = vmatprep.subr.bf16.mxu0 %v302_v0  ;;  %v305_v3 = vld [vmem:[%s399_s1 + $0x20] sm:$0xff]   ;;  %v22_v5 = vld [vmem:[%s400_s0 + $0x8] sm:$0xff]  ;;  %v306_v7 = vld [vmem:[%s399_s1 + $0x18] sm:$0xff]  }
   0x3   :  { %283 = vmatpush3.bf16.msra.mxu0 %v302_v0  ;;  %v21_v4 = vld [vmem:[%s400_s0] sm:$0xff]  ;;  %v307_v8 = vld [vmem:[%s399_s1 + $0x10] sm:$0xff]   ;;  %v308_v9 = vld [vmem:[%s399_s1 + $0x8] sm:$0xff]  }
   0x4   :  { %284 = vmatprep.subr.bf16.mxu0 %v303_v1  ;;  %v25_v6 = vpack.c.bf16 %v22_v5, %v21_v4  ;;  %v309_v10 = vld [vmem:[%s399_s1] sm:$0xff]   ;;  %v23_v11 = vld [vmem:[%s400_s0 + $0x10] sm:$0xff]  ;;  %v24_v12 = vld [vmem:[%s400_s0 + $0x18] sm:$0xff] }
   0x5   :  { %v26_v13 = vpack.c.bf16 %v24_v12, %v23_v11  ;;  %v242_v14 = vld [vmem:[%s401_s2] ss:$0 sm:$0xff] }
   0x6   :  { %298 = vmatprep.mubr.bf16.mxu0 %v25_v6  ;;  %v251_v52 = vld [vmem:[%s402_s3] ss:$0 sm:$0xff] }
   0x7   :  { %285 = vmatpush3.bf16.msra.mxu0 %v303_v1  ;;  %v252_v56 = vld [vmem:[%s403_s4] ss:$0 sm:$0xff] }
   0x8   :  { %286 = vmatprep.subr.bf16.mxu0 %v304_v2 }
   0xb   :  { %287 = vmatpush3.bf16.msra.mxu0 %v304_v2 }
   0xc   :  { %288 = vmatprep.subr.bf16.mxu0 %v305_v3 }
   0xf   :  { %289 = vmatpush3.bf16.msra.mxu0 %v305_v3 }
  0x10   :  { %290 = vmatprep.subr.bf16.mxu0 %v306_v7 }
  0x13   :  { %291 = vmatpush3.bf16.msra.mxu0 %v306_v7 }
  0x14   :  { %292 = vmatprep.subr.bf16.mxu0 %v307_v8 }
  0x17   :  { %293 = vmatpush3.bf16.msra.mxu0 %v307_v8 }
  0x18   :  { %294 = vmatprep.subr.bf16.mxu0 %v308_v9 }
  0x1b   :  { %295 = vmatpush3.bf16.msra.mxu0 %v308_v9 }
  0x1c   :  { %296 = vmatprep.subr.bf16.mxu0 %v309_v10 }
  0x1f   :  { %297 = vmatpush3.bf16.msra.mxu0 %v309_v10 }
  0x22   :  { %299 = vmatmul.mubr.bf16.vlgmr.msra.gmra.mxu0 %v26_v13 }
  0xe2   :  { %v300_v15 = vpop.f32.mrf.mxu0 }
  0xe3   :  { %v141_v16 = vadd.f32 %v300_v15, %v242_v14 }
  0xe4   :  { %v132_v17 = vpop.f32.mrf.mxu0 }
  0xe5   :  { %v133_v18 = vadd.f32 %v242_v14, %v132_v17  ;;  %153 = vadd.xlane.f32.xlu1 %v141_v16 }
  0xe6   :  { %v301_v19 = vpop.f32.mrf.mxu0 }
  0xe7   :  { %v144_v20 = vadd.f32 %v301_v19, %v242_v14  ;;  %149 = vadd.xlane.f32.xlu0 %v133_v18 }
  0xe8   :  { %v135_v21 = vpop.f32.mrf.mxu0 }
  0xe9   :  { %v136_v22 = vadd.f32 %v242_v14, %v135_v21  ;;  %155 = vadd.xlane.f32.xlu1 %v144_v20 }
  0xeb   :  { %151 = vadd.xlane.f32.xlu0 %v136_v22 }
 0x16e   :  { %v154_v23 = vpop.xlane.xlu1 %153 }
 0x16f   :  { %v160_v25 = vmul.f32 0.0078125, %v154_v23 }
 0x170   :  { %v150_v24 = vpop.xlane.xlu0 %149 }
 0x171   :  { %v158_v26 = vmul.f32 0.0078125, %v150_v24  ;;  %v164_v30 = vsub.f32 %v141_v16, %v160_v25 }
 0x172   :  { %v156_v27 = vpop.xlane.xlu1 %155 }
 0x173   :  { %v162_v28 = vsub.f32 %v133_v18, %v158_v26  ;;  %v161_v31 = vmul.f32 0.0078125, %v156_v27  ;;  %v168_v36 = vmul.f32 %v164_v30, %v164_v30 }
 0x174   :  { %v152_v29 = vpop.xlane.xlu0 %151 }
 0x175   :  { %v159_v32 = vmul.f32 0.0078125, %v152_v29  ;;  %v166_v33 = vmul.f32 %v162_v28, %v162_v28  ;;  %v165_v35 = vsub.f32 %v144_v20, %v161_v31 }
 0x177   :  { %v163_v34 = vsub.f32 %v136_v22, %v159_v32  ;;  %170 = vadd.xlane.f32.xlu0 %v166_v33  ;;  %v169_v38 = vmul.f32 %v165_v35, %v165_v35 }
 0x179   :  { %v167_v37 = vmul.f32 %v163_v34, %v163_v34 }
 0x17b   :  { %174 = vadd.xlane.f32.xlu0 %v168_v36  ;;  %172 = vadd.xlane.f32.xlu1 %v167_v37 }
 0x17f   :  { %176 = vadd.xlane.f32.xlu1 %v169_v38 }
 0x200   :  { %v171_v39 = vpop.xlane.xlu0 %170 }
 0x201   :  { %v178_v40 = vmul.f32 0.0078125, %v171_v39 }
 0x203   :  { %v182_v41 = vadd.f32 1e-05, %v178_v40 }
 0x204   :  { %v173_v42 = vpop.xlane.xlu1 %172  ;;  %v175_v43 = vpop.xlane.xlu0 %174 }
 0x205   :  { %310 = vrsqrt.f32 %v182_v41  ;;  %v179_v44 = vmul.f32 0.0078125, %v173_v42  ;;  %v180_v45 = vmul.f32 0.0078125, %v175_v43 }
 0x207   :  { %v183_v46 = vadd.f32 1e-05, %v179_v44  ;;  %v184_v47 = vadd.f32 1e-05, %v180_v45 }
 0x208   :  { %v177_v48 = vpop.xlane.xlu1 %176 }
 0x209   :  { %312 = vrsqrt.f32 %v183_v46  ;;  %v181_v49 = vmul.f32 0.0078125, %v177_v48 }
 0x20a   :  { %314 = vrsqrt.f32 %v184_v47 }
 0x20b   :  { %v185_v50 = vadd.f32 1e-05, %v181_v49 }
 0x20d   :  { %316 = vrsqrt.f32 %v185_v50 }
 0x212   :  { %v311_v51 = vpop.eup %310 }
 0x213   :  { %v190_v53 = vmul.f32 %v311_v51, %v162_v28 }
 0x215   :  { %v200_v54 = vmul.f32 %v251_v52, %v190_v53 }
 0x216   :  { %v313_v55 = vpop.eup %312 }
 0x217   :  { %v315_v57 = vpop.eup %314  ;;  %v191_v58 = vmul.f32 %v313_v55, %v163_v34  ;;  %v210_v60 = vadd.f32 %v252_v56, %v200_v54 }
 0x218   :  { %v192_v59 = vmul.f32 %v315_v57, %v164_v30 }
 0x219   :  { %v201_v61 = vmul.f32 %v251_v52, %v191_v58  ;;  %v214_v2 = vmul.f32 11.313708, %v210_v60 }
 0x21a   :  { %v317_v62 = vpop.eup %316  ;;  %v202_v63 = vmul.f32 %v251_v52, %v192_v59 }
 0x21b   :  { %v211_v0 = vadd.f32 %v252_v56, %v201_v61  ;;  %v193_v1 = vmul.f32 %v317_v62, %v165_v35 }
 0x21c   :  { %v212_v4 = vadd.f32 %v252_v56, %v202_v63 }
 0x21d   :  { %v215_v3 = vmul.f32 11.313708, %v211_v0  ;;  %v203_v5 = vmul.f32 %v251_v52, %v193_v1 }
 0x21e   :  { %v216_v8 = vmul.f32 11.313708, %v212_v4 }
 0x21f   :  { %v264_v6 = vpack.c.bf16 %v215_v3, %v214_v2  ;;  %v213_v7 = vadd.f32 %v252_v56, %v203_v5 }
 0x221   :  { %265 = vst [vmem:[%s404_s5] sm:$0xff] %v264_v6   ;;  %v217_v9 = vmul.f32 11.313708, %v213_v7 }
 0x223   :  { %v269_v10 = vpack.c.bf16 %v217_v9, %v216_v8 }
 0x225   :  { %271 = vst [vmem:[%s404_s5 + $0x8] sm:$0xff] %v269_v10  }

// kernel: encoder_forward.15
= control target key start
LH: loop header
LB: loop body
LE: loop exit
PB: predicated region body
PF: predicated region fallthrough
CT: control target
= control target key end

     0   :  { %s192_s0 = inlined_call_operand.vmem [shape: bf16[32,128], index: 0, kind: input, shape index: {}]   ;;  %s193_s1 = inlined_call_operand.vmem [shape: f32[1,128], index: 1, kind: input, shape index: {}]   ;;  %s194_s2 = inlined_call_operand.vmem [shape: f32[1,128], index: 2, kind: input, shape index: {}]   ;;  %s195_s3 = inlined_call_operand.hbm [shape: f32[32,128], index: 3, kind: output, shape index: {}]  }
   0x1   :  { %v113_v0 = vld [vmem:[%s192_s0] sm:$0xff]   ;;  %v120_v1 = vld [vmem:[%s192_s0 + $0x8] sm:$0xff]  }
   0x2   :  { %8 = vsyncpa [#allocation3], 0  ;;  %v114_v2 = vunpack.c.l.bf16 %v113_v0  ;;  %v118_v3 = vunpack.c.l.bf16 %v120_v1  ;;  %v115_v4 = vunpack.c.h.bf16 %v113_v0  ;;  %v119_v5 = vunpack.c.h.bf16 %v120_v1  ;;  %v110_v35 = vld [vmem:[%s193_s1] ss:$0 sm:$0xff]  ;;  %s154_s19 = smov [#allocation2]  }
   0x3   :  { %v111_v37 = vld [vmem:[%s194_s2] ss:$0 sm:$0xff]  ;;  %s99_s1 = sshll.u32 %s154_s19, 4  ;;  %s100_s1 = int_to_ptr.vmem [resolvable:$true] %s99_s1 }
   0x4   :  { %25 = vadd.xlane.f32.xlu0 %v114_v2  ;;  %29 = vadd.xlane.f32.xlu1 %v118_v3  ;;  %s132_s2 = scalar_lea.vmem %s100_s1, 512  ;;  %p137_p1 = scmp.lt.s32.totalorder %s100_s1, %s100_s1 }
   0x5   :  { %p133_p0 = scmp.ne.s32.totalorder %s100_s1, %s132_s2  ;;  %p138_p2 = scmp.lt.s32.totalorder %s132_s2, %s132_s2 }
   0x7   :  { %p139_p3 = por %p138_p2, %p137_p1 }
   0x8   :  { %27 = vadd.xlane.f32.xlu0 %v115_v4  ;;  %31 = vadd.xlane.f32.xlu1 %v119_v5 }
   0x9   :  { %p140_p4 = pnand %p139_p3, %p133_p0 }
  0x8d   :  { %v26_v6 = vpop.xlane.xlu0 %25  ;;  %v30_v7 = vpop.xlane.xlu1 %29 }
  0x8e   :  { %v34_v8 = vmul.f32 0.0078125, %v26_v6  ;;  %v36_v9 = vmul.f32 0.0078125, %v30_v7 }
  0x90   :  { %v38_v10 = vsub.f32 %v114_v2, %v34_v8  ;;  %v40_v11 = vsub.f32 %v118_v3, %v36_v9 }
  0x91   :  { %v28_v12 = vpop.xlane.xlu0 %27  ;;  %v32_v13 = vpop.xlane.xlu1 %31 }
  0x92   :  { %v35_v14 = vmul.f32 0.0078125, %v28_v12  ;;  %v42_v15 = vmul.f32 %v38_v10, %v38_v10  ;;  %v37_v16 = vmul.f32 0.0078125, %v32_v13  ;;  %v44_v19 = vmul.f32 %v40_v11, %v40_v11 }
  0x94   :  { %v39_v17 = vsub.f32 %v115_v4, %v35_v14  ;;  %46 = vadd.xlane.f32.xlu0 %v42_v15  ;;  %v41_v18 = vsub.f32 %v119_v5, %v37_v16 }
  0x96   :  { %v43_v20 = vmul.f32 %v39_v17, %v39_v17  ;;  %v45_v21 = vmul.f32 %v41_v18, %v41_v18 }
  0x98   :  { %50 = vadd.xlane.f32.xlu0 %v44_v19  ;;  %48 = vadd.xlane.f32.xlu1 %v43_v20 }
  0x9c   :  { %52 = vadd.xlane.f32.xlu1 %v45_v21 }
 0x11d   :  { %v47_v22 = vpop.xlane.xlu0 %46 }
 0x11e   :  { %v54_v23 = vmul.f32 0.0078125, %v47_v22 }
 0x120   :  { %v58_v24 = vadd.f32 1e-05, %v54_v23 }
 0x121   :  { %v49_v25 = vpop.xlane.xlu1 %48  ;;  %v51_v26 = vpop.xlane.xlu0 %50 }
 0x122   :  { %124 = vrsqrt.f32 %v58_v24  ;;  %v55_v27 = vmul.f32 0.0078125, %v49_v25  ;;  %v56_v28 = vmul.f32 0.0078125, %v51_v26 }
 0x124   :  { %v59_v29 = vadd.f32 1e-05, %v55_v27  ;;  %v60_v30 = vadd.f32 1e-05, %v56_v28 }
 0x125   :  { %v53_v31 = vpop.xlane.xlu1 %52 }
 0x126   :  { %126 = vrsqrt.f32 %v59_v29  ;;  %v57_v32 = vmul.f32 0.0078125, %v53_v31 }
 0x127   :  { %128 = vrsqrt.f32 %v60_v30 }
 0x128   :  { %v61_v33 = vadd.f32 1e-05, %v57_v32 }
 0x12a   :  { %130 = vrsqrt.f32 %v61_v33 }
 0x12f   :  { %v125_v34 = vpop.eup %124 }
 0x130   :  { %v66_v36 = vmul.f32 %v125_v34, %v38_v10 }
 0x132   :  { %v76_v38 = vmul.f32 %v110_v35, %v66_v36 }
 0x133   :  { %v127_v39 = vpop.eup %126 }
 0x134   :  { %v129_v40 = vpop.eup %128  ;;  %v67_v41 = vmul.f32 %v127_v39, %v39_v17  ;;  %v86_v42 = vadd.f32 %v111_v37, %v76_v38 }
 0x135   :  { %v68_v43 = vmul.f32 %v129_v40, %v40_v11 }
 0x136   :  { %v77_v44 = vmul.f32 %v110_v35, %v67_v41  ;;  %90 = vst [vmem:[#allocation2] sm:$0xff] %v86_v42 }
 0x137   :  { %v131_v45 = vpop.eup %130  ;;  %v78_v46 = vmul.f32 %v110_v35, %v68_v43 }
 0x138   :  { %v69_v47 = vmul.f32 %v131_v45, %v41_v18  ;;  %v87_v48 = vadd.f32 %v111_v37, %v77_v44 }
 0x139   :  { %v88_v49 = vadd.f32 %v111_v37, %v78_v46 }
 0x13a   :  { %v79_v50 = vmul.f32 %v110_v35, %v69_v47  ;;  %91 = vst [vmem:[#allocation2 + $0x8] sm:$0xff] %v87_v48 }
 0x13b   :  { %92 = vst [vmem:[#allocation2 + $0x10] sm:$0xff] %v88_v49 }
 0x13c   :  { %v89_v51 = vadd.f32 %v111_v37, %v79_v50 }
 0x13e   :  { %93 = vst [vmem:[#allocation2 + $0x18] sm:$0xff] %v89_v51 }
 0x13f   :  { %143 = shalt.err (!%p140_p4)
}
 0x140   :  { %s155_s20 = smov 128   ;;  %s156_s21 = smov 8  }
 0x141   :  { %105 = dma.vmem_to_hbm [thread:$0]  %s100_s1, 512, %s195_s3, [#allocation3], %s155_s20, %s155_s20, %s156_s21  }
 0x142   :  { %152 = dma.done.wait [#allocation3], 512  }
 0x143   :  { %153 = vsyncadd [#allocation3], 4294966784 }
 0x144   :  { %109 = vsyncpa [#allocation3], 1 }

// kernel: encoder_forward.9
= control target key start
LH: loop header
LB: loop body
LE: loop exit
PB: predicated region body
PF: predicated region fallthrough
CT: control target
= control target key end

     0   :  { %s4800_s6 = smov 1   ;;  %s4801_s10 = smov 2   ;;  %s5644_s0 = inlined_call_operand.smem [shape: u32[35], index: -1, kind: input, shape index: {}] }
   0x1   :  { %s4852_s5 = sld [smem:[%s5644_s0]]   ;;  %s4802_s14 = smov 3  }
   0x2   :  { %s4857_s9 = sld [smem:[%s5644_s0 + %s4800_s6]]   ;;  %s4803_s18 = smov 4  }
   0x3   :  { %s4862_s13 = sld [smem:[%s5644_s0 + %s4801_s10]]   ;;  %s4804_s22 = smov 5  }
   0x4   :  { %s4867_s17 = sld [smem:[%s5644_s0 + %s4802_s14]]   ;;  %s4805_s26 = smov 6  }
   0x5   :  { %s4872_s21 = sld [smem:[%s5644_s0 + %s4803_s18]]   ;;  %s4806_s30 = smov 7  }
   0x6   :  { %s4877_s25 = sld [smem:[%s5644_s0 + %s4804_s22]]   ;;  %s4807_s4 = smov 8  }
   0x7   :  { %s4882_s29 = sld [smem:[%s5644_s0 + %s4805_s26]]   ;;  %s4808_s10 = smov 9  }
   0x8   :  { %s4887_s3 = sld [smem:[%s5644_s0 + %s4806_s30]]   ;;  %s4809_s15 = smov 10  }
   0x9   :  { %s4892_s8 = sld [smem:[%s5644_s0 + %s4807_s4]]   ;;  %s4810_s20 = smov 11  }
   0xa   :  { %s4897_s14 = sld [smem:[%s5644_s0 + %s4808_s10]]   ;;  %s4811_s26 = smov 12  }
   0xb   :  { %s4902_s19 = sld [smem:[%s5644_s0 + %s4809_s15]]   ;;  %s4812_s1 = smov 13  }
   0xc   :  { %s4907_s24 = sld [smem:[%s5644_s0 + %s4810_s20]]   ;;  %s4813_s7 = smov 14  }
   0xd   :  { %s4912_s30 = sld [smem:[%s5644_s0 + %s4811_s26]]   ;;  %s4814_s15 = smov 15  }
   0xe   :  { %s4917_s6 = sld [smem:[%s5644_s0 + %s4812_s1]]   ;;  %s4815_s22 = smov 16  }
   0xf   :  { %s4922_s12 = sld [smem:[%s5644_s0 + %s4813_s7]]   ;;  %s4816_s28 = smov 17  }
  0x10   :  { %s4927_s20 = sld [smem:[%s5644_s0 + %s4814_s15]]   ;;  %s4817_s7 = smov 18  }
  0x11   :  { %s4932_s27 = sld [smem:[%s5644_s0 + %s4815_s22]]   ;;  %s4818_s15 = smov 19  }
  0x12   :  { %s4937_s4 = sld [smem:[%s5644_s0 + %s4816_s28]]   ;;  %s4819_s22 = smov 20  }
  0x13   :  { %5653 = sst [smem:[#allocation12_spill]] %s4912_s30  ;;  %s4820_s28 = smov 21  }
  0x15   :  { %5654 = sst [smem:[#allocation13_spill]] %s4922_s12 }
  0x16   :  { %5655 = sst [smem:[#allocation14_spill]] %s4927_s20 }
  0x17   :  { %5656 = sst [smem:[#allocation15_spill]] %s4932_s27 }
  0x18   :  { %5657 = sst [smem:[#allocation16_spill]] %s4937_s4 }
  0x19   :  { %s4942_s12 = sld [smem:[%s5644_s0 + %s4817_s7]]   ;;  %s4821_s7 = smov 22  }
  0x1a   :  { %s4947_s20 = sld [smem:[%s5644_s0 + %s4818_s15]]   ;;  %s4822_s15 = smov 23  }
  0x1b   :  { %s4952_s27 = sld [smem:[%s5644_s0 + %s4819_s22]]   ;;  %s4823_s22 = smov 24  }
  0x1c   :  { %s4957_s4 = sld [smem:[%s5644_s0 + %s4820_s28]]   ;;  %s4824_s28 = smov 25  }
  0x1f   :  { %5658 = sst [smem:[#allocation17_spill]] %s4942_s12 }
  0x20   :  { %5659 = sst [smem:[#allocation18_spill]] %s4947_s20 }
  0x21   :  { %5660 = sst [smem:[#allocation19_spill]] %s4952_s27 }
  0x22   :  { %5661 = sst [smem:[#allocation20_spill]] %s4957_s4 }
  0x23   :  { %s4962_s12 = sld [smem:[%s5644_s0 + %s4821_s7]]   ;;  %s4825_s7 = smov 26  }
  0x24   :  { %s4967_s20 = sld [smem:[%s5644_s0 + %s4822_s15]]   ;;  %s4826_s15 = smov 27  }
  0x25   :  { %s4972_s27 = sld [smem:[%s5644_s0 + %s4823_s22]]   ;;  %s4827_s22 = smov 28  }
  0x26   :  { %s4977_s4 = sld [smem:[%s5644_s0 + %s4824_s28]]   ;;  %s4828_s28 = smov 29  }
  0x29   :  { %5662 = sst [smem:[#allocation21_spill]] %s4962_s12 }
  0x2a   :  { %5663 = sst [smem:[#allocation22_spill]] %s4967_s20 }
  0x2b   :  { %5664 = sst [smem:[#allocation23_spill]] %s4972_s27 }
  0x2c   :  { %5665 = sst [smem:[#allocation24_spill]] %s4977_s4 }
  0x2d   :  { %s4982_s12 = sld [smem:[%s5644_s0 + %s4825_s7]]   ;;  %s4829_s7 = smov 30  }
  0x2e   :  { %s4987_s20 = sld [smem:[%s5644_s0 + %s4826_s15]]   ;;  %s4830_s15 = smov 31  }
  0x2f   :  { %s4992_s27 = sld [smem:[%s5644_s0 + %s4827_s22]]   ;;  %s4831_s22 = smov 32  }
  0x30   :  { %s4997_s4 = sld [smem:[%s5644_s0 + %s4828_s28]]   ;;  %s4832_s28 = smov 33  }
  0x31   :  { %s5007_s30 = sld [smem:[%s5644_s0 + %s4830_s15]]  }
  0x33   :  { %5666 = sst [smem:[#allocation25_spill]] %s4982_s12 }
  0x34   :  { %s5002_s12 = sld [smem:[%s5644_s0 + %s4829_s7]]   ;;  %s4833_s7 = smov 34  }
  0x35   :  { %5667 = sst [smem:[#allocation26_spill]] %s4992_s27 }
  0x36   :  { %5668 = sst [smem:[#allocation27_spill]] %s4997_s4 }
  0x37   :  { %s5012_s27 = sld [smem:[%s5644_s0 + %s4831_s22]]  }
  0x38   :  { %s5017_s4 = sld [smem:[%s5644_s0 + %s4832_s28]]  }
  0x3a   :  { %5669 = sst [smem:[#allocation28_spill]] %s5002_s12 }
  0x3b   :  { %s5022_s12 = sld [smem:[%s5644_s0 + %s4833_s7]]  }
  0x3c   :  { %74 = vsyncpa [#allocation3], 0 }
  0x3d   :  { %75 = vsyncpa [#allocation5], 0 }
  0x3e   :  { %76 = vsyncpa [#allocation8], 0  ;;  %s5024_s15 = smov 0  }
  0x3f LB: > { %s5030_s16 = sadd.s32 4294967295, %s4798_s15   ;;  %p3898_p0 = scmp.ge.s32.totalorder %s4798_s15, 1  ;;  %s4798_s15 = sphi %s5024_s15, %s82_s15  }
  0x40   : > { %p832_p1 = scmp.lt.s32.totalorder %s4798_s15, 3  ;;  %p5651_p2 = scmp.eq.s32.totalorder %s5030_s16, 0 }
  0x41   : > { %s4834_s0 = smov [#allocation4]   ;;  %s4835_s23 = smov [#allocation2]  }
  0x42   : > { %s943_s18 = sshll.u32 %s4834_s0, 4  ;;  %p5035_p3 = pnand %p3898_p0, %p832_p1  ;;  %s944_s18 = int_to_ptr.vmem [resolvable:$true] %s943_s18 }
  0x43   : > { %s923_s26 = sshll.u32 %s4835_s23, 4  ;;  %s4836_s28 = smov [#allocation6]   ;;  %s924_s26 = int_to_ptr.vmem [resolvable:$true] %s923_s26 }
  0x44   : > { %s5670_s22 = scalar_select %p5035_p3, 1, 0 }
  0x45   : > { %p4336_p4 = pneg %p5035_p3  ;;  %s954_s1 = sshll.u32 %s4836_s28, 4  ;;  %s5047_s1 = int_to_ptr.vmem [resolvable:$true] %s954_s1 }
  0x46   : > { %s4837_s7 = smov [#allocation7]   ;;  %s4687_s11 = scalar_lea.vmem %s944_s18, 16 }
  0x47   : > { %p5043_p5 = pnand %p5651_p2, %p4336_p4  ;;  %s965_s10 = sshll.u32 %s4837_s7, 4  ;;  %s5049_s10 = int_to_ptr.vmem [resolvable:$true] %s965_s10 }
  0x48   : > { %p4688_p7 = scmp.ne.s32.totalorder %s944_s18, %s4687_s11  ;;  %s4694_s0 = scalar_lea.vmem %s944_s18, 32 }
  0x49   : > { %p4678_p6 = pneg %p5043_p5  ;;  %p4695_p10 = scmp.lt.s32.totalorder %s944_s18, %s944_s18 }
  0x4a   : > { %p4696_p11 = scmp.lt.s32.totalorder %s4694_s0, %s4687_s11 }
  0x4b   : > { %p4690_p8 = pnand %p4688_p7, %p4678_p6 }
  0x4c   : > { %p4697_p12 = por %p4696_p11, %p4695_p10 }
  0x4d   : > { %p4691_p9 = pneg %p4690_p8 }
  0x4f   : > { %p4698_p13 = pnand %p4697_p12, %p4691_p9 }
  0x51   : > { %4701 = shalt.err (!%p4698_p13)
}
  0x52   : > { %4342 = dma.hbm_to_vmem [thread:$0]  (!%p5043_p5), %s5007_s30, 16, %s944_s18, [#allocation5]  }
  0x53   : > { %s4713_s23 = scalar_lea.vmem %s924_s26, 16  ;;  %s4720_s28 = scalar_lea.vmem %s924_s26, 32 }
  0x54   : > { %p4714_p0 = scmp.ne.s32.totalorder %s924_s26, %s4713_s23  ;;  %p4721_p7 = scmp.lt.s32.totalorder %s924_s26, %s924_s26 }
  0x55   : > { %p4722_p8 = scmp.lt.s32.totalorder %s4720_s28, %s4713_s23 }
  0x56   : > { %p4716_p1 = pnand %p4714_p0, %p4678_p6 }
  0x57   : > { %p4723_p2 = por %p4722_p8, %p4721_p7 }
  0x58   : > { %p4717_p4 = pneg %p4716_p1 }
  0x5a   : > { %p4724_p3 = pnand %p4723_p2, %p4717_p4 }
  0x5c   : > { %4727 = shalt.err (!%p4724_p3)
}
  0x5d   : > { %4339 = dma.hbm_to_vmem [thread:$0]  (!%p5043_p5), %s4987_s20, 16, %s924_s26, [#allocation3]  }
  0x5e   : > { %s4739_s18 = scalar_lea.vmem %s5047_s1, 16  ;;  %s4746_s7 = scalar_lea.vmem %s5047_s1, 32 }
  0x5f   : > { %p4740_p9 = scmp.ne.s32.totalorder %s5047_s1, %s4739_s18  ;;  %p4747_p12 = scmp.lt.s32.totalorder %s5047_s1, %s5047_s1 }
  0x60   : > { %p4748_p2 = scmp.lt.s32.totalorder %s4746_s7, %s4739_s18 }
  0x61   : > { %p4742_p10 = pnand %p4740_p9, %p4678_p6 }
  0x62   : > { %p4749_p3 = por %p4748_p2, %p4747_p12 }
  0x63   : > { %p4743_p11 = pneg %p4742_p10 }
  0x65   : > { %p4750_p13 = pnand %p4749_p3, %p4743_p11 }
  0x67   : > { %4753 = shalt.err (!%p4750_p13)
}
  0x68   : > { %4345 = dma.hbm_to_vmem [thread:$0]  (!%p5043_p5), %s5012_s27, 16, %s5047_s1, [#allocation5]  }
  0x69   : > { %s4765_s26 = scalar_lea.vmem %s5049_s10, 16  ;;  %s4772_s11 = scalar_lea.vmem %s5049_s10, 32 }
  0x6a   : > { %p4766_p0 = scmp.ne.s32.totalorder %s5049_s10, %s4765_s26  ;;  %p4773_p7 = scmp.lt.s32.totalorder %s5049_s10, %s5049_s10 }
  0x6b   : > { %p4774_p8 = scmp.lt.s32.totalorder %s4772_s11, %s4765_s26 }
  0x6c   : > { %p4768_p1 = pnand %p4766_p0, %p4678_p6 }
  0x6d   : > { %p4775_p9 = por %p4774_p8, %p4773_p7 }
  0x6e   : > { %p4769_p4 = pneg %p4768_p1 }
  0x70   : > { %p4776_p10 = pnand %p4775_p9, %p4769_p4 }
  0x72   : > { %4779 = shalt.err (!%p4776_p10)
}
  0x73   : > { %4348 = dma.hbm_to_vmem [thread:$0]  (!%p5043_p5), %s5017_s4, 16, %s5049_s10, [#allocation8]  }
  0x74   : > { %p5672_p11 = scmp.ne.s32.totalorder %s5670_s22, 0 }
  0x75   : > { %p5673_p12 = scmp.eq.s32.totalorder (!%p5672_p11), %s5030_s16, 0 }
  0x76   : > { %986 = sbr.rel (%p5672_p11) target bundleno = 5904 (0x1710), region = 156 }
  0x7b   : > { %4785 = dma.done.wait (%p5673_p12), [#allocation3], 16   ;;  %p5674_p6 = pmov %p5673_p12 }
  0x7d   : > { %4787 = vsyncadd (%p5674_p6), [#allocation3], 4294967280  ;;  %p5675_p2 = pmov %p5674_p6 }
  0x7f   : > { %4789 = dma.done.wait (%p5675_p2), [#allocation5], 32   ;;  %p5676_p3 = pmov %p5675_p2 }
  0x80   : > { %p5677_p13 = pmov %p5675_p2 }
  0x81   : > { %4791 = vsyncadd (%p5676_p3), [#allocation5], 4294967264 }
  0x82   : > { %4793 = dma.done.wait (%p5677_p13), [#allocation8], 16   ;;  %p5678_p5 = pmov %p5675_p2 }
  0x83   : > { %p1084_p0 = scmp.lt.s32.totalorder %s5030_s16, 1  ;;  %v4424_v3 = vld [vmem:[%s4872_s21 + $0x74] ss:$8 sps:$4 sm:$0xff]   ;;  %v4426_v4 = vld [vmem:[%s4872_s21 + $0x70] ss:$8 sps:$4 sm:$0xff]   ;;  %v4838_v22 = vmov 0   ;;  %v1159_v61 = vlaneseq }
  0x84   : > { %4795 = vsyncadd (%p5678_p5), [#allocation8], 4294967280  ;;  %1249 = vmatprep.subr.bf16.mxu0 %v4424_v3  ;;  %v4427_v13 = vld [vmem:[%s4872_s21 + $0x64] ss:$8 sps:$4 sm:$0xff]   ;;  %v4429_v14 = vld [vmem:[%s4872_s21 + $0x60] ss:$8 sps:$4 sm:$0xff]   ;;  %1281 = vmatprep.mubr.bf16.mxu0 %v4838_v22 }
  0x85   : > { %s5697_s16 = smov (!%p1084_p0, %s5030_s16), 1  ;;  %1250 = vmatpush1.bf16.msra.mxu0 %v4426_v4  ;;  %v4430_v15 = vld [vmem:[%s4872_s21 + $0x54] ss:$8 sps:$4 sm:$0xff]   ;;  %v4432_v16 = vld [vmem:[%s4872_s21 + $0x50] ss:$8 sps:$4 sm:$0xff]   ;;  %v4452_v49 = vld [vmem:[%s4882_s29 + $0x68] sm:$0xff]  }
  0x86   : > { %s4080_s22 = sshll.u32 %s5697_s16, 3  ;;  %1251 = vmatprep.subr.bf16.mxu0 %v4427_v13  ;;  %v4433_v17 = vld [vmem:[%s4872_s21 + $0x44] ss:$8 sps:$4 sm:$0xff]   ;;  %v4435_v18 = vld [vmem:[%s4872_s21 + $0x40] ss:$8 sps:$4 sm:$0xff]   ;;  %v4448_v45 = vld [vmem:[%s4882_s29 + $0x78] sm:$0xff]  }
  0x87   : > { %s1088_s1 = scalar_lea.vmem %s4852_s5, %s4080_s22  ;;  %v4436_v19 = vld [vmem:[%s4872_s21 + $0x34] ss:$8 sps:$4 sm:$0xff]   ;;  %v4438_v20 = vld [vmem:[%s4872_s21 + $0x30] ss:$8 sps:$4 sm:$0xff]   ;;  %v4439_v21 = vld [vmem:[%s4872_s21 + $0x24] ss:$8 sps:$4 sm:$0xff]   ;;  %4093 = vmatprep.subr.bf16.mxu1 %v4448_v45 }
  0x88   : > { %v4085_v0 = vld [vmem:[%s1088_s1] sm:$0xff]   ;;  %v4442_v24 = vld [vmem:[%s4872_s21 + $0x14] ss:$8 sps:$4 sm:$0xff]   ;;  %v4444_v25 = vld [vmem:[%s4872_s21 + $0x10] ss:$8 sps:$4 sm:$0xff]   ;;  %v5155_v62 = vshrl.u32 %v1159_v61, 7 }
  0x89   : > { %v5111_v1 = vunpack.c.l.bf16 %v4085_v0  ;;  %v5114_v2 = vunpack.c.h.bf16 %v4085_v0  ;;  %1252 = vmatpush1.bf16.msra.mxu0 %v4429_v14  ;;  %v4441_v23 = vld [vmem:[%s4872_s21 + $0x20] ss:$8 sps:$4 sm:$0xff]   ;;  %v4445_v26 = vld [vmem:[%s4872_s21 + $0x4] ss:$8 sps:$4 sm:$0xff]   ;;  %v4449_v46 = vld [vmem:[%s4882_s29 + $0x38] sm:$0xff]   ;;  %vm4840_vm0 = vmmov 0  }
  0x8a   : > { %1253 = vmatprep.subr.bf16.mxu0 %v4430_v15  ;;  %v4447_v27 = vld [vmem:[%s4872_s21] ss:$8 sps:$4 sm:$0xff]   ;;  %4094 = vmatpush3.bf16.msra.mxu1 %v4449_v46  ;;  %v4450_v47 = vld [vmem:[%s4882_s29 + $0x70] sm:$0xff]   ;;  %v4456_v53 = vld [vmem:[%s4882_s29 + $0x58] sm:$0xff]   ;;  %v5158_v63 = vsub.s32 0, %v5155_v62  ;;  %v5162_v3 = vsub.s32 1, %v5155_v62 }
  0x8b   : > { %1101 = vadd.xlane.f32.xlu0 %v5111_v1  ;;  %v3913_v36 = vld [vmem:[%s4862_s13] ss:$0 sm:$0xff]  ;;  %v4451_v48 = vld [vmem:[%s4882_s29 + $0x30] sm:$0xff]   ;;  %4095 = vmatprep.subr.bf16.mxu1 %v4450_v47  ;;  %v4453_v50 = vld [vmem:[%s4882_s29 + $0x28] sm:$0xff]   ;;  %vm1829_vm1 = vcmask 261120   ;;  %s5679_s2 = sld [smem:[#allocation12_spill]] }
  0x8c   : > { %v3914_v40 = vld [vmem:[%s4867_s17] ss:$0 sm:$0xff]  ;;  %v4457_v54 = vld [vmem:[%s4882_s29 + $0x18] sm:$0xff]   ;;  %v4458_v55 = vld [vmem:[%s4882_s29 + $0x50] sm:$0xff]   ;;  %vm1926_vm2 = vcmask 130048   ;;  %s4841_s10 = smov 96  }
  0x8d   : > { %1254 = vmatpush1.bf16.msra.mxu0 %v4432_v16  ;;  %v4454_v51 = vld [vmem:[%s4882_s29 + $0x60] sm:$0xff]   ;;  %v4459_v56 = vld [vmem:[%s4882_s29 + $0x10] sm:$0xff]   ;;  %v4460_v57 = vld [vmem:[%s4882_s29 + $0x48] sm:$0xff]   ;;  %s4842_s0 = smov 64   ;;  %s4843_s23 = smov 32   ;;  %vm2547_vm3 = vcmask 523264  }
  0x8e   : > { %1255 = vmatprep.subr.bf16.mxu0 %v4433_v17  ;;  %4096 = vmatpush3.bf16.msra.mxu1 %v4451_v48  ;;  %v4455_v52 = vld [vmem:[%s4882_s29 + $0x20] sm:$0xff]   ;;  %v4461_v58 = vld [vmem:[%s4882_s29 + $0x8] sm:$0xff]   ;;  %v4468_v61 = vld [vmem:[%s4902_s19 + $0x90] ss:$12 sps:$4 sm:$0xff]   ;;  %s5680_s28 = sld [smem:[#allocation13_spill]]  ;;  %vm2550_vm4 = vcmask 785408  }
  0x8f   : > { %1103 = vadd.xlane.f32.xlu0 %v5114_v2  ;;  %4097 = vmatprep.subr.bf16.mxu1 %v4452_v49  ;;  %v4462_v59 = vld [vmem:[%s4882_s29 + $0x40] sm:$0xff]   ;;  %s5681_s18 = sld [smem:[#allocation14_spill]]  ;;  %vm2878_vm5 = vcmask 1046528   ;;  %vm2926_vm6 = vcmask 1045504   ;;  %vm2946_vm7 = vcmask 1044480   ;;  %vm2966_vm8 = vcmask 1043456  }
  0x90   : > { %v4463_v60 = vld [vmem:[%s4882_s29] sm:$0xff]   ;;  %s5682_s7 = sld [smem:[#allocation17_spill]]  ;;  %vm2986_vm9 = vcmask 1042432   ;;  %vm3006_vm10 = vcmask 1041408   ;;  %vm3026_vm11 = vcmask 1040384  }
  0x91   : > { %1256 = vmatpush1.bf16.msra.mxu0 %v4435_v18  ;;  %v1157_v0 = vld [vmem:[%s4877_s25] sm:$0x3]  ;;  %s5683_s26 = sld [smem:[#allocation15_spill]] }
  0x92   : > { %1257 = vmatprep.subr.bf16.mxu0 %v4436_v19  ;;  %4098 = vmatpush3.bf16.msra.mxu1 %v4453_v50  ;;  %v1162_v4 = vrot.slane %v1157_v0, %v5158_v63  ;;  %v4464_v50 = vld [vmem:[%s4902_s19 + $0xa8] ss:$12 sps:$4 sm:$0xff]   ;;  %s5684_s11 = sld [smem:[#allocation16_spill]] }
  0x93   : > { %4099 = vmatprep.subr.bf16.mxu1 %v4454_v51  ;;  %v4466_v51 = vld [vmem:[%s4902_s19 + $0xac] ss:$12 sps:$4 sm:$0xff]   ;;  %s5685_s1 = sld [smem:[#allocation23_spill]] }
  0x95   : > { %1258 = vmatpush1.bf16.msra.mxu0 %v4438_v20 }
  0x96   : > { %1259 = vmatprep.subr.bf16.mxu0 %v4439_v21  ;;  %4100 = vmatpush3.bf16.msra.mxu1 %v4455_v52  ;;  %v4839_v52 = vmov 0.0  }
  0x97   : > { %4101 = vmatprep.subr.bf16.mxu1 %v4456_v53  ;;  %v4467_v53 = vld [vmem:[%s4902_s19 + $0xb0] ss:$12 sps:$4 sm:$0xff]  }
  0x99   : > { %1260 = vmatpush1.bf16.msra.mxu0 %v4441_v23 }
  0x9a   : > { %1261 = vmatprep.subr.bf16.mxu0 %v4442_v24  ;;  %4102 = vmatpush3.bf16.msra.mxu1 %v4457_v54 }
  0x9b   : > { %4103 = vmatprep.subr.bf16.mxu1 %v4458_v55 }
  0x9d   : > { %1262 = vmatpush1.bf16.msra.mxu0 %v4444_v25 }
  0x9e   : > { %1263 = vmatprep.subr.bf16.mxu0 %v4445_v26  ;;  %4104 = vmatpush3.bf16.msra.mxu1 %v4459_v56 }
  0x9f   : > { %4105 = vmatprep.subr.bf16.mxu1 %v4460_v57 }
  0xa1   : > { %1264 = vmatpush1.bf16.msra.mxu0 %v4447_v27 }
  0xa2   : > { %4106 = vmatpush3.bf16.msra.mxu1 %v4461_v58  ;;  %1720 = vmatprep.subr.bf16.mxu0 %v4466_v51 }
  0xa3   : > { %4107 = vmatprep.subr.bf16.mxu1 %v4462_v59 }
  0xa6   : > { %4108 = vmatpush3.bf16.msra.mxu1 %v4463_v60  ;;  %v4470_v60 = vld [vmem:[%s4902_s19 + $0x94] ss:$12 sps:$4 sm:$0xff]  }
  0xa7   : > { %4188 = vmatprep.subr.bf16.mxu1 %v4839_v52 }
 0x114   : > { %v1102_v5 = vpop.xlane.xlu0 %1101 }
 0x115   : > { %v1106_v6 = vmul.f32 0.0078125, %v1102_v5  ;;  %v1166_v5 = vrot.slane %v1157_v0, %v5162_v3  ;;  %v4471_v0 = vld [vmem:[%s4902_s19 + $0x98] ss:$12 sps:$4 sm:$0xff]  }
 0x117   : > { %v1108_v7 = vsub.f32 %v5111_v1, %v1106_v6 }
 0x118   : > { %v1104_v8 = vpop.xlane.xlu0 %1103 }
 0x119   : > { %v1107_v9 = vmul.f32 0.0078125, %v1104_v8  ;;  %v1110_v10 = vmul.f32 %v1108_v7, %v1108_v7 }
 0x11b   : > { %v1109_v11 = vsub.f32 %v5114_v2, %v1107_v9  ;;  %1112 = vadd.xlane.f32.xlu1 %v1110_v10 }
 0x11d   : > { %v1111_v12 = vmul.f32 %v1109_v11, %v1109_v11 }
 0x11f   : > { %1114 = vadd.xlane.f32.xlu1 %v1111_v12 }
 0x1a4   : > { %v1113_v28 = vpop.xlane.xlu1 %1112 }
 0x1a5   : > { %v1116_v29 = vmul.f32 0.0078125, %v1113_v28 }
 0x1a7   : > { %v1118_v30 = vadd.f32 1e-05, %v1116_v29 }
 0x1a8   : > { %v1115_v31 = vpop.xlane.xlu1 %1114 }
 0x1a9   : > { %4576 = vrsqrt.f32 %v1118_v30  ;;  %v1117_v32 = vmul.f32 0.0078125, %v1115_v31 }
 0x1ab   : > { %v1119_v33 = vadd.f32 1e-05, %v1117_v32 }
 0x1ad   : > { %4578 = vrsqrt.f32 %v1119_v33 }
 0x1b6   : > { %v4577_v34 = vpop.eup %4576 }
 0x1b7   : > { %v1122_v35 = vmul.f32 %v4577_v34, %v1108_v7 }
 0x1b9   : > { %v1130_v39 = vmul.f32 %v3913_v36, %v1122_v35 }
 0x1ba   : > { %v4579_v37 = vpop.eup %4578 }
 0x1bb   : > { %v1123_v38 = vmul.f32 %v4579_v37, %v1109_v11  ;;  %v1138_v42 = vadd.f32 %v3914_v40, %v1130_v39 }
 0x1bd   : > { %v1131_v41 = vmul.f32 %v3913_v36, %v1123_v38  ;;  %v3935_v38 = vld [vmem:[%s4887_s3] ss:$0 sm:$0xff] }
 0x1bf   : > { %v1139_v43 = vadd.f32 %v3914_v40, %v1131_v41 }
 0x1c1   : > { %v1140_v44 = vpack.c.bf16 %v1139_v43, %v1138_v42 }
 0x1c3   : > { %1282 = vmatmul.mubr.bf16.vlgmr.msra.gmra.mxu0 %v1140_v44 }
 0x1c4   : > { %1752 = vmatprep.mubr.bf16.mxu0 %v4838_v22  ;;  %1721 = vmatpush1.bf16.msra.mxu0 %v4464_v50 }
 0x1c5   : > { %1722 = vmatprep.subr.bf16.mxu0 %v4470_v60 }
 0x1c8   : > { %1723 = vmatpush1.bf16.msra.mxu0 %v4468_v61 }
 0x283   : > { %v1283_v6 = vpop.f32.mrf.mxu0 }
 0x284   : > { %v1284_v7 = vadd.f32 %v1283_v6, %v1162_v4  ;;  %v4475_v6 = vld [vmem:[%s4902_s19 + $0x80] ss:$12 sps:$4 sm:$0xff]  }
 0x285   : > { %v1285_v8 = vpop.f32.mrf.mxu0 }
 0x286   : > { %v3931_v9 = vmul.f32 -1.442695, %v1284_v7  ;;  %v1286_v10 = vadd.f32 %v1285_v8, %v1166_v5  ;;  %v4478_v8 = vld [vmem:[%s4902_s19 + $0x64] ss:$12 sps:$4 sm:$0xff]  }
 0x287   : > { %v1287_v11 = vpop.f32.mrf.mxu0 }
 0x288   : > { %v3932_v12 = vmul.f32 -1.442695, %v1286_v10  ;;  %v1288_v13 = vadd.f32 %v1287_v11, %v1162_v4  ;;  %4580 = vpow2.f32 %v3931_v9  ;;  %v4474_v4 = vld [vmem:[%s4902_s19 + $0x7c] ss:$12 sps:$4 sm:$0xff]  }
 0x289   : > { %v1289_v14 = vpop.f32.mrf.mxu0  ;;  %1724 = vmatprep.subr.bf16.mxu0 %v4474_v4  ;;  %v4479_v9 = vld [vmem:[%s4902_s19 + $0x68] ss:$12 sps:$4 sm:$0xff]   ;;  %v5241_v4 = vsub.s32 2, %v5155_v62 }
 0x28a   : > { %4582 = vpow2.f32 %v3932_v12  ;;  %v3933_v15 = vmul.f32 -1.442695, %v1288_v13  ;;  %v1290_v16 = vadd.f32 %v1289_v14, %v1166_v5  ;;  %v4472_v5 = vld [vmem:[%s4902_s19 + $0x78] ss:$12 sps:$4 sm:$0xff]   ;;  %v4480_v11 = vld [vmem:[%s4902_s19 + $0x48] ss:$12 sps:$4 sm:$0xff]  }
 0x28b   : > { %1725 = vmatpush1.bf16.msra.mxu0 %v4472_v5  ;;  %v4483_v12 = vld [vmem:[%s4902_s19 + $0x50] ss:$12 sps:$4 sm:$0xff]  }
 0x28c   : > { %4584 = vpow2.f32 %v3933_v15  ;;  %v3934_v17 = vmul.f32 -1.442695, %v1290_v16  ;;  %1726 = vmatprep.subr.bf16.mxu0 %v4478_v8  ;;  %v4484_v14 = vld [vmem:[%s4902_s19 + $0x30] ss:$12 sps:$4 sm:$0xff]   ;;  %v4487_v15 = vld [vmem:[%s4902_s19 + $0x38] ss:$12 sps:$4 sm:$0xff]  }
 0x28d   : > { %v3978_v8 = vld [vmem:[%s5679_s2] ss:$0 sm:$0xff]  ;;  %s5686_s2 = sld [smem:[#allocation18_spill]] }
 0x28e   : > { %4586 = vpow2.f32 %v3934_v17  ;;  %v4488_v17 = vld [vmem:[%s4902_s19 + $0x18] ss:$12 sps:$4 sm:$0xff]  }
 0x295   : > { %v4581_v18 = vpop.eup %4580 }
 0x296   : > { %v1304_v23 = vadd.f32 1.0, %v4581_v18  ;;  %v4491_v18 = vld [vmem:[%s4902_s19 + $0x20] ss:$12 sps:$4 sm:$0xff]  }
 0x297   : > { %v4583_v19 = vpop.eup %4582 }
 0x298   : > { %v1305_v20 = vadd.f32 1.0, %v4583_v19  ;;  %v4494_v19 = vld [vmem:[%s4902_s19 + $0x4] ss:$12 sps:$4 sm:$0xff]  }
 0x299   : > { %v4585_v21 = vpop.eup %4584 }
 0x29a   : > { %v1306_v24 = vadd.f32 1.0, %v4585_v21  ;;  %4588 = vrcp.f32 %v1305_v20  ;;  %v4492_v20 = vld [vmem:[%s4902_s19] ss:$12 sps:$4 sm:$0xff]   ;;  %v4495_v21 = vld [vmem:[%s4902_s19 + $0x8] ss:$12 sps:$4 sm:$0xff]  }
 0x29b   : > { %v4587_v25 = vpop.eup %4586 }
 0x29c   : > { %4590 = vrcp.f32 %v1306_v24  ;;  %v1307_v26 = vadd.f32 1.0, %v4587_v25 }
 0x29d   : > { %4592 = vrcp.f32 %v1304_v23 }
 0x29e   : > { %4594 = vrcp.f32 %v1307_v26 }
 0x2a7   : > { %v4589_v27 = vpop.eup %4588 }
 0x2a8   : > { %v1317_v32 = vmul.f32 %v4589_v27, %v1286_v10  ;;  %v4482_v10 = vld [vmem:[%s4902_s19 + $0x4c] ss:$12 sps:$4 sm:$0xff]  }
 0x2a9   : > { %v4591_v28 = vpop.eup %4590 }
 0x2aa   : > { %v4593_v29 = vpop.eup %4592  ;;  %v1318_v31 = vmul.f32 %v4591_v28, %v1288_v13  ;;  %v4486_v13 = vld [vmem:[%s4902_s19 + $0x34] ss:$12 sps:$4 sm:$0xff]  }
 0x2ab   : > { %v4595_v30 = vpop.eup %4594  ;;  %v1316_v34 = vmul.f32 %v4593_v29, %v1284_v7  ;;  %v4476_v7 = vld [vmem:[%s4902_s19 + $0x60] ss:$12 sps:$4 sm:$0xff]  }
 0x2ac   : > { %v1319_v33 = vmul.f32 %v4595_v30, %v1290_v16  ;;  %1727 = vmatpush1.bf16.msra.mxu0 %v4476_v7  ;;  %v4490_v16 = vld [vmem:[%s4902_s19 + $0x1c] ss:$12 sps:$4 sm:$0xff]  }
 0x2ad   : > { %v1320_v36 = vpack.c.bf16 %v1318_v31, %v1316_v34  ;;  %1728 = vmatprep.subr.bf16.mxu0 %v4482_v10  ;;  %v3952_v31 = vld [vmem:[%s4892_s8] ss:$0 sm:$0xff] }
 0x2ae   : > { %v1321_v35 = vpack.c.bf16 %v1319_v33, %v1317_v32 }
 0x2b0   : > { %1489 = vmatprep.mubr.bf16.mxu1 %v1321_v35  ;;  %1729 = vmatpush1.bf16.msra.mxu0 %v4480_v11  ;;  %v3953_v35 = vld [vmem:[%s4897_s14] ss:$0 sm:$0xff] }
 0x2b1   : > { %1490 = vmatmul.mubr.bf16.vlgmr.msra.gmra.mxu1 %v1320_v36  ;;  %1730 = vmatprep.subr.bf16.mxu0 %v4486_v13 }
 0x2b2   : > { %4189 = vmatpush3.bf16.msra.mxu1 %v4467_v53  ;;  %4204 = vmatprep.mubr.msk.bf16.mxu1 %vm4840_vm0, %v4839_v52 }
 0x2b3   : > { %4190 = vmatprep.subr.bf16.mxu1 %v4839_v52 }
 0x2b4   : > { %1731 = vmatpush1.bf16.msra.mxu0 %v4484_v14 }
 0x2b5   : > { %1732 = vmatprep.subr.bf16.mxu0 %v4490_v16 }
 0x2b6   : > { %4191 = vmatpush3.bf16.msra.mxu1 %v4471_v0 }
 0x2b7   : > { %4192 = vmatprep.subr.bf16.mxu1 %v4839_v52 }
 0x2b8   : > { %1733 = vmatpush1.bf16.msra.mxu0 %v4488_v17 }
 0x2b9   : > { %1734 = vmatprep.subr.bf16.mxu0 %v4494_v19 }
 0x2ba   : > { %4193 = vmatpush3.bf16.msra.mxu1 %v4475_v6 }
 0x2bb   : > { %4194 = vmatprep.subr.bf16.mxu1 %v4839_v52 }
 0x2bc   : > { %1735 = vmatpush1.bf16.msra.mxu0 %v4492_v20 }
 0x2bd   : > { %4232 = vmatprep.subr.bf16.mxu0 %v4839_v52 }
 0x2be   : > { %4195 = vmatpush3.bf16.msra.mxu1 %v4479_v9 }
 0x2bf   : > { %4196 = vmatprep.subr.bf16.mxu1 %v4839_v52 }
 0x2c2   : > { %4197 = vmatpush3.bf16.msra.mxu1 %v4483_v12 }
 0x2c3   : > { %4198 = vmatprep.subr.bf16.mxu1 %v4839_v52 }
 0x2c6   : > { %4199 = vmatpush3.bf16.msra.mxu1 %v4487_v15 }
 0x2c7   : > { %4200 = vmatprep.subr.bf16.mxu1 %v4839_v52 }
 0x2ca   : > { %4201 = vmatpush3.bf16.msra.mxu1 %v4491_v18 }
 0x2cb   : > { %4202 = vmatprep.subr.bf16.mxu1 %v4839_v52 }
 0x2ce   : > { %4203 = vmatpush3.bf16.msra.mxu1 %v4495_v21 }
 0x2cf   : > { %4208 = vmatprep.subr.bf16.mxu1 %v4839_v52 }
 0x371   : > { %v4109_v37 = vpop.f32.mrf.mxu1 }
 0x373   : > { %v4110_v39 = vpop.f32.mrf.mxu1 }
 0x374   : > { %v4111_v40 = vadd.f32 %v4110_v39, %v4109_v37 }
 0x375   : > { %v4112_v41 = vpop.f32.mrf.mxu1 }
 0x376   : > { %v1492_v42 = vadd.f32 %v4111_v40, %v3935_v38  ;;  %v1806_v40 = vld [vmem:[%s4857_s9] sm:$0xff] }
 0x377   : > { %v4113_v43 = vpop.f32.mrf.mxu1 }
 0x378   : > { %v1498_v44 = vmul.f32 0.5, %v1492_v42  ;;  %v4114_v45 = vadd.f32 %v4113_v43, %v4112_v41  ;;  %v1807_v41 = vld [vmem:[%s4857_s9 + $0x8] sm:$0xff] }
 0x379   : > { %v5231_v42 = vpack.c.bf16 %v1807_v41, %v1806_v40 }
 0x37a   : > { %v1495_v46 = vadd.f32 %v4114_v45, %v3935_v38  ;;  %v5168_v47 = vadd.f32 %v5111_v1, %v1498_v44  ;;  %v1575_v44 = vld [vmem:[%s4907_s24] sm:$0x7] }
 0x37b   : > { %v1834_v43 = vsel %vm1829_vm1, %v5231_v42, 0  ;;  %v1580_v45 = vrot.slane %v1575_v44, %v5158_v63  ;;  %v1588_v9 = vrot.slane %v1575_v44, %v5241_v4 }
 0x37c   : > { %v1499_v48 = vmul.f32 0.5, %v1495_v46  ;;  %1504 = vadd.xlane.f32.xlu0 %v5168_v47 }
 0x37e   : > { %v5172_v49 = vadd.f32 %v5114_v2, %v1499_v48 }
 0x380   : > { %1506 = vadd.xlane.f32.xlu1 %v5172_v49 }
 0x405   : > { %v1505_v1 = vpop.xlane.xlu0 %1504 }
 0x406   : > { %v1508_v2 = vmul.f32 0.0078125, %v1505_v1  ;;  %v1584_v1 = vrot.slane %v1575_v44, %v5162_v3 }
 0x408   : > { %v5181_v54 = vsub.f32 %v5168_v47, %v1508_v2  ;;  %v3979_v2 = vld [vmem:[%s4917_s6] ss:$0 sm:$0xff] }
 0x409   : > { %v1507_v55 = vpop.xlane.xlu1 %1506 }
 0x40a   : > { %v1509_v56 = vmul.f32 0.0078125, %v1507_v55  ;;  %v1512_v57 = vmul.f32 %v5181_v54, %v5181_v54 }
 0x40c   : > { %v5186_v58 = vsub.f32 %v5172_v49, %v1509_v56  ;;  %1514 = vadd.xlane.f32.xlu0 %v1512_v57 }
 0x40e   : > { %v1513_v59 = vmul.f32 %v5186_v58, %v5186_v58 }
 0x410   : > { %1516 = vadd.xlane.f32.xlu1 %v1513_v59 }
 0x495   : > { %v1515_v23 = vpop.xlane.xlu0 %1514 }
 0x496   : > { %v1518_v24 = vmul.f32 0.0078125, %v1515_v23 }
 0x498   : > { %v1520_v25 = vadd.f32 1e-05, %v1518_v24 }
 0x499   : > { %v1517_v26 = vpop.xlane.xlu1 %1516 }
 0x49a   : > { %4596 = vrsqrt.f32 %v1520_v25  ;;  %v1519_v27 = vmul.f32 0.0078125, %v1517_v26 }
 0x49c   : > { %v1521_v28 = vadd.f32 1e-05, %v1519_v27 }
 0x49e   : > { %4598 = vrsqrt.f32 %v1521_v28 }
 0x4a7   : > { %v4597_v29 = vpop.eup %4596 }
 0x4a8   : > { %v1524_v30 = vmul.f32 %v4597_v29, %v5181_v54 }
 0x4aa   : > { %v1532_v34 = vmul.f32 %v3952_v31, %v1524_v30 }
 0x4ab   : > { %v4599_v32 = vpop.eup %4598 }
 0x4ac   : > { %v1525_v33 = vmul.f32 %v4599_v32, %v5186_v58  ;;  %v1540_v37 = vadd.f32 %v3953_v35, %v1532_v34 }
 0x4ae   : > { %v1533_v36 = vmul.f32 %v3952_v31, %v1525_v33 }
 0x4b0   : > { %v1541_v38 = vadd.f32 %v3953_v35, %v1533_v36 }
 0x4b2   : > { %v1542_v39 = vpack.c.bf16 %v1541_v38, %v1540_v37 }
 0x4b4   : > { %1753 = vmatmul.mubr.bf16.vlgmr.msra.gmra.mxu0 %v1542_v39  ;;  %4205 = vmatmul.mubr.bf16.vlgmr.msra.gmra.mxu1 %v1542_v39 }
 0x4b5   : > { %4210 = vmatprep.mubr.msk.bf16.mxu1 %vm4840_vm0, %v4839_v52  ;;  %4234 = vmatprep.mubr.msk.bf16.mxu0 %vm4840_vm0, %v4839_v52 }
 0x4b6   : > { %4209 = vmatpush3.bf16.xpose.msra.mxu1 %v1834_v43 }
 0x4b7   : > { %4214 = vmatprep.subr.bf16.mxu1 %v4839_v52 }
 0x574   : > { %v1754_v46 = vpop.f32.mrf.mxu0  ;;  %v1797_v48 = vpop.f32.mrf.mxu1 }
 0x575   : > { %v1755_v53 = vadd.f32 %v1754_v46, %v1580_v45  ;;  %v1798_v13 = vadd.f32 %v1797_v48, %v1588_v9 }
 0x576   : > { %v1756_v50 = vpop.f32.mrf.mxu0  ;;  %v4206_v51 = vpop.f32.mrf.mxu1 }
 0x577   : > { %v1826_v59 = vadd.f32 %v3979_v2, %v1755_v53  ;;  %v1757_v60 = vadd.f32 %v1756_v50, %v1584_v1  ;;  %v1816_v12 = vadd.f32 %v3978_v8, %v1755_v53 }
 0x578   : > { %v1758_v54 = vpop.f32.mrf.mxu0  ;;  %v1800_v55 = vpop.f32.mrf.mxu1 }
 0x579   : > { %v1759_v56 = vadd.f32 %v1758_v54, %v1580_v45  ;;  %v1801_v11 = vadd.f32 %v1800_v55, %v1588_v9 }
 0x57a   : > { %v1760_v57 = vpop.f32.mrf.mxu0  ;;  %v4207_v58 = vpop.f32.mrf.mxu1 }
 0x57b   : > { %v1827_v61 = vadd.f32 %v3979_v2, %v1759_v56  ;;  %v1761_v0 = vadd.f32 %v1760_v57, %v1584_v1  ;;  %v1817_v10 = vadd.f32 %v3978_v8, %v1759_v56  ;;  %v5258_v15 = vpack.c.bf16 %v1801_v11, %v1798_v13 }
 0x57d   : > { %v5243_v5 = vpack.c.bf16 %v1827_v61, %v1826_v59  ;;  %v5245_v6 = vpack.c.bf16 %v1761_v0, %v1757_v60  ;;  %v5256_v14 = vpack.c.bf16 %v1817_v10, %v1816_v12 }
 0x57f   : > { %4211 = vmatmul.mubr.msk.bf16.vlgmr.msra.gmra.mxu1 %vm1829_vm1, %v5243_v5  ;;  %v1881_v7 = vsel %vm1829_vm1, %v5245_v6, 0 }
 0x580   : > { %4215 = vmatpush3.bf16.xpose.msra.mxu1 %v1881_v7  ;;  %4216 = vmatprep.mubr.msk.bf16.mxu1 %vm4840_vm0, %v4839_v52 }
 0x581   : > { %4220 = vmatprep.subr.bf16.mxu1 %v4839_v52 }
 0x587   : > { %4217 = vmatmul.mubr.msk.bf16.vlgmr.msra.gmra.mxu1 %vm1829_vm1, %v5256_v14 }
 0x588   : > { %4221 = vmatpush3.bf16.msra.mxu1 %v5258_v15  ;;  %4222 = vmatprep.mubr.msk.bf16.mxu1 %vm4840_vm0, %v4839_v52 }
 0x589   : > { %4226 = vmatprep.subr.bf16.mxu1 %v4839_v52 }
 0x63f   : > { %v1870_v16 = vpop.f32.mrf.mxu1 }
 0x641   : > { %v4212_v17 = vpop.f32.mrf.mxu1 }
 0x643   : > { %v1873_v18 = vpop.f32.mrf.mxu1 }
 0x645   : > { %v4213_v19 = vpop.f32.mrf.mxu1 }
 0x647   : > { %v1917_v20 = vpop.f32.mrf.mxu1 }
 0x648   : > { %v1918_v21 = vadd.f32 %v1917_v20, %v1870_v16 }
 0x649   : > { %v4218_v23 = vpop.f32.mrf.mxu1 }
 0x64a   : > { %v1924_v24 = vmul.f32 0.17677669, %v1918_v21 }
 0x64b   : > { %v1920_v25 = vpop.f32.mrf.mxu1 }
 0x64c   : > { %v1921_v26 = vadd.f32 %v1920_v25, %v1873_v18  ;;  %v1927_v27 = vsel %vm1926_vm2, %v1924_v24, -inf }
 0x64d   : > { %1928 = vmax.xlane.f32.xlu0 %v1927_v27  ;;  %v4219_v28 = vpop.f32.mrf.mxu1 }
 0x64e   : > { %v1925_v29 = vmul.f32 0.17677669, %v1921_v26 }
 0x650   : > { %v1930_v30 = vsel %vm1926_vm2, %v1925_v29, -inf }
 0x651   : > { %1931 = vmax.xlane.f32.xlu1 %v1930_v30 }
 0x662   : > { %2051 = vrot.lane.b32.xlu1 %v5245_v6, %s4841_s10 }
 0x6d6   : > { %v1929_v31 = vpop.xlane.xlu0 %1928 }
 0x6d7   : > { %v1933_v32 = vsub.f32 %v1924_v24, %v1929_v31 }
 0x6d9   : > { %v1935_v33 = vmul.f32 1.442695, %v1933_v32 }
 0x6da   : > { %v1932_v34 = vpop.xlane.xlu1 %1931 }
 0x6db   : > { %4600 = vpow2.f32 %v1935_v33  ;;  %v1934_v35 = vsub.f32 %v1925_v29, %v1932_v34 }
 0x6dd   : > { %v1937_v36 = vmul.f32 1.442695, %v1934_v35 }
 0x6de   : > { %v2052_v37 = vpop.permute.xlu1 %2051 }
 0x6df   : > { %4602 = vpow2.f32 %v1937_v36  ;;  %v2057_v38 = vsel %vm1829_vm1, %v2052_v37, 0 }
 0x6e0   : > { %4233 = vmatpush3.bf16.xpose.msra.mxu0 %v2057_v38 }
 0x6e1   : > { %4244 = vmatprep.subr.bf16.mxu0 %v4839_v52 }
 0x6e8   : > { %v4601_v39 = vpop.eup %4600 }
 0x6e9   : > { %v1939_v40 = vsel %vm1926_vm2, %v4601_v39, 0.0 }
 0x6ea   : > { %1940 = vadd.xlane.f32.xlu0 %v1939_v40 }
 0x6ec   : > { %v4603_v41 = vpop.eup %4602 }
 0x6ed   : > { %v1942_v43 = vsel %vm1926_vm2, %v4603_v41, 0.0 }
 0x6ee   : > { %1943 = vadd.xlane.f32.xlu1 %v1942_v43 }
 0x6ff   : > { %1995 = vrot.lane.b32.xlu1 %v5243_v5, %s4841_s10 }
 0x700   : > { %1998 = vrot.lane.b32.xlu0 %v5231_v42, %s4841_s10 }
 0x703   : > { %2048 = vrot.lane.b32.xlu1 %v5256_v14, %s4841_s10 }
 0x773   : > { %v1941_v44 = vpop.xlane.xlu0 %1940 }
 0x774   : > { %4604 = vrcp.f32 %v1941_v44 }
 0x777   : > { %v1944_v45 = vpop.xlane.xlu1 %1943  ;;  %v1999_v53 = vpop.permute.xlu0 %1998 }
 0x778   : > { %4606 = vrcp.f32 %v1944_v45  ;;  %v2004_v54 = vsel %vm1829_vm1, %v1999_v53, 0 }
 0x77b   : > { %v1996_v46 = vpop.permute.xlu1 %1995 }
 0x77f   : > { %v2049_v48 = vpop.permute.xlu1 %2048 }
 0x780   : > { %4235 = vmatmul.mubr.msk.bf16.vlgmr.msra.gmra.mxu0 %vm1829_vm1, %v2049_v48 }
 0x781   : > { %4246 = vmatprep.mubr.msk.bf16.mxu0 %vm4840_vm0, %v4839_v52  ;;  %v4605_v50 = vpop.eup %4604 }
 0x782   : > { %v1947_v1 = vmul.f32 %v4605_v50, %v4601_v39 }
 0x785   : > { %v4607_v51 = vpop.eup %4606 }
 0x786   : > { %v1948_v2 = vmul.f32 %v4607_v51, %v4603_v41 }
 0x788   : > { %v1949_v55 = vpack.c.bf16 %v1948_v2, %v1947_v1 }
 0x78a   : > { %4223 = vmatmul.mubr.msk.bf16.vlgmr.msra.gmra.mxu1 %vm1926_vm2, %v1949_v55 }
 0x78b   : > { %4227 = vmatpush3.bf16.xpose.msra.mxu1 %v2004_v54  ;;  %4228 = vmatprep.mubr.msk.bf16.mxu1 %vm4840_vm0, %v4839_v52 }
 0x78c   : > { %4238 = vmatprep.subr.bf16.mxu1 %v4839_v52 }
 0x792   : > { %4229 = vmatmul.mubr.msk.bf16.vlgmr.msra.gmra.mxu1 %vm1829_vm1, %v1996_v46 }
 0x793   : > { %4240 = vmatprep.mubr.msk.bf16.mxu1 %vm4840_vm0, %v4839_v52 }
 0x840   : > { %v2093_v56 = vpop.f32.mrf.mxu0 }
 0x842   : > { %v4236_v57 = vpop.f32.mrf.mxu0 }
 0x844   : > { %v2096_v58 = vpop.f32.mrf.mxu0 }
 0x846   : > { %v4237_v59 = vpop.f32.mrf.mxu0 }
 0x84a   : > { %v5291_v60 = vpop.f32.mrf.mxu1 }
 0x84c   : > { %v4224_v61 = vpop.f32.mrf.mxu1 }
 0x84e   : > { %v5293_v0 = vpop.f32.mrf.mxu1 }
 0x850   : > { %v4225_v7 = vpop.f32.mrf.mxu1 }
 0x852   : > { %v2040_v8 = vpop.f32.mrf.mxu1 }
 0x853   : > { %v2094_v9 = vadd.f32 %v2093_v56, %v2040_v8 }
 0x854   : > { %v4230_v10 = vpop.f32.mrf.mxu1 }
 0x855   : > { %v2100_v11 = vmul.f32 0.17677669, %v2094_v9 }
 0x856   : > { %v2043_v12 = vpop.f32.mrf.mxu1 }
 0x857   : > { %v2097_v13 = vadd.f32 %v2096_v58, %v2043_v12  ;;  %v2102_v16 = vsel %vm1926_vm2, %v2100_v11, -inf }
 0x858   : > { %2103 = vmax.xlane.f32.xlu0 %v2102_v16  ;;  %v4231_v17 = vpop.f32.mrf.mxu1 }
 0x859   : > { %v2101_v18 = vmul.f32 0.17677669, %v2097_v13 }
 0x85b   : > { %v2105_v19 = vsel %vm1926_vm2, %v2101_v18, -inf }
 0x85c   : > { %2106 = vmax.xlane.f32.xlu1 %v2105_v19 }
 0x86d   : > { %2175 = vrot.lane.b32.xlu1 %v5231_v42, %s4842_s0 }
 0x871   : > { %2226 = vrot.lane.b32.xlu1 %v5245_v6, %s4842_s0 }
 0x875   : > { %2173 = vrot.lane.b32.xlu1 %v5243_v5, %s4842_s0 }
 0x8e1   : > { %v2104_v20 = vpop.xlane.xlu0 %2103 }
 0x8e2   : > { %v2108_v21 = vsub.f32 %v2100_v11, %v2104_v20 }
 0x8e4   : > { %v2110_v23 = vmul.f32 1.442695, %v2108_v21 }
 0x8e5   : > { %v2107_v24 = vpop.xlane.xlu1 %2106 }
 0x8e6   : > { %4608 = vpow2.f32 %v2110_v23  ;;  %v2109_v25 = vsub.f32 %v2101_v18, %v2107_v24 }
 0x8e8   : > { %v2112_v26 = vmul.f32 1.442695, %v2109_v25 }
 0x8e9   : > { %v2176_v27 = vpop.permute.xlu1 %2175 }
 0x8ea   : > { %4610 = vpow2.f32 %v2112_v26  ;;  %v2181_v28 = vsel %vm1829_vm1, %v2176_v27, 0 }
 0x8eb   : > { %4245 = vmatpush3.bf16.xpose.msra.mxu0 %v2181_v28 }
 0x8ec   : > { %4256 = vmatprep.subr.bf16.mxu0 %v4839_v52 }
 0x8ed   : > { %v2227_v29 = vpop.permute.xlu1 %2226 }
 0x8ee   : > { %v2232_v44 = vsel %vm1829_vm1, %v2227_v29, 0 }
 0x8f1   : > { %v2174_v30 = vpop.permute.xlu1 %2173 }
 0x8f2   : > { %4247 = vmatmul.mubr.msk.bf16.vlgmr.msra.gmra.mxu0 %vm1829_vm1, %v2174_v30 }
 0x8f3   : > { %v4609_v31 = vpop.eup %4608  ;;  %4258 = vmatprep.mubr.msk.bf16.mxu0 %vm4840_vm0, %v4839_v52 }
 0x8f4   : > { %v2114_v32 = vsel %vm1926_vm2, %v4609_v31, 0.0 }
 0x8f5   : > { %2115 = vadd.xlane.f32.xlu0 %v2114_v32 }
 0x8f7   : > { %v4611_v33 = vpop.eup %4610 }
 0x8f8   : > { %v2117_v34 = vsel %vm1926_vm2, %v4611_v33, 0.0 }
 0x8f9   : > { %2118 = vadd.xlane.f32.xlu0 %v2117_v34 }
 0x90f   : > { %2126 = vrot.lane.b32.xlu0 %v5258_v15, %s4841_s10 }
 0x913   : > { %2224 = vrot.lane.b32.xlu0 %v5256_v14, %s4842_s0 }
 0x97e   : > { %v2116_v35 = vpop.xlane.xlu0 %2115 }
 0x97f   : > { %4612 = vrcp.f32 %v2116_v35 }
 0x982   : > { %v2119_v36 = vpop.xlane.xlu0 %2118 }
 0x983   : > { %4614 = vrcp.f32 %v2119_v36 }
 0x986   : > { %v2127_v37 = vpop.permute.xlu0 %2126 }
 0x987   : > { %4239 = vmatpush3.bf16.msra.mxu1 %v2127_v37 }
 0x988   : > { %4250 = vmatprep.subr.bf16.mxu1 %v4839_v52 }
 0x98a   : > { %v2225_v45 = vpop.permute.xlu0 %2224 }
 0x98c   : > { %v4613_v38 = vpop.eup %4612 }
 0x98d   : > { %v2122_v40 = vmul.f32 %v4613_v38, %v4609_v31 }
 0x990   : > { %v4615_v39 = vpop.eup %4614 }
 0x991   : > { %v2123_v41 = vmul.f32 %v4615_v39, %v4611_v33 }
 0x993   : > { %v2124_v43 = vpack.c.bf16 %v2123_v41, %v2122_v40 }
 0x995   : > { %4241 = vmatmul.mubr.msk.bf16.vlgmr.msra.gmra.mxu1 %vm1926_vm2, %v2124_v43 }
 0x996   : > { %4251 = vmatpush3.bf16.xpose.msra.mxu1 %v2232_v44  ;;  %4252 = vmatprep.mubr.msk.bf16.mxu1 %vm4840_vm0, %v4839_v52 }
 0x997   : > { %4262 = vmatprep.subr.bf16.mxu1 %v4839_v52 }
 0x99d   : > { %4253 = vmatmul.mubr.msk.bf16.vlgmr.msra.gmra.mxu1 %vm1829_vm1, %v2225_v45 }
 0x99e   : > { %4264 = vmatprep.mubr.msk.bf16.mxu1 %vm4840_vm0, %v4839_v52 }
 0x9b2   : > { %v2217_v46 = vpop.f32.mrf.mxu0 }
 0x9b4   : > { %v4248_v48 = vpop.f32.mrf.mxu0 }
 0x9b6   : > { %v2220_v50 = vpop.f32.mrf.mxu0 }
 0x9b8   : > { %v4249_v51 = vpop.f32.mrf.mxu0 }
 0xa55   : > { %v5323_v53 = vpop.f32.mrf.mxu1 }
 0xa57   : > { %v4242_v1 = vpop.f32.mrf.mxu1 }
 0xa59   : > { %v5325_v2 = vpop.f32.mrf.mxu1 }
 0xa5a   : > { %v4409_v54 = vpack.i.bf16 %v5325_v2, %v5323_v53 }
 0xa5b   : > { %v4243_v55 = vpop.f32.mrf.mxu1 }
 0xa5d   : > { %v2268_v56 = vpop.f32.mrf.mxu1 }
 0xa5e   : > { %v2269_v57 = vadd.f32 %v2268_v56, %v2217_v46 }
 0xa5f   : > { %v4254_v58 = vpop.f32.mrf.mxu1 }
 0xa60   : > { %v2275_v59 = vmul.f32 0.17677669, %v2269_v57 }
 0xa61   : > { %v2271_v61 = vpop.f32.mrf.mxu1 }
 0xa62   : > { %v2272_v7 = vadd.f32 %v2271_v61, %v2220_v50  ;;  %v2277_v8 = vsel %vm1926_vm2, %v2275_v59, -inf }
 0xa63   : > { %2278 = vmax.xlane.f32.xlu1 %v2277_v8  ;;  %v4255_v9 = vpop.f32.mrf.mxu1 }
 0xa64   : > { %v2276_v10 = vmul.f32 0.17677669, %v2272_v7 }
 0xa66   : > { %v2280_v11 = vsel %vm1926_vm2, %v2276_v10, -inf }
 0xa67   : > { %2281 = vmax.xlane.f32.xlu0 %v2280_v11 }
 0xa74   : > { %2300 = vrot.lane.b32.xlu1 %v5258_v15, %s4842_s0 }
 0xa78   : > { %2400 = vrot.lane.b32.xlu1 %v5245_v6, %s4843_s23 }
 0xa7c   : > { %2347 = vrot.lane.b32.xlu1 %v5243_v5, %s4843_s23 }
 0xa80   : > { %2398 = vrot.lane.b32.xlu1 %v5256_v14, %s4843_s23 }
 0xaec   : > { %v2279_v12 = vpop.xlane.xlu1 %2278 }
 0xaed   : > { %v2283_v13 = vsub.f32 %v2275_v59, %v2279_v12 }
 0xaef   : > { %v2285_v16 = vmul.f32 1.442695, %v2283_v13 }
 0xaf0   : > { %v2301_v17 = vpop.permute.xlu1 %2300  ;;  %v2282_v18 = vpop.xlane.xlu0 %2281 }
 0xaf1   : > { %4616 = vpow2.f32 %v2285_v16  ;;  %v2284_v19 = vsub.f32 %v2276_v10, %v2282_v18  ;;  %4257 = vmatpush3.bf16.msra.mxu0 %v2301_v17 }
 0xaf2   : > { %4268 = vmatprep.subr.bf16.mxu0 %v4839_v52 }
 0xaf3   : > { %v2287_v20 = vmul.f32 1.442695, %v2284_v19 }
 0xaf4   : > { %v2401_v27 = vpop.permute.xlu1 %2400 }
 0xaf5   : > { %4618 = vpow2.f32 %v2287_v20  ;;  %v2406_v33 = vsel %vm1829_vm1, %v2401_v27, 0 }
 0xaf8   : > { %v2348_v29 = vpop.permute.xlu1 %2347 }
 0xafc   : > { %v2399_v34 = vpop.permute.xlu1 %2398 }
 0xafe   : > { %v4617_v21 = vpop.eup %4616 }
 0xaff   : > { %v2289_v6 = vsel %vm1926_vm2, %v4617_v21, 0.0 }
 0xb00   : > { %2290 = vadd.xlane.f32.xlu0 %v2289_v6  ;;  %v4497_v6 = vld [vmem:[%s5680_s28 + $0x30] sm:$0xff]  }
 0xb02   : > { %v4619_v5 = vpop.eup %4618 }
 0xb03   : > { %v2292_v23 = vsel %vm1926_vm2, %v4619_v5, 0.0 }
 0xb04   : > { %2293 = vadd.xlane.f32.xlu0 %v2292_v23  ;;  %v4499_v23 = vld [vmem:[%s5680_s28 + $0x20] sm:$0xff]  }
 0xb1a   : > { %2349 = vrot.lane.b32.xlu0 %v5231_v42, %s4843_s23 }
 0xb89   : > { %v2291_v14 = vpop.xlane.xlu0 %2290 }
 0xb8a   : > { %4620 = vrcp.f32 %v2291_v14  ;;  %v4500_v14 = vld [vmem:[%s5680_s28 + $0x18] sm:$0xff]  }
 0xb8d   : > { %v2294_v24 = vpop.xlane.xlu0 %2293 }
 0xb8e   : > { %4622 = vrcp.f32 %v2294_v24  ;;  %v4501_v24 = vld [vmem:[%s5680_s28 + $0x10] sm:$0xff]  }
 0xb91   : > { %v2350_v25 = vpop.permute.xlu0 %2349 }
 0xb92   : > { %v2355_v26 = vsel %vm1829_vm1, %v2350_v25, 0  ;;  %v4502_v25 = vld [vmem:[%s5680_s28 + $0x8] sm:$0xff]  }
 0xb93   : > { %4263 = vmatpush3.bf16.xpose.msra.mxu1 %v2355_v26  ;;  %v4503_v26 = vld [vmem:[%s5680_s28] sm:$0xff]  }
 0xb94   : > { %4274 = vmatprep.subr.bf16.mxu1 %v4839_v52 }
 0xb97   : > { %v4621_v28 = vpop.eup %4620 }
 0xb98   : > { %v2297_v42 = vmul.f32 %v4621_v28, %v4617_v21 }
 0xb9a   : > { %4265 = vmatmul.mubr.msk.bf16.vlgmr.msra.gmra.mxu1 %vm1829_vm1, %v2348_v29 }
 0xb9b   : > { %v4623_v30 = vpop.eup %4622  ;;  %4276 = vmatprep.mubr.msk.bf16.mxu1 %vm4840_vm0, %v4839_v52 }
 0xb9c   : > { %v2298_v31 = vmul.f32 %v4623_v30, %v4619_v5  ;;  %v4498_v5 = vld [vmem:[%s5680_s28 + $0x28] sm:$0xff]  }
 0xb9e   : > { %v2299_v32 = vpack.c.bf16 %v2298_v31, %v2297_v42 }
 0xba0   : > { %4259 = vmatmul.mubr.msk.bf16.vlgmr.msra.gmra.mxu0 %vm1926_vm2, %v2299_v32 }
 0xba1   : > { %4269 = vmatpush3.bf16.xpose.msra.mxu0 %v2406_v33  ;;  %4270 = vmatprep.mubr.msk.bf16.mxu0 %vm4840_vm0, %v4839_v52 }
 0xba2   : > { %4280 = vmatprep.subr.bf16.mxu0 %v4839_v52 }
 0xba8   : > { %4271 = vmatmul.mubr.msk.bf16.vlgmr.msra.gmra.mxu0 %vm1829_vm1, %v2399_v34 }
 0xba9   : > { %4296 = vmatprep.mubr.msk.bf16.mxu0 %vm4840_vm0, %v4839_v52 }
 0xc5a   : > { %v2391_v35 = vpop.f32.mrf.mxu1 }
 0xc5c   : > { %v4266_v36 = vpop.f32.mrf.mxu1 }
 0xc5e   : > { %v2394_v37 = vpop.f32.mrf.mxu1 }
 0xc60   : > { %v2340_v38 = vpop.f32.mrf.mxu0  ;;  %v4267_v39 = vpop.f32.mrf.mxu1 }
 0xc62   : > { %v4260_v40 = vpop.f32.mrf.mxu0 }
 0xc64   : > { %v2343_v41 = vpop.f32.mrf.mxu0 }
 0xc65   : > { %v4414_v58 = vpack.i.bf16 %v2343_v41, %v2340_v38 }
 0xc66   : > { %v4261_v43 = vpop.f32.mrf.mxu0 }
 0xc68   : > { %v2442_v44 = vpop.f32.mrf.mxu0 }
 0xc69   : > { %v2443_v45 = vadd.f32 %v2442_v44, %v2391_v35 }
 0xc6a   : > { %v4272_v46 = vpop.f32.mrf.mxu0 }
 0xc6b   : > { %v2449_v48 = vmul.f32 0.17677669, %v2443_v45 }
 0xc6c   : > { %v2445_v50 = vpop.f32.mrf.mxu0 }
 0xc6d   : > { %v2446_v51 = vadd.f32 %v2445_v50, %v2394_v37  ;;  %v2451_v1 = vsel %vm1926_vm2, %v2449_v48, -inf }
 0xc6e   : > { %v4273_v55 = vpop.f32.mrf.mxu0  ;;  %2452 = vmax.xlane.f32.xlu0 %v2451_v1 }
 0xc6f   : > { %v2450_v56 = vmul.f32 0.17677669, %v2446_v51  ;;  %v4000_v51 = vld [vmem:[%s5681_s18] ss:$0 sm:$0xff]  ;;  %s5690_s18 = sld [smem:[#allocation22_spill]] }
 0xc71   : > { %v2454_v57 = vsel %vm1926_vm2, %v2450_v56, -inf }
 0xc72   : > { %2455 = vmax.xlane.f32.xlu1 %v2454_v57 }
 0xc83   : > { %4410 = vrot.lane.b32.xlu1 %v4409_v54, %s4843_s23 }
 0xc87   : > { %4415 = vrot.lane.b32.xlu1 %v4414_v58, %s4842_s0  ;;  %s5688_s0 = sld [smem:[#allocation20_spill]] }
 0xcf7   : > { %v2453_v59 = vpop.xlane.xlu0 %2452 }
 0xcf8   : > { %v2457_v61 = vsub.f32 %v2449_v48, %v2453_v59  ;;  %v4504_v59 = vld [vmem:[%s5682_s7 + $0x70] ss:$8 sps:$4 sm:$0xff]  }
 0xcfa   : > { %v2459_v7 = vmul.f32 1.442695, %v2457_v61  ;;  %v4506_v61 = vld [vmem:[%s5682_s7 + $0x74] ss:$8 sps:$4 sm:$0xff]  }
 0xcfb   : > { %v2456_v8 = vpop.xlane.xlu1 %2455 }
 0xcfc   : > { %4624 = vpow2.f32 %v2459_v7  ;;  %v2458_v9 = vsub.f32 %v2450_v56, %v2456_v8 }
 0xcfe   : > { %v2461_v10 = vmul.f32 1.442695, %v2458_v9 }
 0xcff   : > { %v4411_v31 = vpop.permute.xlu1 %4410 }
 0xd00   : > { %4626 = vpow2.f32 %v2461_v10  ;;  %v4413_v33 = vunpack.i.h.bf16 %v4411_v31  ;;  %v4412_v34 = vunpack.i.l.bf16 %v4411_v31 }
 0xd02   : > { %v2546_v38 = vsel %vm1829_vm1, %v5293_v0, %v4413_v33  ;;  %v2545_v39 = vsel %vm1829_vm1, %v5291_v60, %v4412_v34  ;;  %v4002_v34 = vld [vmem:[%s5684_s11] ss:$0 sm:$0xff]  ;;  %s5692_s11 = sld [smem:[#allocation26_spill]] }
 0xd03   : > { %v4416_v32 = vpop.permute.xlu1 %4415 }
 0xd04   : > { %v4418_v35 = vunpack.i.h.bf16 %v4416_v32  ;;  %v4417_v36 = vunpack.i.l.bf16 %v4416_v32 }
 0xd06   : > { %v2548_v43 = vsel %vm2547_vm3, %v2545_v39, %v4417_v36  ;;  %v2549_v44 = vsel %vm2547_vm3, %v2546_v38, %v4418_v35  ;;  %v4528_v39 = vld [vmem:[%s5685_s1 + $0x38] sm:$0xff]  }
 0xd09   : > { %v4625_v11 = vpop.eup %4624 }
 0xd0a   : > { %v2463_v12 = vsel %vm1926_vm2, %v4625_v11, 0.0 }
 0xd0b   : > { %2464 = vadd.xlane.f32.xlu0 %v2463_v12 }
 0xd0d   : > { %v4627_v13 = vpop.eup %4626 }
 0xd0e   : > { %v2466_v16 = vsel %vm1926_vm2, %v4627_v13, 0.0 }
 0xd0f   : > { %2467 = vadd.xlane.f32.xlu0 %v2466_v16  ;;  %v4507_v16 = vld [vmem:[%s5682_s7 + $0x60] ss:$8 sps:$4 sm:$0xff]  }
 0xd25   : > { %2474 = vrot.lane.b32.xlu0 %v5258_v15, %s4843_s23  ;;  %v4496_v15 = vld [vmem:[%s5680_s28 + $0x38] sm:$0xff]   ;;  %s5689_s23 = sld [smem:[#allocation21_spill]] }
 0xd26   : > { %4281 = vmatpush3.bf16.msra.mxu0 %v4496_v15  ;;  %v4524_v15 = vld [vmem:[%s5682_s7 + $0x14] ss:$8 sps:$4 sm:$0xff]  }
 0xd27   : > { %4282 = vmatprep.subr.bf16.mxu0 %v4839_v52 }
 0xd2a   : > { %4283 = vmatpush3.bf16.msra.mxu0 %v4497_v6  ;;  %v4522_v6 = vld [vmem:[%s5682_s7 + $0x10] ss:$8 sps:$4 sm:$0xff]  }
 0xd2b   : > { %4284 = vmatprep.subr.bf16.mxu0 %v4839_v52 }
 0xd2e   : > { %4285 = vmatpush3.bf16.msra.mxu0 %v4498_v5  ;;  %v4527_v5 = vld [vmem:[%s5682_s7 + $0x4] ss:$8 sps:$4 sm:$0xff]  }
 0xd2f   : > { %4286 = vmatprep.subr.bf16.mxu0 %v4839_v52 }
 0xd32   : > { %4287 = vmatpush3.bf16.msra.mxu0 %v4499_v23  ;;  %v4525_v23 = vld [vmem:[%s5682_s7] ss:$8 sps:$4 sm:$0xff]  }
 0xd33   : > { %4288 = vmatprep.subr.bf16.mxu0 %v4839_v52 }
 0xd36   : > { %4289 = vmatpush3.bf16.msra.mxu0 %v4500_v14 }
 0xd37   : > { %4290 = vmatprep.subr.bf16.mxu0 %v4839_v52 }
 0xd3a   : > { %4291 = vmatpush3.bf16.msra.mxu0 %v4501_v24 }
 0xd3b   : > { %4292 = vmatprep.subr.bf16.mxu0 %v4839_v52 }
 0xd3e   : > { %4293 = vmatpush3.bf16.msra.mxu0 %v4502_v25 }
 0xd3f   : > { %4294 = vmatprep.subr.bf16.mxu0 %v4839_v52 }
 0xd42   : > { %4295 = vmatpush3.bf16.msra.mxu0 %v4503_v26 }
 0xd43   : > { %4300 = vmatprep.subr.bf16.mxu0 %v4839_v52 }
 0xd94   : > { %v2465_v53 = vpop.xlane.xlu0 %2464 }
 0xd95   : > { %4628 = vrcp.f32 %v2465_v53  ;;  %v4512_v53 = vld [vmem:[%s5682_s7 + $0x54] ss:$8 sps:$4 sm:$0xff]  }
 0xd98   : > { %v2468_v2 = vpop.xlane.xlu0 %2467 }
 0xd99   : > { %4630 = vrcp.f32 %v2468_v2  ;;  %v4510_v2 = vld [vmem:[%s5682_s7 + $0x50] ss:$8 sps:$4 sm:$0xff]  }
 0xd9c   : > { %v2475_v54 = vpop.permute.xlu0 %2474 }
 0xd9d   : > { %4275 = vmatpush3.bf16.msra.mxu1 %v2475_v54  ;;  %v4513_v54 = vld [vmem:[%s5682_s7 + $0x40] ss:$8 sps:$4 sm:$0xff]  }
 0xd9e   : > { %2819 = vmatprep.subr.bf16.mxu1 %v4506_v61 }
 0xda2   : > { %v4629_v17 = vpop.eup %4628 }
 0xda3   : > { %v2471_v19 = vmul.f32 %v4629_v17, %v4625_v11  ;;  %v4515_v17 = vld [vmem:[%s5682_s7 + $0x44] ss:$8 sps:$4 sm:$0xff]  }
 0xda6   : > { %v4631_v18 = vpop.eup %4630 }
 0xda7   : > { %v2472_v20 = vmul.f32 %v4631_v18, %v4627_v13  ;;  %v4509_v13 = vld [vmem:[%s5682_s7 + $0x64] ss:$8 sps:$4 sm:$0xff]   ;;  %v4518_v18 = vld [vmem:[%s5682_s7 + $0x34] ss:$8 sps:$4 sm:$0xff]  }
 0xda9   : > { %v2473_v21 = vpack.c.bf16 %v2472_v20, %v2471_v19  ;;  %v4516_v19 = vld [vmem:[%s5682_s7 + $0x30] ss:$8 sps:$4 sm:$0xff]   ;;  %v4521_v20 = vld [vmem:[%s5682_s7 + $0x24] ss:$8 sps:$4 sm:$0xff]  }
 0xdab   : > { %4277 = vmatmul.mubr.msk.bf16.vlgmr.msra.gmra.mxu1 %vm1926_vm2, %v2473_v21  ;;  %v4519_v21 = vld [vmem:[%s5682_s7 + $0x20] ss:$8 sps:$4 sm:$0xff]  }
 0xdac   : > { %2851 = vmatprep.mubr.bf16.mxu1 %v4838_v22  ;;  %2820 = vmatpush1.bf16.msra.mxu1 %v4504_v59 }
 0xdad   : > { %2821 = vmatprep.subr.bf16.mxu1 %v4509_v13 }
 0xdb0   : > { %2822 = vmatpush1.bf16.msra.mxu1 %v4507_v16 }
 0xdb1   : > { %2823 = vmatprep.subr.bf16.mxu1 %v4512_v53 }
 0xdb4   : > { %2824 = vmatpush1.bf16.msra.mxu1 %v4510_v2  ;;  %v2958_v2 = vsub.s32 4, %v5155_v62 }
 0xdb5   : > { %2825 = vmatprep.subr.bf16.mxu1 %v4515_v17 }
 0xdb8   : > { %2826 = vmatpush1.bf16.msra.mxu1 %v4513_v54 }
 0xdb9   : > { %2827 = vmatprep.subr.bf16.mxu1 %v4518_v18  ;;  %v2978_v18 = vsub.s32 5, %v5155_v62 }
 0xdbc   : > { %2828 = vmatpush1.bf16.msra.mxu1 %v4516_v19  ;;  %v2998_v19 = vsub.s32 6, %v5155_v62 }
 0xdbd   : > { %2829 = vmatprep.subr.bf16.mxu1 %v4521_v20 }
 0xdc0   : > { %2830 = vmatpush1.bf16.msra.mxu1 %v4519_v21 }
 0xdc1   : > { %2831 = vmatprep.subr.bf16.mxu1 %v4524_v15  ;;  %v3018_v15 = vsub.s32 7, %v5155_v62 }
 0xdc4   : > { %2832 = vmatpush1.bf16.msra.mxu1 %v4522_v6 }
 0xdc5   : > { %2833 = vmatprep.subr.bf16.mxu1 %v4527_v5 }
 0xdc8   : > { %2834 = vmatpush1.bf16.msra.mxu1 %v4525_v23 }
 0xe6b   : > { %v2514_v27 = vpop.f32.mrf.mxu1 }
 0xe6d   : > { %v4278_v28 = vpop.f32.mrf.mxu1 }
 0xe6f   : > { %v2517_v29 = vpop.f32.mrf.mxu1 }
 0xe70   : > { %v4419_v30 = vpack.i.bf16 %v2517_v29, %v2514_v27 }
 0xe71   : > { %v4279_v42 = vpop.f32.mrf.mxu1 }
 0xe72   : > { %4420 = vrot.lane.b32.xlu1 %v4419_v30, %s4841_s10  ;;  %v4001_v42 = vld [vmem:[%s5683_s26] ss:$0 sm:$0xff]  ;;  %s5687_s10 = sld [smem:[#allocation19_spill]] }
 0xe73   : > { %s5691_s26 = sld [smem:[#allocation24_spill]] }
 0xee4   : > { %v4421_v37 = vpop.permute.xlu1 %4420 }
 0xee5   : > { %v4423_v40 = vunpack.i.h.bf16 %v4421_v37  ;;  %v4422_v41 = vunpack.i.l.bf16 %v4421_v37 }
 0xee7   : > { %v2552_v45 = vsel %vm2550_vm4, %v2549_v44, %v4423_v40  ;;  %v2551_v46 = vsel %vm2550_vm4, %v2548_v43, %v4422_v41  ;;  %v4529_v40 = vld [vmem:[%s5685_s1 + $0x30] sm:$0xff]   ;;  %v4530_v41 = vld [vmem:[%s5685_s1 + $0x28] sm:$0xff]   ;;  %v4531_v43 = vld [vmem:[%s5685_s1 + $0x20] sm:$0xff]  }
 0xee8   : > { %v2553_v48 = vpack.c.bf16 %v2552_v45, %v2551_v46  ;;  %v4532_v44 = vld [vmem:[%s5685_s1 + $0x18] sm:$0xff]   ;;  %v4534_v45 = vld [vmem:[%s5685_s1 + $0x8] sm:$0xff]   ;;  %v4535_v46 = vld [vmem:[%s5685_s1] sm:$0xff]  }
 0xeea   : > { %4297 = vmatmul.mubr.bf16.vlgmr.msra.gmra.mxu0 %v2553_v48  ;;  %v2727_v48 = vld [vmem:[%s5686_s2] sm:$0x3]  ;;  %s5693_s2 = sld [smem:[#allocation25_spill]] }
 0xeeb   : > { %4316 = vmatprep.mubr.msk.bf16.mxu0 %vm4840_vm0, %v4839_v52  ;;  %4301 = vmatpush3.bf16.msra.mxu0 %v4528_v39 }
 0xeec   : > { %4302 = vmatprep.subr.bf16.mxu0 %v4839_v52 }
 0xeef   : > { %4303 = vmatpush3.bf16.msra.mxu0 %v4529_v40 }
 0xef0   : > { %4304 = vmatprep.subr.bf16.mxu0 %v4839_v52 }
 0xef3   : > { %4305 = vmatpush3.bf16.msra.mxu0 %v4530_v41 }
 0xef4   : > { %4306 = vmatprep.subr.bf16.mxu0 %v4839_v52 }
 0xef7   : > { %4307 = vmatpush3.bf16.msra.mxu0 %v4531_v43 }
 0xef8   : > { %4308 = vmatprep.subr.bf16.mxu0 %v4839_v52 }
 0xefb   : > { %4309 = vmatpush3.bf16.msra.mxu0 %v4532_v44 }
 0xefc   : > { %4310 = vmatprep.subr.bf16.mxu0 %v4839_v52 }
 0xfaa   : > { %v2652_v50 = vpop.f32.mrf.mxu0 }
 0xfab   : > { %v2659_v0 = vadd.f32 %v2652_v50, %v5168_v47  ;;  %v2736_v50 = vrot.slane %v2727_v48, %v5162_v3 }
 0xfac   : > { %v4298_v1 = vpop.f32.mrf.mxu0 }
 0xfad   : > { %v5395_v55 = vadd.f32 %v4000_v51, %v2659_v0 }
 0xfae   : > { %v2655_v60 = vpop.f32.mrf.mxu0 }
 0xfaf   : > { %v2660_v56 = vadd.f32 %v2655_v60, %v5172_v49  ;;  %2672 = vadd.xlane.f32.xlu0 %v5395_v55 }
 0xfb0   : > { %v4299_v57 = vpop.f32.mrf.mxu0 }
 0xfb1   : > { %v5399_v58 = vadd.f32 %v4000_v51, %v2660_v56 }
 0xfb3   : > { %2674 = vadd.xlane.f32.xlu1 %v5399_v58 }
0x1038   : > { %v2673_v47 = vpop.xlane.xlu0 %2672 }
0x1039   : > { %v2676_v7 = vmul.f32 0.0078125, %v2673_v47 }
0x103b   : > { %v2678_v8 = vsub.f32 %v5395_v55, %v2676_v7 }
0x103c   : > { %v2675_v49 = vpop.xlane.xlu1 %2674 }
0x103d   : > { %v2677_v9 = vmul.f32 0.0078125, %v2675_v49  ;;  %v2680_v10 = vmul.f32 %v2678_v8, %v2678_v8 }
0x103f   : > { %v2679_v11 = vsub.f32 %v5399_v58, %v2677_v9  ;;  %2682 = vadd.xlane.f32.xlu0 %v2680_v10  ;;  %v2938_v10 = vsub.s32 3, %v5155_v62 }
0x1041   : > { %v2681_v12 = vmul.f32 %v2679_v11, %v2679_v11 }
0x1043   : > { %2684 = vadd.xlane.f32.xlu0 %v2681_v12  ;;  %v2887_v12 = vld [vmem:[%s5687_s10] sm:$0xff] }
0x1044   : > { %v2919_v54 = vrot.slane %v2887_v12, %v5241_v4 }
0x10c8   : > { %v2683_v14 = vpop.xlane.xlu0 %2682 }
0x10c9   : > { %v2686_v24 = vmul.f32 0.0078125, %v2683_v14 }
0x10cb   : > { %v2688_v25 = vadd.f32 1e-05, %v2686_v24  ;;  %v2900_v24 = vrot.slane %v2887_v12, %v5162_v3 }
0x10cc   : > { %v2685_v26 = vpop.xlane.xlu0 %2684 }
0x10cd   : > { %4632 = vrsqrt.f32 %v2688_v25  ;;  %v2687_v27 = vmul.f32 0.0078125, %v2685_v26  ;;  %v2939_v25 = vrot.slane %v2887_v12, %v2938_v10  ;;  %v2959_v26 = vrot.slane %v2887_v12, %v2958_v2 }
0x10cf   : > { %v2689_v28 = vadd.f32 1e-05, %v2687_v27 }
0x10d1   : > { %4634 = vrsqrt.f32 %v2689_v28 }
0x10da   : > { %v4633_v29 = vpop.eup %4632 }
0x10db   : > { %v2692_v30 = vmul.f32 %v4633_v29, %v2678_v8  ;;  %v2888_v8 = vld [vmem:[%s5687_s10 + $0x8] sm:$0x7f]  ;;  %v5473_v29 = vrot.slane %v2887_v12, %v2978_v18 }
0x10dc   : > { %v5442_v9 = vrot.slane %v2888_v8, %v5241_v4  ;;  %v5448_v13 = vrot.slane %v2888_v8, %v5162_v3  ;;  %v5453_v53 = vrot.slane %v2888_v8, %v2938_v10  ;;  %v2892_v4 = vrot.slane %v2887_v12, %v5158_v63 }
0x10dd   : > { %v2700_v33 = vmul.f32 %v4001_v42, %v2692_v30  ;;  %v5468_v14 = vrot.slane %v2888_v8, %v2958_v2  ;;  %v5471_v27 = vrot.slane %v2888_v8, %v2978_v18  ;;  %v5475_v30 = vrot.slane %v2887_v12, %v2998_v19 }
0x10de   : > { %v4635_v31 = vpop.eup %4634  ;;  %v5451_v16 = vmul.f32 0.0, %v5442_v9  ;;  %v5462_v6 = vmul.f32 0.0, %v5448_v13  ;;  %v5465_v5 = vmul.f32 0.0, %v5453_v53 }
0x10df   : > { %v2693_v32 = vmul.f32 %v4635_v31, %v2679_v11  ;;  %v2708_v36 = vadd.f32 %v4002_v34, %v2700_v33  ;;  %v2732_v11 = vrot.slane %v2727_v48, %v5158_v63  ;;  %v5477_v31 = vrot.slane %v2887_v12, %v3018_v15 }
0x10e0   : > { %v3076_v21 = vrot.slane %v5451_v16, 2  ;;  %v3057_v33 = vrot.slane %v5462_v6, 1  ;;  %v5491_v43 = vmul.f32 0.0, %v5471_v27 }
0x10e1   : > { %v2701_v35 = vmul.f32 %v4001_v42, %v2693_v32  ;;  %v5480_v32 = vrot.slane %v2888_v8, %v5158_v63 }
0x10e3   : > { %v2709_v37 = vadd.f32 %v4002_v34, %v2701_v35  ;;  %v3095_v34 = vrot.slane %v5465_v5, 3 }
0x10e5   : > { %v2710_v38 = vpack.c.bf16 %v2709_v37, %v2708_v36  ;;  %v5486_v37 = vmul.f32 0.0, %v5468_v14 }
0x10e7   : > { %2852 = vmatmul.mubr.bf16.vlgmr.msra.gmra.mxu1 %v2710_v38  ;;  %v5488_v38 = vrot.slane %v2888_v8, %v2998_v19 }
0x10e8   : > { %3495 = vmatprep.mubr.bf16.mxu1 %v4838_v22  ;;  %v4533_v22 = vld [vmem:[%s5685_s1 + $0x10] sm:$0xff]  }
0x10e9   : > { %4311 = vmatpush3.bf16.msra.mxu0 %v4533_v22 }
0x10ea   : > { %4312 = vmatprep.subr.bf16.mxu0 %v4839_v52 }
0x10ed   : > { %4313 = vmatpush3.bf16.msra.mxu0 %v4534_v45 }
0x10ee   : > { %4314 = vmatprep.subr.bf16.mxu0 %v4839_v52 }
0x10f1   : > { %4315 = vmatpush3.bf16.msra.mxu0 %v4535_v46 }
0x11a7   : > { %v2853_v51 = vpop.f32.mrf.mxu1 }
0x11a8   : > { %v2854_v17 = vadd.f32 %v2853_v51, %v2732_v11 }
0x11a9   : > { %v2855_v0 = vpop.f32.mrf.mxu1 }
0x11aa   : > { %v2856_v1 = vadd.f32 %v2855_v0, %v2736_v50 }
0x11ab   : > { %v2857_v60 = vpop.f32.mrf.mxu1 }
0x11ac   : > { %v4019_v56 = vmul.f32 -1.442695, %v2856_v1  ;;  %v2858_v62 = vadd.f32 %v2857_v60, %v2732_v11 }
0x11ad   : > { %v2859_v57 = vpop.f32.mrf.mxu1 }
0x11ae   : > { %4636 = vpow2.f32 %v4019_v56  ;;  %v2860_v59 = vadd.f32 %v2859_v57, %v2736_v50 }
0x11b0   : > { %v4020_v61 = vmul.f32 -1.442695, %v2860_v59 }
0x11b2   : > { %4638 = vpow2.f32 %v4020_v61 }
0x11bb   : > { %v4637_v47 = vpop.eup %4636 }
0x11bc   : > { %v2868_v7 = vadd.f32 1.0, %v4637_v47 }
0x11be   : > { %4640 = vrcp.f32 %v2868_v7 }
0x11bf   : > { %v4639_v52 = vpop.eup %4638 }
0x11c0   : > { %v2869_v49 = vadd.f32 1.0, %v4639_v52 }
0x11c2   : > { %4642 = vrcp.f32 %v2869_v49 }
0x11cb   : > { %v4641_v20 = vpop.eup %4640 }
0x11cc   : > { %v2874_v23 = vmul.f32 %v4641_v20, %v2854_v17 }
0x11ce   : > { %v2879_v28 = vrot.slane %v2874_v23, 1 }
0x11cf   : > { %v4643_v42 = vpop.eup %4642 }
0x11d0   : > { %v2885_v35 = vsel %vm2878_vm5, 0.0, %v2879_v28  ;;  %v2875_v36 = vmul.f32 %v4643_v42, %v2858_v62 }
0x11d1   : > { %v2901_v39 = vmul.f32 %v2900_v24, %v2885_v35  ;;  %v2920_v40 = vmul.f32 %v2919_v54, %v2885_v35  ;;  %v2940_v41 = vmul.f32 %v2939_v25, %v2885_v35  ;;  %v2893_v44 = vmul.f32 %v2892_v4, %v2885_v35 }
0x11d2   : > { %v2880_v22 = vrot.slane %v2875_v36, 1  ;;  %v2960_v45 = vmul.f32 %v2959_v26, %v2885_v35  ;;  %v2980_v46 = vmul.f32 %v5473_v29, %v2885_v35  ;;  %v3000_v0 = vmul.f32 %v5475_v30, %v2885_v35 }
0x11d3   : > { %v2907_v48 = vrot.slane %v2901_v39, 1  ;;  %v2927_v50 = vrot.slane %v2920_v40, 2  ;;  %v2947_v51 = vrot.slane %v2940_v41, 3  ;;  %v3020_v57 = vmul.f32 %v5477_v31, %v2885_v35 }
0x11d4   : > { %v5496_v1 = vsel %vm2878_vm5, %v2879_v28, %v2880_v22  ;;  %v5499_v60 = vsel %vm2878_vm5, %v2880_v22, 0.0  ;;  %v2967_v56 = vrot.slane %v2960_v45, 4 }
0x11d5   : > { %v2894_v59 = vmul.f32 %v2892_v4, %v5496_v1  ;;  %v2902_v61 = vmul.f32 %v2900_v24, %v5496_v1  ;;  %v2903_v47 = vmul.f32 %v2900_v24, %v5499_v60  ;;  %v2921_v7 = vmul.f32 %v2919_v54, %v5496_v1 }
0x11d6   : > { %v2922_v52 = vmul.f32 %v2919_v54, %v5499_v60  ;;  %v2941_v8 = vmul.f32 %v2939_v25, %v5496_v1  ;;  %v2942_v49 = vmul.f32 %v2939_v25, %v5499_v60  ;;  %v2961_v10 = vmul.f32 %v2959_v26, %v5496_v1 }
0x11d7   : > { %v2908_v11 = vrot.slane %v2902_v61, 1  ;;  %v2910_v12 = vrot.slane %v2903_v47, 1  ;;  %v2928_v2 = vrot.slane %v2921_v7, 2  ;;  %v2962_v17 = vmul.f32 %v2959_v26, %v5499_v60 }
0x11d8   : > { %v2930_v18 = vrot.slane %v2922_v52, 2  ;;  %v2948_v19 = vrot.slane %v2941_v8, 3  ;;  %v2950_v20 = vrot.slane %v2942_v49, 3  ;;  %v2968_v15 = vrot.slane %v2961_v10, 4 }
0x11d9   : > { %v2909_v23 = vsel %vm2878_vm5, %v2907_v48, %v2908_v11  ;;  %v2911_v54 = vsel %vm2878_vm5, %v2908_v11, %v2910_v12  ;;  %v2970_v4 = vrot.slane %v2962_v17, 4  ;;  %v2987_v24 = vrot.slane %v2980_v46, 5 }
0x11da   : > { %v2914_v25 = vadd.f32 %v2909_v23, %v2893_v44  ;;  %v2915_v28 = vadd.f32 %v2911_v54, %v2894_v59  ;;  %v2929_v62 = vsel %vm2926_vm6, %v2927_v50, %v2928_v2  ;;  %v2931_v42 = vsel %vm2926_vm6, %v2928_v2, %v2930_v18 }
0x11db   : > { %v2949_v35 = vsel %vm2946_vm7, %v2947_v51, %v2948_v19  ;;  %v2951_v26 = vsel %vm2946_vm7, %v2948_v19, %v2950_v20  ;;  %v2969_v36 = vsel %vm2966_vm8, %v2967_v56, %v2968_v15  ;;  %v2981_v39 = vmul.f32 %v5473_v29, %v5496_v1 }
0x11dc   : > { %v2934_v40 = vadd.f32 %v2929_v62, %v2914_v25  ;;  %v2935_v41 = vadd.f32 %v2931_v42, %v2915_v28  ;;  %v2982_v22 = vmul.f32 %v5473_v29, %v5499_v60  ;;  %v3001_v44 = vmul.f32 %v5475_v30, %v5496_v1 }
0x11dd   : > { %v2971_v45 = vsel %vm2966_vm8, %v2968_v15, %v2970_v4  ;;  %v2988_v46 = vrot.slane %v2981_v39, 5  ;;  %v3002_v48 = vmul.f32 %v5475_v30, %v5499_v60  ;;  %v3021_v50 = vmul.f32 %v5477_v31, %v5496_v1 }
0x11de   : > { %v2954_v51 = vadd.f32 %v2949_v35, %v2934_v40  ;;  %v2955_v56 = vadd.f32 %v2951_v26, %v2935_v41  ;;  %v2990_v59 = vrot.slane %v2982_v22, 5  ;;  %v3008_v61 = vrot.slane %v3001_v44, 6 }
0x11df   : > { %v2989_v47 = vsel %vm2986_vm9, %v2987_v24, %v2988_v46  ;;  %v3007_v7 = vrot.slane %v3000_v0, 6  ;;  %v3010_v29 = vrot.slane %v3002_v48, 6  ;;  %v3022_v52 = vmul.f32 %v5477_v31, %v5499_v60 }
0x11e0   : > { %v2974_v8 = vadd.f32 %v2969_v36, %v2954_v51  ;;  %v2975_v49 = vadd.f32 %v2971_v45, %v2955_v56  ;;  %v2991_v10 = vsel %vm2986_vm9, %v2988_v46, %v2990_v59  ;;  %v3027_v11 = vrot.slane %v3020_v57, 7 }
0x11e1   : > { %v3009_v30 = vsel %vm3006_vm10, %v3007_v7, %v3008_v61  ;;  %v3011_v12 = vsel %vm3006_vm10, %v3008_v61, %v3010_v29  ;;  %v3028_v2 = vrot.slane %v3021_v50, 7  ;;  %v3030_v17 = vrot.slane %v3022_v52, 7 }
0x11e2   : > { %v2994_v18 = vadd.f32 %v2989_v47, %v2974_v8  ;;  %v2995_v19 = vadd.f32 %v2991_v10, %v2975_v49  ;;  %v3040_v0 = vmul.f32 %v5480_v32, %v5496_v1  ;;  %v3048_v20 = vmul.f32 %v5448_v13, %v5496_v1 }
0x11e3   : > { %v3029_v31 = vsel %vm3026_vm11, %v3027_v11, %v3028_v2  ;;  %v3031_v15 = vsel %vm3026_vm11, %v3028_v2, %v3030_v17  ;;  %v3049_v57 = vmul.f32 %v5448_v13, %v5499_v60  ;;  %v3067_v23 = vmul.f32 %v5442_v9, %v5496_v1 }
0x11e4   : > { %v3014_v54 = vadd.f32 %v3009_v30, %v2994_v18  ;;  %v3015_v4 = vadd.f32 %v3011_v12, %v2995_v19  ;;  %v3054_v24 = vrot.slane %v3048_v20, 1  ;;  %v3068_v25 = vmul.f32 %v5442_v9, %v5499_v60 }
0x11e5   : > { %v3055_v28 = vrot.slane %v3049_v57, 1  ;;  %v3073_v62 = vrot.slane %v3067_v23, 2  ;;  %v3086_v42 = vmul.f32 %v5453_v53, %v5496_v1  ;;  %v3087_v35 = vmul.f32 %v5453_v53, %v5499_v60 }
0x11e6   : > { %v3034_v26 = vadd.f32 %v3029_v31, %v3014_v54  ;;  %v3035_v36 = vadd.f32 %v3031_v15, %v3015_v4  ;;  %v3041_v13 = vmul.f32 %v5480_v32, %v5499_v60  ;;  %v3074_v39 = vrot.slane %v3068_v25, 2  ;;  %v4022_v15 = vld [vmem:[%s5689_s23] ss:$0 sm:$0xff]  ;;  %s5695_s23 = sld [smem:[#allocation27_spill]] }
0x11e7   : > { %v3056_v40 = vsel %vm2878_vm5, %v3054_v24, %v3055_v28  ;;  %v3105_v41 = vmul.f32 %v5468_v14, %v5496_v1  ;;  %v3114_v9 = vrot.slane %v5486_v37, 4  ;;  %v3145_v22 = vmul.f32 0.0, %v5488_v38  ;;  %v4023_v54 = vld [vmem:[%s5690_s18] ss:$0 sm:$0xff]  ;;  %s1093_s18 = scalar_lea.vmem %s5022_s12, %s4080_s22 }
0x11e8   : > { %v3042_v44 = vadd.f32 %v3040_v0, %v3034_v26  ;;  %v3043_v45 = vadd.f32 %v3041_v13, %v3035_v36  ;;  %v3058_v53 = vsel %vm2878_vm5, %v3055_v28, %v3057_v33  ;;  %v3092_v46 = vrot.slane %v3086_v42, 3  ;;  %v4021_v0 = vld [vmem:[%s5688_s0] ss:$0 sm:$0xff]  ;;  %s5694_s0 = sld [smem:[#allocation28_spill]] }
0x11e9   : > { %v3075_v48 = vsel %vm2926_vm6, %v3073_v62, %v3074_v39  ;;  %v3077_v32 = vsel %vm2926_vm6, %v3074_v39, %v3076_v21  ;;  %v3093_v50 = vrot.slane %v3087_v35, 3  ;;  %v3106_v51 = vmul.f32 %v5468_v14, %v5499_v60 }
0x11ea   : > { %v3061_v37 = vadd.f32 %v3056_v40, %v3042_v44  ;;  %v3062_v56 = vadd.f32 %v3058_v53, %v3043_v45  ;;  %v3124_v59 = vmul.f32 %v5471_v27, %v5496_v1  ;;  %v3125_v6 = vmul.f32 %v5471_v27, %v5499_v60  ;;  %v4026_v44 = vld [vmem:[%s5691_s26] ss:$0 sm:$0xff] }
0x11eb   : > { %v3111_v33 = vrot.slane %v3105_v41, 4  ;;  %v3112_v61 = vrot.slane %v3106_v51, 4  ;;  %v3143_v47 = vmul.f32 %v5488_v38, %v5496_v1  ;;  %v3144_v16 = vmul.f32 %v5488_v38, %v5499_v60 }
0x11ec   : > { %v3080_v21 = vadd.f32 %v3075_v48, %v3061_v37  ;;  %v3081_v7 = vadd.f32 %v3077_v32, %v3062_v56  ;;  %v3133_v14 = vrot.slane %v5491_v43, 5  ;;  %v3094_v29 = vsel %vm2946_vm7, %v3092_v46, %v3093_v50  ;;  %v4536_v56 = vld [vmem:[%s5692_s11 + $0x70] ss:$8 sps:$4 sm:$0xff]  }
0x11ed   : > { %v3096_v52 = vsel %vm2946_vm7, %v3093_v50, %v3095_v34  ;;  %v3130_v8 = vrot.slane %v3124_v59, 5  ;;  %v3131_v27 = vrot.slane %v3125_v6, 5  ;;  %v3152_v11 = vrot.slane %v3145_v22, 6  ;;  %v4538_v59 = vld [vmem:[%s5692_s11 + $0x74] ss:$8 sps:$4 sm:$0xff]  }
0x11ee   : > { %v3099_v49 = vadd.f32 %v3094_v29, %v3080_v21  ;;  %v3100_v10 = vadd.f32 %v3096_v52, %v3081_v7  ;;  %v3113_v1 = vsel %vm2966_vm8, %v3111_v33, %v3112_v61  ;;  %v3115_v38 = vsel %vm2966_vm8, %v3112_v61, %v3114_v9  ;;  %3463 = vmatprep.subr.bf16.mxu1 %v4538_v59  ;;  %v4539_v7 = vld [vmem:[%s5692_s11 + $0x60] ss:$8 sps:$4 sm:$0xff]   ;;  %v4542_v29 = vld [vmem:[%s5692_s11 + $0x50] ss:$8 sps:$4 sm:$0xff]   ;;  %v4544_v52 = vld [vmem:[%s5692_s11 + $0x54] ss:$8 sps:$4 sm:$0xff]  }
0x11ef   : > { %v3149_v60 = vrot.slane %v3143_v47, 6  ;;  %v3150_v43 = vrot.slane %v3144_v16, 6  ;;  %v3132_v5 = vsel %vm2986_vm9, %v3130_v8, %v3131_v27  ;;  %v3134_v34 = vsel %vm2986_vm9, %v3131_v27, %v3133_v14  ;;  %3464 = vmatpush1.bf16.msra.mxu1 %v4536_v56  ;;  %v4541_v14 = vld [vmem:[%s5692_s11 + $0x64] ss:$8 sps:$4 sm:$0xff]   ;;  %v4545_v27 = vld [vmem:[%s5692_s11 + $0x40] ss:$8 sps:$4 sm:$0xff]  }
0x11f0   : > { %v3118_v30 = vadd.f32 %v3113_v1, %v3099_v49  ;;  %v3119_v12 = vadd.f32 %v3115_v38, %v3100_v10  ;;  %3465 = vmatprep.subr.bf16.mxu1 %v4541_v14  ;;  %v4547_v8 = vld [vmem:[%s5692_s11 + $0x44] ss:$8 sps:$4 sm:$0xff]   ;;  %v4550_v49 = vld [vmem:[%s5692_s11 + $0x34] ss:$8 sps:$4 sm:$0xff]   ;;  %v4548_v10 = vld [vmem:[%s5692_s11 + $0x30] ss:$8 sps:$4 sm:$0xff]  }
0x11f1   : > { %v3151_v18 = vsel %vm3006_vm10, %v3149_v60, %v3150_v43  ;;  %v3153_v19 = vsel %vm3006_vm10, %v3150_v43, %v3152_v11  ;;  %v4553_v11 = vld [vmem:[%s5692_s11 + $0x24] ss:$8 sps:$4 sm:$0xff]   ;;  %v4551_v1 = vld [vmem:[%s5692_s11 + $0x20] ss:$8 sps:$4 sm:$0xff]   ;;  %v4556_v38 = vld [vmem:[%s5692_s11 + $0x14] ss:$8 sps:$4 sm:$0xff]  }
0x11f2   : > { %v3137_v2 = vadd.f32 %v3132_v5, %v3118_v30  ;;  %v3138_v17 = vadd.f32 %v3134_v34, %v3119_v12  ;;  %v4554_v60 = vld [vmem:[%s5692_s11 + $0x10] ss:$8 sps:$4 sm:$0xff]   ;;  %v4559_v43 = vld [vmem:[%s5692_s11 + $0x4] ss:$8 sps:$4 sm:$0xff]   ;;  %v4557_v30 = vld [vmem:[%s5692_s11] ss:$8 sps:$4 sm:$0xff]  }
0x11f3   : > { %3466 = vmatpush1.bf16.msra.mxu1 %v4539_v7 }
0x11f4   : > { %v3156_v20 = vadd.f32 %v3151_v18, %v3137_v2  ;;  %v3157_v31 = vadd.f32 %v3153_v19, %v3138_v17  ;;  %3467 = vmatprep.subr.bf16.mxu1 %v4544_v52 }
0x11f6   : > { %v3165_v57 = vadd.f32 %v4021_v0, %v3156_v20  ;;  %v3166_v23 = vadd.f32 %v4021_v0, %v3157_v31  ;;  %v4035_v20 = vld [vmem:[%s5693_s2] ss:$0 sm:$0xff] }
0x11f7   : > { %3468 = vmatpush1.bf16.msra.mxu1 %v4542_v29 }
0x11f8   : > { %v3174_v4 = vmul.f32 %v4022_v15, %v3165_v57  ;;  %v3175_v24 = vmul.f32 %v4022_v15, %v3166_v23  ;;  %3469 = vmatprep.subr.bf16.mxu1 %v4547_v8  ;;  %v4036_v23 = vld [vmem:[#allocation2] ss:$0 sm:$0xff] }
0x11fa   : > { %v3183_v25 = vadd.f32 %v4023_v54, %v3174_v4  ;;  %v3184_v28 = vadd.f32 %v4023_v54, %v3175_v24 }
0x11fb   : > { %3470 = vmatpush1.bf16.msra.mxu1 %v4545_v27 }
0x11fc   : > { %v4024_v62 = vmul.f32 -1.442695, %v3183_v25  ;;  %v4025_v42 = vmul.f32 -1.442695, %v3184_v28  ;;  %3471 = vmatprep.subr.bf16.mxu1 %v4550_v49 }
0x11fe   : > { %4644 = vpow2.f32 %v4024_v62  ;;  %v4561_v62 = vld [vmem:[%s5694_s0 + $0x38] sm:$0xff]  }
0x11ff   : > { %4646 = vpow2.f32 %v4025_v42  ;;  %3472 = vmatpush1.bf16.msra.mxu1 %v4548_v10  ;;  %v4562_v42 = vld [vmem:[%s5694_s0 + $0x70] sm:$0xff]  }
0x1200   : > { %3473 = vmatprep.subr.bf16.mxu1 %v4553_v11 }
0x1203   : > { %3474 = vmatpush1.bf16.msra.mxu1 %v4551_v1 }
0x1204   : > { %3475 = vmatprep.subr.bf16.mxu1 %v4556_v38 }
0x1207   : > { %3476 = vmatpush1.bf16.msra.mxu1 %v4554_v60 }
0x1208   : > { %3477 = vmatprep.subr.bf16.mxu1 %v4559_v43 }
0x120b   : > { %v4645_v35 = vpop.eup %4644  ;;  %3478 = vmatpush1.bf16.msra.mxu1 %v4557_v30 }
0x120c   : > { %v4647_v26 = vpop.eup %4646  ;;  %v3191_v36 = vadd.f32 1.0, %v4645_v35  ;;  %v4563_v35 = vld [vmem:[%s5694_s0 + $0x30] sm:$0xff]  }
0x120d   : > { %v3192_v13 = vadd.f32 1.0, %v4647_v26  ;;  %v4564_v26 = vld [vmem:[%s5694_s0 + $0x68] sm:$0xff]  }
0x120e   : > { %4648 = vrcp.f32 %v3191_v36  ;;  %v4565_v36 = vld [vmem:[%s5694_s0 + $0x28] sm:$0xff]  }
0x120f   : > { %4650 = vrcp.f32 %v3192_v13  ;;  %v4566_v13 = vld [vmem:[%s5694_s0 + $0x60] sm:$0xff]  }
0x121b   : > { %v4649_v39 = vpop.eup %4648 }
0x121c   : > { %v4651_v40 = vpop.eup %4650  ;;  %v3197_v41 = vmul.f32 %v4649_v39, %v3183_v25  ;;  %v4567_v39 = vld [vmem:[%s5694_s0 + $0x20] sm:$0xff]  }
0x121d   : > { %v3198_v9 = vmul.f32 %v4651_v40, %v3184_v28  ;;  %v4560_v28 = vld [vmem:[%s5694_s0 + $0x78] sm:$0xff]  }
0x121e   : > { %4166 = vmatprep.subr.bf16.mxu0 %v4560_v28  ;;  %v4568_v40 = vld [vmem:[%s5694_s0 + $0x58] sm:$0xff]  }
0x121f   : > { %v3199_v22 = vpack.c.bf16 %v3198_v9, %v3197_v41  ;;  %v4569_v41 = vld [vmem:[%s5694_s0 + $0x18] sm:$0xff]   ;;  %v4570_v9 = vld [vmem:[%s5694_s0 + $0x50] sm:$0xff]  }
0x1221   : > { %4317 = vmatmul.mubr.bf16.vlgmr.msra.gmra.mxu0 %v3199_v22  ;;  %v4571_v22 = vld [vmem:[%s5694_s0 + $0x10] sm:$0xff]  }
0x1222   : > { %4167 = vmatpush3.bf16.msra.mxu0 %v4561_v62 }
0x1223   : > { %4168 = vmatprep.subr.bf16.mxu0 %v4562_v42 }
0x1226   : > { %4169 = vmatpush3.bf16.msra.mxu0 %v4563_v35 }
0x1227   : > { %4170 = vmatprep.subr.bf16.mxu0 %v4564_v26 }
0x122a   : > { %4171 = vmatpush3.bf16.msra.mxu0 %v4565_v36 }
0x122b   : > { %4172 = vmatprep.subr.bf16.mxu0 %v4566_v13 }
0x122e   : > { %4173 = vmatpush3.bf16.msra.mxu0 %v4567_v39 }
0x122f   : > { %4174 = vmatprep.subr.bf16.mxu0 %v4568_v40 }
0x1232   : > { %4175 = vmatpush3.bf16.msra.mxu0 %v4569_v41 }
0x1233   : > { %4176 = vmatprep.subr.bf16.mxu0 %v4570_v9 }
0x1236   : > { %4177 = vmatpush3.bf16.msra.mxu0 %v4571_v22 }
0x12e1   : > { %v3305_v45 = vpop.f32.mrf.mxu0 }
0x12e2   : > { %v3306_v53 = vadd.f32 %v4026_v44, %v3305_v45  ;;  %v4573_v45 = vld [vmem:[%s5694_s0 + $0x8] sm:$0xff]  }
0x12e3   : > { %v4318_v46 = vpop.f32.mrf.mxu0 }
0x12e4   : > { %v5591_v48 = vadd.f32 %v3306_v53, %v5395_v55  ;;  %v4574_v53 = vld [vmem:[%s5694_s0 + $0x40] sm:$0xff]  }
0x12e5   : > { %v3308_v32 = vpop.f32.mrf.mxu0  ;;  %v4575_v46 = vld [vmem:[%s5694_s0] sm:$0xff]  }
0x12e6   : > { %v3309_v50 = vadd.f32 %v4026_v44, %v3308_v32  ;;  %3316 = vadd.xlane.f32.xlu0 %v5591_v48  ;;  %v4572_v44 = vld [vmem:[%s5694_s0 + $0x48] sm:$0xff]   ;;  %v3371_v32 = vld [vmem:[%s5695_s23] sm:$0x3] }
0x12e7   : > { %v4319_v51 = vpop.f32.mrf.mxu0  ;;  %4178 = vmatprep.subr.bf16.mxu0 %v4572_v44 }
0x12e8   : > { %v5595_v37 = vadd.f32 %v3309_v50, %v5399_v58  ;;  %4179 = vmatpush3.bf16.msra.mxu0 %v4573_v45  ;;  %v3376_v50 = vrot.slane %v3371_v32, %v5158_v63  ;;  %v3380_v51 = vrot.slane %v3371_v32, %v5162_v3 }
0x12e9   : > { %4180 = vmatprep.subr.bf16.mxu0 %v4574_v53  ;;  %v4074_v53 = vld [vmem:[#allocation6] ss:$0 sm:$0xff] }
0x12ea   : > { %3318 = vadd.xlane.f32.xlu1 %v5595_v37 }
0x12ec   : > { %4181 = vmatpush3.bf16.msra.mxu0 %v4575_v46 }
0x136f   : > { %v3317_v55 = vpop.xlane.xlu0 %3316 }
0x1370   : > { %v3320_v6 = vmul.f32 0.0078125, %v3317_v55 }
0x1372   : > { %v3322_v33 = vsub.f32 %v5591_v48, %v3320_v6 }
0x1373   : > { %v3319_v61 = vpop.xlane.xlu1 %3318 }
0x1374   : > { %v3321_v47 = vmul.f32 0.0078125, %v3319_v61  ;;  %v3324_v58 = vmul.f32 %v3322_v33, %v3322_v33 }
0x1376   : > { %v3323_v16 = vsub.f32 %v5595_v37, %v3321_v47  ;;  %3326 = vadd.xlane.f32.xlu0 %v3324_v58 }
0x1378   : > { %v3325_v21 = vmul.f32 %v3323_v16, %v3323_v16 }
0x137a   : > { %3328 = vadd.xlane.f32.xlu1 %v3325_v21 }
0x13ff   : > { %v3327_v12 = vpop.xlane.xlu0 %3326 }
0x1400   : > { %v3330_v5 = vmul.f32 0.0078125, %v3327_v12 }
0x1402   : > { %v3332_v34 = vadd.f32 1e-05, %v3330_v5 }
0x1403   : > { %v3329_v2 = vpop.xlane.xlu1 %3328 }
0x1404   : > { %4652 = vrsqrt.f32 %v3332_v34  ;;  %v3331_v17 = vmul.f32 0.0078125, %v3329_v2 }
0x1406   : > { %v3333_v18 = vadd.f32 1e-05, %v3331_v17 }
0x1408   : > { %4654 = vrsqrt.f32 %v3333_v18  ;;  %v4057_v18 = vld [vmem:[#allocation4] ss:$0 sm:$0xff] }
0x1411   : > { %v4653_v19 = vpop.eup %4652 }
0x1412   : > { %v3336_v0 = vmul.f32 %v4653_v19, %v3322_v33 }
0x1414   : > { %v3344_v57 = vmul.f32 %v4035_v20, %v3336_v0 }
0x1415   : > { %v4655_v31 = vpop.eup %4654 }
0x1416   : > { %v3337_v15 = vmul.f32 %v4655_v31, %v3323_v16  ;;  %v3352_v4 = vadd.f32 %v4036_v23, %v3344_v57 }
0x1418   : > { %v3345_v54 = vmul.f32 %v4035_v20, %v3337_v15 }
0x141a   : > { %v3353_v24 = vadd.f32 %v4036_v23, %v3345_v54 }
0x141c   : > { %v3354_v25 = vpack.c.bf16 %v3353_v24, %v3352_v4 }
0x141e   : > { %3496 = vmatmul.mubr.bf16.vlgmr.msra.gmra.mxu1 %v3354_v25 }
0x14de   : > { %v3497_v56 = vpop.f32.mrf.mxu1 }
0x14df   : > { %v3498_v59 = vadd.f32 %v3497_v56, %v3376_v50 }
0x14e0   : > { %v3499_v55 = vpop.f32.mrf.mxu1 }
0x14e1   : > { %v4053_v6 = vmul.f32 -1.442695, %v3498_v59  ;;  %v3500_v33 = vadd.f32 %v3499_v55, %v3380_v51 }
0x14e2   : > { %v3501_v61 = vpop.f32.mrf.mxu1 }
0x14e3   : > { %v4054_v47 = vmul.f32 -1.442695, %v3500_v33  ;;  %v3502_v58 = vadd.f32 %v3501_v61, %v3376_v50  ;;  %4656 = vpow2.f32 %v4053_v6 }
0x14e4   : > { %v3503_v16 = vpop.f32.mrf.mxu1 }
0x14e5   : > { %4658 = vpow2.f32 %v4054_v47  ;;  %v4055_v21 = vmul.f32 -1.442695, %v3502_v58  ;;  %v3504_v7 = vadd.f32 %v3503_v16, %v3380_v51  ;;  %v4075_v51 = vld [vmem:[#allocation7] ss:$0 sm:$0xff] }
0x14e7   : > { %4660 = vpow2.f32 %v4055_v21  ;;  %v4056_v14 = vmul.f32 -1.442695, %v3504_v7 }
0x14e9   : > { %4662 = vpow2.f32 %v4056_v14 }
0x14f0   : > { %v4657_v29 = vpop.eup %4656 }
0x14f1   : > { %v3518_v8 = vadd.f32 1.0, %v4657_v29 }
0x14f2   : > { %v4659_v63 = vpop.eup %4658 }
0x14f3   : > { %v3519_v52 = vadd.f32 1.0, %v4659_v63 }
0x14f4   : > { %v4661_v3 = vpop.eup %4660 }
0x14f5   : > { %v3520_v27 = vadd.f32 1.0, %v4661_v3  ;;  %4664 = vrcp.f32 %v3519_v52 }
0x14f6   : > { %v4663_v49 = vpop.eup %4662 }
0x14f7   : > { %4666 = vrcp.f32 %v3520_v27  ;;  %v3521_v10 = vadd.f32 1.0, %v4663_v49 }
0x14f8   : > { %4668 = vrcp.f32 %v3518_v8 }
0x14f9   : > { %4670 = vrcp.f32 %v3521_v10 }
0x1502   : > { %v4665_v11 = vpop.eup %4664 }
0x1503   : > { %v3531_v30 = vmul.f32 %v4665_v11, %v3500_v33 }
0x1504   : > { %v4667_v1 = vpop.eup %4666 }
0x1505   : > { %v4669_v38 = vpop.eup %4668  ;;  %v3532_v43 = vmul.f32 %v4667_v1, %v3502_v58 }
0x1506   : > { %v4671_v60 = vpop.eup %4670  ;;  %v3530_v5 = vmul.f32 %v4669_v38, %v3498_v59 }
0x1507   : > { %v3533_v12 = vmul.f32 %v4671_v60, %v3504_v7 }
0x1508   : > { %v3534_v2 = vpack.c.bf16 %v3532_v43, %v3530_v5 }
0x1509   : > { %v3535_v34 = vpack.c.bf16 %v3533_v12, %v3531_v30 }
0x150b   : > { %3703 = vmatprep.mubr.bf16.mxu0 %v3535_v34 }
0x150c   : > { %3704 = vmatmul.mubr.bf16.vlgmr.msra.gmra.mxu0 %v3534_v2 }
0x15cc   : > { %v4182_v17 = vpop.f32.mrf.mxu0 }
0x15ce   : > { %v4183_v19 = vpop.f32.mrf.mxu0 }
0x15cf   : > { %v4184_v0 = vadd.f32 %v4183_v19, %v4182_v17 }
0x15d0   : > { %v4185_v20 = vpop.f32.mrf.mxu0 }
0x15d1   : > { %v3706_v31 = vadd.f32 %v4184_v0, %v4057_v18 }
0x15d2   : > { %v4186_v15 = vpop.f32.mrf.mxu0 }
0x15d3   : > { %v3712_v57 = vmul.f32 0.5, %v3706_v31  ;;  %v4187_v23 = vadd.f32 %v4186_v15, %v4185_v20 }
0x15d5   : > { %v3709_v54 = vadd.f32 %v4187_v23, %v4057_v18  ;;  %v3714_v4 = vadd.f32 %v3712_v57, %v5591_v48 }
0x15d7   : > { %v3713_v24 = vmul.f32 0.5, %v3709_v54  ;;  %3718 = vadd.xlane.f32.xlu0 %v3714_v4 }
0x15d9   : > { %v3715_v25 = vadd.f32 %v3713_v24, %v5595_v37 }
0x15db   : > { %3720 = vadd.xlane.f32.xlu1 %v3715_v25 }
0x1660   : > { %v3719_v28 = vpop.xlane.xlu0 %3718 }
0x1661   : > { %v3722_v62 = vmul.f32 0.0078125, %v3719_v28 }
0x1663   : > { %v3724_v42 = vsub.f32 %v3714_v4, %v3722_v62 }
0x1664   : > { %v3721_v35 = vpop.xlane.xlu1 %3720 }
0x1665   : > { %v3723_v26 = vmul.f32 0.0078125, %v3721_v35  ;;  %v3726_v36 = vmul.f32 %v3724_v42, %v3724_v42 }
0x1667   : > { %v3725_v13 = vsub.f32 %v3715_v25, %v3723_v26  ;;  %3728 = vadd.xlane.f32.xlu0 %v3726_v36 }
0x1669   : > { %v3727_v39 = vmul.f32 %v3725_v13, %v3725_v13 }
0x166b   : > { %3730 = vadd.xlane.f32.xlu1 %v3727_v39 }
0x16f0   : > { %v3729_v40 = vpop.xlane.xlu0 %3728 }
0x16f1   : > { %v3732_v41 = vmul.f32 0.0078125, %v3729_v40 }
0x16f3   : > { %v3734_v9 = vadd.f32 1e-05, %v3732_v41 }
0x16f4   : > { %v3731_v48 = vpop.xlane.xlu1 %3730 }
0x16f5   : > { %4672 = vrsqrt.f32 %v3734_v9  ;;  %v3733_v22 = vmul.f32 0.0078125, %v3731_v48 }
0x16f7   : > { %v3735_v37 = vadd.f32 1e-05, %v3733_v22 }
0x16f9   : > { %4674 = vrsqrt.f32 %v3735_v37 }
0x1702   : > { %v4673_v44 = vpop.eup %4672 }
0x1703   : > { %v3738_v45 = vmul.f32 %v4673_v44, %v3724_v42 }
0x1705   : > { %v3746_v32 = vmul.f32 %v4074_v53, %v3738_v45 }
0x1706   : > { %v4675_v46 = vpop.eup %4674 }
0x1707   : > { %v3739_v50 = vmul.f32 %v4675_v46, %v3725_v13  ;;  %v3754_v59 = vadd.f32 %v4075_v51, %v3746_v32 }
0x1709   : > { %v3747_v56 = vmul.f32 %v4074_v53, %v3739_v50 }
0x170b   : > { %v3755_v55 = vadd.f32 %v4075_v51, %v3747_v56 }
0x170d   : > { %v4091_v6 = vpack.c.bf16 %v3755_v55, %v3754_v59 }
0x170f   : > { %4092 = vst [vmem:[%s1093_s18] sm:$0xff] %v4091_v6  }
0x1710 PF: > { %s82_s15 = sadd.s32 1, %s4798_s15  }
0x1711   : > { %p79_p1 = scmp.ge.s32.totalorder %s82_s15, 4  }
0x1713   :  { %81 = sbr.rel (!%p79_p1) target bundleno = 63 (0x3f), region = 237 }
0x1718   :  { %3787 = vsyncpa [#allocation3], 1 }
0x1719   :  { %3789 = vsyncpa [#allocation3 + $0x1], 1 }
0x171a   :  { %3790 = vsyncpa [#allocation5], 1 }
0x171b   :  { %3791 = vsyncpa [#allocation8], 1 }

// kernel: encoder_forward.10
= control target key start
LH: loop header
LB: loop body
LE: loop exit
PB: predicated region body
PF: predicated region fallthrough
CT: control target
= control target key end

     0   :  { %s5172_s6 = smov 1   ;;  %s5173_s10 = smov 2   ;;  %s6066_s0 = inlined_call_operand.smem [shape: u32[35], index: -1, kind: input, shape index: {}] }
   0x1   :  { %s5230_s5 = sld [smem:[%s6066_s0]]   ;;  %s5174_s14 = smov 3  }
   0x2   :  { %s5235_s9 = sld [smem:[%s6066_s0 + %s5172_s6]]   ;;  %s5175_s18 = smov 4  }
   0x3   :  { %s5240_s13 = sld [smem:[%s6066_s0 + %s5173_s10]]   ;;  %s5176_s22 = smov 5  }
   0x4   :  { %s5245_s17 = sld [smem:[%s6066_s0 + %s5174_s14]]   ;;  %s5177_s26 = smov 6  }
   0x5   :  { %s5250_s21 = sld [smem:[%s6066_s0 + %s5175_s18]]   ;;  %s5178_s30 = smov 7  }
   0x6   :  { %s5255_s25 = sld [smem:[%s6066_s0 + %s5176_s22]]   ;;  %s5179_s4 = smov 8  }
   0x7   :  { %s5260_s29 = sld [smem:[%s6066_s0 + %s5177_s26]]   ;;  %s5180_s10 = smov 9  }
   0x8   :  { %6077 = sst [smem:[#allocation24_spill]] %s5235_s9  ;;  %s5181_s15 = smov 10  }
   0x9   :  { %s5265_s3 = sld [smem:[%s6066_s0 + %s5178_s30]]   ;;  %s5182_s20 = smov 11  }
   0xa   :  { %s5270_s8 = sld [smem:[%s6066_s0 + %s5179_s4]]   ;;  %s5183_s26 = smov 12  }
   0xb   :  { %s5275_s14 = sld [smem:[%s6066_s0 + %s5180_s10]]   ;;  %s5184_s1 = smov 13  }
   0xc   :  { %s5280_s19 = sld [smem:[%s6066_s0 + %s5181_s15]]   ;;  %s5185_s7 = smov 14  }
   0xd   :  { %s5285_s24 = sld [smem:[%s6066_s0 + %s5182_s20]]   ;;  %s5186_s15 = smov 15  }
   0xe   :  { %s5290_s30 = sld [smem:[%s6066_s0 + %s5183_s26]]   ;;  %s5187_s22 = smov 16  }
   0xf   :  { %s5295_s6 = sld [smem:[%s6066_s0 + %s5184_s1]]   ;;  %s5188_s28 = smov 17  }
  0x10   :  { %6078 = sst [smem:[#allocation25_spill]] %s5270_s8 }
  0x11   :  { %6079 = sst [smem:[#allocation26_spill]] %s5275_s14 }
  0x12   :  { %6080 = sst [smem:[#allocation27_spill]] %s5280_s19 }
  0x13   :  { %6081 = sst [smem:[#allocation28_spill]] %s5285_s24 }
  0x14   :  { %6082 = sst [smem:[#allocation29_spill]] %s5290_s30 }
  0x15   :  { %6083 = sst [smem:[#allocation30_spill]] %s5295_s6 }
  0x16   :  { %s5300_s12 = sld [smem:[%s6066_s0 + %s5185_s7]]   ;;  %s5189_s7 = smov 18  }
  0x17   :  { %s5305_s20 = sld [smem:[%s6066_s0 + %s5186_s15]]   ;;  %s5190_s15 = smov 19  }
  0x18   :  { %s5310_s27 = sld [smem:[%s6066_s0 + %s5187_s22]]   ;;  %s5191_s22 = smov 20  }
  0x19   :  { %s5315_s4 = sld [smem:[%s6066_s0 + %s5188_s28]]   ;;  %s5192_s28 = smov 21  }
  0x1a   :  { %s5325_s30 = sld [smem:[%s6066_s0 + %s5190_s15]]   ;;  %s5194_s15 = smov 23  }
  0x1b   :  { %s5330_s6 = sld [smem:[%s6066_s0 + %s5191_s22]]   ;;  %s5195_s22 = smov 24  }
  0x1c   :  { %6084 = sst [smem:[#allocation31_spill]] %s5300_s12 }
  0x1d   :  { %s5320_s12 = sld [smem:[%s6066_s0 + %s5189_s7]]   ;;  %s5193_s7 = smov 22  }
  0x1e   :  { %s5335_s24 = sld [smem:[%s6066_s0 + %s5192_s28]]   ;;  %s5196_s28 = smov 25  }
  0x1f   :  { %s5355_s9 = sld [smem:[%s6066_s0 + %s5196_s28]]   ;;  %s5200_s28 = smov 29  }
  0x20   :  { %6086 = sst [smem:[#allocation33_spill]] %s5325_s30 }
  0x21   :  { %6087 = sst [smem:[#allocation34_spill]] %s5330_s6 }
  0x22   :  { %s5345_s30 = sld [smem:[%s6066_s0 + %s5194_s15]]   ;;  %s5198_s15 = smov 27  }
  0x23   :  { %6085 = sst [smem:[#allocation32_spill]] %s5320_s12 }
  0x24   :  { %s5340_s12 = sld [smem:[%s6066_s0 + %s5193_s7]]   ;;  %s5197_s7 = smov 26  }
  0x25   :  { %s5350_s6 = sld [smem:[%s6066_s0 + %s5195_s22]]   ;;  %s5199_s22 = smov 28  }
  0x26   :  { %s5375_s14 = sld [smem:[%s6066_s0 + %s5200_s28]]   ;;  %s5204_s28 = smov 33  }
  0x28   :  { %6089 = sst [smem:[#allocation36_spill]] %s5345_s30 }
  0x29   :  { %s5365_s30 = sld [smem:[%s6066_s0 + %s5198_s15]]   ;;  %s5202_s15 = smov 31  }
  0x2a   :  { %6088 = sst [smem:[#allocation35_spill]] %s5340_s12 }
  0x2b   :  { %6090 = sst [smem:[#allocation37_spill]] %s5350_s6 }
  0x2c   :  { %s5360_s12 = sld [smem:[%s6066_s0 + %s5197_s7]]   ;;  %s5201_s7 = smov 30  }
  0x2d   :  { %s5370_s6 = sld [smem:[%s6066_s0 + %s5199_s22]]   ;;  %s5203_s22 = smov 32  }
  0x2e   :  { %6093 = sst [smem:[#allocation40_spill]] %s5375_s14 }
  0x2f   :  { %s5380_s8 = sld [smem:[%s6066_s0 + %s5201_s7]]   ;;  %s5205_s7 = smov 34  }
  0x30   :  { %s5385_s19 = sld [smem:[%s6066_s0 + %s5202_s15]]  }
  0x31   :  { %s5395_s14 = sld [smem:[%s6066_s0 + %s5204_s28]]  }
  0x32   :  { %6091 = sst [smem:[#allocation38_spill]] %s5360_s12 }
  0x33   :  { %6092 = sst [smem:[#allocation39_spill]] %s5370_s6 }
  0x34   :  { %s5390_s6 = sld [smem:[%s6066_s0 + %s5203_s22]]  }
  0x35   :  { %6094 = sst [smem:[#allocation41_spill]] %s5380_s8 }
  0x36   :  { %s5400_s8 = sld [smem:[%s6066_s0 + %s5205_s7]]  }
  0x37   :  { %74 = vsyncpa [#allocation3], 0 }
  0x38   :  { %75 = vsyncpa [#allocation5], 0 }
  0x39   :  { %76 = vsyncpa [#allocation8], 0 }
  0x3a   :  { %77 = vsyncpa [#allocation11], 0 }
  0x3b   :  { %78 = vsyncpa [#allocation14], 0 }
  0x3c   :  { %79 = vsyncpa [#allocation17], 0  ;;  %s5402_s15 = smov 0  }
  0x3d LB: > { %s5206_s16 = smov [#allocation4]   ;;  %s5408_s0 = sadd.s32 4294967295, %s5170_s15   ;;  %s5170_s15 = sphi %s5402_s15, %s85_s15  }
  0x3e   : > { %s901_s18 = sshll.u32 %s5206_s16, 4  ;;  %p4030_p0 = scmp.ge.s32.totalorder %s5170_s15, 1  ;;  %s902_s18 = int_to_ptr.vmem [resolvable:$true] %s901_s18 }
  0x3f   : > { %p835_p1 = scmp.lt.s32.totalorder %s5170_s15, 3  ;;  %p6075_p2 = scmp.eq.s32.totalorder %s5408_s0, 0 }
  0x40   : > { %s5207_s23 = smov [#allocation7]   ;;  %s5208_s28 = smov [#allocation10]  }
  0x41   : > { %p5413_p3 = pnand %p4030_p0, %p835_p1  ;;  %s932_s26 = sshll.u32 %s5207_s23, 4  ;;  %s5419_s26 = int_to_ptr.vmem [resolvable:$true] %s932_s26 }
  0x42   : > { %s963_s1 = sshll.u32 %s5208_s28, 4  ;;  %s5209_s7 = smov [#allocation13]   ;;  %s5427_s1 = int_to_ptr.vmem [resolvable:$true] %s963_s1 }
  0x43   : > { %s6095_s22 = scalar_select %p5413_p3, 1, 0 }
  0x44   : > { %p4504_p4 = pneg %p5413_p3  ;;  %s994_s10 = sshll.u32 %s5209_s7, 4  ;;  %s5429_s10 = int_to_ptr.vmem [resolvable:$true] %s994_s10 }
  0x45   : > { %s4891_s16 = scalar_lea.vmem %s902_s18, 16  ;;  %s4898_s23 = scalar_lea.vmem %s902_s18, 32 }
  0x46   : > { %p5423_p5 = pnand %p6075_p2, %p4504_p4  ;;  %p4892_p7 = scmp.ne.s32.totalorder %s902_s18, %s4891_s16 }
  0x47   : > { %p4899_p10 = scmp.lt.s32.totalorder %s902_s18, %s902_s18  ;;  %p4900_p11 = scmp.lt.s32.totalorder %s4898_s23, %s4891_s16 }
  0x48   : > { %p5433_p6 = pneg %p5423_p5 }
  0x49   : > { %p4901_p12 = por %p4900_p11, %p4899_p10 }
  0x4a   : > { %p4894_p8 = pnand %p4892_p7, %p5433_p6 }
  0x4c   : > { %p4895_p9 = pneg %p4894_p8 }
  0x4e   : > { %p4902_p13 = pnand %p4901_p12, %p4895_p9 }
  0x50   : > { %4905 = shalt.err (!%p4902_p13)
}
  0x51   : > { %4510 = dma.hbm_to_vmem [thread:$0]  (!%p5423_p5), %s5310_s27, 16, %s902_s18, [#allocation5]  }
  0x52   : > { %s4917_s28 = scalar_lea.vmem %s5419_s26, 16  ;;  %s4924_s7 = scalar_lea.vmem %s5419_s26, 32 }
  0x53   : > { %p4918_p0 = scmp.ne.s32.totalorder %s5419_s26, %s4917_s28  ;;  %p4925_p7 = scmp.lt.s32.totalorder %s5419_s26, %s5419_s26 }
  0x54   : > { %p4926_p8 = scmp.lt.s32.totalorder %s4924_s7, %s4917_s28 }
  0x55   : > { %p4920_p1 = pnand %p4918_p0, %p5433_p6 }
  0x56   : > { %p4927_p9 = por %p4926_p8, %p4925_p7 }
  0x57   : > { %p4921_p4 = pneg %p4920_p1 }
  0x59   : > { %p4928_p10 = pnand %p4927_p9, %p4921_p4 }
  0x5b   : > { %4931 = shalt.err (!%p4928_p10)
}
  0x5c   : > { %4516 = dma.hbm_to_vmem [thread:$0]  (!%p5423_p5), %s5335_s24, 16, %s5419_s26, [#allocation8]  }
  0x5d   : > { %s4943_s18 = scalar_lea.vmem %s5427_s1, 16  ;;  %s4950_s16 = scalar_lea.vmem %s5427_s1, 32 }
  0x5e   : > { %p4944_p11 = scmp.ne.s32.totalorder %s5427_s1, %s4943_s18  ;;  %p4951_p0 = scmp.lt.s32.totalorder %s5427_s1, %s5427_s1 }
  0x5f   : > { %p4952_p1 = scmp.lt.s32.totalorder %s4950_s16, %s4943_s18 }
  0x60   : > { %p4946_p12 = pnand %p4944_p11, %p5433_p6 }
  0x61   : > { %p4953_p4 = por %p4952_p1, %p4951_p0 }
  0x62   : > { %p4947_p13 = pneg %p4946_p12 }
  0x64   : > { %p4954_p7 = pnand %p4953_p4, %p4947_p13 }
  0x66   : > { %4957 = shalt.err (!%p4954_p7)
}
  0x67   : > { %s6098_s12 = sld [smem:[#allocation38_spill]]  ;;  %s4969_s26 = scalar_lea.vmem %s5429_s10, 16 }
  0x68   : > { %p4970_p8 = scmp.ne.s32.totalorder %s5429_s10, %s4969_s26  ;;  %s4976_s23 = scalar_lea.vmem %s5429_s10, 32 }
  0x69   : > { %p4977_p11 = scmp.lt.s32.totalorder %s5429_s10, %s5429_s10  ;;  %p4978_p12 = scmp.lt.s32.totalorder %s4976_s23, %s4969_s26 }
  0x6a   : > { %p4972_p9 = pnand %p4970_p8, %p5433_p6 }
  0x6b   : > { %p4979_p13 = por %p4978_p12, %p4977_p11 }
  0x6c   : > { %p4973_p10 = pneg %p4972_p9 }
  0x6d   : > { %4522 = dma.hbm_to_vmem [thread:$0]  (!%p5423_p5), %s6098_s12, 16, %s5427_s1, [#allocation11]  }
  0x6e   : > { %p4980_p0 = pnand %p4979_p13, %p4973_p10 }
  0x70   : > { %4983 = shalt.err (!%p4980_p0)
}
  0x71   : > { %4528 = dma.hbm_to_vmem [thread:$0]  (!%p5423_p5), %s5385_s19, 16, %s5429_s10, [#allocation14]  }
  0x72   : > { %s5210_s28 = smov [#allocation2]   ;;  %s5211_s7 = smov [#allocation6]  }
  0x73   : > { %s890_s1 = sshll.u32 %s5210_s28, 4  ;;  %s912_s18 = sshll.u32 %s5211_s7, 4  ;;  %s891_s1 = int_to_ptr.vmem [resolvable:$true] %s890_s1  ;;  %s913_s18 = int_to_ptr.vmem [resolvable:$true] %s912_s18 }
  0x74   : > { %s4995_s16 = scalar_lea.vmem %s891_s1, 16  ;;  %s5002_s26 = scalar_lea.vmem %s891_s1, 32 }
  0x75   : > { %p4996_p1 = scmp.ne.s32.totalorder %s891_s1, %s4995_s16  ;;  %p5003_p8 = scmp.lt.s32.totalorder %s891_s1, %s891_s1 }
  0x76   : > { %p5004_p9 = scmp.lt.s32.totalorder %s5002_s26, %s4995_s16 }
  0x77   : > { %p4998_p4 = pnand %p4996_p1, %p5433_p6 }
  0x78   : > { %p5005_p10 = por %p5004_p9, %p5003_p8 }
  0x79   : > { %p4999_p7 = pneg %p4998_p4 }
  0x7b   : > { %p5006_p11 = pnand %p5005_p10, %p4999_p7 }
  0x7d   : > { %5009 = shalt.err (!%p5006_p11)
}
  0x7e   : > { %4507 = dma.hbm_to_vmem [thread:$0]  (!%p5423_p5), %s5305_s20, 16, %s891_s1, [#allocation3]  }
  0x7f   : > { %s5021_s10 = scalar_lea.vmem %s913_s18, 16  ;;  %s5028_s23 = scalar_lea.vmem %s913_s18, 32 }
  0x80   : > { %p5022_p12 = scmp.ne.s32.totalorder %s913_s18, %s5021_s10  ;;  %p5029_p1 = scmp.lt.s32.totalorder %s913_s18, %s913_s18 }
  0x81   : > { %p5030_p4 = scmp.lt.s32.totalorder %s5028_s23, %s5021_s10 }
  0x82   : > { %p5024_p13 = pnand %p5022_p12, %p5433_p6 }
  0x83   : > { %p5031_p2 = por %p5030_p4, %p5029_p1 }
  0x84   : > { %p5025_p0 = pneg %p5024_p13 }
  0x86   : > { %p5032_p3 = pnand %p5031_p2, %p5025_p0 }
  0x88   : > { %5035 = shalt.err (!%p5032_p3)
}
  0x89   : > { %4513 = dma.hbm_to_vmem [thread:$0]  (!%p5423_p5), %s5315_s4, 16, %s913_s18, [#allocation5]  }
  0x8a   : > { %s5212_s28 = smov [#allocation9]   ;;  %s5213_s1 = smov [#allocation12]  }
  0x8b   : > { %s952_s7 = sshll.u32 %s5212_s28, 4  ;;  %s974_s16 = sshll.u32 %s5213_s1, 4  ;;  %s953_s7 = int_to_ptr.vmem [resolvable:$true] %s952_s7  ;;  %s975_s16 = int_to_ptr.vmem [resolvable:$true] %s974_s16 }
  0x8c   : > { %s5047_s26 = scalar_lea.vmem %s953_s7, 16  ;;  %s5054_s12 = scalar_lea.vmem %s953_s7, 32 }
  0x8d   : > { %p5048_p7 = scmp.ne.s32.totalorder %s953_s7, %s5047_s26  ;;  %p5055_p10 = scmp.lt.s32.totalorder %s953_s7, %s953_s7 }
  0x8e   : > { %p5056_p11 = scmp.lt.s32.totalorder %s5054_s12, %s5047_s26 }
  0x8f   : > { %p5050_p8 = pnand %p5048_p7, %p5433_p6 }
  0x90   : > { %p5057_p2 = por %p5056_p11, %p5055_p10 }
  0x91   : > { %p5051_p9 = pneg %p5050_p8 }
  0x93   : > { %p5058_p3 = pnand %p5057_p2, %p5051_p9 }
  0x95   : > { %5061 = shalt.err (!%p5058_p3)
}
  0x96   : > { %4519 = dma.hbm_to_vmem [thread:$0]  (!%p5423_p5), %s5355_s9, 16, %s953_s7, [#allocation8]  }
  0x97   : > { %s5073_s18 = scalar_lea.vmem %s975_s16, 16  ;;  %s5080_s10 = scalar_lea.vmem %s975_s16, 32 }
  0x98   : > { %p5074_p12 = scmp.ne.s32.totalorder %s975_s16, %s5073_s18  ;;  %p5081_p1 = scmp.lt.s32.totalorder %s975_s16, %s975_s16 }
  0x99   : > { %p5082_p4 = scmp.lt.s32.totalorder %s5080_s10, %s5073_s18 }
  0x9a   : > { %p5076_p13 = pnand %p5074_p12, %p5433_p6 }
  0x9b   : > { %p5083_p7 = por %p5082_p4, %p5081_p1 }
  0x9c   : > { %p5077_p0 = pneg %p5076_p13 }
  0x9e   : > { %p5084_p8 = pnand %p5083_p7, %p5077_p0 }
  0xa0   : > { %5087 = shalt.err (!%p5084_p8)
}
  0xa1   : > { %4525 = dma.hbm_to_vmem [thread:$0]  (!%p5423_p5), %s5365_s30, 16, %s975_s16, [#allocation11]  }
  0xa2   : > { %s5214_s12 = smov [#allocation15]   ;;  %s5215_s28 = smov [#allocation16]  }
  0xa3   : > { %s1005_s23 = sshll.u32 %s5214_s12, 4  ;;  %s1016_s7 = sshll.u32 %s5215_s28, 4  ;;  %s1006_s23 = int_to_ptr.vmem [resolvable:$true] %s1005_s23  ;;  %s1017_s7 = int_to_ptr.vmem [resolvable:$true] %s1016_s7 }
  0xa4   : > { %s5099_s1 = scalar_lea.vmem %s1006_s23, 16  ;;  %s5106_s26 = scalar_lea.vmem %s1006_s23, 32 }
  0xa5   : > { %p5100_p9 = scmp.ne.s32.totalorder %s1006_s23, %s5099_s1  ;;  %p5107_p2 = scmp.lt.s32.totalorder %s1006_s23, %s1006_s23 }
  0xa6   : > { %p5108_p3 = scmp.lt.s32.totalorder %s5106_s26, %s5099_s1 }
  0xa7   : > { %p5102_p10 = pnand %p5100_p9, %p5433_p6 }
  0xa8   : > { %p5109_p12 = por %p5108_p3, %p5107_p2 }
  0xa9   : > { %p5103_p11 = pneg %p5102_p10 }
  0xab   : > { %p5110_p13 = pnand %p5109_p12, %p5103_p11 }
  0xad   : > { %5113 = shalt.err (!%p5110_p13)
}
  0xae   : > { %4531 = dma.hbm_to_vmem [thread:$0]  (!%p5423_p5), %s5390_s6, 16, %s1006_s23, [#allocation14]  }
  0xaf   : > { %s5125_s16 = scalar_lea.vmem %s1017_s7, 16  ;;  %s5132_s18 = scalar_lea.vmem %s1017_s7, 32 }
  0xb0   : > { %p5126_p0 = scmp.ne.s32.totalorder %s1017_s7, %s5125_s16  ;;  %p5133_p7 = scmp.lt.s32.totalorder %s1017_s7, %s1017_s7 }
  0xb1   : > { %p5134_p8 = scmp.lt.s32.totalorder %s5132_s18, %s5125_s16 }
  0xb2   : > { %p5128_p1 = pnand %p5126_p0, %p5433_p6 }
  0xb3   : > { %p5135_p9 = por %p5134_p8, %p5133_p7 }
  0xb4   : > { %p5129_p4 = pneg %p5128_p1 }
  0xb6   : > { %p5136_p10 = pnand %p5135_p9, %p5129_p4 }
  0xb8   : > { %5139 = shalt.err (!%p5136_p10)
}
  0xb9   : > { %4534 = dma.hbm_to_vmem [thread:$0]  (!%p5423_p5), %s5395_s14, 16, %s1017_s7, [#allocation17]  }
  0xba   : > { %p6099_p11 = scmp.ne.s32.totalorder %s6095_s22, 0 }
  0xbb   : > { %p6100_p2 = scmp.eq.s32.totalorder (!%p6099_p11), %s5408_s0, 0 }
  0xbc   : > { %1037 = sbr.rel (%p6099_p11) target bundleno = 5982 (0x175e), region = 156 }
  0xc1   : > { %5145 = dma.done.wait (%p6100_p2), [#allocation3], 16   ;;  %p6101_p3 = pmov %p6100_p2 }
  0xc2   : > { %p6102_p6 = pmov %p6100_p2 }
  0xc3   : > { %5147 = vsyncadd (%p6101_p3), [#allocation3], 4294967280 }
  0xc4   : > { %5149 = dma.done.wait (%p6102_p6), [#allocation5], 32   ;;  %p6103_p12 = pmov %p6100_p2 }
  0xc5   : > { %p6104_p13 = pmov %p6100_p2 }
  0xc6   : > { %5151 = vsyncadd (%p6103_p12), [#allocation5], 4294967264 }
  0xc7   : > { %5153 = dma.done.wait (%p6104_p13), [#allocation8], 32   ;;  %p6105_p5 = pmov %p6100_p2 }
  0xc8   : > { %p6106_p0 = pmov %p6100_p2 }
  0xc9   : > { %5155 = vsyncadd (%p6105_p5), [#allocation8], 4294967264 }
  0xca   : > { %5157 = dma.done.wait (%p6106_p0), [#allocation11], 32   ;;  %p6107_p1 = pmov %p6106_p0 }
  0xcb   : > { %p6108_p4 = pmov %p6106_p0 }
  0xcc   : > { %5159 = vsyncadd (%p6107_p1), [#allocation11], 4294967264 }
  0xcd   : > { %5161 = dma.done.wait (%p6108_p4), [#allocation14], 32   ;;  %p6109_p7 = pmov %p6106_p0 }
  0xce   : > { %p6110_p8 = pmov %p6106_p0 }
  0xcf   : > { %5163 = vsyncadd (%p6109_p7), [#allocation14], 4294967264 }
  0xd0   : > { %5165 = dma.done.wait (%p6110_p8), [#allocation17], 16   ;;  %p6111_p9 = pmov %p6106_p0 }
  0xd1   : > { %p1159_p10 = scmp.lt.s32.totalorder %s5408_s0, 1  ;;  %v4628_v3 = vld [vmem:[%s5250_s21 + $0x74] ss:$8 sps:$4 sm:$0xff]   ;;  %v4630_v4 = vld [vmem:[%s5250_s21 + $0x70] ss:$8 sps:$4 sm:$0xff]   ;;  %v5216_v22 = vmov 0   ;;  %v1234_v61 = vlaneseq }
  0xd2   : > { %5167 = vsyncadd (%p6111_p9), [#allocation17], 4294967280  ;;  %1324 = vmatprep.subr.bf16.mxu0 %v4628_v3  ;;  %v4631_v13 = vld [vmem:[%s5250_s21 + $0x64] ss:$8 sps:$4 sm:$0xff]   ;;  %v4633_v14 = vld [vmem:[%s5250_s21 + $0x60] ss:$8 sps:$4 sm:$0xff]   ;;  %1356 = vmatprep.mubr.bf16.mxu0 %v5216_v22 }
  0xd3   : > { %s6130_s0 = smov (!%p1159_p10, %s5408_s0), 1  ;;  %1325 = vmatpush1.bf16.msra.mxu0 %v4630_v4  ;;  %v4634_v15 = vld [vmem:[%s5250_s21 + $0x54] ss:$8 sps:$4 sm:$0xff]   ;;  %v4636_v16 = vld [vmem:[%s5250_s21 + $0x50] ss:$8 sps:$4 sm:$0xff]   ;;  %v4656_v49 = vld [vmem:[%s5260_s29 + $0x68] sm:$0xff]  }
  0xd4   : > { %s4224_s22 = sshll.u32 %s6130_s0, 3  ;;  %1326 = vmatprep.subr.bf16.mxu0 %v4631_v13  ;;  %v4637_v17 = vld [vmem:[%s5250_s21 + $0x44] ss:$8 sps:$4 sm:$0xff]   ;;  %v4639_v18 = vld [vmem:[%s5250_s21 + $0x40] ss:$8 sps:$4 sm:$0xff]   ;;  %v4652_v45 = vld [vmem:[%s5260_s29 + $0x78] sm:$0xff]  }
  0xd5   : > { %s1163_s2 = scalar_lea.vmem %s5230_s5, %s4224_s22  ;;  %v4640_v19 = vld [vmem:[%s5250_s21 + $0x34] ss:$8 sps:$4 sm:$0xff]   ;;  %v4642_v20 = vld [vmem:[%s5250_s21 + $0x30] ss:$8 sps:$4 sm:$0xff]   ;;  %v4643_v21 = vld [vmem:[%s5250_s21 + $0x24] ss:$8 sps:$4 sm:$0xff]   ;;  %4237 = vmatprep.subr.bf16.mxu1 %v4652_v45 }
  0xd6   : > { %v4229_v0 = vld [vmem:[%s1163_s2] sm:$0xff]   ;;  %v4646_v24 = vld [vmem:[%s5250_s21 + $0x14] ss:$8 sps:$4 sm:$0xff]   ;;  %v4648_v25 = vld [vmem:[%s5250_s21 + $0x10] ss:$8 sps:$4 sm:$0xff]   ;;  %v5583_v62 = vshrl.u32 %v1234_v61, 7 }
  0xd7   : > { %v5539_v1 = vunpack.c.l.bf16 %v4229_v0  ;;  %v5542_v2 = vunpack.c.h.bf16 %v4229_v0  ;;  %1327 = vmatpush1.bf16.msra.mxu0 %v4633_v14  ;;  %v4645_v23 = vld [vmem:[%s5250_s21 + $0x20] ss:$8 sps:$4 sm:$0xff]   ;;  %v4649_v26 = vld [vmem:[%s5250_s21 + $0x4] ss:$8 sps:$4 sm:$0xff]   ;;  %v4653_v46 = vld [vmem:[%s5260_s29 + $0x38] sm:$0xff]   ;;  %s6112_s11 = sld [smem:[#allocation27_spill]] }
  0xd8   : > { %1328 = vmatprep.subr.bf16.mxu0 %v4634_v15  ;;  %v4651_v27 = vld [vmem:[%s5250_s21] ss:$8 sps:$4 sm:$0xff]   ;;  %4238 = vmatpush3.bf16.msra.mxu1 %v4653_v46  ;;  %v4654_v47 = vld [vmem:[%s5260_s29 + $0x70] sm:$0xff]   ;;  %v4660_v53 = vld [vmem:[%s5260_s29 + $0x58] sm:$0xff]   ;;  %v5586_v63 = vsub.s32 0, %v5583_v62  ;;  %v5590_v3 = vsub.s32 1, %v5583_v62 }
  0xd9   : > { %1176 = vadd.xlane.f32.xlu0 %v5539_v1  ;;  %v4057_v36 = vld [vmem:[%s5240_s13] ss:$0 sm:$0xff]  ;;  %v4655_v48 = vld [vmem:[%s5260_s29 + $0x30] sm:$0xff]   ;;  %4239 = vmatprep.subr.bf16.mxu1 %v4654_v47  ;;  %v4657_v50 = vld [vmem:[%s5260_s29 + $0x28] sm:$0xff]   ;;  %vm5218_vm0 = vmmov 0   ;;  %s6113_s10 = sld [smem:[#allocation25_spill]] }
  0xda   : > { %v4058_v40 = vld [vmem:[%s5245_s17] ss:$0 sm:$0xff]  ;;  %v4661_v54 = vld [vmem:[%s5260_s29 + $0x18] sm:$0xff]   ;;  %v4662_v55 = vld [vmem:[%s5260_s29 + $0x50] sm:$0xff]   ;;  %s6114_s12 = sld [smem:[#allocation26_spill]]  ;;  %vm1904_vm1 = vcmask 261120  }
  0xdb   : > { %1329 = vmatpush1.bf16.msra.mxu0 %v4636_v16  ;;  %v4658_v51 = vld [vmem:[%s5260_s29 + $0x60] sm:$0xff]   ;;  %v4663_v56 = vld [vmem:[%s5260_s29 + $0x10] sm:$0xff]   ;;  %v4664_v57 = vld [vmem:[%s5260_s29 + $0x48] sm:$0xff]   ;;  %s6115_s23 = sld [smem:[#allocation24_spill]]  ;;  %vm2001_vm2 = vcmask 130048   ;;  %s5219_s26 = smov 96  }
  0xdc   : > { %1330 = vmatprep.subr.bf16.mxu0 %v4637_v17  ;;  %4240 = vmatpush3.bf16.msra.mxu1 %v4655_v48  ;;  %v4659_v52 = vld [vmem:[%s5260_s29 + $0x20] sm:$0xff]   ;;  %v4665_v58 = vld [vmem:[%s5260_s29 + $0x8] sm:$0xff]   ;;  %s6116_s28 = sld [smem:[#allocation28_spill]]  ;;  %s5220_s16 = smov 64   ;;  %vm2622_vm3 = vcmask 523264   ;;  %vm2625_vm4 = vcmask 785408  }
  0xdd   : > { %1178 = vadd.xlane.f32.xlu0 %v5542_v2  ;;  %4241 = vmatprep.subr.bf16.mxu1 %v4656_v49  ;;  %v4666_v59 = vld [vmem:[%s5260_s29 + $0x40] sm:$0xff]   ;;  %v4672_v61 = vld [vmem:[%s6112_s11 + $0x90] ss:$12 sps:$4 sm:$0xff]   ;;  %s6117_s7 = sld [smem:[#allocation30_spill]]  ;;  %s5221_s18 = smov 32   ;;  %vm2953_vm5 = vcmask 1046528  }
  0xde   : > { %v4667_v60 = vld [vmem:[%s5260_s29] sm:$0xff]   ;;  %s6118_s1 = sld [smem:[#allocation29_spill]]  ;;  %vm3001_vm6 = vcmask 1045504   ;;  %vm3021_vm7 = vcmask 1044480   ;;  %vm3041_vm8 = vcmask 1043456   ;;  %vm3061_vm9 = vcmask 1042432  }
  0xdf   : > { %1331 = vmatpush1.bf16.msra.mxu0 %v4639_v18  ;;  %v1232_v0 = vld [vmem:[%s5255_s25] sm:$0x3]  ;;  %s6119_s2 = sld [smem:[#allocation31_spill]]  ;;  %vm3081_vm10 = vcmask 1041408   ;;  %vm3101_vm11 = vcmask 1040384  }
  0xe0   : > { %1332 = vmatprep.subr.bf16.mxu0 %v4640_v19  ;;  %4242 = vmatpush3.bf16.msra.mxu1 %v4657_v50  ;;  %v1237_v4 = vrot.slane %v1232_v0, %v5586_v63  ;;  %v4668_v50 = vld [vmem:[%s6112_s11 + $0xa8] ss:$12 sps:$4 sm:$0xff]  }
  0xe1   : > { %4243 = vmatprep.subr.bf16.mxu1 %v4658_v51  ;;  %v4670_v51 = vld [vmem:[%s6112_s11 + $0xac] ss:$12 sps:$4 sm:$0xff]  }
  0xe3   : > { %1333 = vmatpush1.bf16.msra.mxu0 %v4642_v20 }
  0xe4   : > { %1334 = vmatprep.subr.bf16.mxu0 %v4643_v21  ;;  %4244 = vmatpush3.bf16.msra.mxu1 %v4659_v52  ;;  %v5217_v52 = vmov 0.0  }
  0xe5   : > { %4245 = vmatprep.subr.bf16.mxu1 %v4660_v53  ;;  %v4671_v53 = vld [vmem:[%s6112_s11 + $0xb0] ss:$12 sps:$4 sm:$0xff]  }
  0xe7   : > { %1335 = vmatpush1.bf16.msra.mxu0 %v4645_v23 }
  0xe8   : > { %1336 = vmatprep.subr.bf16.mxu0 %v4646_v24  ;;  %4246 = vmatpush3.bf16.msra.mxu1 %v4661_v54 }
  0xe9   : > { %4247 = vmatprep.subr.bf16.mxu1 %v4662_v55 }
  0xeb   : > { %1337 = vmatpush1.bf16.msra.mxu0 %v4648_v25 }
  0xec   : > { %1338 = vmatprep.subr.bf16.mxu0 %v4649_v26  ;;  %4248 = vmatpush3.bf16.msra.mxu1 %v4663_v56 }
  0xed   : > { %4249 = vmatprep.subr.bf16.mxu1 %v4664_v57 }
  0xef   : > { %1339 = vmatpush1.bf16.msra.mxu0 %v4651_v27 }
  0xf0   : > { %4250 = vmatpush3.bf16.msra.mxu1 %v4665_v58  ;;  %1795 = vmatprep.subr.bf16.mxu0 %v4670_v51 }
  0xf1   : > { %4251 = vmatprep.subr.bf16.mxu1 %v4666_v59 }
  0xf4   : > { %4252 = vmatpush3.bf16.msra.mxu1 %v4667_v60  ;;  %v4674_v60 = vld [vmem:[%s6112_s11 + $0x94] ss:$12 sps:$4 sm:$0xff]  }
  0xf5   : > { %4332 = vmatprep.subr.bf16.mxu1 %v5217_v52 }
 0x162   : > { %v1177_v5 = vpop.xlane.xlu0 %1176 }
 0x163   : > { %v1181_v6 = vmul.f32 0.0078125, %v1177_v5  ;;  %v1241_v5 = vrot.slane %v1232_v0, %v5590_v3  ;;  %v4675_v0 = vld [vmem:[%s6112_s11 + $0x98] ss:$12 sps:$4 sm:$0xff]  }
 0x165   : > { %v1183_v7 = vsub.f32 %v5539_v1, %v1181_v6 }
 0x166   : > { %v1179_v8 = vpop.xlane.xlu0 %1178 }
 0x167   : > { %v1182_v9 = vmul.f32 0.0078125, %v1179_v8  ;;  %v1185_v10 = vmul.f32 %v1183_v7, %v1183_v7 }
 0x169   : > { %v1184_v11 = vsub.f32 %v5542_v2, %v1182_v9  ;;  %1187 = vadd.xlane.f32.xlu1 %v1185_v10 }
 0x16b   : > { %v1186_v12 = vmul.f32 %v1184_v11, %v1184_v11 }
 0x16d   : > { %1189 = vadd.xlane.f32.xlu1 %v1186_v12 }
 0x1f2   : > { %v1188_v28 = vpop.xlane.xlu1 %1187 }
 0x1f3   : > { %v1191_v29 = vmul.f32 0.0078125, %v1188_v28 }
 0x1f5   : > { %v1193_v30 = vadd.f32 1e-05, %v1191_v29 }
 0x1f6   : > { %v1190_v31 = vpop.xlane.xlu1 %1189 }
 0x1f7   : > { %4780 = vrsqrt.f32 %v1193_v30  ;;  %v1192_v32 = vmul.f32 0.0078125, %v1190_v31 }
 0x1f9   : > { %v1194_v33 = vadd.f32 1e-05, %v1192_v32 }
 0x1fb   : > { %4782 = vrsqrt.f32 %v1194_v33 }
 0x204   : > { %v4781_v34 = vpop.eup %4780 }
 0x205   : > { %v1197_v35 = vmul.f32 %v4781_v34, %v1183_v7 }
 0x207   : > { %v1205_v39 = vmul.f32 %v4057_v36, %v1197_v35 }
 0x208   : > { %v4783_v37 = vpop.eup %4782 }
 0x209   : > { %v1198_v38 = vmul.f32 %v4783_v37, %v1184_v11  ;;  %v1213_v42 = vadd.f32 %v4058_v40, %v1205_v39 }
 0x20b   : > { %v1206_v41 = vmul.f32 %v4057_v36, %v1198_v38  ;;  %v4079_v38 = vld [vmem:[%s5265_s3] ss:$0 sm:$0xff] }
 0x20d   : > { %v1214_v43 = vadd.f32 %v4058_v40, %v1206_v41 }
 0x20f   : > { %v1215_v44 = vpack.c.bf16 %v1214_v43, %v1213_v42 }
 0x211   : > { %1357 = vmatmul.mubr.bf16.vlgmr.msra.gmra.mxu0 %v1215_v44 }
 0x212   : > { %1827 = vmatprep.mubr.bf16.mxu0 %v5216_v22  ;;  %1796 = vmatpush1.bf16.msra.mxu0 %v4668_v50 }
 0x213   : > { %1797 = vmatprep.subr.bf16.mxu0 %v4674_v60 }
 0x216   : > { %1798 = vmatpush1.bf16.msra.mxu0 %v4672_v61 }
 0x2d1   : > { %v1358_v6 = vpop.f32.mrf.mxu0 }
 0x2d2   : > { %v1359_v7 = vadd.f32 %v1358_v6, %v1237_v4  ;;  %v4679_v6 = vld [vmem:[%s6112_s11 + $0x80] ss:$12 sps:$4 sm:$0xff]  }
 0x2d3   : > { %v1360_v8 = vpop.f32.mrf.mxu0 }
 0x2d4   : > { %v4075_v9 = vmul.f32 -1.442695, %v1359_v7  ;;  %v1361_v10 = vadd.f32 %v1360_v8, %v1241_v5  ;;  %v4682_v8 = vld [vmem:[%s6112_s11 + $0x64] ss:$12 sps:$4 sm:$0xff]  }
 0x2d5   : > { %v1362_v11 = vpop.f32.mrf.mxu0 }
 0x2d6   : > { %v4076_v12 = vmul.f32 -1.442695, %v1361_v10  ;;  %v1363_v13 = vadd.f32 %v1362_v11, %v1237_v4  ;;  %4784 = vpow2.f32 %v4075_v9  ;;  %v4678_v4 = vld [vmem:[%s6112_s11 + $0x7c] ss:$12 sps:$4 sm:$0xff]  }
 0x2d7   : > { %v1364_v14 = vpop.f32.mrf.mxu0  ;;  %1799 = vmatprep.subr.bf16.mxu0 %v4678_v4  ;;  %v4683_v9 = vld [vmem:[%s6112_s11 + $0x68] ss:$12 sps:$4 sm:$0xff]   ;;  %v5669_v4 = vsub.s32 2, %v5583_v62 }
 0x2d8   : > { %4786 = vpow2.f32 %v4076_v12  ;;  %v4077_v15 = vmul.f32 -1.442695, %v1363_v13  ;;  %v1365_v16 = vadd.f32 %v1364_v14, %v1241_v5  ;;  %v4676_v5 = vld [vmem:[%s6112_s11 + $0x78] ss:$12 sps:$4 sm:$0xff]   ;;  %v4684_v11 = vld [vmem:[%s6112_s11 + $0x48] ss:$12 sps:$4 sm:$0xff]  }
 0x2d9   : > { %1800 = vmatpush1.bf16.msra.mxu0 %v4676_v5  ;;  %v4687_v12 = vld [vmem:[%s6112_s11 + $0x50] ss:$12 sps:$4 sm:$0xff]  }
 0x2da   : > { %4788 = vpow2.f32 %v4077_v15  ;;  %v4078_v17 = vmul.f32 -1.442695, %v1365_v16  ;;  %1801 = vmatprep.subr.bf16.mxu0 %v4682_v8  ;;  %v4688_v14 = vld [vmem:[%s6112_s11 + $0x30] ss:$12 sps:$4 sm:$0xff]   ;;  %v4691_v15 = vld [vmem:[%s6112_s11 + $0x38] ss:$12 sps:$4 sm:$0xff]  }
 0x2db   : > { %v4122_v8 = vld [vmem:[%s6118_s1] ss:$0 sm:$0xff]  ;;  %s6124_s1 = sld [smem:[#allocation35_spill]] }
 0x2dc   : > { %4790 = vpow2.f32 %v4078_v17  ;;  %v4692_v17 = vld [vmem:[%s6112_s11 + $0x18] ss:$12 sps:$4 sm:$0xff]  }
 0x2e3   : > { %v4785_v18 = vpop.eup %4784 }
 0x2e4   : > { %v1379_v23 = vadd.f32 1.0, %v4785_v18  ;;  %v4695_v18 = vld [vmem:[%s6112_s11 + $0x20] ss:$12 sps:$4 sm:$0xff]  }
 0x2e5   : > { %v4787_v19 = vpop.eup %4786 }
 0x2e6   : > { %v1380_v20 = vadd.f32 1.0, %v4787_v19  ;;  %v4698_v19 = vld [vmem:[%s6112_s11 + $0x4] ss:$12 sps:$4 sm:$0xff]  }
 0x2e7   : > { %v4789_v21 = vpop.eup %4788 }
 0x2e8   : > { %v1381_v24 = vadd.f32 1.0, %v4789_v21  ;;  %4792 = vrcp.f32 %v1380_v20  ;;  %v4696_v20 = vld [vmem:[%s6112_s11] ss:$12 sps:$4 sm:$0xff]   ;;  %v4699_v21 = vld [vmem:[%s6112_s11 + $0x8] ss:$12 sps:$4 sm:$0xff]  }
 0x2e9   : > { %v4791_v25 = vpop.eup %4790 }
 0x2ea   : > { %4794 = vrcp.f32 %v1381_v24  ;;  %v1382_v26 = vadd.f32 1.0, %v4791_v25 }
 0x2eb   : > { %4796 = vrcp.f32 %v1379_v23 }
 0x2ec   : > { %4798 = vrcp.f32 %v1382_v26 }
 0x2f5   : > { %v4793_v27 = vpop.eup %4792 }
 0x2f6   : > { %v1392_v32 = vmul.f32 %v4793_v27, %v1361_v10  ;;  %v4686_v10 = vld [vmem:[%s6112_s11 + $0x4c] ss:$12 sps:$4 sm:$0xff]  }
 0x2f7   : > { %v4795_v28 = vpop.eup %4794 }
 0x2f8   : > { %v4797_v29 = vpop.eup %4796  ;;  %v1393_v31 = vmul.f32 %v4795_v28, %v1363_v13  ;;  %v4690_v13 = vld [vmem:[%s6112_s11 + $0x34] ss:$12 sps:$4 sm:$0xff]  }
 0x2f9   : > { %v4799_v30 = vpop.eup %4798  ;;  %v1391_v34 = vmul.f32 %v4797_v29, %v1359_v7  ;;  %v4680_v7 = vld [vmem:[%s6112_s11 + $0x60] ss:$12 sps:$4 sm:$0xff]  }
 0x2fa   : > { %v1394_v33 = vmul.f32 %v4799_v30, %v1365_v16  ;;  %1802 = vmatpush1.bf16.msra.mxu0 %v4680_v7  ;;  %v4694_v16 = vld [vmem:[%s6112_s11 + $0x1c] ss:$12 sps:$4 sm:$0xff]  }
 0x2fb   : > { %v1395_v36 = vpack.c.bf16 %v1393_v31, %v1391_v34  ;;  %1803 = vmatprep.subr.bf16.mxu0 %v4686_v10  ;;  %v4096_v31 = vld [vmem:[%s6113_s10] ss:$0 sm:$0xff]  ;;  %s6120_s10 = sld [smem:[#allocation32_spill]] }
 0x2fc   : > { %v1396_v35 = vpack.c.bf16 %v1394_v33, %v1392_v32 }
 0x2fe   : > { %1564 = vmatprep.mubr.bf16.mxu1 %v1396_v35  ;;  %1804 = vmatpush1.bf16.msra.mxu0 %v4684_v11  ;;  %v4097_v35 = vld [vmem:[%s6114_s12] ss:$0 sm:$0xff]  ;;  %s6121_s12 = sld [smem:[#allocation37_spill]] }
 0x2ff   : > { %1565 = vmatmul.mubr.bf16.vlgmr.msra.gmra.mxu1 %v1395_v36  ;;  %1805 = vmatprep.subr.bf16.mxu0 %v4690_v13 }
 0x300   : > { %4333 = vmatpush3.bf16.msra.mxu1 %v4671_v53  ;;  %4348 = vmatprep.mubr.msk.bf16.mxu1 %vm5218_vm0, %v5217_v52 }
 0x301   : > { %4334 = vmatprep.subr.bf16.mxu1 %v5217_v52 }
 0x302   : > { %1806 = vmatpush1.bf16.msra.mxu0 %v4688_v14 }
 0x303   : > { %1807 = vmatprep.subr.bf16.mxu0 %v4694_v16 }
 0x304   : > { %4335 = vmatpush3.bf16.msra.mxu1 %v4675_v0 }
 0x305   : > { %4336 = vmatprep.subr.bf16.mxu1 %v5217_v52 }
 0x306   : > { %1808 = vmatpush1.bf16.msra.mxu0 %v4692_v17 }
 0x307   : > { %1809 = vmatprep.subr.bf16.mxu0 %v4698_v19 }
 0x308   : > { %4337 = vmatpush3.bf16.msra.mxu1 %v4679_v6 }
 0x309   : > { %4338 = vmatprep.subr.bf16.mxu1 %v5217_v52 }
 0x30a   : > { %1810 = vmatpush1.bf16.msra.mxu0 %v4696_v20 }
 0x30b   : > { %4376 = vmatprep.subr.bf16.mxu0 %v5217_v52 }
 0x30c   : > { %4339 = vmatpush3.bf16.msra.mxu1 %v4683_v9 }
 0x30d   : > { %4340 = vmatprep.subr.bf16.mxu1 %v5217_v52 }
 0x310   : > { %4341 = vmatpush3.bf16.msra.mxu1 %v4687_v12 }
 0x311   : > { %4342 = vmatprep.subr.bf16.mxu1 %v5217_v52 }
 0x314   : > { %4343 = vmatpush3.bf16.msra.mxu1 %v4691_v15 }
 0x315   : > { %4344 = vmatprep.subr.bf16.mxu1 %v5217_v52 }
 0x318   : > { %4345 = vmatpush3.bf16.msra.mxu1 %v4695_v18 }
 0x319   : > { %4346 = vmatprep.subr.bf16.mxu1 %v5217_v52 }
 0x31c   : > { %4347 = vmatpush3.bf16.msra.mxu1 %v4699_v21 }
 0x31d   : > { %4352 = vmatprep.subr.bf16.mxu1 %v5217_v52 }
 0x3bf   : > { %v4253_v37 = vpop.f32.mrf.mxu1 }
 0x3c1   : > { %v4254_v39 = vpop.f32.mrf.mxu1 }
 0x3c2   : > { %v4255_v40 = vadd.f32 %v4254_v39, %v4253_v37 }
 0x3c3   : > { %v4256_v41 = vpop.f32.mrf.mxu1 }
 0x3c4   : > { %v1567_v42 = vadd.f32 %v4255_v40, %v4079_v38  ;;  %v1881_v40 = vld [vmem:[%s6115_s23] sm:$0xff] }
 0x3c5   : > { %v4257_v43 = vpop.f32.mrf.mxu1 }
 0x3c6   : > { %v1573_v44 = vmul.f32 0.5, %v1567_v42  ;;  %v4258_v45 = vadd.f32 %v4257_v43, %v4256_v41  ;;  %v1882_v41 = vld [vmem:[%s6115_s23 + $0x8] sm:$0xff] }
 0x3c7   : > { %v5659_v42 = vpack.c.bf16 %v1882_v41, %v1881_v40 }
 0x3c8   : > { %v1570_v46 = vadd.f32 %v4258_v45, %v4079_v38  ;;  %v5596_v47 = vadd.f32 %v5539_v1, %v1573_v44  ;;  %v1650_v44 = vld [vmem:[%s6116_s28] sm:$0x7]  ;;  %s6122_s28 = sld [smem:[#allocation33_spill]] }
 0x3c9   : > { %v1909_v43 = vsel %vm1904_vm1, %v5659_v42, 0  ;;  %v1655_v45 = vrot.slane %v1650_v44, %v5586_v63  ;;  %v1663_v9 = vrot.slane %v1650_v44, %v5669_v4 }
 0x3ca   : > { %v1574_v48 = vmul.f32 0.5, %v1570_v46  ;;  %1579 = vadd.xlane.f32.xlu0 %v5596_v47 }
 0x3cc   : > { %v5600_v49 = vadd.f32 %v5542_v2, %v1574_v48 }
 0x3ce   : > { %1581 = vadd.xlane.f32.xlu1 %v5600_v49 }
 0x453   : > { %v1580_v1 = vpop.xlane.xlu0 %1579 }
 0x454   : > { %v1583_v2 = vmul.f32 0.0078125, %v1580_v1  ;;  %v1659_v1 = vrot.slane %v1650_v44, %v5590_v3 }
 0x456   : > { %v5609_v54 = vsub.f32 %v5596_v47, %v1583_v2  ;;  %v4123_v2 = vld [vmem:[%s6117_s7] ss:$0 sm:$0xff]  ;;  %s6123_s7 = sld [smem:[#allocation34_spill]] }
 0x457   : > { %v1582_v55 = vpop.xlane.xlu1 %1581 }
 0x458   : > { %v1584_v56 = vmul.f32 0.0078125, %v1582_v55  ;;  %v1587_v57 = vmul.f32 %v5609_v54, %v5609_v54 }
 0x45a   : > { %v5614_v58 = vsub.f32 %v5600_v49, %v1584_v56  ;;  %1589 = vadd.xlane.f32.xlu0 %v1587_v57 }
 0x45c   : > { %v1588_v59 = vmul.f32 %v5614_v58, %v5614_v58 }
 0x45e   : > { %1591 = vadd.xlane.f32.xlu1 %v1588_v59 }
 0x4e3   : > { %v1590_v23 = vpop.xlane.xlu0 %1589 }
 0x4e4   : > { %v1593_v24 = vmul.f32 0.0078125, %v1590_v23 }
 0x4e6   : > { %v1595_v25 = vadd.f32 1e-05, %v1593_v24 }
 0x4e7   : > { %v1592_v26 = vpop.xlane.xlu1 %1591 }
 0x4e8   : > { %4800 = vrsqrt.f32 %v1595_v25  ;;  %v1594_v27 = vmul.f32 0.0078125, %v1592_v26 }
 0x4ea   : > { %v1596_v28 = vadd.f32 1e-05, %v1594_v27 }
 0x4ec   : > { %4802 = vrsqrt.f32 %v1596_v28 }
 0x4f5   : > { %v4801_v29 = vpop.eup %4800 }
 0x4f6   : > { %v1599_v30 = vmul.f32 %v4801_v29, %v5609_v54 }
 0x4f8   : > { %v1607_v34 = vmul.f32 %v4096_v31, %v1599_v30 }
 0x4f9   : > { %v4803_v32 = vpop.eup %4802 }
 0x4fa   : > { %v1600_v33 = vmul.f32 %v4803_v32, %v5614_v58  ;;  %v1615_v37 = vadd.f32 %v4097_v35, %v1607_v34 }
 0x4fc   : > { %v1608_v36 = vmul.f32 %v4096_v31, %v1600_v33 }
 0x4fe   : > { %v1616_v38 = vadd.f32 %v4097_v35, %v1608_v36 }
 0x500   : > { %v1617_v39 = vpack.c.bf16 %v1616_v38, %v1615_v37 }
 0x502   : > { %1828 = vmatmul.mubr.bf16.vlgmr.msra.gmra.mxu0 %v1617_v39  ;;  %4349 = vmatmul.mubr.bf16.vlgmr.msra.gmra.mxu1 %v1617_v39 }
 0x503   : > { %4354 = vmatprep.mubr.msk.bf16.mxu1 %vm5218_vm0, %v5217_v52  ;;  %4378 = vmatprep.mubr.msk.bf16.mxu0 %vm5218_vm0, %v5217_v52 }
 0x504   : > { %4353 = vmatpush3.bf16.xpose.msra.mxu1 %v1909_v43 }
 0x505   : > { %4358 = vmatprep.subr.bf16.mxu1 %v5217_v52 }
 0x5c2   : > { %v1829_v46 = vpop.f32.mrf.mxu0  ;;  %v1872_v48 = vpop.f32.mrf.mxu1 }
 0x5c3   : > { %v1830_v53 = vadd.f32 %v1829_v46, %v1655_v45  ;;  %v1873_v13 = vadd.f32 %v1872_v48, %v1663_v9 }
 0x5c4   : > { %v1831_v50 = vpop.f32.mrf.mxu0  ;;  %v4350_v51 = vpop.f32.mrf.mxu1 }
 0x5c5   : > { %v1901_v59 = vadd.f32 %v4123_v2, %v1830_v53  ;;  %v1832_v60 = vadd.f32 %v1831_v50, %v1659_v1  ;;  %v1891_v12 = vadd.f32 %v4122_v8, %v1830_v53 }
 0x5c6   : > { %v1833_v54 = vpop.f32.mrf.mxu0  ;;  %v1875_v55 = vpop.f32.mrf.mxu1 }
 0x5c7   : > { %v1834_v56 = vadd.f32 %v1833_v54, %v1655_v45  ;;  %v1876_v11 = vadd.f32 %v1875_v55, %v1663_v9 }
 0x5c8   : > { %v1835_v57 = vpop.f32.mrf.mxu0  ;;  %v4351_v58 = vpop.f32.mrf.mxu1 }
 0x5c9   : > { %v1902_v61 = vadd.f32 %v4123_v2, %v1834_v56  ;;  %v1836_v0 = vadd.f32 %v1835_v57, %v1659_v1  ;;  %v1892_v10 = vadd.f32 %v4122_v8, %v1834_v56  ;;  %v5686_v15 = vpack.c.bf16 %v1876_v11, %v1873_v13 }
 0x5cb   : > { %v5671_v5 = vpack.c.bf16 %v1902_v61, %v1901_v59  ;;  %v5673_v6 = vpack.c.bf16 %v1836_v0, %v1832_v60  ;;  %v5684_v14 = vpack.c.bf16 %v1892_v10, %v1891_v12 }
 0x5cd   : > { %4355 = vmatmul.mubr.msk.bf16.vlgmr.msra.gmra.mxu1 %vm1904_vm1, %v5671_v5  ;;  %v1956_v7 = vsel %vm1904_vm1, %v5673_v6, 0 }
 0x5ce   : > { %4359 = vmatpush3.bf16.xpose.msra.mxu1 %v1956_v7  ;;  %4360 = vmatprep.mubr.msk.bf16.mxu1 %vm5218_vm0, %v5217_v52 }
 0x5cf   : > { %4364 = vmatprep.subr.bf16.mxu1 %v5217_v52 }
 0x5d5   : > { %4361 = vmatmul.mubr.msk.bf16.vlgmr.msra.gmra.mxu1 %vm1904_vm1, %v5684_v14 }
 0x5d6   : > { %4365 = vmatpush3.bf16.msra.mxu1 %v5686_v15  ;;  %4366 = vmatprep.mubr.msk.bf16.mxu1 %vm5218_vm0, %v5217_v52 }
 0x5d7   : > { %4370 = vmatprep.subr.bf16.mxu1 %v5217_v52 }
 0x68d   : > { %v1945_v16 = vpop.f32.mrf.mxu1 }
 0x68f   : > { %v4356_v17 = vpop.f32.mrf.mxu1 }
 0x691   : > { %v1948_v18 = vpop.f32.mrf.mxu1 }
 0x693   : > { %v4357_v19 = vpop.f32.mrf.mxu1 }
 0x695   : > { %v1992_v20 = vpop.f32.mrf.mxu1 }
 0x696   : > { %v1993_v21 = vadd.f32 %v1992_v20, %v1945_v16 }
 0x697   : > { %v4362_v23 = vpop.f32.mrf.mxu1 }
 0x698   : > { %v1999_v24 = vmul.f32 0.17677669, %v1993_v21 }
 0x699   : > { %v1995_v25 = vpop.f32.mrf.mxu1 }
 0x69a   : > { %v1996_v26 = vadd.f32 %v1995_v25, %v1948_v18  ;;  %v2002_v27 = vsel %vm2001_vm2, %v1999_v24, -inf }
 0x69b   : > { %2003 = vmax.xlane.f32.xlu0 %v2002_v27  ;;  %v4363_v28 = vpop.f32.mrf.mxu1 }
 0x69c   : > { %v2000_v29 = vmul.f32 0.17677669, %v1996_v26 }
 0x69e   : > { %v2005_v30 = vsel %vm2001_vm2, %v2000_v29, -inf }
 0x69f   : > { %2006 = vmax.xlane.f32.xlu1 %v2005_v30 }
 0x6b0   : > { %2126 = vrot.lane.b32.xlu1 %v5673_v6, %s5219_s26 }
 0x724   : > { %v2004_v31 = vpop.xlane.xlu0 %2003 }
 0x725   : > { %v2008_v32 = vsub.f32 %v1999_v24, %v2004_v31 }
 0x727   : > { %v2010_v33 = vmul.f32 1.442695, %v2008_v32 }
 0x728   : > { %v2007_v34 = vpop.xlane.xlu1 %2006 }
 0x729   : > { %4804 = vpow2.f32 %v2010_v33  ;;  %v2009_v35 = vsub.f32 %v2000_v29, %v2007_v34 }
 0x72b   : > { %v2012_v36 = vmul.f32 1.442695, %v2009_v35 }
 0x72c   : > { %v2127_v37 = vpop.permute.xlu1 %2126 }
 0x72d   : > { %4806 = vpow2.f32 %v2012_v36  ;;  %v2132_v38 = vsel %vm1904_vm1, %v2127_v37, 0 }
 0x72e   : > { %4377 = vmatpush3.bf16.xpose.msra.mxu0 %v2132_v38 }
 0x72f   : > { %4388 = vmatprep.subr.bf16.mxu0 %v5217_v52 }
 0x736   : > { %v4805_v39 = vpop.eup %4804 }
 0x737   : > { %v2014_v40 = vsel %vm2001_vm2, %v4805_v39, 0.0 }
 0x738   : > { %2015 = vadd.xlane.f32.xlu0 %v2014_v40 }
 0x73a   : > { %v4807_v41 = vpop.eup %4806 }
 0x73b   : > { %v2017_v43 = vsel %vm2001_vm2, %v4807_v41, 0.0 }
 0x73c   : > { %2018 = vadd.xlane.f32.xlu1 %v2017_v43 }
 0x74d   : > { %2070 = vrot.lane.b32.xlu1 %v5671_v5, %s5219_s26 }
 0x74e   : > { %2073 = vrot.lane.b32.xlu0 %v5659_v42, %s5219_s26 }
 0x751   : > { %2123 = vrot.lane.b32.xlu1 %v5684_v14, %s5219_s26 }
 0x7c1   : > { %v2016_v44 = vpop.xlane.xlu0 %2015 }
 0x7c2   : > { %4808 = vrcp.f32 %v2016_v44 }
 0x7c5   : > { %v2019_v45 = vpop.xlane.xlu1 %2018  ;;  %v2074_v53 = vpop.permute.xlu0 %2073 }
 0x7c6   : > { %4810 = vrcp.f32 %v2019_v45  ;;  %v2079_v54 = vsel %vm1904_vm1, %v2074_v53, 0 }
 0x7c9   : > { %v2071_v46 = vpop.permute.xlu1 %2070 }
 0x7cd   : > { %v2124_v48 = vpop.permute.xlu1 %2123 }
 0x7ce   : > { %4379 = vmatmul.mubr.msk.bf16.vlgmr.msra.gmra.mxu0 %vm1904_vm1, %v2124_v48 }
 0x7cf   : > { %4390 = vmatprep.mubr.msk.bf16.mxu0 %vm5218_vm0, %v5217_v52  ;;  %v4809_v50 = vpop.eup %4808 }
 0x7d0   : > { %v2022_v1 = vmul.f32 %v4809_v50, %v4805_v39 }
 0x7d3   : > { %v4811_v51 = vpop.eup %4810 }
 0x7d4   : > { %v2023_v2 = vmul.f32 %v4811_v51, %v4807_v41 }
 0x7d6   : > { %v2024_v55 = vpack.c.bf16 %v2023_v2, %v2022_v1 }
 0x7d8   : > { %4367 = vmatmul.mubr.msk.bf16.vlgmr.msra.gmra.mxu1 %vm2001_vm2, %v2024_v55 }
 0x7d9   : > { %4371 = vmatpush3.bf16.xpose.msra.mxu1 %v2079_v54  ;;  %4372 = vmatprep.mubr.msk.bf16.mxu1 %vm5218_vm0, %v5217_v52 }
 0x7da   : > { %4382 = vmatprep.subr.bf16.mxu1 %v5217_v52 }
 0x7e0   : > { %4373 = vmatmul.mubr.msk.bf16.vlgmr.msra.gmra.mxu1 %vm1904_vm1, %v2071_v46 }
 0x7e1   : > { %4384 = vmatprep.mubr.msk.bf16.mxu1 %vm5218_vm0, %v5217_v52 }
 0x88e   : > { %v2168_v56 = vpop.f32.mrf.mxu0 }
 0x890   : > { %v4380_v57 = vpop.f32.mrf.mxu0 }
 0x892   : > { %v2171_v58 = vpop.f32.mrf.mxu0 }
 0x894   : > { %v4381_v59 = vpop.f32.mrf.mxu0 }
 0x898   : > { %v5719_v60 = vpop.f32.mrf.mxu1 }
 0x89a   : > { %v4368_v61 = vpop.f32.mrf.mxu1 }
 0x89c   : > { %v5721_v0 = vpop.f32.mrf.mxu1 }
 0x89e   : > { %v4369_v7 = vpop.f32.mrf.mxu1 }
 0x8a0   : > { %v2115_v8 = vpop.f32.mrf.mxu1 }
 0x8a1   : > { %v2169_v9 = vadd.f32 %v2168_v56, %v2115_v8 }
 0x8a2   : > { %v4374_v10 = vpop.f32.mrf.mxu1 }
 0x8a3   : > { %v2175_v11 = vmul.f32 0.17677669, %v2169_v9 }
 0x8a4   : > { %v2118_v12 = vpop.f32.mrf.mxu1 }
 0x8a5   : > { %v2172_v13 = vadd.f32 %v2171_v58, %v2118_v12  ;;  %v2177_v16 = vsel %vm2001_vm2, %v2175_v11, -inf }
 0x8a6   : > { %2178 = vmax.xlane.f32.xlu0 %v2177_v16  ;;  %v4375_v17 = vpop.f32.mrf.mxu1 }
 0x8a7   : > { %v2176_v18 = vmul.f32 0.17677669, %v2172_v13 }
 0x8a9   : > { %v2180_v19 = vsel %vm2001_vm2, %v2176_v18, -inf }
 0x8aa   : > { %2181 = vmax.xlane.f32.xlu1 %v2180_v19 }
 0x8bb   : > { %2250 = vrot.lane.b32.xlu1 %v5659_v42, %s5220_s16 }
 0x8bf   : > { %2301 = vrot.lane.b32.xlu1 %v5673_v6, %s5220_s16 }
 0x8c3   : > { %2248 = vrot.lane.b32.xlu1 %v5671_v5, %s5220_s16 }
 0x92f   : > { %v2179_v20 = vpop.xlane.xlu0 %2178 }
 0x930   : > { %v2183_v21 = vsub.f32 %v2175_v11, %v2179_v20 }
 0x932   : > { %v2185_v23 = vmul.f32 1.442695, %v2183_v21 }
 0x933   : > { %v2182_v24 = vpop.xlane.xlu1 %2181 }
 0x934   : > { %4812 = vpow2.f32 %v2185_v23  ;;  %v2184_v25 = vsub.f32 %v2176_v18, %v2182_v24 }
 0x936   : > { %v2187_v26 = vmul.f32 1.442695, %v2184_v25 }
 0x937   : > { %v2251_v27 = vpop.permute.xlu1 %2250 }
 0x938   : > { %4814 = vpow2.f32 %v2187_v26  ;;  %v2256_v28 = vsel %vm1904_vm1, %v2251_v27, 0 }
 0x939   : > { %4389 = vmatpush3.bf16.xpose.msra.mxu0 %v2256_v28 }
 0x93a   : > { %4400 = vmatprep.subr.bf16.mxu0 %v5217_v52 }
 0x93b   : > { %v2302_v29 = vpop.permute.xlu1 %2301 }
 0x93c   : > { %v2307_v44 = vsel %vm1904_vm1, %v2302_v29, 0 }
 0x93f   : > { %v2249_v30 = vpop.permute.xlu1 %2248 }
 0x940   : > { %4391 = vmatmul.mubr.msk.bf16.vlgmr.msra.gmra.mxu0 %vm1904_vm1, %v2249_v30 }
 0x941   : > { %v4813_v31 = vpop.eup %4812  ;;  %4402 = vmatprep.mubr.msk.bf16.mxu0 %vm5218_vm0, %v5217_v52 }
 0x942   : > { %v2189_v32 = vsel %vm2001_vm2, %v4813_v31, 0.0 }
 0x943   : > { %2190 = vadd.xlane.f32.xlu0 %v2189_v32 }
 0x945   : > { %v4815_v33 = vpop.eup %4814 }
 0x946   : > { %v2192_v34 = vsel %vm2001_vm2, %v4815_v33, 0.0 }
 0x947   : > { %2193 = vadd.xlane.f32.xlu0 %v2192_v34 }
 0x95d   : > { %2201 = vrot.lane.b32.xlu0 %v5686_v15, %s5219_s26 }
 0x961   : > { %2299 = vrot.lane.b32.xlu0 %v5684_v14, %s5220_s16 }
 0x9cc   : > { %v2191_v35 = vpop.xlane.xlu0 %2190 }
 0x9cd   : > { %4816 = vrcp.f32 %v2191_v35 }
 0x9d0   : > { %v2194_v36 = vpop.xlane.xlu0 %2193 }
 0x9d1   : > { %4818 = vrcp.f32 %v2194_v36 }
 0x9d4   : > { %v2202_v37 = vpop.permute.xlu0 %2201 }
 0x9d5   : > { %4383 = vmatpush3.bf16.msra.mxu1 %v2202_v37 }
 0x9d6   : > { %4394 = vmatprep.subr.bf16.mxu1 %v5217_v52 }
 0x9d8   : > { %v2300_v45 = vpop.permute.xlu0 %2299 }
 0x9da   : > { %v4817_v38 = vpop.eup %4816 }
 0x9db   : > { %v2197_v40 = vmul.f32 %v4817_v38, %v4813_v31 }
 0x9de   : > { %v4819_v39 = vpop.eup %4818 }
 0x9df   : > { %v2198_v41 = vmul.f32 %v4819_v39, %v4815_v33 }
 0x9e1   : > { %v2199_v43 = vpack.c.bf16 %v2198_v41, %v2197_v40 }
 0x9e3   : > { %4385 = vmatmul.mubr.msk.bf16.vlgmr.msra.gmra.mxu1 %vm2001_vm2, %v2199_v43 }
 0x9e4   : > { %4395 = vmatpush3.bf16.xpose.msra.mxu1 %v2307_v44  ;;  %4396 = vmatprep.mubr.msk.bf16.mxu1 %vm5218_vm0, %v5217_v52 }
 0x9e5   : > { %4406 = vmatprep.subr.bf16.mxu1 %v5217_v52 }
 0x9eb   : > { %4397 = vmatmul.mubr.msk.bf16.vlgmr.msra.gmra.mxu1 %vm1904_vm1, %v2300_v45 }
 0x9ec   : > { %4408 = vmatprep.mubr.msk.bf16.mxu1 %vm5218_vm0, %v5217_v52 }
 0xa00   : > { %v2292_v46 = vpop.f32.mrf.mxu0 }
 0xa02   : > { %v4392_v48 = vpop.f32.mrf.mxu0 }
 0xa04   : > { %v2295_v50 = vpop.f32.mrf.mxu0 }
 0xa06   : > { %v4393_v51 = vpop.f32.mrf.mxu0 }
 0xaa3   : > { %v5751_v53 = vpop.f32.mrf.mxu1 }
 0xaa5   : > { %v4386_v1 = vpop.f32.mrf.mxu1 }
 0xaa7   : > { %v5753_v2 = vpop.f32.mrf.mxu1 }
 0xaa8   : > { %v4613_v54 = vpack.i.bf16 %v5753_v2, %v5751_v53 }
 0xaa9   : > { %v4387_v55 = vpop.f32.mrf.mxu1 }
 0xaab   : > { %v2343_v56 = vpop.f32.mrf.mxu1 }
 0xaac   : > { %v2344_v57 = vadd.f32 %v2343_v56, %v2292_v46 }
 0xaad   : > { %v4398_v58 = vpop.f32.mrf.mxu1 }
 0xaae   : > { %v2350_v59 = vmul.f32 0.17677669, %v2344_v57 }
 0xaaf   : > { %v2346_v61 = vpop.f32.mrf.mxu1 }
 0xab0   : > { %v2347_v7 = vadd.f32 %v2346_v61, %v2295_v50  ;;  %v2352_v8 = vsel %vm2001_vm2, %v2350_v59, -inf }
 0xab1   : > { %2353 = vmax.xlane.f32.xlu1 %v2352_v8  ;;  %v4399_v9 = vpop.f32.mrf.mxu1 }
 0xab2   : > { %v2351_v10 = vmul.f32 0.17677669, %v2347_v7 }
 0xab4   : > { %v2355_v11 = vsel %vm2001_vm2, %v2351_v10, -inf }
 0xab5   : > { %2356 = vmax.xlane.f32.xlu0 %v2355_v11 }
 0xac2   : > { %2375 = vrot.lane.b32.xlu1 %v5686_v15, %s5220_s16 }
 0xac6   : > { %2475 = vrot.lane.b32.xlu1 %v5673_v6, %s5221_s18 }
 0xaca   : > { %2422 = vrot.lane.b32.xlu1 %v5671_v5, %s5221_s18 }
 0xace   : > { %2473 = vrot.lane.b32.xlu1 %v5684_v14, %s5221_s18 }
 0xb3a   : > { %v2354_v12 = vpop.xlane.xlu1 %2353 }
 0xb3b   : > { %v2358_v13 = vsub.f32 %v2350_v59, %v2354_v12 }
 0xb3d   : > { %v2360_v16 = vmul.f32 1.442695, %v2358_v13 }
 0xb3e   : > { %v2376_v17 = vpop.permute.xlu1 %2375  ;;  %v2357_v18 = vpop.xlane.xlu0 %2356 }
 0xb3f   : > { %4820 = vpow2.f32 %v2360_v16  ;;  %v2359_v19 = vsub.f32 %v2351_v10, %v2357_v18  ;;  %4401 = vmatpush3.bf16.msra.mxu0 %v2376_v17 }
 0xb40   : > { %4412 = vmatprep.subr.bf16.mxu0 %v5217_v52 }
 0xb41   : > { %v2362_v20 = vmul.f32 1.442695, %v2359_v19 }
 0xb42   : > { %v2476_v27 = vpop.permute.xlu1 %2475 }
 0xb43   : > { %4822 = vpow2.f32 %v2362_v20  ;;  %v2481_v33 = vsel %vm1904_vm1, %v2476_v27, 0 }
 0xb46   : > { %v2423_v29 = vpop.permute.xlu1 %2422 }
 0xb4a   : > { %v2474_v34 = vpop.permute.xlu1 %2473 }
 0xb4c   : > { %v4821_v21 = vpop.eup %4820 }
 0xb4d   : > { %v2364_v6 = vsel %vm2001_vm2, %v4821_v21, 0.0 }
 0xb4e   : > { %2365 = vadd.xlane.f32.xlu0 %v2364_v6  ;;  %v4701_v6 = vld [vmem:[%s6119_s2 + $0x30] sm:$0xff]  }
 0xb50   : > { %v4823_v5 = vpop.eup %4822 }
 0xb51   : > { %v2367_v23 = vsel %vm2001_vm2, %v4823_v5, 0.0 }
 0xb52   : > { %2368 = vadd.xlane.f32.xlu0 %v2367_v23  ;;  %v4703_v23 = vld [vmem:[%s6119_s2 + $0x20] sm:$0xff]  }
 0xb68   : > { %2424 = vrot.lane.b32.xlu0 %v5659_v42, %s5221_s18 }
 0xbd7   : > { %v2366_v14 = vpop.xlane.xlu0 %2365 }
 0xbd8   : > { %4824 = vrcp.f32 %v2366_v14  ;;  %v4704_v14 = vld [vmem:[%s6119_s2 + $0x18] sm:$0xff]  }
 0xbdb   : > { %v2369_v24 = vpop.xlane.xlu0 %2368 }
 0xbdc   : > { %4826 = vrcp.f32 %v2369_v24  ;;  %v4705_v24 = vld [vmem:[%s6119_s2 + $0x10] sm:$0xff]  }
 0xbdf   : > { %v2425_v25 = vpop.permute.xlu0 %2424 }
 0xbe0   : > { %v2430_v26 = vsel %vm1904_vm1, %v2425_v25, 0  ;;  %v4706_v25 = vld [vmem:[%s6119_s2 + $0x8] sm:$0xff]  }
 0xbe1   : > { %4407 = vmatpush3.bf16.xpose.msra.mxu1 %v2430_v26  ;;  %v4707_v26 = vld [vmem:[%s6119_s2] sm:$0xff]  }
 0xbe2   : > { %4418 = vmatprep.subr.bf16.mxu1 %v5217_v52 }
 0xbe5   : > { %v4825_v28 = vpop.eup %4824 }
 0xbe6   : > { %v2372_v42 = vmul.f32 %v4825_v28, %v4821_v21 }
 0xbe8   : > { %4409 = vmatmul.mubr.msk.bf16.vlgmr.msra.gmra.mxu1 %vm1904_vm1, %v2423_v29 }
 0xbe9   : > { %v4827_v30 = vpop.eup %4826  ;;  %4420 = vmatprep.mubr.msk.bf16.mxu1 %vm5218_vm0, %v5217_v52 }
 0xbea   : > { %v2373_v31 = vmul.f32 %v4827_v30, %v4823_v5  ;;  %v4702_v5 = vld [vmem:[%s6119_s2 + $0x28] sm:$0xff]  }
 0xbec   : > { %v2374_v32 = vpack.c.bf16 %v2373_v31, %v2372_v42 }
 0xbee   : > { %4403 = vmatmul.mubr.msk.bf16.vlgmr.msra.gmra.mxu0 %vm2001_vm2, %v2374_v32 }
 0xbef   : > { %4413 = vmatpush3.bf16.xpose.msra.mxu0 %v2481_v33  ;;  %4414 = vmatprep.mubr.msk.bf16.mxu0 %vm5218_vm0, %v5217_v52 }
 0xbf0   : > { %4424 = vmatprep.subr.bf16.mxu0 %v5217_v52 }
 0xbf6   : > { %4415 = vmatmul.mubr.msk.bf16.vlgmr.msra.gmra.mxu0 %vm1904_vm1, %v2474_v34 }
 0xbf7   : > { %4440 = vmatprep.mubr.msk.bf16.mxu0 %vm5218_vm0, %v5217_v52 }
 0xca8   : > { %v2466_v35 = vpop.f32.mrf.mxu1 }
 0xcaa   : > { %v4410_v36 = vpop.f32.mrf.mxu1 }
 0xcac   : > { %v2469_v37 = vpop.f32.mrf.mxu1 }
 0xcae   : > { %v2415_v38 = vpop.f32.mrf.mxu0  ;;  %v4411_v39 = vpop.f32.mrf.mxu1 }
 0xcb0   : > { %v4404_v40 = vpop.f32.mrf.mxu0 }
 0xcb2   : > { %v2418_v41 = vpop.f32.mrf.mxu0 }
 0xcb3   : > { %v4618_v58 = vpack.i.bf16 %v2418_v41, %v2415_v38 }
 0xcb4   : > { %v4405_v43 = vpop.f32.mrf.mxu0 }
 0xcb6   : > { %v2517_v44 = vpop.f32.mrf.mxu0 }
 0xcb7   : > { %v2518_v45 = vadd.f32 %v2517_v44, %v2466_v35 }
 0xcb8   : > { %v4416_v46 = vpop.f32.mrf.mxu0 }
 0xcb9   : > { %v2524_v48 = vmul.f32 0.17677669, %v2518_v45 }
 0xcba   : > { %v2520_v50 = vpop.f32.mrf.mxu0 }
 0xcbb   : > { %v2521_v51 = vadd.f32 %v2520_v50, %v2469_v37  ;;  %v2526_v1 = vsel %vm2001_vm2, %v2524_v48, -inf }
 0xcbc   : > { %v4417_v55 = vpop.f32.mrf.mxu0  ;;  %2527 = vmax.xlane.f32.xlu0 %v2526_v1 }
 0xcbd   : > { %v2525_v56 = vmul.f32 0.17677669, %v2521_v51  ;;  %v4144_v51 = vld [vmem:[#allocation2] ss:$0 sm:$0xff] }
 0xcbf   : > { %v2529_v57 = vsel %vm2001_vm2, %v2525_v56, -inf }
 0xcc0   : > { %2530 = vmax.xlane.f32.xlu1 %v2529_v57 }
 0xcd1   : > { %4614 = vrot.lane.b32.xlu1 %v4613_v54, %s5221_s18 }
 0xcd5   : > { %4619 = vrot.lane.b32.xlu1 %v4618_v58, %s5220_s16  ;;  %s6126_s16 = sld [smem:[#allocation39_spill]] }
 0xd45   : > { %v2528_v59 = vpop.xlane.xlu0 %2527 }
 0xd46   : > { %v2532_v61 = vsub.f32 %v2524_v48, %v2528_v59  ;;  %v4708_v59 = vld [vmem:[%s6120_s10 + $0x70] ss:$8 sps:$4 sm:$0xff]  }
 0xd48   : > { %v2534_v7 = vmul.f32 1.442695, %v2532_v61  ;;  %v4710_v61 = vld [vmem:[%s6120_s10 + $0x74] ss:$8 sps:$4 sm:$0xff]  }
 0xd49   : > { %v2531_v8 = vpop.xlane.xlu1 %2530 }
 0xd4a   : > { %4828 = vpow2.f32 %v2534_v7  ;;  %v2533_v9 = vsub.f32 %v2525_v56, %v2531_v8 }
 0xd4c   : > { %v2536_v10 = vmul.f32 1.442695, %v2533_v9 }
 0xd4d   : > { %v4615_v31 = vpop.permute.xlu1 %4614 }
 0xd4e   : > { %4830 = vpow2.f32 %v2536_v10  ;;  %v4617_v33 = vunpack.i.h.bf16 %v4615_v31  ;;  %v4616_v34 = vunpack.i.l.bf16 %v4615_v31 }
 0xd50   : > { %v2621_v38 = vsel %vm1904_vm1, %v5721_v0, %v4617_v33  ;;  %v2620_v39 = vsel %vm1904_vm1, %v5719_v60, %v4616_v34  ;;  %v4146_v34 = vld [vmem:[#allocation6] ss:$0 sm:$0xff] }
 0xd51   : > { %v4620_v32 = vpop.permute.xlu1 %4619 }
 0xd52   : > { %v4622_v35 = vunpack.i.h.bf16 %v4620_v32  ;;  %v4621_v36 = vunpack.i.l.bf16 %v4620_v32 }
 0xd54   : > { %v2623_v43 = vsel %vm2622_vm3, %v2620_v39, %v4621_v36  ;;  %v2624_v44 = vsel %vm2622_vm3, %v2621_v38, %v4622_v35  ;;  %v4732_v39 = vld [vmem:[%s6121_s12 + $0x38] sm:$0xff]  }
 0xd57   : > { %v4829_v11 = vpop.eup %4828 }
 0xd58   : > { %v2538_v12 = vsel %vm2001_vm2, %v4829_v11, 0.0 }
 0xd59   : > { %2539 = vadd.xlane.f32.xlu0 %v2538_v12 }
 0xd5b   : > { %v4831_v13 = vpop.eup %4830 }
 0xd5c   : > { %v2541_v16 = vsel %vm2001_vm2, %v4831_v13, 0.0 }
 0xd5d   : > { %2542 = vadd.xlane.f32.xlu0 %v2541_v16  ;;  %v4711_v16 = vld [vmem:[%s6120_s10 + $0x60] ss:$8 sps:$4 sm:$0xff]  }
 0xd73   : > { %2549 = vrot.lane.b32.xlu0 %v5686_v15, %s5221_s18  ;;  %v4700_v15 = vld [vmem:[%s6119_s2 + $0x38] sm:$0xff]   ;;  %s6127_s18 = sld [smem:[#allocation41_spill]] }
 0xd74   : > { %4425 = vmatpush3.bf16.msra.mxu0 %v4700_v15  ;;  %v4728_v15 = vld [vmem:[%s6120_s10 + $0x14] ss:$8 sps:$4 sm:$0xff]  }
 0xd75   : > { %4426 = vmatprep.subr.bf16.mxu0 %v5217_v52 }
 0xd78   : > { %4427 = vmatpush3.bf16.msra.mxu0 %v4701_v6  ;;  %v4726_v6 = vld [vmem:[%s6120_s10 + $0x10] ss:$8 sps:$4 sm:$0xff]  }
 0xd79   : > { %4428 = vmatprep.subr.bf16.mxu0 %v5217_v52 }
 0xd7c   : > { %4429 = vmatpush3.bf16.msra.mxu0 %v4702_v5  ;;  %v4731_v5 = vld [vmem:[%s6120_s10 + $0x4] ss:$8 sps:$4 sm:$0xff]  }
 0xd7d   : > { %4430 = vmatprep.subr.bf16.mxu0 %v5217_v52 }
 0xd80   : > { %4431 = vmatpush3.bf16.msra.mxu0 %v4703_v23  ;;  %v4729_v23 = vld [vmem:[%s6120_s10] ss:$8 sps:$4 sm:$0xff]  }
 0xd81   : > { %4432 = vmatprep.subr.bf16.mxu0 %v5217_v52 }
 0xd84   : > { %4433 = vmatpush3.bf16.msra.mxu0 %v4704_v14 }
 0xd85   : > { %4434 = vmatprep.subr.bf16.mxu0 %v5217_v52 }
 0xd88   : > { %4435 = vmatpush3.bf16.msra.mxu0 %v4705_v24 }
 0xd89   : > { %4436 = vmatprep.subr.bf16.mxu0 %v5217_v52 }
 0xd8c   : > { %4437 = vmatpush3.bf16.msra.mxu0 %v4706_v25 }
 0xd8d   : > { %4438 = vmatprep.subr.bf16.mxu0 %v5217_v52 }
 0xd90   : > { %4439 = vmatpush3.bf16.msra.mxu0 %v4707_v26 }
 0xd91   : > { %4444 = vmatprep.subr.bf16.mxu0 %v5217_v52 }
 0xde2   : > { %v2540_v53 = vpop.xlane.xlu0 %2539 }
 0xde3   : > { %4832 = vrcp.f32 %v2540_v53  ;;  %v4716_v53 = vld [vmem:[%s6120_s10 + $0x54] ss:$8 sps:$4 sm:$0xff]  }
 0xde6   : > { %v2543_v2 = vpop.xlane.xlu0 %2542 }
 0xde7   : > { %4834 = vrcp.f32 %v2543_v2  ;;  %v4714_v2 = vld [vmem:[%s6120_s10 + $0x50] ss:$8 sps:$4 sm:$0xff]  }
 0xdea   : > { %v2550_v54 = vpop.permute.xlu0 %2549 }
 0xdeb   : > { %4419 = vmatpush3.bf16.msra.mxu1 %v2550_v54  ;;  %v4717_v54 = vld [vmem:[%s6120_s10 + $0x40] ss:$8 sps:$4 sm:$0xff]  }
 0xdec   : > { %2894 = vmatprep.subr.bf16.mxu1 %v4710_v61 }
 0xdf0   : > { %v4833_v17 = vpop.eup %4832 }
 0xdf1   : > { %v2546_v19 = vmul.f32 %v4833_v17, %v4829_v11  ;;  %v4719_v17 = vld [vmem:[%s6120_s10 + $0x44] ss:$8 sps:$4 sm:$0xff]  }
 0xdf4   : > { %v4835_v18 = vpop.eup %4834 }
 0xdf5   : > { %v2547_v20 = vmul.f32 %v4835_v18, %v4831_v13  ;;  %v4713_v13 = vld [vmem:[%s6120_s10 + $0x64] ss:$8 sps:$4 sm:$0xff]   ;;  %v4722_v18 = vld [vmem:[%s6120_s10 + $0x34] ss:$8 sps:$4 sm:$0xff]  }
 0xdf7   : > { %v2548_v21 = vpack.c.bf16 %v2547_v20, %v2546_v19  ;;  %v4720_v19 = vld [vmem:[%s6120_s10 + $0x30] ss:$8 sps:$4 sm:$0xff]   ;;  %v4725_v20 = vld [vmem:[%s6120_s10 + $0x24] ss:$8 sps:$4 sm:$0xff]  }
 0xdf9   : > { %4421 = vmatmul.mubr.msk.bf16.vlgmr.msra.gmra.mxu1 %vm2001_vm2, %v2548_v21  ;;  %v4723_v21 = vld [vmem:[%s6120_s10 + $0x20] ss:$8 sps:$4 sm:$0xff]  }
 0xdfa   : > { %2926 = vmatprep.mubr.bf16.mxu1 %v5216_v22  ;;  %2895 = vmatpush1.bf16.msra.mxu1 %v4708_v59 }
 0xdfb   : > { %2896 = vmatprep.subr.bf16.mxu1 %v4713_v13 }
 0xdfe   : > { %2897 = vmatpush1.bf16.msra.mxu1 %v4711_v16 }
 0xdff   : > { %2898 = vmatprep.subr.bf16.mxu1 %v4716_v53 }
 0xe02   : > { %2899 = vmatpush1.bf16.msra.mxu1 %v4714_v2  ;;  %v3033_v2 = vsub.s32 4, %v5583_v62 }
 0xe03   : > { %2900 = vmatprep.subr.bf16.mxu1 %v4719_v17 }
 0xe06   : > { %2901 = vmatpush1.bf16.msra.mxu1 %v4717_v54 }
 0xe07   : > { %2902 = vmatprep.subr.bf16.mxu1 %v4722_v18  ;;  %v3053_v18 = vsub.s32 5, %v5583_v62 }
 0xe0a   : > { %2903 = vmatpush1.bf16.msra.mxu1 %v4720_v19  ;;  %v3073_v19 = vsub.s32 6, %v5583_v62 }
 0xe0b   : > { %2904 = vmatprep.subr.bf16.mxu1 %v4725_v20 }
 0xe0e   : > { %2905 = vmatpush1.bf16.msra.mxu1 %v4723_v21 }
 0xe0f   : > { %2906 = vmatprep.subr.bf16.mxu1 %v4728_v15  ;;  %v3093_v15 = vsub.s32 7, %v5583_v62 }
 0xe12   : > { %2907 = vmatpush1.bf16.msra.mxu1 %v4726_v6 }
 0xe13   : > { %2908 = vmatprep.subr.bf16.mxu1 %v4731_v5 }
 0xe16   : > { %2909 = vmatpush1.bf16.msra.mxu1 %v4729_v23 }
 0xeb9   : > { %v2589_v27 = vpop.f32.mrf.mxu1 }
 0xebb   : > { %v4422_v28 = vpop.f32.mrf.mxu1 }
 0xebd   : > { %v2592_v29 = vpop.f32.mrf.mxu1 }
 0xebe   : > { %v4623_v30 = vpack.i.bf16 %v2592_v29, %v2589_v27 }
 0xebf   : > { %v4423_v42 = vpop.f32.mrf.mxu1 }
 0xec0   : > { %4624 = vrot.lane.b32.xlu1 %v4623_v30, %s5219_s26  ;;  %v4145_v42 = vld [vmem:[#allocation4] ss:$0 sm:$0xff]  ;;  %s6125_s26 = sld [smem:[#allocation36_spill]] }
 0xf32   : > { %v4625_v37 = vpop.permute.xlu1 %4624 }
 0xf33   : > { %v4627_v40 = vunpack.i.h.bf16 %v4625_v37  ;;  %v4626_v41 = vunpack.i.l.bf16 %v4625_v37 }
 0xf35   : > { %v2627_v45 = vsel %vm2625_vm4, %v2624_v44, %v4627_v40  ;;  %v2626_v46 = vsel %vm2625_vm4, %v2623_v43, %v4626_v41  ;;  %v4733_v40 = vld [vmem:[%s6121_s12 + $0x30] sm:$0xff]   ;;  %v4734_v41 = vld [vmem:[%s6121_s12 + $0x28] sm:$0xff]   ;;  %v4735_v43 = vld [vmem:[%s6121_s12 + $0x20] sm:$0xff]  }
 0xf36   : > { %v2628_v48 = vpack.c.bf16 %v2627_v45, %v2626_v46  ;;  %v4736_v44 = vld [vmem:[%s6121_s12 + $0x18] sm:$0xff]   ;;  %v4738_v45 = vld [vmem:[%s6121_s12 + $0x8] sm:$0xff]   ;;  %v4739_v46 = vld [vmem:[%s6121_s12] sm:$0xff]  }
 0xf38   : > { %4441 = vmatmul.mubr.bf16.vlgmr.msra.gmra.mxu0 %v2628_v48  ;;  %v2802_v48 = vld [vmem:[%s6122_s28] sm:$0x3]  ;;  %s6128_s28 = sld [smem:[#allocation40_spill]] }
 0xf39   : > { %4460 = vmatprep.mubr.msk.bf16.mxu0 %vm5218_vm0, %v5217_v52  ;;  %4445 = vmatpush3.bf16.msra.mxu0 %v4732_v39 }
 0xf3a   : > { %4446 = vmatprep.subr.bf16.mxu0 %v5217_v52 }
 0xf3d   : > { %4447 = vmatpush3.bf16.msra.mxu0 %v4733_v40 }
 0xf3e   : > { %4448 = vmatprep.subr.bf16.mxu0 %v5217_v52 }
 0xf41   : > { %4449 = vmatpush3.bf16.msra.mxu0 %v4734_v41 }
 0xf42   : > { %4450 = vmatprep.subr.bf16.mxu0 %v5217_v52 }
 0xf45   : > { %4451 = vmatpush3.bf16.msra.mxu0 %v4735_v43 }
 0xf46   : > { %4452 = vmatprep.subr.bf16.mxu0 %v5217_v52 }
 0xf49   : > { %4453 = vmatpush3.bf16.msra.mxu0 %v4736_v44 }
 0xf4a   : > { %4454 = vmatprep.subr.bf16.mxu0 %v5217_v52 }
 0xff8   : > { %v2727_v50 = vpop.f32.mrf.mxu0 }
 0xff9   : > { %v2734_v0 = vadd.f32 %v2727_v50, %v5596_v47  ;;  %v2811_v50 = vrot.slane %v2802_v48, %v5590_v3 }
 0xffa   : > { %v4442_v1 = vpop.f32.mrf.mxu0 }
 0xffb   : > { %v5822_v55 = vadd.f32 %v4144_v51, %v2734_v0 }
 0xffc   : > { %v2730_v60 = vpop.f32.mrf.mxu0 }
 0xffd   : > { %v2735_v56 = vadd.f32 %v2730_v60, %v5600_v49  ;;  %2747 = vadd.xlane.f32.xlu0 %v5822_v55 }
 0xffe   : > { %v4443_v57 = vpop.f32.mrf.mxu0 }
 0xfff   : > { %v5826_v58 = vadd.f32 %v4144_v51, %v2735_v56 }
0x1001   : > { %2749 = vadd.xlane.f32.xlu1 %v5826_v58 }
0x1086   : > { %v2748_v47 = vpop.xlane.xlu0 %2747 }
0x1087   : > { %v2751_v7 = vmul.f32 0.0078125, %v2748_v47 }
0x1089   : > { %v2753_v8 = vsub.f32 %v5822_v55, %v2751_v7 }
0x108a   : > { %v2750_v49 = vpop.xlane.xlu1 %2749 }
0x108b   : > { %v2752_v9 = vmul.f32 0.0078125, %v2750_v49  ;;  %v2755_v10 = vmul.f32 %v2753_v8, %v2753_v8 }
0x108d   : > { %v2754_v11 = vsub.f32 %v5826_v58, %v2752_v9  ;;  %2757 = vadd.xlane.f32.xlu0 %v2755_v10  ;;  %v3013_v10 = vsub.s32 3, %v5583_v62 }
0x108f   : > { %v2756_v12 = vmul.f32 %v2754_v11, %v2754_v11 }
0x1091   : > { %2759 = vadd.xlane.f32.xlu0 %v2756_v12  ;;  %v2962_v12 = vld [vmem:[%s6123_s7] sm:$0xff] }
0x1092   : > { %v2994_v54 = vrot.slane %v2962_v12, %v5669_v4 }
0x1116   : > { %v2758_v14 = vpop.xlane.xlu0 %2757 }
0x1117   : > { %v2761_v24 = vmul.f32 0.0078125, %v2758_v14 }
0x1119   : > { %v2763_v25 = vadd.f32 1e-05, %v2761_v24  ;;  %v2975_v24 = vrot.slane %v2962_v12, %v5590_v3 }
0x111a   : > { %v2760_v26 = vpop.xlane.xlu0 %2759 }
0x111b   : > { %4836 = vrsqrt.f32 %v2763_v25  ;;  %v2762_v27 = vmul.f32 0.0078125, %v2760_v26  ;;  %v3014_v25 = vrot.slane %v2962_v12, %v3013_v10  ;;  %v3034_v26 = vrot.slane %v2962_v12, %v3033_v2 }
0x111d   : > { %v2764_v28 = vadd.f32 1e-05, %v2762_v27 }
0x111f   : > { %4838 = vrsqrt.f32 %v2764_v28 }
0x1128   : > { %v4837_v29 = vpop.eup %4836 }
0x1129   : > { %v2767_v30 = vmul.f32 %v4837_v29, %v2753_v8  ;;  %v2963_v8 = vld [vmem:[%s6123_s7 + $0x8] sm:$0x7f]  ;;  %v5898_v29 = vrot.slane %v2962_v12, %v3053_v18 }
0x112a   : > { %v5867_v9 = vrot.slane %v2963_v8, %v5669_v4  ;;  %v5873_v13 = vrot.slane %v2963_v8, %v5590_v3  ;;  %v5878_v53 = vrot.slane %v2963_v8, %v3013_v10  ;;  %v2967_v4 = vrot.slane %v2962_v12, %v5586_v63 }
0x112b   : > { %v2775_v33 = vmul.f32 %v4145_v42, %v2767_v30  ;;  %v5893_v14 = vrot.slane %v2963_v8, %v3033_v2  ;;  %v5896_v27 = vrot.slane %v2963_v8, %v3053_v18  ;;  %v5900_v30 = vrot.slane %v2962_v12, %v3073_v19 }
0x112c   : > { %v4839_v31 = vpop.eup %4838  ;;  %v5876_v16 = vmul.f32 0.0, %v5867_v9  ;;  %v5887_v6 = vmul.f32 0.0, %v5873_v13  ;;  %v5890_v5 = vmul.f32 0.0, %v5878_v53 }
0x112d   : > { %v2768_v32 = vmul.f32 %v4839_v31, %v2754_v11  ;;  %v2783_v36 = vadd.f32 %v4146_v34, %v2775_v33  ;;  %v2807_v11 = vrot.slane %v2802_v48, %v5586_v63  ;;  %v5902_v31 = vrot.slane %v2962_v12, %v3093_v15 }
0x112e   : > { %v3151_v21 = vrot.slane %v5876_v16, 2  ;;  %v3132_v33 = vrot.slane %v5887_v6, 1  ;;  %v5916_v43 = vmul.f32 0.0, %v5896_v27 }
0x112f   : > { %v2776_v35 = vmul.f32 %v4145_v42, %v2768_v32  ;;  %v5905_v32 = vrot.slane %v2963_v8, %v5586_v63 }
0x1131   : > { %v2784_v37 = vadd.f32 %v4146_v34, %v2776_v35  ;;  %v3170_v34 = vrot.slane %v5890_v5, 3 }
0x1133   : > { %v2785_v38 = vpack.c.bf16 %v2784_v37, %v2783_v36  ;;  %v5911_v37 = vmul.f32 0.0, %v5893_v14 }
0x1135   : > { %2927 = vmatmul.mubr.bf16.vlgmr.msra.gmra.mxu1 %v2785_v38  ;;  %v5913_v38 = vrot.slane %v2963_v8, %v3073_v19 }
0x1136   : > { %3570 = vmatprep.mubr.bf16.mxu1 %v5216_v22  ;;  %v4737_v22 = vld [vmem:[%s6121_s12 + $0x10] sm:$0xff]  }
0x1137   : > { %4455 = vmatpush3.bf16.msra.mxu0 %v4737_v22 }
0x1138   : > { %4456 = vmatprep.subr.bf16.mxu0 %v5217_v52 }
0x113b   : > { %4457 = vmatpush3.bf16.msra.mxu0 %v4738_v45 }
0x113c   : > { %4458 = vmatprep.subr.bf16.mxu0 %v5217_v52 }
0x113f   : > { %4459 = vmatpush3.bf16.msra.mxu0 %v4739_v46 }
0x11f5   : > { %v2928_v51 = vpop.f32.mrf.mxu1 }
0x11f6   : > { %v2929_v17 = vadd.f32 %v2928_v51, %v2807_v11 }
0x11f7   : > { %v2930_v0 = vpop.f32.mrf.mxu1 }
0x11f8   : > { %v2931_v1 = vadd.f32 %v2930_v0, %v2811_v50 }
0x11f9   : > { %v2932_v60 = vpop.f32.mrf.mxu1 }
0x11fa   : > { %v4163_v56 = vmul.f32 -1.442695, %v2931_v1  ;;  %v2933_v62 = vadd.f32 %v2932_v60, %v2807_v11 }
0x11fb   : > { %v2934_v57 = vpop.f32.mrf.mxu1 }
0x11fc   : > { %4840 = vpow2.f32 %v4163_v56  ;;  %v2935_v59 = vadd.f32 %v2934_v57, %v2811_v50 }
0x11fe   : > { %v4164_v61 = vmul.f32 -1.442695, %v2935_v59 }
0x1200   : > { %4842 = vpow2.f32 %v4164_v61 }
0x1209   : > { %v4841_v47 = vpop.eup %4840 }
0x120a   : > { %v2943_v7 = vadd.f32 1.0, %v4841_v47 }
0x120c   : > { %4844 = vrcp.f32 %v2943_v7 }
0x120d   : > { %v4843_v52 = vpop.eup %4842 }
0x120e   : > { %v2944_v49 = vadd.f32 1.0, %v4843_v52 }
0x1210   : > { %4846 = vrcp.f32 %v2944_v49 }
0x1219   : > { %v4845_v20 = vpop.eup %4844 }
0x121a   : > { %v2949_v23 = vmul.f32 %v4845_v20, %v2929_v17 }
0x121c   : > { %v2954_v28 = vrot.slane %v2949_v23, 1 }
0x121d   : > { %v4847_v42 = vpop.eup %4846 }
0x121e   : > { %v2960_v35 = vsel %vm2953_vm5, 0.0, %v2954_v28  ;;  %v2950_v36 = vmul.f32 %v4847_v42, %v2933_v62 }
0x121f   : > { %v2976_v39 = vmul.f32 %v2975_v24, %v2960_v35  ;;  %v2995_v40 = vmul.f32 %v2994_v54, %v2960_v35  ;;  %v3015_v41 = vmul.f32 %v3014_v25, %v2960_v35  ;;  %v2968_v44 = vmul.f32 %v2967_v4, %v2960_v35 }
0x1220   : > { %v2955_v22 = vrot.slane %v2950_v36, 1  ;;  %v3035_v45 = vmul.f32 %v3034_v26, %v2960_v35  ;;  %v3055_v46 = vmul.f32 %v5898_v29, %v2960_v35  ;;  %v3075_v0 = vmul.f32 %v5900_v30, %v2960_v35 }
0x1221   : > { %v2982_v48 = vrot.slane %v2976_v39, 1  ;;  %v3002_v50 = vrot.slane %v2995_v40, 2  ;;  %v3022_v51 = vrot.slane %v3015_v41, 3  ;;  %v3095_v57 = vmul.f32 %v5902_v31, %v2960_v35 }
0x1222   : > { %v5921_v1 = vsel %vm2953_vm5, %v2954_v28, %v2955_v22  ;;  %v5924_v60 = vsel %vm2953_vm5, %v2955_v22, 0.0  ;;  %v3042_v56 = vrot.slane %v3035_v45, 4 }
0x1223   : > { %v2969_v59 = vmul.f32 %v2967_v4, %v5921_v1  ;;  %v2977_v61 = vmul.f32 %v2975_v24, %v5921_v1  ;;  %v2978_v47 = vmul.f32 %v2975_v24, %v5924_v60  ;;  %v2996_v7 = vmul.f32 %v2994_v54, %v5921_v1 }
0x1224   : > { %v2997_v52 = vmul.f32 %v2994_v54, %v5924_v60  ;;  %v3016_v8 = vmul.f32 %v3014_v25, %v5921_v1  ;;  %v3017_v49 = vmul.f32 %v3014_v25, %v5924_v60  ;;  %v3036_v10 = vmul.f32 %v3034_v26, %v5921_v1 }
0x1225   : > { %v2983_v11 = vrot.slane %v2977_v61, 1  ;;  %v2985_v12 = vrot.slane %v2978_v47, 1  ;;  %v3003_v2 = vrot.slane %v2996_v7, 2  ;;  %v3037_v17 = vmul.f32 %v3034_v26, %v5924_v60 }
0x1226   : > { %v3005_v18 = vrot.slane %v2997_v52, 2  ;;  %v3023_v19 = vrot.slane %v3016_v8, 3  ;;  %v3025_v20 = vrot.slane %v3017_v49, 3  ;;  %v3043_v15 = vrot.slane %v3036_v10, 4 }
0x1227   : > { %v2984_v23 = vsel %vm2953_vm5, %v2982_v48, %v2983_v11  ;;  %v2986_v54 = vsel %vm2953_vm5, %v2983_v11, %v2985_v12  ;;  %v3045_v4 = vrot.slane %v3037_v17, 4  ;;  %v3062_v24 = vrot.slane %v3055_v46, 5 }
0x1228   : > { %v2989_v25 = vadd.f32 %v2984_v23, %v2968_v44  ;;  %v2990_v28 = vadd.f32 %v2986_v54, %v2969_v59  ;;  %v3004_v62 = vsel %vm3001_vm6, %v3002_v50, %v3003_v2  ;;  %v3006_v42 = vsel %vm3001_vm6, %v3003_v2, %v3005_v18 }
0x1229   : > { %v3024_v35 = vsel %vm3021_vm7, %v3022_v51, %v3023_v19  ;;  %v3026_v26 = vsel %vm3021_vm7, %v3023_v19, %v3025_v20  ;;  %v3044_v36 = vsel %vm3041_vm8, %v3042_v56, %v3043_v15  ;;  %v3056_v39 = vmul.f32 %v5898_v29, %v5921_v1 }
0x122a   : > { %v3009_v40 = vadd.f32 %v3004_v62, %v2989_v25  ;;  %v3010_v41 = vadd.f32 %v3006_v42, %v2990_v28  ;;  %v3057_v22 = vmul.f32 %v5898_v29, %v5924_v60  ;;  %v3076_v44 = vmul.f32 %v5900_v30, %v5921_v1 }
0x122b   : > { %v3046_v45 = vsel %vm3041_vm8, %v3043_v15, %v3045_v4  ;;  %v3063_v46 = vrot.slane %v3056_v39, 5  ;;  %v3077_v48 = vmul.f32 %v5900_v30, %v5924_v60  ;;  %v3096_v50 = vmul.f32 %v5902_v31, %v5921_v1 }
0x122c   : > { %v3029_v51 = vadd.f32 %v3024_v35, %v3009_v40  ;;  %v3030_v56 = vadd.f32 %v3026_v26, %v3010_v41  ;;  %v3065_v59 = vrot.slane %v3057_v22, 5  ;;  %v3083_v61 = vrot.slane %v3076_v44, 6 }
0x122d   : > { %v3064_v47 = vsel %vm3061_vm9, %v3062_v24, %v3063_v46  ;;  %v3082_v7 = vrot.slane %v3075_v0, 6  ;;  %v3085_v29 = vrot.slane %v3077_v48, 6  ;;  %v3097_v52 = vmul.f32 %v5902_v31, %v5924_v60 }
0x122e   : > { %v3049_v8 = vadd.f32 %v3044_v36, %v3029_v51  ;;  %v3050_v49 = vadd.f32 %v3046_v45, %v3030_v56  ;;  %v3066_v10 = vsel %vm3061_vm9, %v3063_v46, %v3065_v59  ;;  %v3102_v11 = vrot.slane %v3095_v57, 7 }
0x122f   : > { %v3084_v30 = vsel %vm3081_vm10, %v3082_v7, %v3083_v61  ;;  %v3086_v12 = vsel %vm3081_vm10, %v3083_v61, %v3085_v29  ;;  %v3103_v2 = vrot.slane %v3096_v50, 7  ;;  %v3105_v17 = vrot.slane %v3097_v52, 7 }
0x1230   : > { %v3069_v18 = vadd.f32 %v3064_v47, %v3049_v8  ;;  %v3070_v19 = vadd.f32 %v3066_v10, %v3050_v49  ;;  %v3115_v0 = vmul.f32 %v5905_v32, %v5921_v1  ;;  %v3123_v20 = vmul.f32 %v5873_v13, %v5921_v1 }
0x1231   : > { %v3104_v31 = vsel %vm3101_vm11, %v3102_v11, %v3103_v2  ;;  %v3106_v15 = vsel %vm3101_vm11, %v3103_v2, %v3105_v17  ;;  %v3124_v57 = vmul.f32 %v5873_v13, %v5924_v60  ;;  %v3142_v23 = vmul.f32 %v5867_v9, %v5921_v1 }
0x1232   : > { %v3089_v54 = vadd.f32 %v3084_v30, %v3069_v18  ;;  %v3090_v4 = vadd.f32 %v3086_v12, %v3070_v19  ;;  %v3129_v24 = vrot.slane %v3123_v20, 1  ;;  %v3143_v25 = vmul.f32 %v5867_v9, %v5924_v60 }
0x1233   : > { %v3130_v28 = vrot.slane %v3124_v57, 1  ;;  %v3148_v62 = vrot.slane %v3142_v23, 2  ;;  %v3161_v42 = vmul.f32 %v5878_v53, %v5921_v1  ;;  %v3162_v35 = vmul.f32 %v5878_v53, %v5924_v60 }
0x1234   : > { %v3109_v26 = vadd.f32 %v3104_v31, %v3089_v54  ;;  %v3110_v36 = vadd.f32 %v3106_v15, %v3090_v4  ;;  %v3116_v13 = vmul.f32 %v5905_v32, %v5924_v60  ;;  %v3149_v39 = vrot.slane %v3143_v25, 2  ;;  %v4166_v15 = vld [vmem:[%s6124_s1] ss:$0 sm:$0xff]  ;;  %s1168_s1 = scalar_lea.vmem %s5400_s8, %s4224_s22 }
0x1235   : > { %v3131_v40 = vsel %vm2953_vm5, %v3129_v24, %v3130_v28  ;;  %v3180_v41 = vmul.f32 %v5893_v14, %v5921_v1  ;;  %v3189_v9 = vrot.slane %v5911_v37, 4  ;;  %v3220_v22 = vmul.f32 0.0, %v5913_v38  ;;  %v4167_v54 = vld [vmem:[%s6125_s26] ss:$0 sm:$0xff] }
0x1236   : > { %v3117_v44 = vadd.f32 %v3115_v0, %v3109_v26  ;;  %v3118_v45 = vadd.f32 %v3116_v13, %v3110_v36  ;;  %v3133_v53 = vsel %vm2953_vm5, %v3130_v28, %v3132_v33  ;;  %v3167_v46 = vrot.slane %v3161_v42, 3  ;;  %v4165_v0 = vld [vmem:[#allocation7] ss:$0 sm:$0xff] }
0x1237   : > { %v3150_v48 = vsel %vm3001_vm6, %v3148_v62, %v3149_v39  ;;  %v3152_v32 = vsel %vm3001_vm6, %v3149_v39, %v3151_v21  ;;  %v3168_v50 = vrot.slane %v3162_v35, 3  ;;  %v3181_v51 = vmul.f32 %v5893_v14, %v5924_v60 }
0x1238   : > { %v3136_v37 = vadd.f32 %v3131_v40, %v3117_v44  ;;  %v3137_v56 = vadd.f32 %v3133_v53, %v3118_v45  ;;  %v3199_v59 = vmul.f32 %v5896_v27, %v5921_v1  ;;  %v3200_v6 = vmul.f32 %v5896_v27, %v5924_v60  ;;  %v4170_v44 = vld [vmem:[#allocation9] ss:$0 sm:$0xff] }
0x1239   : > { %v3186_v33 = vrot.slane %v3180_v41, 4  ;;  %v3187_v61 = vrot.slane %v3181_v51, 4  ;;  %v3218_v47 = vmul.f32 %v5913_v38, %v5921_v1  ;;  %v3219_v16 = vmul.f32 %v5913_v38, %v5924_v60 }
0x123a   : > { %v3155_v21 = vadd.f32 %v3150_v48, %v3136_v37  ;;  %v3156_v7 = vadd.f32 %v3152_v32, %v3137_v56  ;;  %v3208_v14 = vrot.slane %v5916_v43, 5  ;;  %v3169_v29 = vsel %vm3021_vm7, %v3167_v46, %v3168_v50  ;;  %v4740_v56 = vld [vmem:[%s6126_s16 + $0x70] ss:$8 sps:$4 sm:$0xff]  }
0x123b   : > { %v3171_v52 = vsel %vm3021_vm7, %v3168_v50, %v3170_v34  ;;  %v3205_v8 = vrot.slane %v3199_v59, 5  ;;  %v3206_v27 = vrot.slane %v3200_v6, 5  ;;  %v3227_v11 = vrot.slane %v3220_v22, 6  ;;  %v4742_v59 = vld [vmem:[%s6126_s16 + $0x74] ss:$8 sps:$4 sm:$0xff]  }
0x123c   : > { %v3174_v49 = vadd.f32 %v3169_v29, %v3155_v21  ;;  %v3175_v10 = vadd.f32 %v3171_v52, %v3156_v7  ;;  %v3188_v1 = vsel %vm3041_vm8, %v3186_v33, %v3187_v61  ;;  %v3190_v38 = vsel %vm3041_vm8, %v3187_v61, %v3189_v9  ;;  %3538 = vmatprep.subr.bf16.mxu1 %v4742_v59  ;;  %v4743_v7 = vld [vmem:[%s6126_s16 + $0x60] ss:$8 sps:$4 sm:$0xff]   ;;  %v4746_v29 = vld [vmem:[%s6126_s16 + $0x50] ss:$8 sps:$4 sm:$0xff]   ;;  %v4748_v52 = vld [vmem:[%s6126_s16 + $0x54] ss:$8 sps:$4 sm:$0xff]  }
0x123d   : > { %v3224_v60 = vrot.slane %v3218_v47, 6  ;;  %v3225_v30 = vrot.slane %v3219_v16, 6  ;;  %v3207_v2 = vsel %vm3061_vm9, %v3205_v8, %v3206_v27  ;;  %v3209_v5 = vsel %vm3061_vm9, %v3206_v27, %v3208_v14  ;;  %3539 = vmatpush1.bf16.msra.mxu1 %v4740_v56  ;;  %v4745_v14 = vld [vmem:[%s6126_s16 + $0x64] ss:$8 sps:$4 sm:$0xff]   ;;  %v4749_v27 = vld [vmem:[%s6126_s16 + $0x40] ss:$8 sps:$4 sm:$0xff]  }
0x123e   : > { %v3193_v43 = vadd.f32 %v3188_v1, %v3174_v49  ;;  %v3194_v12 = vadd.f32 %v3190_v38, %v3175_v10  ;;  %3540 = vmatprep.subr.bf16.mxu1 %v4745_v14  ;;  %v4751_v8 = vld [vmem:[%s6126_s16 + $0x44] ss:$8 sps:$4 sm:$0xff]   ;;  %v4754_v49 = vld [vmem:[%s6126_s16 + $0x34] ss:$8 sps:$4 sm:$0xff]   ;;  %v4752_v10 = vld [vmem:[%s6126_s16 + $0x30] ss:$8 sps:$4 sm:$0xff]  }
0x123f   : > { %v3226_v18 = vsel %vm3081_vm10, %v3224_v60, %v3225_v30  ;;  %v3228_v19 = vsel %vm3081_vm10, %v3225_v30, %v3227_v11  ;;  %v4757_v11 = vld [vmem:[%s6126_s16 + $0x24] ss:$8 sps:$4 sm:$0xff]   ;;  %v4755_v1 = vld [vmem:[%s6126_s16 + $0x20] ss:$8 sps:$4 sm:$0xff]   ;;  %v4760_v38 = vld [vmem:[%s6126_s16 + $0x14] ss:$8 sps:$4 sm:$0xff]  }
0x1240   : > { %v3212_v34 = vadd.f32 %v3207_v2, %v3193_v43  ;;  %v3213_v17 = vadd.f32 %v3209_v5, %v3194_v12  ;;  %v4758_v60 = vld [vmem:[%s6126_s16 + $0x10] ss:$8 sps:$4 sm:$0xff]   ;;  %v4763_v30 = vld [vmem:[%s6126_s16 + $0x4] ss:$8 sps:$4 sm:$0xff]   ;;  %v4761_v43 = vld [vmem:[%s6126_s16] ss:$8 sps:$4 sm:$0xff]  }
0x1241   : > { %3541 = vmatpush1.bf16.msra.mxu1 %v4743_v7 }
0x1242   : > { %v3231_v20 = vadd.f32 %v3226_v18, %v3212_v34  ;;  %v3232_v31 = vadd.f32 %v3228_v19, %v3213_v17  ;;  %3542 = vmatprep.subr.bf16.mxu1 %v4748_v52 }
0x1244   : > { %v3240_v57 = vadd.f32 %v4165_v0, %v3231_v20  ;;  %v3241_v23 = vadd.f32 %v4165_v0, %v3232_v31  ;;  %v4179_v20 = vld [vmem:[#allocation10] ss:$0 sm:$0xff] }
0x1245   : > { %3543 = vmatpush1.bf16.msra.mxu1 %v4746_v29 }
0x1246   : > { %v3249_v4 = vmul.f32 %v4166_v15, %v3240_v57  ;;  %v3250_v24 = vmul.f32 %v4166_v15, %v3241_v23  ;;  %3544 = vmatprep.subr.bf16.mxu1 %v4751_v8  ;;  %v4180_v23 = vld [vmem:[#allocation12] ss:$0 sm:$0xff] }
0x1248   : > { %v3258_v25 = vadd.f32 %v4167_v54, %v3249_v4  ;;  %v3259_v28 = vadd.f32 %v4167_v54, %v3250_v24 }
0x1249   : > { %3545 = vmatpush1.bf16.msra.mxu1 %v4749_v27 }
0x124a   : > { %v4168_v62 = vmul.f32 -1.442695, %v3258_v25  ;;  %v4169_v42 = vmul.f32 -1.442695, %v3259_v28  ;;  %3546 = vmatprep.subr.bf16.mxu1 %v4754_v49 }
0x124c   : > { %4848 = vpow2.f32 %v4168_v62  ;;  %v4765_v62 = vld [vmem:[%s6127_s18 + $0x38] sm:$0xff]  }
0x124d   : > { %4850 = vpow2.f32 %v4169_v42  ;;  %3547 = vmatpush1.bf16.msra.mxu1 %v4752_v10  ;;  %v4766_v42 = vld [vmem:[%s6127_s18 + $0x70] sm:$0xff]  }
0x124e   : > { %3548 = vmatprep.subr.bf16.mxu1 %v4757_v11 }
0x1251   : > { %3549 = vmatpush1.bf16.msra.mxu1 %v4755_v1 }
0x1252   : > { %3550 = vmatprep.subr.bf16.mxu1 %v4760_v38 }
0x1255   : > { %3551 = vmatpush1.bf16.msra.mxu1 %v4758_v60 }
0x1256   : > { %3552 = vmatprep.subr.bf16.mxu1 %v4763_v30 }
0x1259   : > { %v4849_v35 = vpop.eup %4848  ;;  %3553 = vmatpush1.bf16.msra.mxu1 %v4761_v43 }
0x125a   : > { %v4851_v26 = vpop.eup %4850  ;;  %v3266_v36 = vadd.f32 1.0, %v4849_v35  ;;  %v4767_v35 = vld [vmem:[%s6127_s18 + $0x30] sm:$0xff]  }
0x125b   : > { %v3267_v13 = vadd.f32 1.0, %v4851_v26  ;;  %v4768_v26 = vld [vmem:[%s6127_s18 + $0x68] sm:$0xff]  }
0x125c   : > { %4852 = vrcp.f32 %v3266_v36  ;;  %v4769_v36 = vld [vmem:[%s6127_s18 + $0x28] sm:$0xff]  }
0x125d   : > { %4854 = vrcp.f32 %v3267_v13  ;;  %v4770_v13 = vld [vmem:[%s6127_s18 + $0x60] sm:$0xff]  }
0x1269   : > { %v4853_v39 = vpop.eup %4852 }
0x126a   : > { %v4855_v40 = vpop.eup %4854  ;;  %v3272_v41 = vmul.f32 %v4853_v39, %v3258_v25  ;;  %v4771_v39 = vld [vmem:[%s6127_s18 + $0x20] sm:$0xff]  }
0x126b   : > { %v3273_v9 = vmul.f32 %v4855_v40, %v3259_v28  ;;  %v4764_v28 = vld [vmem:[%s6127_s18 + $0x78] sm:$0xff]  }
0x126c   : > { %4310 = vmatprep.subr.bf16.mxu0 %v4764_v28  ;;  %v4772_v40 = vld [vmem:[%s6127_s18 + $0x58] sm:$0xff]  }
0x126d   : > { %v3274_v22 = vpack.c.bf16 %v3273_v9, %v3272_v41  ;;  %v4773_v41 = vld [vmem:[%s6127_s18 + $0x18] sm:$0xff]   ;;  %v4774_v9 = vld [vmem:[%s6127_s18 + $0x50] sm:$0xff]  }
0x126f   : > { %4461 = vmatmul.mubr.bf16.vlgmr.msra.gmra.mxu0 %v3274_v22  ;;  %v4775_v22 = vld [vmem:[%s6127_s18 + $0x10] sm:$0xff]  }
0x1270   : > { %4311 = vmatpush3.bf16.msra.mxu0 %v4765_v62 }
0x1271   : > { %4312 = vmatprep.subr.bf16.mxu0 %v4766_v42 }
0x1274   : > { %4313 = vmatpush3.bf16.msra.mxu0 %v4767_v35 }
0x1275   : > { %4314 = vmatprep.subr.bf16.mxu0 %v4768_v26 }
0x1278   : > { %4315 = vmatpush3.bf16.msra.mxu0 %v4769_v36 }
0x1279   : > { %4316 = vmatprep.subr.bf16.mxu0 %v4770_v13 }
0x127c   : > { %4317 = vmatpush3.bf16.msra.mxu0 %v4771_v39 }
0x127d   : > { %4318 = vmatprep.subr.bf16.mxu0 %v4772_v40 }
0x1280   : > { %4319 = vmatpush3.bf16.msra.mxu0 %v4773_v41 }
0x1281   : > { %4320 = vmatprep.subr.bf16.mxu0 %v4774_v9 }
0x1284   : > { %4321 = vmatpush3.bf16.msra.mxu0 %v4775_v22 }
0x132f   : > { %v3380_v45 = vpop.f32.mrf.mxu0 }
0x1330   : > { %v3381_v53 = vadd.f32 %v4170_v44, %v3380_v45  ;;  %v4777_v45 = vld [vmem:[%s6127_s18 + $0x8] sm:$0xff]  }
0x1331   : > { %v4462_v46 = vpop.f32.mrf.mxu0 }
0x1332   : > { %v6014_v48 = vadd.f32 %v3381_v53, %v5822_v55  ;;  %v4778_v53 = vld [vmem:[%s6127_s18 + $0x40] sm:$0xff]  }
0x1333   : > { %v3383_v32 = vpop.f32.mrf.mxu0  ;;  %v4779_v46 = vld [vmem:[%s6127_s18] sm:$0xff]  }
0x1334   : > { %v3384_v50 = vadd.f32 %v4170_v44, %v3383_v32  ;;  %3391 = vadd.xlane.f32.xlu0 %v6014_v48  ;;  %v4776_v44 = vld [vmem:[%s6127_s18 + $0x48] sm:$0xff]   ;;  %v3446_v32 = vld [vmem:[%s6128_s28] sm:$0x3] }
0x1335   : > { %v4463_v51 = vpop.f32.mrf.mxu0  ;;  %4322 = vmatprep.subr.bf16.mxu0 %v4776_v44 }
0x1336   : > { %v6018_v37 = vadd.f32 %v3384_v50, %v5826_v58  ;;  %4323 = vmatpush3.bf16.msra.mxu0 %v4777_v45  ;;  %v3451_v50 = vrot.slane %v3446_v32, %v5586_v63  ;;  %v3455_v51 = vrot.slane %v3446_v32, %v5590_v3 }
0x1337   : > { %4324 = vmatprep.subr.bf16.mxu0 %v4778_v53  ;;  %v4218_v53 = vld [vmem:[#allocation15] ss:$0 sm:$0xff] }
0x1338   : > { %3393 = vadd.xlane.f32.xlu1 %v6018_v37 }
0x133a   : > { %4325 = vmatpush3.bf16.msra.mxu0 %v4779_v46 }
0x13bd   : > { %v3392_v55 = vpop.xlane.xlu0 %3391 }
0x13be   : > { %v3395_v6 = vmul.f32 0.0078125, %v3392_v55 }
0x13c0   : > { %v3397_v33 = vsub.f32 %v6014_v48, %v3395_v6 }
0x13c1   : > { %v3394_v61 = vpop.xlane.xlu1 %3393 }
0x13c2   : > { %v3396_v47 = vmul.f32 0.0078125, %v3394_v61  ;;  %v3399_v58 = vmul.f32 %v3397_v33, %v3397_v33 }
0x13c4   : > { %v3398_v16 = vsub.f32 %v6018_v37, %v3396_v47  ;;  %3401 = vadd.xlane.f32.xlu0 %v3399_v58 }
0x13c6   : > { %v3400_v21 = vmul.f32 %v3398_v16, %v3398_v16 }
0x13c8   : > { %3403 = vadd.xlane.f32.xlu1 %v3400_v21 }
0x144d   : > { %v3402_v12 = vpop.xlane.xlu0 %3401 }
0x144e   : > { %v3405_v2 = vmul.f32 0.0078125, %v3402_v12 }
0x1450   : > { %v3407_v5 = vadd.f32 1e-05, %v3405_v2 }
0x1451   : > { %v3404_v34 = vpop.xlane.xlu1 %3403 }
0x1452   : > { %4856 = vrsqrt.f32 %v3407_v5  ;;  %v3406_v17 = vmul.f32 0.0078125, %v3404_v34 }
0x1454   : > { %v3408_v18 = vadd.f32 1e-05, %v3406_v17 }
0x1456   : > { %4858 = vrsqrt.f32 %v3408_v18  ;;  %v4201_v18 = vld [vmem:[#allocation13] ss:$0 sm:$0xff] }
0x145f   : > { %v4857_v19 = vpop.eup %4856 }
0x1460   : > { %v3411_v0 = vmul.f32 %v4857_v19, %v3397_v33 }
0x1462   : > { %v3419_v57 = vmul.f32 %v4179_v20, %v3411_v0 }
0x1463   : > { %v4859_v31 = vpop.eup %4858 }
0x1464   : > { %v3412_v15 = vmul.f32 %v4859_v31, %v3398_v16  ;;  %v3427_v4 = vadd.f32 %v4180_v23, %v3419_v57 }
0x1466   : > { %v3420_v54 = vmul.f32 %v4179_v20, %v3412_v15 }
0x1468   : > { %v3428_v24 = vadd.f32 %v4180_v23, %v3420_v54 }
0x146a   : > { %v3429_v25 = vpack.c.bf16 %v3428_v24, %v3427_v4 }
0x146c   : > { %3571 = vmatmul.mubr.bf16.vlgmr.msra.gmra.mxu1 %v3429_v25 }
0x152c   : > { %v3572_v56 = vpop.f32.mrf.mxu1 }
0x152d   : > { %v3573_v59 = vadd.f32 %v3572_v56, %v3451_v50 }
0x152e   : > { %v3574_v55 = vpop.f32.mrf.mxu1 }
0x152f   : > { %v4197_v6 = vmul.f32 -1.442695, %v3573_v59  ;;  %v3575_v33 = vadd.f32 %v3574_v55, %v3455_v51 }
0x1530   : > { %v3576_v61 = vpop.f32.mrf.mxu1 }
0x1531   : > { %v4198_v47 = vmul.f32 -1.442695, %v3575_v33  ;;  %v3577_v58 = vadd.f32 %v3576_v61, %v3451_v50  ;;  %4860 = vpow2.f32 %v4197_v6 }
0x1532   : > { %v3578_v16 = vpop.f32.mrf.mxu1 }
0x1533   : > { %4862 = vpow2.f32 %v4198_v47  ;;  %v4199_v21 = vmul.f32 -1.442695, %v3577_v58  ;;  %v3579_v7 = vadd.f32 %v3578_v16, %v3455_v51  ;;  %v4219_v51 = vld [vmem:[#allocation16] ss:$0 sm:$0xff] }
0x1535   : > { %4864 = vpow2.f32 %v4199_v21  ;;  %v4200_v14 = vmul.f32 -1.442695, %v3579_v7 }
0x1537   : > { %4866 = vpow2.f32 %v4200_v14 }
0x153e   : > { %v4861_v29 = vpop.eup %4860 }
0x153f   : > { %v3593_v8 = vadd.f32 1.0, %v4861_v29 }
0x1540   : > { %v4863_v63 = vpop.eup %4862 }
0x1541   : > { %v3594_v52 = vadd.f32 1.0, %v4863_v63 }
0x1542   : > { %v4865_v3 = vpop.eup %4864 }
0x1543   : > { %v3595_v27 = vadd.f32 1.0, %v4865_v3  ;;  %4868 = vrcp.f32 %v3594_v52 }
0x1544   : > { %v4867_v49 = vpop.eup %4866 }
0x1545   : > { %4870 = vrcp.f32 %v3595_v27  ;;  %v3596_v10 = vadd.f32 1.0, %v4867_v49 }
0x1546   : > { %4872 = vrcp.f32 %v3593_v8 }
0x1547   : > { %4874 = vrcp.f32 %v3596_v10 }
0x1550   : > { %v4869_v11 = vpop.eup %4868 }
0x1551   : > { %v3606_v43 = vmul.f32 %v4869_v11, %v3575_v33 }
0x1552   : > { %v4871_v1 = vpop.eup %4870 }
0x1553   : > { %v4873_v38 = vpop.eup %4872  ;;  %v3607_v30 = vmul.f32 %v4871_v1, %v3577_v58 }
0x1554   : > { %v4875_v60 = vpop.eup %4874  ;;  %v3605_v2 = vmul.f32 %v4873_v38, %v3573_v59 }
0x1555   : > { %v3608_v12 = vmul.f32 %v4875_v60, %v3579_v7 }
0x1556   : > { %v3609_v34 = vpack.c.bf16 %v3607_v30, %v3605_v2 }
0x1557   : > { %v3610_v5 = vpack.c.bf16 %v3608_v12, %v3606_v43 }
0x1559   : > { %3778 = vmatprep.mubr.bf16.mxu0 %v3610_v5 }
0x155a   : > { %3779 = vmatmul.mubr.bf16.vlgmr.msra.gmra.mxu0 %v3609_v34 }
0x161a   : > { %v4326_v17 = vpop.f32.mrf.mxu0 }
0x161c   : > { %v4327_v19 = vpop.f32.mrf.mxu0 }
0x161d   : > { %v4328_v0 = vadd.f32 %v4327_v19, %v4326_v17 }
0x161e   : > { %v4329_v20 = vpop.f32.mrf.mxu0 }
0x161f   : > { %v3781_v31 = vadd.f32 %v4328_v0, %v4201_v18 }
0x1620   : > { %v4330_v15 = vpop.f32.mrf.mxu0 }
0x1621   : > { %v3787_v57 = vmul.f32 0.5, %v3781_v31  ;;  %v4331_v23 = vadd.f32 %v4330_v15, %v4329_v20 }
0x1623   : > { %v3784_v54 = vadd.f32 %v4331_v23, %v4201_v18  ;;  %v3789_v4 = vadd.f32 %v3787_v57, %v6014_v48 }
0x1625   : > { %v3788_v24 = vmul.f32 0.5, %v3784_v54  ;;  %3793 = vadd.xlane.f32.xlu0 %v3789_v4 }
0x1627   : > { %v3790_v25 = vadd.f32 %v3788_v24, %v6018_v37 }
0x1629   : > { %3795 = vadd.xlane.f32.xlu1 %v3790_v25 }
0x16ae   : > { %v3794_v28 = vpop.xlane.xlu0 %3793 }
0x16af   : > { %v3797_v62 = vmul.f32 0.0078125, %v3794_v28 }
0x16b1   : > { %v3799_v42 = vsub.f32 %v3789_v4, %v3797_v62 }
0x16b2   : > { %v3796_v35 = vpop.xlane.xlu1 %3795 }
0x16b3   : > { %v3798_v26 = vmul.f32 0.0078125, %v3796_v35  ;;  %v3801_v36 = vmul.f32 %v3799_v42, %v3799_v42 }
0x16b5   : > { %v3800_v13 = vsub.f32 %v3790_v25, %v3798_v26  ;;  %3803 = vadd.xlane.f32.xlu0 %v3801_v36 }
0x16b7   : > { %v3802_v39 = vmul.f32 %v3800_v13, %v3800_v13 }
0x16b9   : > { %3805 = vadd.xlane.f32.xlu1 %v3802_v39 }
0x173e   : > { %v3804_v40 = vpop.xlane.xlu0 %3803 }
0x173f   : > { %v3807_v41 = vmul.f32 0.0078125, %v3804_v40 }
0x1741   : > { %v3809_v9 = vadd.f32 1e-05, %v3807_v41 }
0x1742   : > { %v3806_v48 = vpop.xlane.xlu1 %3805 }
0x1743   : > { %4876 = vrsqrt.f32 %v3809_v9  ;;  %v3808_v22 = vmul.f32 0.0078125, %v3806_v48 }
0x1745   : > { %v3810_v37 = vadd.f32 1e-05, %v3808_v22 }
0x1747   : > { %4878 = vrsqrt.f32 %v3810_v37 }
0x1750   : > { %v4877_v44 = vpop.eup %4876 }
0x1751   : > { %v3813_v45 = vmul.f32 %v4877_v44, %v3799_v42 }
0x1753   : > { %v3821_v32 = vmul.f32 %v4218_v53, %v3813_v45 }
0x1754   : > { %v4879_v46 = vpop.eup %4878 }
0x1755   : > { %v3814_v50 = vmul.f32 %v4879_v46, %v3800_v13  ;;  %v3829_v59 = vadd.f32 %v4219_v51, %v3821_v32 }
0x1757   : > { %v3822_v56 = vmul.f32 %v4218_v53, %v3814_v50 }
0x1759   : > { %v3830_v55 = vadd.f32 %v4219_v51, %v3822_v56 }
0x175b   : > { %v4235_v6 = vpack.c.bf16 %v3830_v55, %v3829_v59 }
0x175d   : > { %4236 = vst [vmem:[%s1168_s1] sm:$0xff] %v4235_v6  }
0x175e PF: > { %s85_s15 = sadd.s32 1, %s5170_s15  }
0x175f   : > { %p82_p11 = scmp.ge.s32.totalorder %s85_s15, 4  }
0x1761   :  { %84 = sbr.rel (!%p82_p11) target bundleno = 61 (0x3d), region = 261 }
0x1766   :  { %3862 = vsyncpa [#allocation3], 1 }
0x1767   :  { %3864 = vsyncpa [#allocation3 + $0x1], 1 }
0x1768   :  { %3865 = vsyncpa [#allocation5], 1 }
0x1769   :  { %3866 = vsyncpa [#allocation8], 1 }
0x176a   :  { %3867 = vsyncpa [#allocation11], 1 }
0x176b   :  { %3868 = vsyncpa [#allocation14], 1 }
0x176c   :  { %3869 = vsyncpa [#allocation17], 1 }

// kernel: encoder_forward.13
= control target key start
LH: loop header
LB: loop body
LE: loop exit
PB: predicated region body
PF: predicated region fallthrough
CT: control target
= control target key end

     0   :  { %s5420_s6 = smov 1   ;;  %s5421_s10 = smov 2   ;;  %s6342_s0 = inlined_call_operand.smem [shape: u32[35], index: -1, kind: input, shape index: {}] }
   0x1   :  { %s5482_s5 = sld [smem:[%s6342_s0]]   ;;  %s5422_s14 = smov 3  }
   0x2   :  { %s5487_s9 = sld [smem:[%s6342_s0 + %s5420_s6]]   ;;  %s5423_s18 = smov 4  }
   0x3   :  { %s5492_s13 = sld [smem:[%s6342_s0 + %s5421_s10]]   ;;  %s5424_s22 = smov 5  }
   0x4   :  { %s5497_s17 = sld [smem:[%s6342_s0 + %s5422_s14]]   ;;  %s5425_s26 = smov 6  }
   0x5   :  { %s5502_s21 = sld [smem:[%s6342_s0 + %s5423_s18]]   ;;  %s5426_s30 = smov 7  }
   0x6   :  { %s5507_s25 = sld [smem:[%s6342_s0 + %s5424_s22]]   ;;  %s5427_s4 = smov 8  }
   0x7   :  { %s5512_s29 = sld [smem:[%s6342_s0 + %s5425_s26]]   ;;  %s5428_s10 = smov 9  }
   0x8   :  { %6354 = sst [smem:[#allocation32_spill]] %s5487_s9  ;;  %s5429_s15 = smov 10  }
   0x9   :  { %s5517_s3 = sld [smem:[%s6342_s0 + %s5426_s30]]   ;;  %s5430_s20 = smov 11  }
   0xa   :  { %s5522_s8 = sld [smem:[%s6342_s0 + %s5427_s4]]   ;;  %s5431_s26 = smov 12  }
   0xb   :  { %s5527_s14 = sld [smem:[%s6342_s0 + %s5428_s10]]   ;;  %s5432_s1 = smov 13  }
   0xc   :  { %6355 = sst [smem:[#allocation33_spill]] %s5507_s25  ;;  %s5433_s7 = smov 14  }
   0xd   :  { %6356 = sst [smem:[#allocation34_spill]] %s5512_s29  ;;  %s5435_s22 = smov 16  }
   0xe   :  { %s5532_s19 = sld [smem:[%s6342_s0 + %s5429_s15]]   ;;  %s5434_s15 = smov 15  }
   0xf   :  { %6357 = sst [smem:[#allocation35_spill]] %s5517_s3  ;;  %s5436_s28 = smov 17  }
  0x10   :  { %s5537_s24 = sld [smem:[%s6342_s0 + %s5430_s20]]  }
  0x11   :  { %s5542_s30 = sld [smem:[%s6342_s0 + %s5431_s26]]  }
  0x12   :  { %s5547_s6 = sld [smem:[%s6342_s0 + %s5432_s1]]  }
  0x13   :  { %s5552_s12 = sld [smem:[%s6342_s0 + %s5433_s7]]   ;;  %s5437_s7 = smov 18  }
  0x14   :  { %6358 = sst [smem:[#allocation36_spill]] %s5532_s19 }
  0x15   :  { %s5557_s20 = sld [smem:[%s6342_s0 + %s5434_s15]]   ;;  %s5438_s15 = smov 19  }
  0x16   :  { %6359 = sst [smem:[#allocation37_spill]] %s5537_s24 }
  0x17   :  { %6360 = sst [smem:[#allocation38_spill]] %s5542_s30 }
  0x18   :  { %6361 = sst [smem:[#allocation39_spill]] %s5547_s6 }
  0x19   :  { %6362 = sst [smem:[#allocation40_spill]] %s5552_s12 }
  0x1a   :  { %s5562_s27 = sld [smem:[%s6342_s0 + %s5435_s22]]   ;;  %s5439_s22 = smov 20  }
  0x1b   :  { %s5567_s4 = sld [smem:[%s6342_s0 + %s5436_s28]]   ;;  %s5440_s28 = smov 21  }
  0x1c   :  { %s5572_s12 = sld [smem:[%s6342_s0 + %s5437_s7]]   ;;  %s5441_s7 = smov 22  }
  0x1d   :  { %s5577_s30 = sld [smem:[%s6342_s0 + %s5438_s15]]   ;;  %s5442_s15 = smov 23  }
  0x1e   :  { %s5582_s6 = sld [smem:[%s6342_s0 + %s5439_s22]]   ;;  %s5443_s22 = smov 24  }
  0x1f   :  { %s5587_s24 = sld [smem:[%s6342_s0 + %s5440_s28]]   ;;  %s5444_s28 = smov 25  }
  0x20   :  { %s5607_s9 = sld [smem:[%s6342_s0 + %s5444_s28]]   ;;  %s5448_s28 = smov 29  }
  0x21   :  { %s5627_s19 = sld [smem:[%s6342_s0 + %s5448_s28]]   ;;  %s5452_s28 = smov 33  }
  0x22   :  { %6363 = sst [smem:[#allocation41_spill]] %s5572_s12 }
  0x23   :  { %6364 = sst [smem:[#allocation42_spill]] %s5577_s30 }
  0x24   :  { %6365 = sst [smem:[#allocation43_spill]] %s5582_s6 }
  0x25   :  { %s5592_s12 = sld [smem:[%s6342_s0 + %s5441_s7]]   ;;  %s5445_s7 = smov 26  }
  0x26   :  { %s5597_s30 = sld [smem:[%s6342_s0 + %s5442_s15]]   ;;  %s5446_s15 = smov 27  }
  0x27   :  { %s5602_s6 = sld [smem:[%s6342_s0 + %s5443_s22]]   ;;  %s5447_s22 = smov 28  }
  0x28   :  { %6370 = sst [smem:[#allocation48_spill]] %s5627_s19 }
  0x29   :  { %s5647_s19 = sld [smem:[%s6342_s0 + %s5452_s28]]  }
  0x2b   :  { %6366 = sst [smem:[#allocation44_spill]] %s5592_s12 }
  0x2c   :  { %6367 = sst [smem:[#allocation45_spill]] %s5597_s30 }
  0x2d   :  { %6368 = sst [smem:[#allocation46_spill]] %s5602_s6 }
  0x2e   :  { %s5612_s12 = sld [smem:[%s6342_s0 + %s5445_s7]]   ;;  %s5449_s7 = smov 30  }
  0x2f   :  { %s5617_s30 = sld [smem:[%s6342_s0 + %s5446_s15]]   ;;  %s5450_s15 = smov 31  }
  0x30   :  { %s5622_s6 = sld [smem:[%s6342_s0 + %s5447_s22]]   ;;  %s5451_s22 = smov 32  }
  0x31   :  { %s5632_s25 = sld [smem:[%s6342_s0 + %s5449_s7]]   ;;  %s5453_s7 = smov 34  }
  0x32   :  { %s5637_s29 = sld [smem:[%s6342_s0 + %s5450_s15]]  }
  0x36   :  { %6369 = sst [smem:[#allocation47_spill]] %s5622_s6 }
  0x37   :  { %6371 = sst [smem:[#allocation49_spill]] %s5632_s25 }
  0x38   :  { %s5642_s6 = sld [smem:[%s6342_s0 + %s5451_s22]]  }
  0x39   :  { %s5652_s25 = sld [smem:[%s6342_s0 + %s5453_s7]]  }
  0x3a   :  { %74 = vsyncpa [#allocation3], 0 }
  0x3b   :  { %75 = vsyncpa [#allocation5], 0 }
  0x3c   :  { %76 = vsyncpa [#allocation8], 0 }
  0x3d   :  { %77 = vsyncpa [#allocation11], 0 }
  0x3e   :  { %78 = vsyncpa [#allocation14], 0 }
  0x3f   :  { %79 = vsyncpa [#allocation17], 0 }
  0x40   :  { %80 = vsyncpa [#allocation20], 0 }
  0x41   :  { %81 = vsyncpa [#allocation23], 0  ;;  %s5654_s15 = smov 0  }
  0x42 LB: > { %s5454_s0 = smov [#allocation4]   ;;  %s5660_s18 = sadd.s32 4294967295, %s5418_s15   ;;  %s5418_s15 = sphi %s5654_s15, %s87_s15  }
  0x43   : > { %s876_s16 = sshll.u32 %s5454_s0, 4  ;;  %p4118_p0 = scmp.ge.s32.totalorder %s5418_s15, 1  ;;  %s877_s16 = int_to_ptr.vmem [resolvable:$true] %s876_s16 }
  0x44   : > { %p837_p1 = scmp.lt.s32.totalorder %s5418_s15, 3  ;;  %p6352_p2 = scmp.eq.s32.totalorder %s5660_s18, 0 }
  0x45   : > { %s5455_s23 = smov [#allocation7]   ;;  %s5456_s28 = smov [#allocation10]  }
  0x46   : > { %p5665_p3 = pnand %p4118_p0, %p837_p1  ;;  %s898_s26 = sshll.u32 %s5455_s23, 4  ;;  %s5671_s26 = int_to_ptr.vmem [resolvable:$true] %s898_s26 }
  0x47   : > { %s935_s1 = sshll.u32 %s5456_s28, 4  ;;  %s5457_s7 = smov [#allocation13]   ;;  %s5679_s1 = int_to_ptr.vmem [resolvable:$true] %s935_s1 }
  0x48   : > { %s6372_s22 = scalar_select %p5665_p3, 1, 0 }
  0x49   : > { %p4616_p4 = pneg %p5665_p3  ;;  %s966_s10 = sshll.u32 %s5457_s7, 4  ;;  %s5681_s10 = int_to_ptr.vmem [resolvable:$true] %s966_s10 }
  0x4a   : > { %s5027_s0 = scalar_lea.vmem %s877_s16, 16  ;;  %s5034_s23 = scalar_lea.vmem %s877_s16, 32 }
  0x4b   : > { %p5675_p5 = pnand %p6352_p2, %p4616_p4  ;;  %p5028_p7 = scmp.ne.s32.totalorder %s877_s16, %s5027_s0 }
  0x4c   : > { %p5035_p10 = scmp.lt.s32.totalorder %s877_s16, %s877_s16  ;;  %p5036_p11 = scmp.lt.s32.totalorder %s5034_s23, %s5027_s0 }
  0x4d   : > { %p5685_p6 = pneg %p5675_p5 }
  0x4e   : > { %p5037_p12 = por %p5036_p11, %p5035_p10 }
  0x4f   : > { %p5030_p8 = pnand %p5028_p7, %p5685_p6 }
  0x51   : > { %p5031_p9 = pneg %p5030_p8 }
  0x53   : > { %p5038_p13 = pnand %p5037_p12, %p5031_p9 }
  0x55   : > { %5041 = shalt.err (!%p5038_p13)
}
  0x56   : > { %s6375_s3 = sld [smem:[#allocation35_spill]]  ;;  %s5053_s28 = scalar_lea.vmem %s5671_s26, 16 }
  0x57   : > { %p5054_p0 = scmp.ne.s32.totalorder %s5671_s26, %s5053_s28  ;;  %s5060_s7 = scalar_lea.vmem %s5671_s26, 32 }
  0x58   : > { %p5061_p7 = scmp.lt.s32.totalorder %s5671_s26, %s5671_s26  ;;  %p5062_p8 = scmp.lt.s32.totalorder %s5060_s7, %s5053_s28 }
  0x59   : > { %p5056_p1 = pnand %p5054_p0, %p5685_p6 }
  0x5a   : > { %p5063_p9 = por %p5062_p8, %p5061_p7 }
  0x5b   : > { %p5057_p4 = pneg %p5056_p1 }
  0x5c   : > { %4622 = dma.hbm_to_vmem [thread:$0]  (!%p5675_p5), %s6375_s3, 16, %s877_s16, [#allocation5]  }
  0x5d   : > { %p5064_p10 = pnand %p5063_p9, %p5057_p4 }
  0x5f   : > { %5067 = shalt.err (!%p5064_p10)
}
  0x60   : > { %4628 = dma.hbm_to_vmem [thread:$0]  (!%p5675_p5), %s5527_s14, 16, %s5671_s26, [#allocation8]  }
  0x61   : > { %s5079_s16 = scalar_lea.vmem %s5679_s1, 16  ;;  %s5086_s0 = scalar_lea.vmem %s5679_s1, 32 }
  0x62   : > { %p5080_p11 = scmp.ne.s32.totalorder %s5679_s1, %s5079_s16  ;;  %p5087_p0 = scmp.lt.s32.totalorder %s5679_s1, %s5679_s1 }
  0x63   : > { %p5088_p1 = scmp.lt.s32.totalorder %s5086_s0, %s5079_s16 }
  0x64   : > { %p5082_p12 = pnand %p5080_p11, %p5685_p6 }
  0x65   : > { %p5089_p4 = por %p5088_p1, %p5087_p0 }
  0x66   : > { %p5083_p13 = pneg %p5082_p12 }
  0x68   : > { %p5090_p7 = pnand %p5089_p4, %p5083_p13 }
  0x6a   : > { %5093 = shalt.err (!%p5090_p7)
}
  0x6b   : > { %4634 = dma.hbm_to_vmem [thread:$0]  (!%p5675_p5), %s5562_s27, 16, %s5679_s1, [#allocation11]  }
  0x6c   : > { %s5105_s26 = scalar_lea.vmem %s5681_s10, 16  ;;  %s5112_s23 = scalar_lea.vmem %s5681_s10, 32 }
  0x6d   : > { %p5106_p8 = scmp.ne.s32.totalorder %s5681_s10, %s5105_s26  ;;  %p5113_p11 = scmp.lt.s32.totalorder %s5681_s10, %s5681_s10 }
  0x6e   : > { %p5114_p12 = scmp.lt.s32.totalorder %s5112_s23, %s5105_s26 }
  0x6f   : > { %p5108_p9 = pnand %p5106_p8, %p5685_p6 }
  0x70   : > { %p5115_p13 = por %p5114_p12, %p5113_p11 }
  0x71   : > { %p5109_p10 = pneg %p5108_p9 }
  0x73   : > { %p5116_p0 = pnand %p5115_p13, %p5109_p10 }
  0x75   : > { %5119 = shalt.err (!%p5116_p0)
}
  0x76   : > { %4640 = dma.hbm_to_vmem [thread:$0]  (!%p5675_p5), %s5587_s24, 16, %s5681_s10, [#allocation14]  }
  0x77   : > { %s5458_s28 = smov [#allocation16]   ;;  %s5459_s7 = smov [#allocation19]  }
  0x78   : > { %s997_s1 = sshll.u32 %s5458_s28, 4  ;;  %s1028_s16 = sshll.u32 %s5459_s7, 4  ;;  %s998_s1 = int_to_ptr.vmem [resolvable:$true] %s997_s1  ;;  %s1029_s16 = int_to_ptr.vmem [resolvable:$true] %s1028_s16 }
  0x79   : > { %s5131_s0 = scalar_lea.vmem %s998_s1, 16  ;;  %s5138_s26 = scalar_lea.vmem %s998_s1, 32 }
  0x7a   : > { %p5132_p1 = scmp.ne.s32.totalorder %s998_s1, %s5131_s0  ;;  %p5139_p8 = scmp.lt.s32.totalorder %s998_s1, %s998_s1 }
  0x7b   : > { %p5140_p9 = scmp.lt.s32.totalorder %s5138_s26, %s5131_s0 }
  0x7c   : > { %p5134_p4 = pnand %p5132_p1, %p5685_p6 }
  0x7d   : > { %p5141_p10 = por %p5140_p9, %p5139_p8 }
  0x7e   : > { %p5135_p7 = pneg %p5134_p4 }
  0x80   : > { %p5142_p11 = pnand %p5141_p10, %p5135_p7 }
  0x82   : > { %5145 = shalt.err (!%p5142_p11)
}
  0x83   : > { %4646 = dma.hbm_to_vmem [thread:$0]  (!%p5675_p5), %s5612_s12, 16, %s998_s1, [#allocation17]  }
  0x84   : > { %s5157_s10 = scalar_lea.vmem %s1029_s16, 16  ;;  %s5164_s23 = scalar_lea.vmem %s1029_s16, 32 }
  0x85   : > { %p5158_p12 = scmp.ne.s32.totalorder %s1029_s16, %s5157_s10  ;;  %p5165_p1 = scmp.lt.s32.totalorder %s1029_s16, %s1029_s16 }
  0x86   : > { %p5166_p4 = scmp.lt.s32.totalorder %s5164_s23, %s5157_s10 }
  0x87   : > { %p5160_p13 = pnand %p5158_p12, %p5685_p6 }
  0x88   : > { %p5167_p2 = por %p5166_p4, %p5165_p1 }
  0x89   : > { %p5161_p0 = pneg %p5160_p13 }
  0x8b   : > { %p5168_p3 = pnand %p5167_p2, %p5161_p0 }
  0x8d   : > { %5171 = shalt.err (!%p5168_p3)
}
  0x8e   : > { %4652 = dma.hbm_to_vmem [thread:$0]  (!%p5675_p5), %s5637_s29, 16, %s1029_s16, [#allocation20]  }
  0x8f   : > { %s5460_s28 = smov [#allocation2]   ;;  %s5461_s1 = smov [#allocation6]  }
  0x90   : > { %s856_s7 = sshll.u32 %s5460_s28, 4  ;;  %s887_s0 = sshll.u32 %s5461_s1, 4  ;;  %s857_s7 = int_to_ptr.vmem [resolvable:$true] %s856_s7  ;;  %s888_s0 = int_to_ptr.vmem [resolvable:$true] %s887_s0 }
  0x91   : > { %s5183_s26 = scalar_lea.vmem %s857_s7, 16  ;;  %s5190_s3 = scalar_lea.vmem %s857_s7, 32 }
  0x92   : > { %p5184_p7 = scmp.ne.s32.totalorder %s857_s7, %s5183_s26  ;;  %p5191_p10 = scmp.lt.s32.totalorder %s857_s7, %s857_s7 }
  0x93   : > { %p5192_p11 = scmp.lt.s32.totalorder %s5190_s3, %s5183_s26 }
  0x94   : > { %p5186_p8 = pnand %p5184_p7, %p5685_p6 }
  0x95   : > { %p5193_p2 = por %p5192_p11, %p5191_p10 }
  0x96   : > { %p5187_p9 = pneg %p5186_p8 }
  0x98   : > { %p5194_p3 = pnand %p5193_p2, %p5187_p9 }
  0x9a   : > { %5197 = shalt.err (!%p5194_p3)
}
  0x9b   : > { %4619 = dma.hbm_to_vmem [thread:$0]  (!%p5675_p5), %s5497_s17, 16, %s857_s7, [#allocation3]  }
  0x9c   : > { %s5209_s16 = scalar_lea.vmem %s888_s0, 16  ;;  %s5216_s10 = scalar_lea.vmem %s888_s0, 32 }
  0x9d   : > { %p5210_p12 = scmp.ne.s32.totalorder %s888_s0, %s5209_s16  ;;  %p5217_p1 = scmp.lt.s32.totalorder %s888_s0, %s888_s0 }
  0x9e   : > { %p5218_p4 = scmp.lt.s32.totalorder %s5216_s10, %s5209_s16 }
  0x9f   : > { %p5212_p13 = pnand %p5210_p12, %p5685_p6 }
  0xa0   : > { %p5219_p7 = por %p5218_p4, %p5217_p1 }
  0xa1   : > { %p5213_p0 = pneg %p5212_p13 }
  0xa3   : > { %p5220_p8 = pnand %p5219_p7, %p5213_p0 }
  0xa5   : > { %5223 = shalt.err (!%p5220_p8)
}
  0xa6   : > { %4625 = dma.hbm_to_vmem [thread:$0]  (!%p5675_p5), %s5522_s8, 16, %s888_s0, [#allocation5]  }
  0xa7   : > { %s5462_s3 = smov [#allocation9]   ;;  %s5463_s28 = smov [#allocation12]  }
  0xa8   : > { %s924_s23 = sshll.u32 %s5462_s3, 4  ;;  %s946_s7 = sshll.u32 %s5463_s28, 4  ;;  %s925_s23 = int_to_ptr.vmem [resolvable:$true] %s924_s23  ;;  %s947_s7 = int_to_ptr.vmem [resolvable:$true] %s946_s7 }
  0xa9   : > { %s5235_s1 = scalar_lea.vmem %s925_s23, 16  ;;  %s5242_s26 = scalar_lea.vmem %s925_s23, 32 }
  0xaa   : > { %p5236_p9 = scmp.ne.s32.totalorder %s925_s23, %s5235_s1  ;;  %p5243_p2 = scmp.lt.s32.totalorder %s925_s23, %s925_s23 }
  0xab   : > { %p5244_p3 = scmp.lt.s32.totalorder %s5242_s26, %s5235_s1 }
  0xac   : > { %p5238_p10 = pnand %p5236_p9, %p5685_p6 }
  0xad   : > { %p5245_p12 = por %p5244_p3, %p5243_p2 }
  0xae   : > { %p5239_p11 = pneg %p5238_p10 }
  0xb0   : > { %p5246_p13 = pnand %p5245_p12, %p5239_p11 }
  0xb2   : > { %5249 = shalt.err (!%p5246_p13)
}
  0xb3   : > { %4631 = dma.hbm_to_vmem [thread:$0]  (!%p5675_p5), %s5557_s20, 16, %s925_s23, [#allocation8]  }
  0xb4   : > { %s5261_s0 = scalar_lea.vmem %s947_s7, 16  ;;  %s5268_s16 = scalar_lea.vmem %s947_s7, 32 }
  0xb5   : > { %p5262_p0 = scmp.ne.s32.totalorder %s947_s7, %s5261_s0  ;;  %p5269_p7 = scmp.lt.s32.totalorder %s947_s7, %s947_s7 }
  0xb6   : > { %p5270_p8 = scmp.lt.s32.totalorder %s5268_s16, %s5261_s0 }
  0xb7   : > { %p5264_p1 = pnand %p5262_p0, %p5685_p6 }
  0xb8   : > { %p5271_p9 = por %p5270_p8, %p5269_p7 }
  0xb9   : > { %p5265_p4 = pneg %p5264_p1 }
  0xbb   : > { %p5272_p10 = pnand %p5271_p9, %p5265_p4 }
  0xbd   : > { %5275 = shalt.err (!%p5272_p10)
}
  0xbe   : > { %4637 = dma.hbm_to_vmem [thread:$0]  (!%p5675_p5), %s5567_s4, 16, %s947_s7, [#allocation11]  }
  0xbf   : > { %s5464_s10 = smov [#allocation15]   ;;  %s5465_s23 = smov [#allocation18]  }
  0xc0   : > { %s986_s3 = sshll.u32 %s5464_s10, 4  ;;  %s1008_s28 = sshll.u32 %s5465_s23, 4  ;;  %s987_s3 = int_to_ptr.vmem [resolvable:$true] %s986_s3  ;;  %s1009_s28 = int_to_ptr.vmem [resolvable:$true] %s1008_s28 }
  0xc1   : > { %s5287_s1 = scalar_lea.vmem %s987_s3, 16  ;;  %s5294_s26 = scalar_lea.vmem %s987_s3, 32 }
  0xc2   : > { %p5288_p11 = scmp.ne.s32.totalorder %s987_s3, %s5287_s1  ;;  %p5295_p12 = scmp.lt.s32.totalorder %s987_s3, %s987_s3 }
  0xc3   : > { %p5296_p13 = scmp.lt.s32.totalorder %s5294_s26, %s5287_s1 }
  0xc4   : > { %p5290_p2 = pnand %p5288_p11, %p5685_p6 }
  0xc5   : > { %p5297_p0 = por %p5296_p13, %p5295_p12 }
  0xc6   : > { %p5291_p3 = pneg %p5290_p2 }
  0xc8   : > { %p5298_p1 = pnand %p5297_p0, %p5291_p3 }
  0xca   : > { %5301 = shalt.err (!%p5298_p1)
}
  0xcb   : > { %4643 = dma.hbm_to_vmem [thread:$0]  (!%p5675_p5), %s5607_s9, 16, %s987_s3, [#allocation14]  }
  0xcc   : > { %s5313_s7 = scalar_lea.vmem %s1009_s28, 16  ;;  %s5320_s0 = scalar_lea.vmem %s1009_s28, 32 }
  0xcd   : > { %p5314_p4 = scmp.ne.s32.totalorder %s1009_s28, %s5313_s7  ;;  %p5321_p9 = scmp.lt.s32.totalorder %s1009_s28, %s1009_s28 }
  0xce   : > { %p5322_p10 = scmp.lt.s32.totalorder %s5320_s0, %s5313_s7 }
  0xcf   : > { %p5316_p7 = pnand %p5314_p4, %p5685_p6 }
  0xd0   : > { %p5323_p11 = por %p5322_p10, %p5321_p9 }
  0xd1   : > { %p5317_p8 = pneg %p5316_p7 }
  0xd3   : > { %p5324_p2 = pnand %p5323_p11, %p5317_p8 }
  0xd5   : > { %5327 = shalt.err (!%p5324_p2)
}
  0xd6   : > { %4649 = dma.hbm_to_vmem [thread:$0]  (!%p5675_p5), %s5617_s30, 16, %s1009_s28, [#allocation17]  }
  0xd7   : > { %s5466_s16 = smov [#allocation21]   ;;  %s5467_s3 = smov [#allocation22]  }
  0xd8   : > { %s1039_s10 = sshll.u32 %s5466_s16, 4  ;;  %s1050_s23 = sshll.u32 %s5467_s3, 4  ;;  %s1040_s10 = int_to_ptr.vmem [resolvable:$true] %s1039_s10  ;;  %s1051_s23 = int_to_ptr.vmem [resolvable:$true] %s1050_s23 }
  0xd9   : > { %s5339_s1 = scalar_lea.vmem %s1040_s10, 16  ;;  %s5346_s26 = scalar_lea.vmem %s1040_s10, 32 }
  0xda   : > { %p5340_p3 = scmp.ne.s32.totalorder %s1040_s10, %s5339_s1  ;;  %p5347_p0 = scmp.lt.s32.totalorder %s1040_s10, %s1040_s10 }
  0xdb   : > { %p5348_p1 = scmp.lt.s32.totalorder %s5346_s26, %s5339_s1 }
  0xdc   : > { %p5342_p12 = pnand %p5340_p3, %p5685_p6 }
  0xdd   : > { %p5349_p4 = por %p5348_p1, %p5347_p0 }
  0xde   : > { %p5343_p13 = pneg %p5342_p12 }
  0xe0   : > { %p5350_p7 = pnand %p5349_p4, %p5343_p13 }
  0xe2   : > { %5353 = shalt.err (!%p5350_p7)
}
  0xe3   : > { %4655 = dma.hbm_to_vmem [thread:$0]  (!%p5675_p5), %s5642_s6, 16, %s1040_s10, [#allocation20]  }
  0xe4   : > { %s5365_s28 = scalar_lea.vmem %s1051_s23, 16  ;;  %s5372_s7 = scalar_lea.vmem %s1051_s23, 32 }
  0xe5   : > { %p5366_p8 = scmp.ne.s32.totalorder %s1051_s23, %s5365_s28  ;;  %p5373_p11 = scmp.lt.s32.totalorder %s1051_s23, %s1051_s23 }
  0xe6   : > { %p5374_p2 = scmp.lt.s32.totalorder %s5372_s7, %s5365_s28 }
  0xe7   : > { %p5368_p9 = pnand %p5366_p8, %p5685_p6 }
  0xe8   : > { %p5375_p3 = por %p5374_p2, %p5373_p11 }
  0xe9   : > { %p5369_p10 = pneg %p5368_p9 }
  0xeb   : > { %p5376_p12 = pnand %p5375_p3, %p5369_p10 }
  0xed   : > { %5379 = shalt.err (!%p5376_p12)
}
  0xee   : > { %4658 = dma.hbm_to_vmem [thread:$0]  (!%p5675_p5), %s5647_s19, 16, %s1051_s23, [#allocation23]  }
  0xef   : > { %p6376_p13 = scmp.ne.s32.totalorder %s6372_s22, 0 }
  0xf0   : > { %p6377_p0 = scmp.eq.s32.totalorder (!%p6376_p13), %s5660_s18, 0 }
  0xf1   : > { %1071 = sbr.rel (%p6376_p13) target bundleno = 6041 (0x1799), region = 156 }
  0xf6   : > { %5385 = dma.done.wait (%p6377_p0), [#allocation3], 16   ;;  %p6378_p1 = pmov %p6377_p0 }
  0xf7   : > { %p6379_p6 = pmov %p6377_p0 }
  0xf8   : > { %5387 = vsyncadd (%p6378_p1), [#allocation3], 4294967280 }
  0xf9   : > { %5389 = dma.done.wait (%p6379_p6), [#allocation5], 32   ;;  %p6380_p4 = pmov %p6377_p0 }
  0xfa   : > { %p6381_p7 = pmov %p6377_p0 }
  0xfb   : > { %5391 = vsyncadd (%p6380_p4), [#allocation5], 4294967264 }
  0xfc   : > { %5393 = dma.done.wait (%p6381_p7), [#allocation8], 32   ;;  %p6382_p5 = pmov %p6377_p0 }
  0xfd   : > { %p6383_p8 = pmov %p6377_p0 }
  0xfe   : > { %5395 = vsyncadd (%p6382_p5), [#allocation8], 4294967264 }
  0xff   : > { %5397 = dma.done.wait (%p6383_p8), [#allocation11], 32   ;;  %p6384_p9 = pmov %p6377_p0 }
 0x100   : > { %p6385_p10 = pmov %p6377_p0 }
 0x101   : > { %5399 = vsyncadd (%p6384_p9), [#allocation11], 4294967264 }
 0x102   : > { %5401 = dma.done.wait (%p6385_p10), [#allocation14], 32   ;;  %p6386_p11 = pmov %p6377_p0 }
 0x103   : > { %p6387_p2 = pmov %p6377_p0 }
 0x104   : > { %5403 = vsyncadd (%p6386_p11), [#allocation14], 4294967264 }
 0x105   : > { %5405 = dma.done.wait (%p6387_p2), [#allocation17], 32   ;;  %p6388_p3 = pmov %p6377_p0 }
 0x106   : > { %p6389_p12 = pmov %p6377_p0 }
 0x107   : > { %5407 = vsyncadd (%p6388_p3), [#allocation17], 4294967264 }
 0x108   : > { %5409 = dma.done.wait (%p6389_p12), [#allocation20], 32   ;;  %p6390_p13 = pmov %p6377_p0 }
 0x10a   : > { %5411 = vsyncadd (%p6390_p13), [#allocation20], 4294967264 }
 0x10b   : > { %5413 = dma.done.wait (%p6377_p0), [#allocation23], 16   ;;  %p6391_p1 = pmov %p6377_p0 }
 0x10c   : > { %p1209_p6 = scmp.lt.s32.totalorder %s5660_s18, 1  ;;  %v4764_v3 = vld [vmem:[%s5502_s21 + $0x74] ss:$8 sps:$4 sm:$0xff]   ;;  %v4766_v4 = vld [vmem:[%s5502_s21 + $0x70] ss:$8 sps:$4 sm:$0xff]   ;;  %v5468_v22 = vmov 0   ;;  %v1284_v61 = vlaneseq }
 0x10d   : > { %5415 = vsyncadd (%p6391_p1), [#allocation23], 4294967280  ;;  %1374 = vmatprep.subr.bf16.mxu0 %v4764_v3  ;;  %v4767_v13 = vld [vmem:[%s5502_s21 + $0x64] ss:$8 sps:$4 sm:$0xff]   ;;  %v4769_v14 = vld [vmem:[%s5502_s21 + $0x60] ss:$8 sps:$4 sm:$0xff]   ;;  %1406 = vmatprep.mubr.bf16.mxu0 %v5468_v22 }
 0x10e   : > { %s6410_s18 = smov (!%p1209_p6, %s5660_s18), 1  ;;  %1375 = vmatpush1.bf16.msra.mxu0 %v4766_v4  ;;  %v4770_v15 = vld [vmem:[%s5502_s21 + $0x54] ss:$8 sps:$4 sm:$0xff]   ;;  %v4772_v16 = vld [vmem:[%s5502_s21 + $0x50] ss:$8 sps:$4 sm:$0xff]   ;;  %s6392_s11 = sld [smem:[#allocation34_spill]] }
 0x10f   : > { %s4320_s22 = sshll.u32 %s6410_s18, 3  ;;  %1376 = vmatprep.subr.bf16.mxu0 %v4767_v13  ;;  %v4773_v17 = vld [vmem:[%s5502_s21 + $0x44] ss:$8 sps:$4 sm:$0xff]   ;;  %v4775_v18 = vld [vmem:[%s5502_s21 + $0x40] ss:$8 sps:$4 sm:$0xff]   ;;  %s6393_s0 = sld [smem:[#allocation33_spill]] }
 0x110   : > { %s1213_s2 = scalar_lea.vmem %s5482_s5, %s4320_s22  ;;  %v4776_v19 = vld [vmem:[%s5502_s21 + $0x34] ss:$8 sps:$4 sm:$0xff]   ;;  %v4778_v20 = vld [vmem:[%s5502_s21 + $0x30] ss:$8 sps:$4 sm:$0xff]   ;;  %v4779_v21 = vld [vmem:[%s5502_s21 + $0x24] ss:$8 sps:$4 sm:$0xff]  }
 0x111   : > { %v4325_v0 = vld [vmem:[%s1213_s2] sm:$0xff]   ;;  %v4782_v24 = vld [vmem:[%s5502_s21 + $0x14] ss:$8 sps:$4 sm:$0xff]   ;;  %v4784_v25 = vld [vmem:[%s5502_s21 + $0x10] ss:$8 sps:$4 sm:$0xff]   ;;  %v5862_v62 = vshrl.u32 %v1284_v61, 7 }
 0x112   : > { %v5819_v1 = vunpack.c.l.bf16 %v4325_v0  ;;  %v5822_v2 = vunpack.c.h.bf16 %v4325_v0  ;;  %1377 = vmatpush1.bf16.msra.mxu0 %v4769_v14  ;;  %v4781_v23 = vld [vmem:[%s5502_s21 + $0x20] ss:$8 sps:$4 sm:$0xff]   ;;  %v4785_v26 = vld [vmem:[%s5502_s21 + $0x4] ss:$8 sps:$4 sm:$0xff]   ;;  %s6394_s16 = sld [smem:[#allocation36_spill]]  ;;  %vm5470_vm0 = vmmov 0  }
 0x113   : > { %1378 = vmatprep.subr.bf16.mxu0 %v4770_v15  ;;  %v4787_v27 = vld [vmem:[%s5502_s21] ss:$8 sps:$4 sm:$0xff]   ;;  %v5865_v63 = vsub.s32 0, %v5862_v62  ;;  %v5869_v3 = vsub.s32 1, %v5862_v62  ;;  %s6395_s10 = sld [smem:[#allocation32_spill]]  ;;  %vm1954_vm1 = vcmask 261120  }
 0x114   : > { %1226 = vadd.xlane.f32.xlu0 %v5819_v1  ;;  %v4153_v36 = vld [vmem:[%s5492_s13] ss:$0 sm:$0xff]  ;;  %v4788_v45 = vld [vmem:[%s6392_s11 + $0x78] sm:$0xff]   ;;  %v4790_v47 = vld [vmem:[%s6392_s11 + $0x70] sm:$0xff]   ;;  %s6396_s3 = sld [smem:[#allocation37_spill]]  ;;  %vm2051_vm2 = vcmask 130048  }
 0x115   : > { %v4154_v40 = vld [vmem:[#allocation2] ss:$0 sm:$0xff]  ;;  %v4789_v46 = vld [vmem:[%s6392_s11 + $0x38] sm:$0xff]   ;;  %4333 = vmatprep.subr.bf16.mxu1 %v4788_v45  ;;  %v4791_v48 = vld [vmem:[%s6392_s11 + $0x30] sm:$0xff]   ;;  %s6397_s23 = sld [smem:[#allocation39_spill]]  ;;  %s5471_s26 = smov 96  }
 0x116   : > { %1379 = vmatpush1.bf16.msra.mxu0 %v4772_v16  ;;  %4334 = vmatpush3.bf16.msra.mxu1 %v4789_v46  ;;  %v4792_v49 = vld [vmem:[%s6392_s11 + $0x68] sm:$0xff]   ;;  %v4794_v51 = vld [vmem:[%s6392_s11 + $0x60] sm:$0xff]   ;;  %v4796_v53 = vld [vmem:[%s6392_s11 + $0x58] sm:$0xff]   ;;  %s6398_s1 = sld [smem:[#allocation38_spill]]  ;;  %s5472_s28 = smov 64   ;;  %vm2672_vm3 = vcmask 523264  }
 0x117   : > { %1380 = vmatprep.subr.bf16.mxu0 %v4773_v17  ;;  %4335 = vmatprep.subr.bf16.mxu1 %v4790_v47  ;;  %v4793_v50 = vld [vmem:[%s6392_s11 + $0x28] sm:$0xff]   ;;  %v4795_v52 = vld [vmem:[%s6392_s11 + $0x20] sm:$0xff]   ;;  %v4797_v54 = vld [vmem:[%s6392_s11 + $0x18] sm:$0xff]   ;;  %s5473_s7 = smov 32   ;;  %s6399_s2 = sld [smem:[#allocation40_spill]]  ;;  %vm2675_vm4 = vcmask 785408  }
 0x118   : > { %1228 = vadd.xlane.f32.xlu0 %v5822_v2  ;;  %v4798_v55 = vld [vmem:[%s6392_s11 + $0x50] sm:$0xff]   ;;  %v4800_v57 = vld [vmem:[%s6392_s11 + $0x48] sm:$0xff]   ;;  %v4802_v59 = vld [vmem:[%s6392_s11 + $0x40] sm:$0xff]   ;;  %vm3003_vm5 = vcmask 1046528   ;;  %vm3051_vm6 = vcmask 1045504   ;;  %vm3071_vm7 = vcmask 1044480  }
 0x119   : > { %v4799_v56 = vld [vmem:[%s6392_s11 + $0x10] sm:$0xff]   ;;  %v4801_v58 = vld [vmem:[%s6392_s11 + $0x8] sm:$0xff]   ;;  %v4803_v60 = vld [vmem:[%s6392_s11] sm:$0xff]   ;;  %vm3091_vm8 = vcmask 1043456   ;;  %vm3111_vm9 = vcmask 1042432   ;;  %vm3131_vm10 = vcmask 1041408  }
 0x11a   : > { %1381 = vmatpush1.bf16.msra.mxu0 %v4775_v18  ;;  %4336 = vmatpush3.bf16.msra.mxu1 %v4791_v48  ;;  %v1282_v0 = vld [vmem:[%s6393_s0] sm:$0x3]  ;;  %v4808_v61 = vld [vmem:[%s6394_s16 + $0x90] ss:$12 sps:$4 sm:$0xff]   ;;  %s6400_s0 = sld [smem:[#allocation41_spill]]  ;;  %vm3151_vm11 = vcmask 1040384  }
 0x11b   : > { %1382 = vmatprep.subr.bf16.mxu0 %v4776_v19  ;;  %4337 = vmatprep.subr.bf16.mxu1 %v4792_v49  ;;  %v1287_v4 = vrot.slane %v1282_v0, %v5865_v63 }
 0x11e   : > { %1383 = vmatpush1.bf16.msra.mxu0 %v4778_v20  ;;  %4338 = vmatpush3.bf16.msra.mxu1 %v4793_v50  ;;  %v4804_v50 = vld [vmem:[%s6394_s16 + $0xa8] ss:$12 sps:$4 sm:$0xff]  }
 0x11f   : > { %1384 = vmatprep.subr.bf16.mxu0 %v4779_v21  ;;  %4339 = vmatprep.subr.bf16.mxu1 %v4794_v51  ;;  %v4806_v51 = vld [vmem:[%s6394_s16 + $0xac] ss:$12 sps:$4 sm:$0xff]  }
 0x122   : > { %1385 = vmatpush1.bf16.msra.mxu0 %v4781_v23  ;;  %4340 = vmatpush3.bf16.msra.mxu1 %v4795_v52  ;;  %v5469_v52 = vmov 0.0  }
 0x123   : > { %1386 = vmatprep.subr.bf16.mxu0 %v4782_v24  ;;  %4341 = vmatprep.subr.bf16.mxu1 %v4796_v53  ;;  %v4807_v53 = vld [vmem:[%s6394_s16 + $0xb0] ss:$12 sps:$4 sm:$0xff]  }
 0x126   : > { %1387 = vmatpush1.bf16.msra.mxu0 %v4784_v25  ;;  %4342 = vmatpush3.bf16.msra.mxu1 %v4797_v54 }
 0x127   : > { %1388 = vmatprep.subr.bf16.mxu0 %v4785_v26  ;;  %4343 = vmatprep.subr.bf16.mxu1 %v4798_v55 }
 0x12a   : > { %1389 = vmatpush1.bf16.msra.mxu0 %v4787_v27  ;;  %4344 = vmatpush3.bf16.msra.mxu1 %v4799_v56 }
 0x12b   : > { %4345 = vmatprep.subr.bf16.mxu1 %v4800_v57  ;;  %1845 = vmatprep.subr.bf16.mxu0 %v4806_v51 }
 0x12e   : > { %4346 = vmatpush3.bf16.msra.mxu1 %v4801_v58 }
 0x12f   : > { %4347 = vmatprep.subr.bf16.mxu1 %v4802_v59 }
 0x132   : > { %4348 = vmatpush3.bf16.msra.mxu1 %v4803_v60  ;;  %v4810_v60 = vld [vmem:[%s6394_s16 + $0x94] ss:$12 sps:$4 sm:$0xff]  }
 0x133   : > { %4428 = vmatprep.subr.bf16.mxu1 %v5469_v52 }
 0x19d   : > { %v1227_v5 = vpop.xlane.xlu0 %1226 }
 0x19e   : > { %v1231_v6 = vmul.f32 0.0078125, %v1227_v5  ;;  %v1291_v5 = vrot.slane %v1282_v0, %v5869_v3  ;;  %v4811_v0 = vld [vmem:[%s6394_s16 + $0x98] ss:$12 sps:$4 sm:$0xff]  }
 0x1a0   : > { %v1233_v7 = vsub.f32 %v5819_v1, %v1231_v6 }
 0x1a1   : > { %v1229_v8 = vpop.xlane.xlu0 %1228 }
 0x1a2   : > { %v1232_v9 = vmul.f32 0.0078125, %v1229_v8  ;;  %v1235_v10 = vmul.f32 %v1233_v7, %v1233_v7 }
 0x1a4   : > { %v1234_v11 = vsub.f32 %v5822_v2, %v1232_v9  ;;  %1237 = vadd.xlane.f32.xlu1 %v1235_v10 }
 0x1a6   : > { %v1236_v12 = vmul.f32 %v1234_v11, %v1234_v11 }
 0x1a8   : > { %1239 = vadd.xlane.f32.xlu1 %v1236_v12 }
 0x22d   : > { %v1238_v28 = vpop.xlane.xlu1 %1237 }
 0x22e   : > { %v1241_v29 = vmul.f32 0.0078125, %v1238_v28 }
 0x230   : > { %v1243_v30 = vadd.f32 1e-05, %v1241_v29 }
 0x231   : > { %v1240_v31 = vpop.xlane.xlu1 %1239 }
 0x232   : > { %4916 = vrsqrt.f32 %v1243_v30  ;;  %v1242_v32 = vmul.f32 0.0078125, %v1240_v31 }
 0x234   : > { %v1244_v33 = vadd.f32 1e-05, %v1242_v32 }
 0x236   : > { %4918 = vrsqrt.f32 %v1244_v33 }
 0x23f   : > { %v4917_v34 = vpop.eup %4916 }
 0x240   : > { %v1247_v35 = vmul.f32 %v4917_v34, %v1233_v7 }
 0x242   : > { %v1255_v39 = vmul.f32 %v4153_v36, %v1247_v35 }
 0x243   : > { %v4919_v37 = vpop.eup %4918 }
 0x244   : > { %v1248_v38 = vmul.f32 %v4919_v37, %v1234_v11  ;;  %v1263_v42 = vadd.f32 %v4154_v40, %v1255_v39 }
 0x246   : > { %v1256_v41 = vmul.f32 %v4153_v36, %v1248_v38  ;;  %v4175_v38 = vld [vmem:[#allocation4] ss:$0 sm:$0xff] }
 0x248   : > { %v1264_v43 = vadd.f32 %v4154_v40, %v1256_v41 }
 0x24a   : > { %v1265_v44 = vpack.c.bf16 %v1264_v43, %v1263_v42 }
 0x24c   : > { %1407 = vmatmul.mubr.bf16.vlgmr.msra.gmra.mxu0 %v1265_v44 }
 0x24d   : > { %1877 = vmatprep.mubr.bf16.mxu0 %v5468_v22  ;;  %1846 = vmatpush1.bf16.msra.mxu0 %v4804_v50 }
 0x24e   : > { %1847 = vmatprep.subr.bf16.mxu0 %v4810_v60 }
 0x251   : > { %1848 = vmatpush1.bf16.msra.mxu0 %v4808_v61 }
 0x30c   : > { %v1408_v6 = vpop.f32.mrf.mxu0 }
 0x30d   : > { %v1409_v7 = vadd.f32 %v1408_v6, %v1287_v4  ;;  %v4815_v6 = vld [vmem:[%s6394_s16 + $0x80] ss:$12 sps:$4 sm:$0xff]  }
 0x30e   : > { %v1410_v8 = vpop.f32.mrf.mxu0 }
 0x30f   : > { %v4171_v9 = vmul.f32 -1.442695, %v1409_v7  ;;  %v1411_v10 = vadd.f32 %v1410_v8, %v1291_v5  ;;  %v4818_v8 = vld [vmem:[%s6394_s16 + $0x64] ss:$12 sps:$4 sm:$0xff]  }
 0x310   : > { %v1412_v11 = vpop.f32.mrf.mxu0 }
 0x311   : > { %v4172_v12 = vmul.f32 -1.442695, %v1411_v10  ;;  %v1413_v13 = vadd.f32 %v1412_v11, %v1287_v4  ;;  %4920 = vpow2.f32 %v4171_v9  ;;  %v4814_v4 = vld [vmem:[%s6394_s16 + $0x7c] ss:$12 sps:$4 sm:$0xff]  }
 0x312   : > { %v1414_v14 = vpop.f32.mrf.mxu0  ;;  %1849 = vmatprep.subr.bf16.mxu0 %v4814_v4  ;;  %v4819_v9 = vld [vmem:[%s6394_s16 + $0x68] ss:$12 sps:$4 sm:$0xff]   ;;  %v5945_v4 = vsub.s32 2, %v5862_v62 }
 0x313   : > { %4922 = vpow2.f32 %v4172_v12  ;;  %v4173_v15 = vmul.f32 -1.442695, %v1413_v13  ;;  %v1415_v16 = vadd.f32 %v1414_v14, %v1291_v5  ;;  %v4812_v5 = vld [vmem:[%s6394_s16 + $0x78] ss:$12 sps:$4 sm:$0xff]   ;;  %v4820_v11 = vld [vmem:[%s6394_s16 + $0x48] ss:$12 sps:$4 sm:$0xff]  }
 0x314   : > { %1850 = vmatpush1.bf16.msra.mxu0 %v4812_v5  ;;  %v4823_v12 = vld [vmem:[%s6394_s16 + $0x50] ss:$12 sps:$4 sm:$0xff]  }
 0x315   : > { %4924 = vpow2.f32 %v4173_v15  ;;  %v4174_v17 = vmul.f32 -1.442695, %v1415_v16  ;;  %1851 = vmatprep.subr.bf16.mxu0 %v4818_v8  ;;  %v4824_v14 = vld [vmem:[%s6394_s16 + $0x30] ss:$12 sps:$4 sm:$0xff]   ;;  %v4827_v15 = vld [vmem:[%s6394_s16 + $0x38] ss:$12 sps:$4 sm:$0xff]  }
 0x316   : > { %v4218_v8 = vld [vmem:[%s6398_s1] ss:$0 sm:$0xff]  ;;  %s6403_s1 = sld [smem:[#allocation43_spill]] }
 0x317   : > { %4926 = vpow2.f32 %v4174_v17  ;;  %v4828_v17 = vld [vmem:[%s6394_s16 + $0x18] ss:$12 sps:$4 sm:$0xff]  }
 0x31e   : > { %v4921_v18 = vpop.eup %4920 }
 0x31f   : > { %v1429_v23 = vadd.f32 1.0, %v4921_v18  ;;  %v4831_v18 = vld [vmem:[%s6394_s16 + $0x20] ss:$12 sps:$4 sm:$0xff]  }
 0x320   : > { %v4923_v19 = vpop.eup %4922 }
 0x321   : > { %v1430_v20 = vadd.f32 1.0, %v4923_v19  ;;  %v4834_v19 = vld [vmem:[%s6394_s16 + $0x4] ss:$12 sps:$4 sm:$0xff]  }
 0x322   : > { %v4925_v21 = vpop.eup %4924 }
 0x323   : > { %v1431_v24 = vadd.f32 1.0, %v4925_v21  ;;  %4928 = vrcp.f32 %v1430_v20  ;;  %v4832_v20 = vld [vmem:[%s6394_s16] ss:$12 sps:$4 sm:$0xff]   ;;  %v4835_v21 = vld [vmem:[%s6394_s16 + $0x8] ss:$12 sps:$4 sm:$0xff]  }
 0x324   : > { %v4927_v25 = vpop.eup %4926 }
 0x325   : > { %4930 = vrcp.f32 %v1431_v24  ;;  %v1432_v26 = vadd.f32 1.0, %v4927_v25 }
 0x326   : > { %4932 = vrcp.f32 %v1429_v23 }
 0x327   : > { %4934 = vrcp.f32 %v1432_v26 }
 0x330   : > { %v4929_v27 = vpop.eup %4928 }
 0x331   : > { %v1442_v32 = vmul.f32 %v4929_v27, %v1411_v10  ;;  %v4822_v10 = vld [vmem:[%s6394_s16 + $0x4c] ss:$12 sps:$4 sm:$0xff]  }
 0x332   : > { %v4931_v28 = vpop.eup %4930 }
 0x333   : > { %v4933_v29 = vpop.eup %4932  ;;  %v1443_v31 = vmul.f32 %v4931_v28, %v1413_v13  ;;  %v4826_v13 = vld [vmem:[%s6394_s16 + $0x34] ss:$12 sps:$4 sm:$0xff]  }
 0x334   : > { %v4935_v30 = vpop.eup %4934  ;;  %v1441_v34 = vmul.f32 %v4933_v29, %v1409_v7  ;;  %v4816_v7 = vld [vmem:[%s6394_s16 + $0x60] ss:$12 sps:$4 sm:$0xff]  }
 0x335   : > { %v1444_v33 = vmul.f32 %v4935_v30, %v1415_v16  ;;  %1852 = vmatpush1.bf16.msra.mxu0 %v4816_v7  ;;  %v4830_v16 = vld [vmem:[%s6394_s16 + $0x1c] ss:$12 sps:$4 sm:$0xff]  }
 0x336   : > { %v1445_v36 = vpack.c.bf16 %v1443_v31, %v1441_v34  ;;  %1853 = vmatprep.subr.bf16.mxu0 %v4822_v10  ;;  %v4192_v31 = vld [vmem:[#allocation6] ss:$0 sm:$0xff] }
 0x337   : > { %v1446_v35 = vpack.c.bf16 %v1444_v33, %v1442_v32 }
 0x339   : > { %1614 = vmatprep.mubr.bf16.mxu1 %v1446_v35  ;;  %1854 = vmatpush1.bf16.msra.mxu0 %v4820_v11  ;;  %v4193_v35 = vld [vmem:[#allocation7] ss:$0 sm:$0xff] }
 0x33a   : > { %1615 = vmatmul.mubr.bf16.vlgmr.msra.gmra.mxu1 %v1445_v36  ;;  %1855 = vmatprep.subr.bf16.mxu0 %v4826_v13 }
 0x33b   : > { %4429 = vmatpush3.bf16.msra.mxu1 %v4807_v53  ;;  %4444 = vmatprep.mubr.msk.bf16.mxu1 %vm5470_vm0, %v5469_v52 }
 0x33c   : > { %4430 = vmatprep.subr.bf16.mxu1 %v5469_v52 }
 0x33d   : > { %1856 = vmatpush1.bf16.msra.mxu0 %v4824_v14 }
 0x33e   : > { %1857 = vmatprep.subr.bf16.mxu0 %v4830_v16 }
 0x33f   : > { %4431 = vmatpush3.bf16.msra.mxu1 %v4811_v0 }
 0x340   : > { %4432 = vmatprep.subr.bf16.mxu1 %v5469_v52 }
 0x341   : > { %1858 = vmatpush1.bf16.msra.mxu0 %v4828_v17 }
 0x342   : > { %1859 = vmatprep.subr.bf16.mxu0 %v4834_v19 }
 0x343   : > { %4433 = vmatpush3.bf16.msra.mxu1 %v4815_v6 }
 0x344   : > { %4434 = vmatprep.subr.bf16.mxu1 %v5469_v52 }
 0x345   : > { %1860 = vmatpush1.bf16.msra.mxu0 %v4832_v20 }
 0x346   : > { %4472 = vmatprep.subr.bf16.mxu0 %v5469_v52 }
 0x347   : > { %4435 = vmatpush3.bf16.msra.mxu1 %v4819_v9 }
 0x348   : > { %4436 = vmatprep.subr.bf16.mxu1 %v5469_v52 }
 0x34b   : > { %4437 = vmatpush3.bf16.msra.mxu1 %v4823_v12 }
 0x34c   : > { %4438 = vmatprep.subr.bf16.mxu1 %v5469_v52 }
 0x34f   : > { %4439 = vmatpush3.bf16.msra.mxu1 %v4827_v15 }
 0x350   : > { %4440 = vmatprep.subr.bf16.mxu1 %v5469_v52 }
 0x353   : > { %4441 = vmatpush3.bf16.msra.mxu1 %v4831_v18 }
 0x354   : > { %4442 = vmatprep.subr.bf16.mxu1 %v5469_v52 }
 0x357   : > { %4443 = vmatpush3.bf16.msra.mxu1 %v4835_v21 }
 0x358   : > { %4448 = vmatprep.subr.bf16.mxu1 %v5469_v52 }
 0x3fa   : > { %v4349_v37 = vpop.f32.mrf.mxu1 }
 0x3fc   : > { %v4350_v39 = vpop.f32.mrf.mxu1 }
 0x3fd   : > { %v4351_v40 = vadd.f32 %v4350_v39, %v4349_v37 }
 0x3fe   : > { %v4352_v41 = vpop.f32.mrf.mxu1 }
 0x3ff   : > { %v1617_v42 = vadd.f32 %v4351_v40, %v4175_v38  ;;  %v1931_v40 = vld [vmem:[%s6395_s10] sm:$0xff] }
 0x400   : > { %v4353_v43 = vpop.f32.mrf.mxu1 }
 0x401   : > { %v1623_v44 = vmul.f32 0.5, %v1617_v42  ;;  %v4354_v45 = vadd.f32 %v4353_v43, %v4352_v41  ;;  %v1932_v41 = vld [vmem:[%s6395_s10 + $0x8] sm:$0xff] }
 0x402   : > { %v5935_v42 = vpack.c.bf16 %v1932_v41, %v1931_v40 }
 0x403   : > { %v1620_v46 = vadd.f32 %v4354_v45, %v4175_v38  ;;  %v5874_v47 = vadd.f32 %v5819_v1, %v1623_v44  ;;  %v1700_v44 = vld [vmem:[%s6396_s3] sm:$0x7]  ;;  %s6401_s3 = sld [smem:[#allocation46_spill]] }
 0x404   : > { %v1959_v43 = vsel %vm1954_vm1, %v5935_v42, 0  ;;  %v1705_v45 = vrot.slane %v1700_v44, %v5865_v63  ;;  %v1713_v9 = vrot.slane %v1700_v44, %v5945_v4 }
 0x405   : > { %v1624_v48 = vmul.f32 0.5, %v1620_v46  ;;  %1629 = vadd.xlane.f32.xlu0 %v5874_v47 }
 0x407   : > { %v5878_v49 = vadd.f32 %v5822_v2, %v1624_v48 }
 0x409   : > { %1631 = vadd.xlane.f32.xlu1 %v5878_v49 }
 0x48e   : > { %v1630_v1 = vpop.xlane.xlu0 %1629 }
 0x48f   : > { %v1633_v2 = vmul.f32 0.0078125, %v1630_v1  ;;  %v1709_v1 = vrot.slane %v1700_v44, %v5869_v3 }
 0x491   : > { %v5887_v54 = vsub.f32 %v5874_v47, %v1633_v2  ;;  %v4219_v2 = vld [vmem:[%s6397_s23] ss:$0 sm:$0xff]  ;;  %s6402_s23 = sld [smem:[#allocation42_spill]] }
 0x492   : > { %v1632_v55 = vpop.xlane.xlu1 %1631 }
 0x493   : > { %v1634_v56 = vmul.f32 0.0078125, %v1632_v55  ;;  %v1637_v57 = vmul.f32 %v5887_v54, %v5887_v54 }
 0x495   : > { %v5892_v58 = vsub.f32 %v5878_v49, %v1634_v56  ;;  %1639 = vadd.xlane.f32.xlu0 %v1637_v57 }
 0x497   : > { %v1638_v59 = vmul.f32 %v5892_v58, %v5892_v58 }
 0x499   : > { %1641 = vadd.xlane.f32.xlu1 %v1638_v59 }
 0x51e   : > { %v1640_v23 = vpop.xlane.xlu0 %1639 }
 0x51f   : > { %v1643_v24 = vmul.f32 0.0078125, %v1640_v23 }
 0x521   : > { %v1645_v25 = vadd.f32 1e-05, %v1643_v24 }
 0x522   : > { %v1642_v26 = vpop.xlane.xlu1 %1641 }
 0x523   : > { %4936 = vrsqrt.f32 %v1645_v25  ;;  %v1644_v27 = vmul.f32 0.0078125, %v1642_v26 }
 0x525   : > { %v1646_v28 = vadd.f32 1e-05, %v1644_v27 }
 0x527   : > { %4938 = vrsqrt.f32 %v1646_v28 }
 0x530   : > { %v4937_v29 = vpop.eup %4936 }
 0x531   : > { %v1649_v30 = vmul.f32 %v4937_v29, %v5887_v54 }
 0x533   : > { %v1657_v34 = vmul.f32 %v4192_v31, %v1649_v30 }
 0x534   : > { %v4939_v32 = vpop.eup %4938 }
 0x535   : > { %v1650_v33 = vmul.f32 %v4939_v32, %v5892_v58  ;;  %v1665_v37 = vadd.f32 %v4193_v35, %v1657_v34 }
 0x537   : > { %v1658_v36 = vmul.f32 %v4192_v31, %v1650_v33 }
 0x539   : > { %v1666_v38 = vadd.f32 %v4193_v35, %v1658_v36 }
 0x53b   : > { %v1667_v39 = vpack.c.bf16 %v1666_v38, %v1665_v37 }
 0x53d   : > { %1878 = vmatmul.mubr.bf16.vlgmr.msra.gmra.mxu0 %v1667_v39  ;;  %4445 = vmatmul.mubr.bf16.vlgmr.msra.gmra.mxu1 %v1667_v39 }
 0x53e   : > { %4450 = vmatprep.mubr.msk.bf16.mxu1 %vm5470_vm0, %v5469_v52  ;;  %4474 = vmatprep.mubr.msk.bf16.mxu0 %vm5470_vm0, %v5469_v52 }
 0x53f   : > { %4449 = vmatpush3.bf16.xpose.msra.mxu1 %v1959_v43 }
 0x540   : > { %4454 = vmatprep.subr.bf16.mxu1 %v5469_v52 }
 0x5fd   : > { %v1879_v46 = vpop.f32.mrf.mxu0  ;;  %v1922_v48 = vpop.f32.mrf.mxu1 }
 0x5fe   : > { %v1880_v53 = vadd.f32 %v1879_v46, %v1705_v45  ;;  %v1923_v13 = vadd.f32 %v1922_v48, %v1713_v9 }
 0x5ff   : > { %v1881_v50 = vpop.f32.mrf.mxu0  ;;  %v4446_v51 = vpop.f32.mrf.mxu1 }
 0x600   : > { %v1951_v59 = vadd.f32 %v4219_v2, %v1880_v53  ;;  %v1882_v60 = vadd.f32 %v1881_v50, %v1709_v1  ;;  %v1941_v12 = vadd.f32 %v4218_v8, %v1880_v53 }
 0x601   : > { %v1883_v54 = vpop.f32.mrf.mxu0  ;;  %v1925_v55 = vpop.f32.mrf.mxu1 }
 0x602   : > { %v1884_v56 = vadd.f32 %v1883_v54, %v1705_v45  ;;  %v1926_v11 = vadd.f32 %v1925_v55, %v1713_v9 }
 0x603   : > { %v1885_v57 = vpop.f32.mrf.mxu0  ;;  %v4447_v58 = vpop.f32.mrf.mxu1 }
 0x604   : > { %v1952_v61 = vadd.f32 %v4219_v2, %v1884_v56  ;;  %v1886_v0 = vadd.f32 %v1885_v57, %v1709_v1  ;;  %v1942_v10 = vadd.f32 %v4218_v8, %v1884_v56  ;;  %v5962_v15 = vpack.c.bf16 %v1926_v11, %v1923_v13 }
 0x606   : > { %v5947_v5 = vpack.c.bf16 %v1952_v61, %v1951_v59  ;;  %v5949_v6 = vpack.c.bf16 %v1886_v0, %v1882_v60  ;;  %v5960_v14 = vpack.c.bf16 %v1942_v10, %v1941_v12 }
 0x608   : > { %4451 = vmatmul.mubr.msk.bf16.vlgmr.msra.gmra.mxu1 %vm1954_vm1, %v5947_v5  ;;  %v2006_v7 = vsel %vm1954_vm1, %v5949_v6, 0 }
 0x609   : > { %4455 = vmatpush3.bf16.xpose.msra.mxu1 %v2006_v7  ;;  %4456 = vmatprep.mubr.msk.bf16.mxu1 %vm5470_vm0, %v5469_v52 }
 0x60a   : > { %4460 = vmatprep.subr.bf16.mxu1 %v5469_v52 }
 0x610   : > { %4457 = vmatmul.mubr.msk.bf16.vlgmr.msra.gmra.mxu1 %vm1954_vm1, %v5960_v14 }
 0x611   : > { %4461 = vmatpush3.bf16.msra.mxu1 %v5962_v15  ;;  %4462 = vmatprep.mubr.msk.bf16.mxu1 %vm5470_vm0, %v5469_v52 }
 0x612   : > { %4466 = vmatprep.subr.bf16.mxu1 %v5469_v52 }
 0x6c8   : > { %v1995_v16 = vpop.f32.mrf.mxu1 }
 0x6ca   : > { %v4452_v17 = vpop.f32.mrf.mxu1 }
 0x6cc   : > { %v1998_v18 = vpop.f32.mrf.mxu1 }
 0x6ce   : > { %v4453_v19 = vpop.f32.mrf.mxu1 }
 0x6d0   : > { %v2042_v20 = vpop.f32.mrf.mxu1 }
 0x6d1   : > { %v2043_v21 = vadd.f32 %v2042_v20, %v1995_v16 }
 0x6d2   : > { %v4458_v23 = vpop.f32.mrf.mxu1 }
 0x6d3   : > { %v2049_v24 = vmul.f32 0.17677669, %v2043_v21 }
 0x6d4   : > { %v2045_v25 = vpop.f32.mrf.mxu1 }
 0x6d5   : > { %v2046_v26 = vadd.f32 %v2045_v25, %v1998_v18  ;;  %v2052_v27 = vsel %vm2051_vm2, %v2049_v24, -inf }
 0x6d6   : > { %2053 = vmax.xlane.f32.xlu0 %v2052_v27  ;;  %v4459_v28 = vpop.f32.mrf.mxu1 }
 0x6d7   : > { %v2050_v29 = vmul.f32 0.17677669, %v2046_v26 }
 0x6d9   : > { %v2055_v30 = vsel %vm2051_vm2, %v2050_v29, -inf }
 0x6da   : > { %2056 = vmax.xlane.f32.xlu1 %v2055_v30 }
 0x6eb   : > { %2176 = vrot.lane.b32.xlu1 %v5949_v6, %s5471_s26 }
 0x75f   : > { %v2054_v31 = vpop.xlane.xlu0 %2053 }
 0x760   : > { %v2058_v32 = vsub.f32 %v2049_v24, %v2054_v31 }
 0x762   : > { %v2060_v33 = vmul.f32 1.442695, %v2058_v32 }
 0x763   : > { %v2057_v34 = vpop.xlane.xlu1 %2056 }
 0x764   : > { %4940 = vpow2.f32 %v2060_v33  ;;  %v2059_v35 = vsub.f32 %v2050_v29, %v2057_v34 }
 0x766   : > { %v2062_v36 = vmul.f32 1.442695, %v2059_v35 }
 0x767   : > { %v2177_v37 = vpop.permute.xlu1 %2176 }
 0x768   : > { %4942 = vpow2.f32 %v2062_v36  ;;  %v2182_v38 = vsel %vm1954_vm1, %v2177_v37, 0 }
 0x769   : > { %4473 = vmatpush3.bf16.xpose.msra.mxu0 %v2182_v38 }
 0x76a   : > { %4484 = vmatprep.subr.bf16.mxu0 %v5469_v52 }
 0x771   : > { %v4941_v39 = vpop.eup %4940 }
 0x772   : > { %v2064_v40 = vsel %vm2051_vm2, %v4941_v39, 0.0 }
 0x773   : > { %2065 = vadd.xlane.f32.xlu0 %v2064_v40 }
 0x775   : > { %v4943_v41 = vpop.eup %4942 }
 0x776   : > { %v2067_v43 = vsel %vm2051_vm2, %v4943_v41, 0.0 }
 0x777   : > { %2068 = vadd.xlane.f32.xlu1 %v2067_v43 }
 0x788   : > { %2120 = vrot.lane.b32.xlu1 %v5947_v5, %s5471_s26 }
 0x789   : > { %2123 = vrot.lane.b32.xlu0 %v5935_v42, %s5471_s26 }
 0x78c   : > { %2173 = vrot.lane.b32.xlu1 %v5960_v14, %s5471_s26 }
 0x7fc   : > { %v2066_v44 = vpop.xlane.xlu0 %2065 }
 0x7fd   : > { %4944 = vrcp.f32 %v2066_v44 }
 0x800   : > { %v2069_v45 = vpop.xlane.xlu1 %2068  ;;  %v2124_v53 = vpop.permute.xlu0 %2123 }
 0x801   : > { %4946 = vrcp.f32 %v2069_v45  ;;  %v2129_v54 = vsel %vm1954_vm1, %v2124_v53, 0 }
 0x804   : > { %v2121_v46 = vpop.permute.xlu1 %2120 }
 0x808   : > { %v2174_v48 = vpop.permute.xlu1 %2173 }
 0x809   : > { %4475 = vmatmul.mubr.msk.bf16.vlgmr.msra.gmra.mxu0 %vm1954_vm1, %v2174_v48 }
 0x80a   : > { %4486 = vmatprep.mubr.msk.bf16.mxu0 %vm5470_vm0, %v5469_v52  ;;  %v4945_v50 = vpop.eup %4944 }
 0x80b   : > { %v2072_v1 = vmul.f32 %v4945_v50, %v4941_v39 }
 0x80e   : > { %v4947_v51 = vpop.eup %4946 }
 0x80f   : > { %v2073_v2 = vmul.f32 %v4947_v51, %v4943_v41 }
 0x811   : > { %v2074_v55 = vpack.c.bf16 %v2073_v2, %v2072_v1 }
 0x813   : > { %4463 = vmatmul.mubr.msk.bf16.vlgmr.msra.gmra.mxu1 %vm2051_vm2, %v2074_v55 }
 0x814   : > { %4467 = vmatpush3.bf16.xpose.msra.mxu1 %v2129_v54  ;;  %4468 = vmatprep.mubr.msk.bf16.mxu1 %vm5470_vm0, %v5469_v52 }
 0x815   : > { %4478 = vmatprep.subr.bf16.mxu1 %v5469_v52 }
 0x81b   : > { %4469 = vmatmul.mubr.msk.bf16.vlgmr.msra.gmra.mxu1 %vm1954_vm1, %v2121_v46 }
 0x81c   : > { %4480 = vmatprep.mubr.msk.bf16.mxu1 %vm5470_vm0, %v5469_v52 }
 0x8c9   : > { %v2218_v56 = vpop.f32.mrf.mxu0 }
 0x8cb   : > { %v4476_v57 = vpop.f32.mrf.mxu0 }
 0x8cd   : > { %v2221_v58 = vpop.f32.mrf.mxu0 }
 0x8cf   : > { %v4477_v59 = vpop.f32.mrf.mxu0 }
 0x8d3   : > { %v5995_v60 = vpop.f32.mrf.mxu1 }
 0x8d5   : > { %v4464_v61 = vpop.f32.mrf.mxu1 }
 0x8d7   : > { %v5997_v0 = vpop.f32.mrf.mxu1 }
 0x8d9   : > { %v4465_v7 = vpop.f32.mrf.mxu1 }
 0x8db   : > { %v2165_v8 = vpop.f32.mrf.mxu1 }
 0x8dc   : > { %v2219_v9 = vadd.f32 %v2218_v56, %v2165_v8 }
 0x8dd   : > { %v4470_v10 = vpop.f32.mrf.mxu1 }
 0x8de   : > { %v2225_v11 = vmul.f32 0.17677669, %v2219_v9 }
 0x8df   : > { %v2168_v12 = vpop.f32.mrf.mxu1 }
 0x8e0   : > { %v2222_v13 = vadd.f32 %v2221_v58, %v2168_v12  ;;  %v2227_v16 = vsel %vm2051_vm2, %v2225_v11, -inf }
 0x8e1   : > { %2228 = vmax.xlane.f32.xlu0 %v2227_v16  ;;  %v4471_v17 = vpop.f32.mrf.mxu1 }
 0x8e2   : > { %v2226_v18 = vmul.f32 0.17677669, %v2222_v13 }
 0x8e4   : > { %v2230_v19 = vsel %vm2051_vm2, %v2226_v18, -inf }
 0x8e5   : > { %2231 = vmax.xlane.f32.xlu1 %v2230_v19 }
 0x8f6   : > { %2300 = vrot.lane.b32.xlu1 %v5935_v42, %s5472_s28 }
 0x8fa   : > { %2351 = vrot.lane.b32.xlu1 %v5949_v6, %s5472_s28 }
 0x8fe   : > { %2298 = vrot.lane.b32.xlu1 %v5947_v5, %s5472_s28 }
 0x96a   : > { %v2229_v20 = vpop.xlane.xlu0 %2228 }
 0x96b   : > { %v2233_v21 = vsub.f32 %v2225_v11, %v2229_v20 }
 0x96d   : > { %v2235_v23 = vmul.f32 1.442695, %v2233_v21 }
 0x96e   : > { %v2232_v24 = vpop.xlane.xlu1 %2231 }
 0x96f   : > { %4948 = vpow2.f32 %v2235_v23  ;;  %v2234_v25 = vsub.f32 %v2226_v18, %v2232_v24 }
 0x971   : > { %v2237_v26 = vmul.f32 1.442695, %v2234_v25 }
 0x972   : > { %v2301_v27 = vpop.permute.xlu1 %2300 }
 0x973   : > { %4950 = vpow2.f32 %v2237_v26  ;;  %v2306_v28 = vsel %vm1954_vm1, %v2301_v27, 0 }
 0x974   : > { %4485 = vmatpush3.bf16.xpose.msra.mxu0 %v2306_v28 }
 0x975   : > { %4496 = vmatprep.subr.bf16.mxu0 %v5469_v52 }
 0x976   : > { %v2352_v29 = vpop.permute.xlu1 %2351 }
 0x977   : > { %v2357_v44 = vsel %vm1954_vm1, %v2352_v29, 0 }
 0x97a   : > { %v2299_v30 = vpop.permute.xlu1 %2298 }
 0x97b   : > { %4487 = vmatmul.mubr.msk.bf16.vlgmr.msra.gmra.mxu0 %vm1954_vm1, %v2299_v30 }
 0x97c   : > { %v4949_v31 = vpop.eup %4948  ;;  %4498 = vmatprep.mubr.msk.bf16.mxu0 %vm5470_vm0, %v5469_v52 }
 0x97d   : > { %v2239_v32 = vsel %vm2051_vm2, %v4949_v31, 0.0 }
 0x97e   : > { %2240 = vadd.xlane.f32.xlu0 %v2239_v32 }
 0x980   : > { %v4951_v33 = vpop.eup %4950 }
 0x981   : > { %v2242_v34 = vsel %vm2051_vm2, %v4951_v33, 0.0 }
 0x982   : > { %2243 = vadd.xlane.f32.xlu0 %v2242_v34 }
 0x998   : > { %2251 = vrot.lane.b32.xlu0 %v5962_v15, %s5471_s26 }
 0x99c   : > { %2349 = vrot.lane.b32.xlu0 %v5960_v14, %s5472_s28 }
 0xa07   : > { %v2241_v35 = vpop.xlane.xlu0 %2240 }
 0xa08   : > { %4952 = vrcp.f32 %v2241_v35 }
 0xa0b   : > { %v2244_v36 = vpop.xlane.xlu0 %2243 }
 0xa0c   : > { %4954 = vrcp.f32 %v2244_v36 }
 0xa0f   : > { %v2252_v37 = vpop.permute.xlu0 %2251 }
 0xa10   : > { %4479 = vmatpush3.bf16.msra.mxu1 %v2252_v37 }
 0xa11   : > { %4490 = vmatprep.subr.bf16.mxu1 %v5469_v52 }
 0xa13   : > { %v2350_v45 = vpop.permute.xlu0 %2349 }
 0xa15   : > { %v4953_v38 = vpop.eup %4952 }
 0xa16   : > { %v2247_v40 = vmul.f32 %v4953_v38, %v4949_v31 }
 0xa19   : > { %v4955_v39 = vpop.eup %4954 }
 0xa1a   : > { %v2248_v41 = vmul.f32 %v4955_v39, %v4951_v33 }
 0xa1c   : > { %v2249_v43 = vpack.c.bf16 %v2248_v41, %v2247_v40 }
 0xa1e   : > { %4481 = vmatmul.mubr.msk.bf16.vlgmr.msra.gmra.mxu1 %vm2051_vm2, %v2249_v43 }
 0xa1f   : > { %4491 = vmatpush3.bf16.xpose.msra.mxu1 %v2357_v44  ;;  %4492 = vmatprep.mubr.msk.bf16.mxu1 %vm5470_vm0, %v5469_v52 }
 0xa20   : > { %4502 = vmatprep.subr.bf16.mxu1 %v5469_v52 }
 0xa26   : > { %4493 = vmatmul.mubr.msk.bf16.vlgmr.msra.gmra.mxu1 %vm1954_vm1, %v2350_v45 }
 0xa27   : > { %4504 = vmatprep.mubr.msk.bf16.mxu1 %vm5470_vm0, %v5469_v52 }
 0xa3b   : > { %v2342_v46 = vpop.f32.mrf.mxu0 }
 0xa3d   : > { %v4488_v48 = vpop.f32.mrf.mxu0 }
 0xa3f   : > { %v2345_v50 = vpop.f32.mrf.mxu0 }
 0xa41   : > { %v4489_v51 = vpop.f32.mrf.mxu0 }
 0xade   : > { %v6027_v53 = vpop.f32.mrf.mxu1 }
 0xae0   : > { %v4482_v1 = vpop.f32.mrf.mxu1 }
 0xae2   : > { %v6029_v2 = vpop.f32.mrf.mxu1 }
 0xae3   : > { %v4749_v54 = vpack.i.bf16 %v6029_v2, %v6027_v53 }
 0xae4   : > { %v4483_v55 = vpop.f32.mrf.mxu1 }
 0xae6   : > { %v2393_v56 = vpop.f32.mrf.mxu1 }
 0xae7   : > { %v2394_v57 = vadd.f32 %v2393_v56, %v2342_v46 }
 0xae8   : > { %v4494_v58 = vpop.f32.mrf.mxu1 }
 0xae9   : > { %v2400_v59 = vmul.f32 0.17677669, %v2394_v57 }
 0xaea   : > { %v2396_v61 = vpop.f32.mrf.mxu1 }
 0xaeb   : > { %v2397_v7 = vadd.f32 %v2396_v61, %v2345_v50  ;;  %v2402_v8 = vsel %vm2051_vm2, %v2400_v59, -inf }
 0xaec   : > { %2403 = vmax.xlane.f32.xlu1 %v2402_v8  ;;  %v4495_v9 = vpop.f32.mrf.mxu1 }
 0xaed   : > { %v2401_v10 = vmul.f32 0.17677669, %v2397_v7 }
 0xaef   : > { %v2405_v11 = vsel %vm2051_vm2, %v2401_v10, -inf }
 0xaf0   : > { %2406 = vmax.xlane.f32.xlu0 %v2405_v11 }
 0xafd   : > { %2425 = vrot.lane.b32.xlu1 %v5962_v15, %s5472_s28 }
 0xb01   : > { %2525 = vrot.lane.b32.xlu1 %v5949_v6, %s5473_s7 }
 0xb05   : > { %2472 = vrot.lane.b32.xlu1 %v5947_v5, %s5473_s7 }
 0xb09   : > { %2523 = vrot.lane.b32.xlu1 %v5960_v14, %s5473_s7 }
 0xb75   : > { %v2404_v12 = vpop.xlane.xlu1 %2403 }
 0xb76   : > { %v2408_v13 = vsub.f32 %v2400_v59, %v2404_v12 }
 0xb78   : > { %v2410_v16 = vmul.f32 1.442695, %v2408_v13 }
 0xb79   : > { %v2426_v17 = vpop.permute.xlu1 %2425  ;;  %v2407_v18 = vpop.xlane.xlu0 %2406 }
 0xb7a   : > { %4956 = vpow2.f32 %v2410_v16  ;;  %v2409_v19 = vsub.f32 %v2401_v10, %v2407_v18  ;;  %4497 = vmatpush3.bf16.msra.mxu0 %v2426_v17 }
 0xb7b   : > { %4508 = vmatprep.subr.bf16.mxu0 %v5469_v52 }
 0xb7c   : > { %v2412_v20 = vmul.f32 1.442695, %v2409_v19 }
 0xb7d   : > { %v2526_v27 = vpop.permute.xlu1 %2525 }
 0xb7e   : > { %4958 = vpow2.f32 %v2412_v20  ;;  %v2531_v33 = vsel %vm1954_vm1, %v2526_v27, 0 }
 0xb81   : > { %v2473_v29 = vpop.permute.xlu1 %2472 }
 0xb85   : > { %v2524_v34 = vpop.permute.xlu1 %2523 }
 0xb87   : > { %v4957_v21 = vpop.eup %4956 }
 0xb88   : > { %v2414_v6 = vsel %vm2051_vm2, %v4957_v21, 0.0 }
 0xb89   : > { %2415 = vadd.xlane.f32.xlu0 %v2414_v6  ;;  %v4837_v6 = vld [vmem:[%s6399_s2 + $0x30] sm:$0xff]  }
 0xb8b   : > { %v4959_v5 = vpop.eup %4958 }
 0xb8c   : > { %v2417_v23 = vsel %vm2051_vm2, %v4959_v5, 0.0 }
 0xb8d   : > { %2418 = vadd.xlane.f32.xlu0 %v2417_v23  ;;  %v4839_v23 = vld [vmem:[%s6399_s2 + $0x20] sm:$0xff]  }
 0xba3   : > { %2474 = vrot.lane.b32.xlu0 %v5935_v42, %s5473_s7 }
 0xc12   : > { %v2416_v14 = vpop.xlane.xlu0 %2415 }
 0xc13   : > { %4960 = vrcp.f32 %v2416_v14  ;;  %v4840_v14 = vld [vmem:[%s6399_s2 + $0x18] sm:$0xff]  }
 0xc16   : > { %v2419_v24 = vpop.xlane.xlu0 %2418 }
 0xc17   : > { %4962 = vrcp.f32 %v2419_v24  ;;  %v4841_v24 = vld [vmem:[%s6399_s2 + $0x10] sm:$0xff]  }
 0xc1a   : > { %v2475_v25 = vpop.permute.xlu0 %2474 }
 0xc1b   : > { %v2480_v26 = vsel %vm1954_vm1, %v2475_v25, 0  ;;  %v4842_v25 = vld [vmem:[%s6399_s2 + $0x8] sm:$0xff]  }
 0xc1c   : > { %4503 = vmatpush3.bf16.xpose.msra.mxu1 %v2480_v26  ;;  %v4843_v26 = vld [vmem:[%s6399_s2] sm:$0xff]  }
 0xc1d   : > { %4514 = vmatprep.subr.bf16.mxu1 %v5469_v52 }
 0xc20   : > { %v4961_v28 = vpop.eup %4960 }
 0xc21   : > { %v2422_v42 = vmul.f32 %v4961_v28, %v4957_v21 }
 0xc23   : > { %4505 = vmatmul.mubr.msk.bf16.vlgmr.msra.gmra.mxu1 %vm1954_vm1, %v2473_v29 }
 0xc24   : > { %v4963_v30 = vpop.eup %4962  ;;  %4516 = vmatprep.mubr.msk.bf16.mxu1 %vm5470_vm0, %v5469_v52 }
 0xc25   : > { %v2423_v31 = vmul.f32 %v4963_v30, %v4959_v5  ;;  %v4838_v5 = vld [vmem:[%s6399_s2 + $0x28] sm:$0xff]  }
 0xc27   : > { %v2424_v32 = vpack.c.bf16 %v2423_v31, %v2422_v42 }
 0xc29   : > { %4499 = vmatmul.mubr.msk.bf16.vlgmr.msra.gmra.mxu0 %vm2051_vm2, %v2424_v32 }
 0xc2a   : > { %4509 = vmatpush3.bf16.xpose.msra.mxu0 %v2531_v33  ;;  %4510 = vmatprep.mubr.msk.bf16.mxu0 %vm5470_vm0, %v5469_v52 }
 0xc2b   : > { %4520 = vmatprep.subr.bf16.mxu0 %v5469_v52 }
 0xc31   : > { %4511 = vmatmul.mubr.msk.bf16.vlgmr.msra.gmra.mxu0 %vm1954_vm1, %v2524_v34 }
 0xc32   : > { %4536 = vmatprep.mubr.msk.bf16.mxu0 %vm5470_vm0, %v5469_v52 }
 0xce3   : > { %v2516_v35 = vpop.f32.mrf.mxu1 }
 0xce5   : > { %v4506_v36 = vpop.f32.mrf.mxu1 }
 0xce7   : > { %v2519_v37 = vpop.f32.mrf.mxu1 }
 0xce9   : > { %v2465_v38 = vpop.f32.mrf.mxu0  ;;  %v4507_v39 = vpop.f32.mrf.mxu1 }
 0xceb   : > { %v4500_v40 = vpop.f32.mrf.mxu0 }
 0xced   : > { %v2468_v41 = vpop.f32.mrf.mxu0 }
 0xcee   : > { %v4754_v58 = vpack.i.bf16 %v2468_v41, %v2465_v38 }
 0xcef   : > { %v4501_v43 = vpop.f32.mrf.mxu0 }
 0xcf1   : > { %v2567_v44 = vpop.f32.mrf.mxu0 }
 0xcf2   : > { %v2568_v45 = vadd.f32 %v2567_v44, %v2516_v35 }
 0xcf3   : > { %v4512_v46 = vpop.f32.mrf.mxu0 }
 0xcf4   : > { %v2574_v48 = vmul.f32 0.17677669, %v2568_v45 }
 0xcf5   : > { %v2570_v50 = vpop.f32.mrf.mxu0 }
 0xcf6   : > { %v2571_v51 = vadd.f32 %v2570_v50, %v2519_v37  ;;  %v2576_v1 = vsel %vm2051_vm2, %v2574_v48, -inf }
 0xcf7   : > { %v4513_v55 = vpop.f32.mrf.mxu0  ;;  %2577 = vmax.xlane.f32.xlu0 %v2576_v1 }
 0xcf8   : > { %v2575_v56 = vmul.f32 0.17677669, %v2571_v51  ;;  %v4240_v51 = vld [vmem:[#allocation9] ss:$0 sm:$0xff] }
 0xcfa   : > { %v2579_v57 = vsel %vm2051_vm2, %v2575_v56, -inf }
 0xcfb   : > { %2580 = vmax.xlane.f32.xlu1 %v2579_v57 }
 0xd0c   : > { %4750 = vrot.lane.b32.xlu1 %v4749_v54, %s5473_s7 }
 0xd10   : > { %4755 = vrot.lane.b32.xlu1 %v4754_v58, %s5472_s28  ;;  %s6405_s28 = sld [smem:[#allocation45_spill]] }
 0xd80   : > { %v2578_v59 = vpop.xlane.xlu0 %2577 }
 0xd81   : > { %v2582_v61 = vsub.f32 %v2574_v48, %v2578_v59  ;;  %v4844_v59 = vld [vmem:[%s6400_s0 + $0x70] ss:$8 sps:$4 sm:$0xff]  }
 0xd83   : > { %v2584_v7 = vmul.f32 1.442695, %v2582_v61  ;;  %v4846_v61 = vld [vmem:[%s6400_s0 + $0x74] ss:$8 sps:$4 sm:$0xff]  }
 0xd84   : > { %v2581_v8 = vpop.xlane.xlu1 %2580 }
 0xd85   : > { %4964 = vpow2.f32 %v2584_v7  ;;  %v2583_v9 = vsub.f32 %v2575_v56, %v2581_v8 }
 0xd87   : > { %v2586_v10 = vmul.f32 1.442695, %v2583_v9 }
 0xd88   : > { %v4751_v31 = vpop.permute.xlu1 %4750 }
 0xd89   : > { %4966 = vpow2.f32 %v2586_v10  ;;  %v4753_v33 = vunpack.i.h.bf16 %v4751_v31  ;;  %v4752_v34 = vunpack.i.l.bf16 %v4751_v31 }
 0xd8b   : > { %v2671_v38 = vsel %vm1954_vm1, %v5997_v0, %v4753_v33  ;;  %v2670_v39 = vsel %vm1954_vm1, %v5995_v60, %v4752_v34  ;;  %v4242_v34 = vld [vmem:[#allocation12] ss:$0 sm:$0xff] }
 0xd8c   : > { %v4756_v32 = vpop.permute.xlu1 %4755 }
 0xd8d   : > { %v4758_v35 = vunpack.i.h.bf16 %v4756_v32  ;;  %v4757_v36 = vunpack.i.l.bf16 %v4756_v32 }
 0xd8f   : > { %v2673_v43 = vsel %vm2672_vm3, %v2670_v39, %v4757_v36  ;;  %v2674_v44 = vsel %vm2672_vm3, %v2671_v38, %v4758_v35  ;;  %v4868_v39 = vld [vmem:[%s6401_s3 + $0x38] sm:$0xff]  }
 0xd92   : > { %v4965_v11 = vpop.eup %4964 }
 0xd93   : > { %v2588_v12 = vsel %vm2051_vm2, %v4965_v11, 0.0 }
 0xd94   : > { %2589 = vadd.xlane.f32.xlu0 %v2588_v12 }
 0xd96   : > { %v4967_v13 = vpop.eup %4966 }
 0xd97   : > { %v2591_v16 = vsel %vm2051_vm2, %v4967_v13, 0.0 }
 0xd98   : > { %2592 = vadd.xlane.f32.xlu0 %v2591_v16  ;;  %v4847_v16 = vld [vmem:[%s6400_s0 + $0x60] ss:$8 sps:$4 sm:$0xff]  }
 0xdae   : > { %2599 = vrot.lane.b32.xlu0 %v5962_v15, %s5473_s7  ;;  %v4836_v15 = vld [vmem:[%s6399_s2 + $0x38] sm:$0xff]   ;;  %s6406_s7 = sld [smem:[#allocation47_spill]] }
 0xdaf   : > { %4521 = vmatpush3.bf16.msra.mxu0 %v4836_v15  ;;  %v4864_v15 = vld [vmem:[%s6400_s0 + $0x14] ss:$8 sps:$4 sm:$0xff]  }
 0xdb0   : > { %4522 = vmatprep.subr.bf16.mxu0 %v5469_v52 }
 0xdb3   : > { %4523 = vmatpush3.bf16.msra.mxu0 %v4837_v6  ;;  %v4862_v6 = vld [vmem:[%s6400_s0 + $0x10] ss:$8 sps:$4 sm:$0xff]  }
 0xdb4   : > { %4524 = vmatprep.subr.bf16.mxu0 %v5469_v52 }
 0xdb7   : > { %4525 = vmatpush3.bf16.msra.mxu0 %v4838_v5  ;;  %v4867_v5 = vld [vmem:[%s6400_s0 + $0x4] ss:$8 sps:$4 sm:$0xff]  }
 0xdb8   : > { %4526 = vmatprep.subr.bf16.mxu0 %v5469_v52 }
 0xdbb   : > { %4527 = vmatpush3.bf16.msra.mxu0 %v4839_v23  ;;  %v4865_v23 = vld [vmem:[%s6400_s0] ss:$8 sps:$4 sm:$0xff]  }
 0xdbc   : > { %4528 = vmatprep.subr.bf16.mxu0 %v5469_v52 }
 0xdbf   : > { %4529 = vmatpush3.bf16.msra.mxu0 %v4840_v14 }
 0xdc0   : > { %4530 = vmatprep.subr.bf16.mxu0 %v5469_v52 }
 0xdc3   : > { %4531 = vmatpush3.bf16.msra.mxu0 %v4841_v24 }
 0xdc4   : > { %4532 = vmatprep.subr.bf16.mxu0 %v5469_v52 }
 0xdc7   : > { %4533 = vmatpush3.bf16.msra.mxu0 %v4842_v25 }
 0xdc8   : > { %4534 = vmatprep.subr.bf16.mxu0 %v5469_v52 }
 0xdcb   : > { %4535 = vmatpush3.bf16.msra.mxu0 %v4843_v26 }
 0xdcc   : > { %4540 = vmatprep.subr.bf16.mxu0 %v5469_v52 }
 0xe1d   : > { %v2590_v53 = vpop.xlane.xlu0 %2589 }
 0xe1e   : > { %4968 = vrcp.f32 %v2590_v53  ;;  %v4852_v53 = vld [vmem:[%s6400_s0 + $0x54] ss:$8 sps:$4 sm:$0xff]  }
 0xe21   : > { %v2593_v2 = vpop.xlane.xlu0 %2592 }
 0xe22   : > { %4970 = vrcp.f32 %v2593_v2  ;;  %v4850_v2 = vld [vmem:[%s6400_s0 + $0x50] ss:$8 sps:$4 sm:$0xff]  }
 0xe25   : > { %v2600_v54 = vpop.permute.xlu0 %2599 }
 0xe26   : > { %4515 = vmatpush3.bf16.msra.mxu1 %v2600_v54  ;;  %v4853_v54 = vld [vmem:[%s6400_s0 + $0x40] ss:$8 sps:$4 sm:$0xff]  }
 0xe27   : > { %2944 = vmatprep.subr.bf16.mxu1 %v4846_v61 }
 0xe2b   : > { %v4969_v17 = vpop.eup %4968 }
 0xe2c   : > { %v2596_v19 = vmul.f32 %v4969_v17, %v4965_v11  ;;  %v4855_v17 = vld [vmem:[%s6400_s0 + $0x44] ss:$8 sps:$4 sm:$0xff]  }
 0xe2f   : > { %v4971_v18 = vpop.eup %4970 }
 0xe30   : > { %v2597_v20 = vmul.f32 %v4971_v18, %v4967_v13  ;;  %v4849_v13 = vld [vmem:[%s6400_s0 + $0x64] ss:$8 sps:$4 sm:$0xff]   ;;  %v4858_v18 = vld [vmem:[%s6400_s0 + $0x34] ss:$8 sps:$4 sm:$0xff]  }
 0xe32   : > { %v2598_v21 = vpack.c.bf16 %v2597_v20, %v2596_v19  ;;  %v4856_v19 = vld [vmem:[%s6400_s0 + $0x30] ss:$8 sps:$4 sm:$0xff]   ;;  %v4861_v20 = vld [vmem:[%s6400_s0 + $0x24] ss:$8 sps:$4 sm:$0xff]  }
 0xe34   : > { %4517 = vmatmul.mubr.msk.bf16.vlgmr.msra.gmra.mxu1 %vm2051_vm2, %v2598_v21  ;;  %v4859_v21 = vld [vmem:[%s6400_s0 + $0x20] ss:$8 sps:$4 sm:$0xff]  }
 0xe35   : > { %2976 = vmatprep.mubr.bf16.mxu1 %v5468_v22  ;;  %2945 = vmatpush1.bf16.msra.mxu1 %v4844_v59 }
 0xe36   : > { %2946 = vmatprep.subr.bf16.mxu1 %v4849_v13 }
 0xe39   : > { %2947 = vmatpush1.bf16.msra.mxu1 %v4847_v16 }
 0xe3a   : > { %2948 = vmatprep.subr.bf16.mxu1 %v4852_v53 }
 0xe3d   : > { %2949 = vmatpush1.bf16.msra.mxu1 %v4850_v2  ;;  %v3083_v2 = vsub.s32 4, %v5862_v62 }
 0xe3e   : > { %2950 = vmatprep.subr.bf16.mxu1 %v4855_v17 }
 0xe41   : > { %2951 = vmatpush1.bf16.msra.mxu1 %v4853_v54 }
 0xe42   : > { %2952 = vmatprep.subr.bf16.mxu1 %v4858_v18  ;;  %v3103_v18 = vsub.s32 5, %v5862_v62 }
 0xe45   : > { %2953 = vmatpush1.bf16.msra.mxu1 %v4856_v19  ;;  %v3123_v19 = vsub.s32 6, %v5862_v62 }
 0xe46   : > { %2954 = vmatprep.subr.bf16.mxu1 %v4861_v20 }
 0xe49   : > { %2955 = vmatpush1.bf16.msra.mxu1 %v4859_v21 }
 0xe4a   : > { %2956 = vmatprep.subr.bf16.mxu1 %v4864_v15  ;;  %v3143_v15 = vsub.s32 7, %v5862_v62 }
 0xe4d   : > { %2957 = vmatpush1.bf16.msra.mxu1 %v4862_v6 }
 0xe4e   : > { %2958 = vmatprep.subr.bf16.mxu1 %v4867_v5 }
 0xe51   : > { %2959 = vmatpush1.bf16.msra.mxu1 %v4865_v23 }
 0xef4   : > { %v2639_v27 = vpop.f32.mrf.mxu1 }
 0xef6   : > { %v4518_v28 = vpop.f32.mrf.mxu1 }
 0xef8   : > { %v2642_v29 = vpop.f32.mrf.mxu1 }
 0xef9   : > { %v4759_v30 = vpack.i.bf16 %v2642_v29, %v2639_v27 }
 0xefa   : > { %v4519_v42 = vpop.f32.mrf.mxu1 }
 0xefb   : > { %4760 = vrot.lane.b32.xlu1 %v4759_v30, %s5471_s26  ;;  %v4241_v42 = vld [vmem:[#allocation10] ss:$0 sm:$0xff]  ;;  %s6404_s26 = sld [smem:[#allocation44_spill]] }
 0xf6d   : > { %v4761_v37 = vpop.permute.xlu1 %4760 }
 0xf6e   : > { %v4763_v40 = vunpack.i.h.bf16 %v4761_v37  ;;  %v4762_v41 = vunpack.i.l.bf16 %v4761_v37 }
 0xf70   : > { %v2677_v45 = vsel %vm2675_vm4, %v2674_v44, %v4763_v40  ;;  %v2676_v46 = vsel %vm2675_vm4, %v2673_v43, %v4762_v41  ;;  %v4869_v40 = vld [vmem:[%s6401_s3 + $0x30] sm:$0xff]   ;;  %v4870_v41 = vld [vmem:[%s6401_s3 + $0x28] sm:$0xff]   ;;  %v4871_v43 = vld [vmem:[%s6401_s3 + $0x20] sm:$0xff]  }
 0xf71   : > { %v2678_v48 = vpack.c.bf16 %v2677_v45, %v2676_v46  ;;  %v4872_v44 = vld [vmem:[%s6401_s3 + $0x18] sm:$0xff]   ;;  %v4874_v45 = vld [vmem:[%s6401_s3 + $0x8] sm:$0xff]   ;;  %v4875_v46 = vld [vmem:[%s6401_s3] sm:$0xff]  }
 0xf73   : > { %4537 = vmatmul.mubr.bf16.vlgmr.msra.gmra.mxu0 %v2678_v48  ;;  %v2852_v48 = vld [vmem:[%s6402_s23] sm:$0x3]  ;;  %s6407_s23 = sld [smem:[#allocation49_spill]] }
 0xf74   : > { %4556 = vmatprep.mubr.msk.bf16.mxu0 %vm5470_vm0, %v5469_v52  ;;  %4541 = vmatpush3.bf16.msra.mxu0 %v4868_v39 }
 0xf75   : > { %4542 = vmatprep.subr.bf16.mxu0 %v5469_v52 }
 0xf78   : > { %4543 = vmatpush3.bf16.msra.mxu0 %v4869_v40 }
 0xf79   : > { %4544 = vmatprep.subr.bf16.mxu0 %v5469_v52 }
 0xf7c   : > { %4545 = vmatpush3.bf16.msra.mxu0 %v4870_v41 }
 0xf7d   : > { %4546 = vmatprep.subr.bf16.mxu0 %v5469_v52 }
 0xf80   : > { %4547 = vmatpush3.bf16.msra.mxu0 %v4871_v43 }
 0xf81   : > { %4548 = vmatprep.subr.bf16.mxu0 %v5469_v52 }
 0xf84   : > { %4549 = vmatpush3.bf16.msra.mxu0 %v4872_v44 }
 0xf85   : > { %4550 = vmatprep.subr.bf16.mxu0 %v5469_v52 }
0x1033   : > { %v2777_v50 = vpop.f32.mrf.mxu0 }
0x1034   : > { %v2784_v0 = vadd.f32 %v2777_v50, %v5874_v47  ;;  %v2861_v50 = vrot.slane %v2852_v48, %v5869_v3 }
0x1035   : > { %v4538_v1 = vpop.f32.mrf.mxu0 }
0x1036   : > { %v6098_v55 = vadd.f32 %v4240_v51, %v2784_v0 }
0x1037   : > { %v2780_v60 = vpop.f32.mrf.mxu0 }
0x1038   : > { %v2785_v56 = vadd.f32 %v2780_v60, %v5878_v49  ;;  %2797 = vadd.xlane.f32.xlu0 %v6098_v55 }
0x1039   : > { %v4539_v57 = vpop.f32.mrf.mxu0 }
0x103a   : > { %v6102_v58 = vadd.f32 %v4240_v51, %v2785_v56 }
0x103c   : > { %2799 = vadd.xlane.f32.xlu1 %v6102_v58 }
0x10c1   : > { %v2798_v47 = vpop.xlane.xlu0 %2797 }
0x10c2   : > { %v2801_v7 = vmul.f32 0.0078125, %v2798_v47 }
0x10c4   : > { %v2803_v8 = vsub.f32 %v6098_v55, %v2801_v7 }
0x10c5   : > { %v2800_v49 = vpop.xlane.xlu1 %2799 }
0x10c6   : > { %v2802_v9 = vmul.f32 0.0078125, %v2800_v49  ;;  %v2805_v10 = vmul.f32 %v2803_v8, %v2803_v8 }
0x10c8   : > { %v2804_v11 = vsub.f32 %v6102_v58, %v2802_v9  ;;  %2807 = vadd.xlane.f32.xlu0 %v2805_v10  ;;  %v3063_v10 = vsub.s32 3, %v5862_v62 }
0x10ca   : > { %v2806_v12 = vmul.f32 %v2804_v11, %v2804_v11 }
0x10cc   : > { %2809 = vadd.xlane.f32.xlu0 %v2806_v12  ;;  %v3012_v12 = vld [vmem:[%s6403_s1] sm:$0xff] }
0x10cd   : > { %v3044_v54 = vrot.slane %v3012_v12, %v5945_v4 }
0x1151   : > { %v2808_v14 = vpop.xlane.xlu0 %2807 }
0x1152   : > { %v2811_v24 = vmul.f32 0.0078125, %v2808_v14 }
0x1154   : > { %v2813_v25 = vadd.f32 1e-05, %v2811_v24  ;;  %v3025_v24 = vrot.slane %v3012_v12, %v5869_v3 }
0x1155   : > { %v2810_v26 = vpop.xlane.xlu0 %2809 }
0x1156   : > { %4972 = vrsqrt.f32 %v2813_v25  ;;  %v2812_v27 = vmul.f32 0.0078125, %v2810_v26  ;;  %v3064_v25 = vrot.slane %v3012_v12, %v3063_v10  ;;  %v3084_v26 = vrot.slane %v3012_v12, %v3083_v2 }
0x1158   : > { %v2814_v28 = vadd.f32 1e-05, %v2812_v27 }
0x115a   : > { %4974 = vrsqrt.f32 %v2814_v28 }
0x1163   : > { %v4973_v29 = vpop.eup %4972 }
0x1164   : > { %v2817_v30 = vmul.f32 %v4973_v29, %v2803_v8  ;;  %v3013_v8 = vld [vmem:[%s6403_s1 + $0x8] sm:$0x7f]  ;;  %v6174_v29 = vrot.slane %v3012_v12, %v3103_v18 }
0x1165   : > { %v6143_v9 = vrot.slane %v3013_v8, %v5945_v4  ;;  %v6149_v13 = vrot.slane %v3013_v8, %v5869_v3  ;;  %v6154_v53 = vrot.slane %v3013_v8, %v3063_v10  ;;  %v3017_v4 = vrot.slane %v3012_v12, %v5865_v63 }
0x1166   : > { %v2825_v33 = vmul.f32 %v4241_v42, %v2817_v30  ;;  %v6169_v14 = vrot.slane %v3013_v8, %v3083_v2  ;;  %v6172_v27 = vrot.slane %v3013_v8, %v3103_v18  ;;  %v6176_v30 = vrot.slane %v3012_v12, %v3123_v19 }
0x1167   : > { %v4975_v31 = vpop.eup %4974  ;;  %v6152_v16 = vmul.f32 0.0, %v6143_v9  ;;  %v6163_v6 = vmul.f32 0.0, %v6149_v13  ;;  %v6166_v5 = vmul.f32 0.0, %v6154_v53 }
0x1168   : > { %v2818_v32 = vmul.f32 %v4975_v31, %v2804_v11  ;;  %v2833_v36 = vadd.f32 %v4242_v34, %v2825_v33  ;;  %v2857_v11 = vrot.slane %v2852_v48, %v5865_v63  ;;  %v6178_v31 = vrot.slane %v3012_v12, %v3143_v15 }
0x1169   : > { %v3201_v21 = vrot.slane %v6152_v16, 2  ;;  %v3182_v33 = vrot.slane %v6163_v6, 1  ;;  %v6192_v43 = vmul.f32 0.0, %v6172_v27 }
0x116a   : > { %v2826_v35 = vmul.f32 %v4241_v42, %v2818_v32  ;;  %v6181_v32 = vrot.slane %v3013_v8, %v5865_v63 }
0x116c   : > { %v2834_v37 = vadd.f32 %v4242_v34, %v2826_v35  ;;  %v3220_v34 = vrot.slane %v6166_v5, 3 }
0x116e   : > { %v2835_v38 = vpack.c.bf16 %v2834_v37, %v2833_v36  ;;  %v6187_v37 = vmul.f32 0.0, %v6169_v14 }
0x1170   : > { %2977 = vmatmul.mubr.bf16.vlgmr.msra.gmra.mxu1 %v2835_v38  ;;  %v6189_v38 = vrot.slane %v3013_v8, %v3123_v19 }
0x1171   : > { %3620 = vmatprep.mubr.bf16.mxu1 %v5468_v22  ;;  %v4873_v22 = vld [vmem:[%s6401_s3 + $0x10] sm:$0xff]  }
0x1172   : > { %4551 = vmatpush3.bf16.msra.mxu0 %v4873_v22 }
0x1173   : > { %4552 = vmatprep.subr.bf16.mxu0 %v5469_v52 }
0x1176   : > { %4553 = vmatpush3.bf16.msra.mxu0 %v4874_v45 }
0x1177   : > { %4554 = vmatprep.subr.bf16.mxu0 %v5469_v52 }
0x117a   : > { %4555 = vmatpush3.bf16.msra.mxu0 %v4875_v46 }
0x1230   : > { %v2978_v51 = vpop.f32.mrf.mxu1 }
0x1231   : > { %v2979_v17 = vadd.f32 %v2978_v51, %v2857_v11 }
0x1232   : > { %v2980_v0 = vpop.f32.mrf.mxu1 }
0x1233   : > { %v2981_v1 = vadd.f32 %v2980_v0, %v2861_v50 }
0x1234   : > { %v2982_v60 = vpop.f32.mrf.mxu1 }
0x1235   : > { %v4259_v56 = vmul.f32 -1.442695, %v2981_v1  ;;  %v2983_v62 = vadd.f32 %v2982_v60, %v2857_v11 }
0x1236   : > { %v2984_v57 = vpop.f32.mrf.mxu1 }
0x1237   : > { %4976 = vpow2.f32 %v4259_v56  ;;  %v2985_v59 = vadd.f32 %v2984_v57, %v2861_v50 }
0x1239   : > { %v4260_v61 = vmul.f32 -1.442695, %v2985_v59 }
0x123b   : > { %4978 = vpow2.f32 %v4260_v61 }
0x1244   : > { %v4977_v47 = vpop.eup %4976 }
0x1245   : > { %v2993_v7 = vadd.f32 1.0, %v4977_v47 }
0x1247   : > { %4980 = vrcp.f32 %v2993_v7 }
0x1248   : > { %v4979_v52 = vpop.eup %4978 }
0x1249   : > { %v2994_v49 = vadd.f32 1.0, %v4979_v52 }
0x124b   : > { %4982 = vrcp.f32 %v2994_v49 }
0x1254   : > { %v4981_v20 = vpop.eup %4980 }
0x1255   : > { %v2999_v23 = vmul.f32 %v4981_v20, %v2979_v17 }
0x1257   : > { %v3004_v28 = vrot.slane %v2999_v23, 1 }
0x1258   : > { %v4983_v42 = vpop.eup %4982 }
0x1259   : > { %v3010_v35 = vsel %vm3003_vm5, 0.0, %v3004_v28  ;;  %v3000_v36 = vmul.f32 %v4983_v42, %v2983_v62 }
0x125a   : > { %v3026_v39 = vmul.f32 %v3025_v24, %v3010_v35  ;;  %v3045_v40 = vmul.f32 %v3044_v54, %v3010_v35  ;;  %v3065_v41 = vmul.f32 %v3064_v25, %v3010_v35  ;;  %v3018_v44 = vmul.f32 %v3017_v4, %v3010_v35 }
0x125b   : > { %v3005_v22 = vrot.slane %v3000_v36, 1  ;;  %v3085_v45 = vmul.f32 %v3084_v26, %v3010_v35  ;;  %v3105_v46 = vmul.f32 %v6174_v29, %v3010_v35  ;;  %v3125_v0 = vmul.f32 %v6176_v30, %v3010_v35 }
0x125c   : > { %v3032_v48 = vrot.slane %v3026_v39, 1  ;;  %v3052_v50 = vrot.slane %v3045_v40, 2  ;;  %v3072_v51 = vrot.slane %v3065_v41, 3  ;;  %v3145_v57 = vmul.f32 %v6178_v31, %v3010_v35 }
0x125d   : > { %v6197_v1 = vsel %vm3003_vm5, %v3004_v28, %v3005_v22  ;;  %v6200_v60 = vsel %vm3003_vm5, %v3005_v22, 0.0  ;;  %v3092_v56 = vrot.slane %v3085_v45, 4 }
0x125e   : > { %v3019_v59 = vmul.f32 %v3017_v4, %v6197_v1  ;;  %v3027_v61 = vmul.f32 %v3025_v24, %v6197_v1  ;;  %v3028_v47 = vmul.f32 %v3025_v24, %v6200_v60  ;;  %v3046_v7 = vmul.f32 %v3044_v54, %v6197_v1 }
0x125f   : > { %v3047_v52 = vmul.f32 %v3044_v54, %v6200_v60  ;;  %v3066_v8 = vmul.f32 %v3064_v25, %v6197_v1  ;;  %v3067_v49 = vmul.f32 %v3064_v25, %v6200_v60  ;;  %v3086_v10 = vmul.f32 %v3084_v26, %v6197_v1 }
0x1260   : > { %v3033_v11 = vrot.slane %v3027_v61, 1  ;;  %v3035_v12 = vrot.slane %v3028_v47, 1  ;;  %v3053_v2 = vrot.slane %v3046_v7, 2  ;;  %v3087_v17 = vmul.f32 %v3084_v26, %v6200_v60 }
0x1261   : > { %v3055_v18 = vrot.slane %v3047_v52, 2  ;;  %v3073_v19 = vrot.slane %v3066_v8, 3  ;;  %v3075_v20 = vrot.slane %v3067_v49, 3  ;;  %v3093_v15 = vrot.slane %v3086_v10, 4 }
0x1262   : > { %v3034_v23 = vsel %vm3003_vm5, %v3032_v48, %v3033_v11  ;;  %v3036_v54 = vsel %vm3003_vm5, %v3033_v11, %v3035_v12  ;;  %v3095_v4 = vrot.slane %v3087_v17, 4  ;;  %v3112_v24 = vrot.slane %v3105_v46, 5 }
0x1263   : > { %v3039_v25 = vadd.f32 %v3034_v23, %v3018_v44  ;;  %v3040_v28 = vadd.f32 %v3036_v54, %v3019_v59  ;;  %v3054_v62 = vsel %vm3051_vm6, %v3052_v50, %v3053_v2  ;;  %v3056_v42 = vsel %vm3051_vm6, %v3053_v2, %v3055_v18 }
0x1264   : > { %v3074_v35 = vsel %vm3071_vm7, %v3072_v51, %v3073_v19  ;;  %v3076_v26 = vsel %vm3071_vm7, %v3073_v19, %v3075_v20  ;;  %v3094_v36 = vsel %vm3091_vm8, %v3092_v56, %v3093_v15  ;;  %v3106_v39 = vmul.f32 %v6174_v29, %v6197_v1 }
0x1265   : > { %v3059_v40 = vadd.f32 %v3054_v62, %v3039_v25  ;;  %v3060_v41 = vadd.f32 %v3056_v42, %v3040_v28  ;;  %v3107_v22 = vmul.f32 %v6174_v29, %v6200_v60  ;;  %v3126_v44 = vmul.f32 %v6176_v30, %v6197_v1 }
0x1266   : > { %v3096_v45 = vsel %vm3091_vm8, %v3093_v15, %v3095_v4  ;;  %v3113_v46 = vrot.slane %v3106_v39, 5  ;;  %v3127_v48 = vmul.f32 %v6176_v30, %v6200_v60  ;;  %v3146_v50 = vmul.f32 %v6178_v31, %v6197_v1 }
0x1267   : > { %v3079_v51 = vadd.f32 %v3074_v35, %v3059_v40  ;;  %v3080_v56 = vadd.f32 %v3076_v26, %v3060_v41  ;;  %v3115_v59 = vrot.slane %v3107_v22, 5  ;;  %v3133_v61 = vrot.slane %v3126_v44, 6 }
0x1268   : > { %v3114_v47 = vsel %vm3111_vm9, %v3112_v24, %v3113_v46  ;;  %v3132_v7 = vrot.slane %v3125_v0, 6  ;;  %v3135_v29 = vrot.slane %v3127_v48, 6  ;;  %v3147_v52 = vmul.f32 %v6178_v31, %v6200_v60 }
0x1269   : > { %v3099_v8 = vadd.f32 %v3094_v36, %v3079_v51  ;;  %v3100_v49 = vadd.f32 %v3096_v45, %v3080_v56  ;;  %v3116_v10 = vsel %vm3111_vm9, %v3113_v46, %v3115_v59  ;;  %v3152_v11 = vrot.slane %v3145_v57, 7 }
0x126a   : > { %v3134_v30 = vsel %vm3131_vm10, %v3132_v7, %v3133_v61  ;;  %v3136_v12 = vsel %vm3131_vm10, %v3133_v61, %v3135_v29  ;;  %v3153_v2 = vrot.slane %v3146_v50, 7  ;;  %v3155_v17 = vrot.slane %v3147_v52, 7 }
0x126b   : > { %v3119_v18 = vadd.f32 %v3114_v47, %v3099_v8  ;;  %v3120_v19 = vadd.f32 %v3116_v10, %v3100_v49  ;;  %v3165_v0 = vmul.f32 %v6181_v32, %v6197_v1  ;;  %v3173_v20 = vmul.f32 %v6149_v13, %v6197_v1 }
0x126c   : > { %v3154_v31 = vsel %vm3151_vm11, %v3152_v11, %v3153_v2  ;;  %v3156_v15 = vsel %vm3151_vm11, %v3153_v2, %v3155_v17  ;;  %v3174_v57 = vmul.f32 %v6149_v13, %v6200_v60  ;;  %v3192_v23 = vmul.f32 %v6143_v9, %v6197_v1 }
0x126d   : > { %v3139_v54 = vadd.f32 %v3134_v30, %v3119_v18  ;;  %v3140_v4 = vadd.f32 %v3136_v12, %v3120_v19  ;;  %v3179_v24 = vrot.slane %v3173_v20, 1  ;;  %v3193_v25 = vmul.f32 %v6143_v9, %v6200_v60 }
0x126e   : > { %v3180_v28 = vrot.slane %v3174_v57, 1  ;;  %v3198_v62 = vrot.slane %v3192_v23, 2  ;;  %v3211_v42 = vmul.f32 %v6154_v53, %v6197_v1  ;;  %v3212_v35 = vmul.f32 %v6154_v53, %v6200_v60 }
0x126f   : > { %v3159_v26 = vadd.f32 %v3154_v31, %v3139_v54  ;;  %v3160_v36 = vadd.f32 %v3156_v15, %v3140_v4  ;;  %v3166_v13 = vmul.f32 %v6181_v32, %v6200_v60  ;;  %v3199_v39 = vrot.slane %v3193_v25, 2  ;;  %v4262_v15 = vld [vmem:[%s6404_s26] ss:$0 sm:$0xff]  ;;  %s6408_s26 = sld [smem:[#allocation48_spill]] }
0x1270   : > { %v3181_v40 = vsel %vm3003_vm5, %v3179_v24, %v3180_v28  ;;  %v3230_v41 = vmul.f32 %v6169_v14, %v6197_v1  ;;  %v3239_v9 = vrot.slane %v6187_v37, 4  ;;  %v3270_v22 = vmul.f32 0.0, %v6189_v38  ;;  %v4263_v54 = vld [vmem:[%s6405_s28] ss:$0 sm:$0xff]  ;;  %s1218_s28 = scalar_lea.vmem %s5652_s25, %s4320_s22 }
0x1271   : > { %v3167_v44 = vadd.f32 %v3165_v0, %v3159_v26  ;;  %v3168_v45 = vadd.f32 %v3166_v13, %v3160_v36  ;;  %v3183_v53 = vsel %vm3003_vm5, %v3180_v28, %v3182_v33  ;;  %v3217_v46 = vrot.slane %v3211_v42, 3  ;;  %v4261_v0 = vld [vmem:[#allocation13] ss:$0 sm:$0xff] }
0x1272   : > { %v3200_v48 = vsel %vm3051_vm6, %v3198_v62, %v3199_v39  ;;  %v3202_v32 = vsel %vm3051_vm6, %v3199_v39, %v3201_v21  ;;  %v3218_v50 = vrot.slane %v3212_v35, 3  ;;  %v3231_v51 = vmul.f32 %v6169_v14, %v6200_v60 }
0x1273   : > { %v3186_v37 = vadd.f32 %v3181_v40, %v3167_v44  ;;  %v3187_v56 = vadd.f32 %v3183_v53, %v3168_v45  ;;  %v3249_v59 = vmul.f32 %v6172_v27, %v6197_v1  ;;  %v3250_v6 = vmul.f32 %v6172_v27, %v6200_v60  ;;  %v4266_v44 = vld [vmem:[#allocation15] ss:$0 sm:$0xff] }
0x1274   : > { %v3236_v33 = vrot.slane %v3230_v41, 4  ;;  %v3237_v61 = vrot.slane %v3231_v51, 4  ;;  %v3268_v47 = vmul.f32 %v6189_v38, %v6197_v1  ;;  %v3269_v16 = vmul.f32 %v6189_v38, %v6200_v60 }
0x1275   : > { %v3205_v21 = vadd.f32 %v3200_v48, %v3186_v37  ;;  %v3206_v7 = vadd.f32 %v3202_v32, %v3187_v56  ;;  %v3258_v14 = vrot.slane %v6192_v43, 5  ;;  %v3219_v29 = vsel %vm3071_vm7, %v3217_v46, %v3218_v50  ;;  %v4876_v56 = vld [vmem:[%s6406_s7 + $0x70] ss:$8 sps:$4 sm:$0xff]  }
0x1276   : > { %v3221_v52 = vsel %vm3071_vm7, %v3218_v50, %v3220_v34  ;;  %v3255_v8 = vrot.slane %v3249_v59, 5  ;;  %v3256_v27 = vrot.slane %v3250_v6, 5  ;;  %v3277_v11 = vrot.slane %v3270_v22, 6  ;;  %v4878_v59 = vld [vmem:[%s6406_s7 + $0x74] ss:$8 sps:$4 sm:$0xff]  }
0x1277   : > { %v3224_v49 = vadd.f32 %v3219_v29, %v3205_v21  ;;  %v3225_v10 = vadd.f32 %v3221_v52, %v3206_v7  ;;  %v3238_v1 = vsel %vm3091_vm8, %v3236_v33, %v3237_v61  ;;  %v3240_v38 = vsel %vm3091_vm8, %v3237_v61, %v3239_v9  ;;  %3588 = vmatprep.subr.bf16.mxu1 %v4878_v59  ;;  %v4879_v7 = vld [vmem:[%s6406_s7 + $0x60] ss:$8 sps:$4 sm:$0xff]   ;;  %v4882_v29 = vld [vmem:[%s6406_s7 + $0x50] ss:$8 sps:$4 sm:$0xff]   ;;  %v4884_v52 = vld [vmem:[%s6406_s7 + $0x54] ss:$8 sps:$4 sm:$0xff]  }
0x1278   : > { %v3274_v60 = vrot.slane %v3268_v47, 6  ;;  %v3275_v30 = vrot.slane %v3269_v16, 6  ;;  %v3257_v2 = vsel %vm3111_vm9, %v3255_v8, %v3256_v27  ;;  %v3259_v5 = vsel %vm3111_vm9, %v3256_v27, %v3258_v14  ;;  %3589 = vmatpush1.bf16.msra.mxu1 %v4876_v56  ;;  %v4881_v14 = vld [vmem:[%s6406_s7 + $0x64] ss:$8 sps:$4 sm:$0xff]   ;;  %v4885_v27 = vld [vmem:[%s6406_s7 + $0x40] ss:$8 sps:$4 sm:$0xff]  }
0x1279   : > { %v3243_v43 = vadd.f32 %v3238_v1, %v3224_v49  ;;  %v3244_v12 = vadd.f32 %v3240_v38, %v3225_v10  ;;  %3590 = vmatprep.subr.bf16.mxu1 %v4881_v14  ;;  %v4887_v8 = vld [vmem:[%s6406_s7 + $0x44] ss:$8 sps:$4 sm:$0xff]   ;;  %v4890_v49 = vld [vmem:[%s6406_s7 + $0x34] ss:$8 sps:$4 sm:$0xff]   ;;  %v4888_v10 = vld [vmem:[%s6406_s7 + $0x30] ss:$8 sps:$4 sm:$0xff]  }
0x127a   : > { %v3276_v18 = vsel %vm3131_vm10, %v3274_v60, %v3275_v30  ;;  %v3278_v19 = vsel %vm3131_vm10, %v3275_v30, %v3277_v11  ;;  %v4893_v11 = vld [vmem:[%s6406_s7 + $0x24] ss:$8 sps:$4 sm:$0xff]   ;;  %v4891_v1 = vld [vmem:[%s6406_s7 + $0x20] ss:$8 sps:$4 sm:$0xff]   ;;  %v4896_v38 = vld [vmem:[%s6406_s7 + $0x14] ss:$8 sps:$4 sm:$0xff]  }
0x127b   : > { %v3262_v34 = vadd.f32 %v3257_v2, %v3243_v43  ;;  %v3263_v17 = vadd.f32 %v3259_v5, %v3244_v12  ;;  %v4894_v60 = vld [vmem:[%s6406_s7 + $0x10] ss:$8 sps:$4 sm:$0xff]   ;;  %v4899_v30 = vld [vmem:[%s6406_s7 + $0x4] ss:$8 sps:$4 sm:$0xff]   ;;  %v4897_v43 = vld [vmem:[%s6406_s7] ss:$8 sps:$4 sm:$0xff]  }
0x127c   : > { %3591 = vmatpush1.bf16.msra.mxu1 %v4879_v7 }
0x127d   : > { %v3281_v20 = vadd.f32 %v3276_v18, %v3262_v34  ;;  %v3282_v31 = vadd.f32 %v3278_v19, %v3263_v17  ;;  %3592 = vmatprep.subr.bf16.mxu1 %v4884_v52 }
0x127f   : > { %v3290_v57 = vadd.f32 %v4261_v0, %v3281_v20  ;;  %v3291_v23 = vadd.f32 %v4261_v0, %v3282_v31  ;;  %v4275_v20 = vld [vmem:[#allocation16] ss:$0 sm:$0xff] }
0x1280   : > { %3593 = vmatpush1.bf16.msra.mxu1 %v4882_v29 }
0x1281   : > { %v3299_v4 = vmul.f32 %v4262_v15, %v3290_v57  ;;  %v3300_v24 = vmul.f32 %v4262_v15, %v3291_v23  ;;  %3594 = vmatprep.subr.bf16.mxu1 %v4887_v8  ;;  %v4276_v23 = vld [vmem:[#allocation18] ss:$0 sm:$0xff] }
0x1283   : > { %v3308_v25 = vadd.f32 %v4263_v54, %v3299_v4  ;;  %v3309_v28 = vadd.f32 %v4263_v54, %v3300_v24 }
0x1284   : > { %3595 = vmatpush1.bf16.msra.mxu1 %v4885_v27 }
0x1285   : > { %v4264_v62 = vmul.f32 -1.442695, %v3308_v25  ;;  %v4265_v42 = vmul.f32 -1.442695, %v3309_v28  ;;  %3596 = vmatprep.subr.bf16.mxu1 %v4890_v49 }
0x1287   : > { %4984 = vpow2.f32 %v4264_v62  ;;  %v4901_v62 = vld [vmem:[%s6407_s23 + $0x38] sm:$0xff]  }
0x1288   : > { %4986 = vpow2.f32 %v4265_v42  ;;  %3597 = vmatpush1.bf16.msra.mxu1 %v4888_v10  ;;  %v4902_v42 = vld [vmem:[%s6407_s23 + $0x70] sm:$0xff]  }
0x1289   : > { %3598 = vmatprep.subr.bf16.mxu1 %v4893_v11 }
0x128c   : > { %3599 = vmatpush1.bf16.msra.mxu1 %v4891_v1 }
0x128d   : > { %3600 = vmatprep.subr.bf16.mxu1 %v4896_v38 }
0x1290   : > { %3601 = vmatpush1.bf16.msra.mxu1 %v4894_v60 }
0x1291   : > { %3602 = vmatprep.subr.bf16.mxu1 %v4899_v30 }
0x1294   : > { %v4985_v35 = vpop.eup %4984  ;;  %3603 = vmatpush1.bf16.msra.mxu1 %v4897_v43 }
0x1295   : > { %v4987_v26 = vpop.eup %4986  ;;  %v3316_v36 = vadd.f32 1.0, %v4985_v35  ;;  %v4903_v35 = vld [vmem:[%s6407_s23 + $0x30] sm:$0xff]  }
0x1296   : > { %v3317_v13 = vadd.f32 1.0, %v4987_v26  ;;  %v4904_v26 = vld [vmem:[%s6407_s23 + $0x68] sm:$0xff]  }
0x1297   : > { %4988 = vrcp.f32 %v3316_v36  ;;  %v4905_v36 = vld [vmem:[%s6407_s23 + $0x28] sm:$0xff]  }
0x1298   : > { %4990 = vrcp.f32 %v3317_v13  ;;  %v4906_v13 = vld [vmem:[%s6407_s23 + $0x60] sm:$0xff]  }
0x12a4   : > { %v4989_v39 = vpop.eup %4988 }
0x12a5   : > { %v4991_v40 = vpop.eup %4990  ;;  %v3322_v41 = vmul.f32 %v4989_v39, %v3308_v25  ;;  %v4907_v39 = vld [vmem:[%s6407_s23 + $0x20] sm:$0xff]  }
0x12a6   : > { %v3323_v9 = vmul.f32 %v4991_v40, %v3309_v28  ;;  %v4900_v28 = vld [vmem:[%s6407_s23 + $0x78] sm:$0xff]  }
0x12a7   : > { %4406 = vmatprep.subr.bf16.mxu0 %v4900_v28  ;;  %v4908_v40 = vld [vmem:[%s6407_s23 + $0x58] sm:$0xff]  }
0x12a8   : > { %v3324_v22 = vpack.c.bf16 %v3323_v9, %v3322_v41  ;;  %v4909_v41 = vld [vmem:[%s6407_s23 + $0x18] sm:$0xff]   ;;  %v4910_v9 = vld [vmem:[%s6407_s23 + $0x50] sm:$0xff]  }
0x12aa   : > { %4557 = vmatmul.mubr.bf16.vlgmr.msra.gmra.mxu0 %v3324_v22  ;;  %v4911_v22 = vld [vmem:[%s6407_s23 + $0x10] sm:$0xff]  }
0x12ab   : > { %4407 = vmatpush3.bf16.msra.mxu0 %v4901_v62 }
0x12ac   : > { %4408 = vmatprep.subr.bf16.mxu0 %v4902_v42 }
0x12af   : > { %4409 = vmatpush3.bf16.msra.mxu0 %v4903_v35 }
0x12b0   : > { %4410 = vmatprep.subr.bf16.mxu0 %v4904_v26 }
0x12b3   : > { %4411 = vmatpush3.bf16.msra.mxu0 %v4905_v36 }
0x12b4   : > { %4412 = vmatprep.subr.bf16.mxu0 %v4906_v13 }
0x12b7   : > { %4413 = vmatpush3.bf16.msra.mxu0 %v4907_v39 }
0x12b8   : > { %4414 = vmatprep.subr.bf16.mxu0 %v4908_v40 }
0x12bb   : > { %4415 = vmatpush3.bf16.msra.mxu0 %v4909_v41 }
0x12bc   : > { %4416 = vmatprep.subr.bf16.mxu0 %v4910_v9 }
0x12bf   : > { %4417 = vmatpush3.bf16.msra.mxu0 %v4911_v22 }
0x136a   : > { %v3430_v45 = vpop.f32.mrf.mxu0 }
0x136b   : > { %v3431_v53 = vadd.f32 %v4266_v44, %v3430_v45  ;;  %v4913_v45 = vld [vmem:[%s6407_s23 + $0x8] sm:$0xff]  }
0x136c   : > { %v4558_v46 = vpop.f32.mrf.mxu0 }
0x136d   : > { %v6290_v48 = vadd.f32 %v3431_v53, %v6098_v55  ;;  %v4914_v53 = vld [vmem:[%s6407_s23 + $0x40] sm:$0xff]  }
0x136e   : > { %v3433_v32 = vpop.f32.mrf.mxu0  ;;  %v4915_v46 = vld [vmem:[%s6407_s23] sm:$0xff]  }
0x136f   : > { %v3434_v50 = vadd.f32 %v4266_v44, %v3433_v32  ;;  %3441 = vadd.xlane.f32.xlu0 %v6290_v48  ;;  %v4912_v44 = vld [vmem:[%s6407_s23 + $0x48] sm:$0xff]   ;;  %v3496_v32 = vld [vmem:[%s6408_s26] sm:$0x3] }
0x1370   : > { %v4559_v51 = vpop.f32.mrf.mxu0  ;;  %4418 = vmatprep.subr.bf16.mxu0 %v4912_v44 }
0x1371   : > { %v6294_v37 = vadd.f32 %v3434_v50, %v6102_v58  ;;  %4419 = vmatpush3.bf16.msra.mxu0 %v4913_v45  ;;  %v3501_v50 = vrot.slane %v3496_v32, %v5865_v63  ;;  %v3505_v51 = vrot.slane %v3496_v32, %v5869_v3 }
0x1372   : > { %4420 = vmatprep.subr.bf16.mxu0 %v4914_v53  ;;  %v4314_v53 = vld [vmem:[#allocation21] ss:$0 sm:$0xff] }
0x1373   : > { %3443 = vadd.xlane.f32.xlu1 %v6294_v37 }
0x1375   : > { %4421 = vmatpush3.bf16.msra.mxu0 %v4915_v46 }
0x13f8   : > { %v3442_v55 = vpop.xlane.xlu0 %3441 }
0x13f9   : > { %v3445_v6 = vmul.f32 0.0078125, %v3442_v55 }
0x13fb   : > { %v3447_v33 = vsub.f32 %v6290_v48, %v3445_v6 }
0x13fc   : > { %v3444_v61 = vpop.xlane.xlu1 %3443 }
0x13fd   : > { %v3446_v47 = vmul.f32 0.0078125, %v3444_v61  ;;  %v3449_v58 = vmul.f32 %v3447_v33, %v3447_v33 }
0x13ff   : > { %v3448_v16 = vsub.f32 %v6294_v37, %v3446_v47  ;;  %3451 = vadd.xlane.f32.xlu0 %v3449_v58 }
0x1401   : > { %v3450_v21 = vmul.f32 %v3448_v16, %v3448_v16 }
0x1403   : > { %3453 = vadd.xlane.f32.xlu1 %v3450_v21 }
0x1488   : > { %v3452_v12 = vpop.xlane.xlu0 %3451 }
0x1489   : > { %v3455_v2 = vmul.f32 0.0078125, %v3452_v12 }
0x148b   : > { %v3457_v5 = vadd.f32 1e-05, %v3455_v2 }
0x148c   : > { %v3454_v34 = vpop.xlane.xlu1 %3453 }
0x148d   : > { %4992 = vrsqrt.f32 %v3457_v5  ;;  %v3456_v17 = vmul.f32 0.0078125, %v3454_v34 }
0x148f   : > { %v3458_v18 = vadd.f32 1e-05, %v3456_v17 }
0x1491   : > { %4994 = vrsqrt.f32 %v3458_v18  ;;  %v4297_v18 = vld [vmem:[#allocation19] ss:$0 sm:$0xff] }
0x149a   : > { %v4993_v19 = vpop.eup %4992 }
0x149b   : > { %v3461_v0 = vmul.f32 %v4993_v19, %v3447_v33 }
0x149d   : > { %v3469_v57 = vmul.f32 %v4275_v20, %v3461_v0 }
0x149e   : > { %v4995_v31 = vpop.eup %4994 }
0x149f   : > { %v3462_v15 = vmul.f32 %v4995_v31, %v3448_v16  ;;  %v3477_v4 = vadd.f32 %v4276_v23, %v3469_v57 }
0x14a1   : > { %v3470_v54 = vmul.f32 %v4275_v20, %v3462_v15 }
0x14a3   : > { %v3478_v24 = vadd.f32 %v4276_v23, %v3470_v54 }
0x14a5   : > { %v3479_v25 = vpack.c.bf16 %v3478_v24, %v3477_v4 }
0x14a7   : > { %3621 = vmatmul.mubr.bf16.vlgmr.msra.gmra.mxu1 %v3479_v25 }
0x1567   : > { %v3622_v56 = vpop.f32.mrf.mxu1 }
0x1568   : > { %v3623_v59 = vadd.f32 %v3622_v56, %v3501_v50 }
0x1569   : > { %v3624_v55 = vpop.f32.mrf.mxu1 }
0x156a   : > { %v4293_v6 = vmul.f32 -1.442695, %v3623_v59  ;;  %v3625_v33 = vadd.f32 %v3624_v55, %v3505_v51 }
0x156b   : > { %v3626_v61 = vpop.f32.mrf.mxu1 }
0x156c   : > { %v4294_v47 = vmul.f32 -1.442695, %v3625_v33  ;;  %v3627_v58 = vadd.f32 %v3626_v61, %v3501_v50  ;;  %4996 = vpow2.f32 %v4293_v6 }
0x156d   : > { %v3628_v16 = vpop.f32.mrf.mxu1 }
0x156e   : > { %4998 = vpow2.f32 %v4294_v47  ;;  %v4295_v21 = vmul.f32 -1.442695, %v3627_v58  ;;  %v3629_v7 = vadd.f32 %v3628_v16, %v3505_v51  ;;  %v4315_v51 = vld [vmem:[#allocation22] ss:$0 sm:$0xff] }
0x1570   : > { %5000 = vpow2.f32 %v4295_v21  ;;  %v4296_v14 = vmul.f32 -1.442695, %v3629_v7 }
0x1572   : > { %5002 = vpow2.f32 %v4296_v14 }
0x1579   : > { %v4997_v29 = vpop.eup %4996 }
0x157a   : > { %v3643_v8 = vadd.f32 1.0, %v4997_v29 }
0x157b   : > { %v4999_v63 = vpop.eup %4998 }
0x157c   : > { %v3644_v52 = vadd.f32 1.0, %v4999_v63 }
0x157d   : > { %v5001_v3 = vpop.eup %5000 }
0x157e   : > { %v3645_v27 = vadd.f32 1.0, %v5001_v3  ;;  %5004 = vrcp.f32 %v3644_v52 }
0x157f   : > { %v5003_v49 = vpop.eup %5002 }
0x1580   : > { %5006 = vrcp.f32 %v3645_v27  ;;  %v3646_v10 = vadd.f32 1.0, %v5003_v49 }
0x1581   : > { %5008 = vrcp.f32 %v3643_v8 }
0x1582   : > { %5010 = vrcp.f32 %v3646_v10 }
0x158b   : > { %v5005_v11 = vpop.eup %5004 }
0x158c   : > { %v3656_v43 = vmul.f32 %v5005_v11, %v3625_v33 }
0x158d   : > { %v5007_v1 = vpop.eup %5006 }
0x158e   : > { %v5009_v38 = vpop.eup %5008  ;;  %v3657_v30 = vmul.f32 %v5007_v1, %v3627_v58 }
0x158f   : > { %v5011_v60 = vpop.eup %5010  ;;  %v3655_v2 = vmul.f32 %v5009_v38, %v3623_v59 }
0x1590   : > { %v3658_v12 = vmul.f32 %v5011_v60, %v3629_v7 }
0x1591   : > { %v3659_v34 = vpack.c.bf16 %v3657_v30, %v3655_v2 }
0x1592   : > { %v3660_v5 = vpack.c.bf16 %v3658_v12, %v3656_v43 }
0x1594   : > { %3828 = vmatprep.mubr.bf16.mxu0 %v3660_v5 }
0x1595   : > { %3829 = vmatmul.mubr.bf16.vlgmr.msra.gmra.mxu0 %v3659_v34 }
0x1655   : > { %v4422_v17 = vpop.f32.mrf.mxu0 }
0x1657   : > { %v4423_v19 = vpop.f32.mrf.mxu0 }
0x1658   : > { %v4424_v0 = vadd.f32 %v4423_v19, %v4422_v17 }
0x1659   : > { %v4425_v20 = vpop.f32.mrf.mxu0 }
0x165a   : > { %v3831_v31 = vadd.f32 %v4424_v0, %v4297_v18 }
0x165b   : > { %v4426_v15 = vpop.f32.mrf.mxu0 }
0x165c   : > { %v3837_v57 = vmul.f32 0.5, %v3831_v31  ;;  %v4427_v23 = vadd.f32 %v4426_v15, %v4425_v20 }
0x165e   : > { %v3834_v54 = vadd.f32 %v4427_v23, %v4297_v18  ;;  %v3839_v4 = vadd.f32 %v3837_v57, %v6290_v48 }
0x1660   : > { %v3838_v24 = vmul.f32 0.5, %v3834_v54  ;;  %3843 = vadd.xlane.f32.xlu0 %v3839_v4 }
0x1662   : > { %v3840_v25 = vadd.f32 %v3838_v24, %v6294_v37 }
0x1664   : > { %3845 = vadd.xlane.f32.xlu1 %v3840_v25 }
0x16e9   : > { %v3844_v28 = vpop.xlane.xlu0 %3843 }
0x16ea   : > { %v3847_v62 = vmul.f32 0.0078125, %v3844_v28 }
0x16ec   : > { %v3849_v42 = vsub.f32 %v3839_v4, %v3847_v62 }
0x16ed   : > { %v3846_v35 = vpop.xlane.xlu1 %3845 }
0x16ee   : > { %v3848_v26 = vmul.f32 0.0078125, %v3846_v35  ;;  %v3851_v36 = vmul.f32 %v3849_v42, %v3849_v42 }
0x16f0   : > { %v3850_v13 = vsub.f32 %v3840_v25, %v3848_v26  ;;  %3853 = vadd.xlane.f32.xlu0 %v3851_v36 }
0x16f2   : > { %v3852_v39 = vmul.f32 %v3850_v13, %v3850_v13 }
0x16f4   : > { %3855 = vadd.xlane.f32.xlu1 %v3852_v39 }
0x1779   : > { %v3854_v40 = vpop.xlane.xlu0 %3853 }
0x177a   : > { %v3857_v41 = vmul.f32 0.0078125, %v3854_v40 }
0x177c   : > { %v3859_v9 = vadd.f32 1e-05, %v3857_v41 }
0x177d   : > { %v3856_v48 = vpop.xlane.xlu1 %3855 }
0x177e   : > { %5012 = vrsqrt.f32 %v3859_v9  ;;  %v3858_v22 = vmul.f32 0.0078125, %v3856_v48 }
0x1780   : > { %v3860_v37 = vadd.f32 1e-05, %v3858_v22 }
0x1782   : > { %5014 = vrsqrt.f32 %v3860_v37 }
0x178b   : > { %v5013_v44 = vpop.eup %5012 }
0x178c   : > { %v3863_v45 = vmul.f32 %v5013_v44, %v3849_v42 }
0x178e   : > { %v3871_v32 = vmul.f32 %v4314_v53, %v3863_v45 }
0x178f   : > { %v5015_v46 = vpop.eup %5014 }
0x1790   : > { %v3864_v50 = vmul.f32 %v5015_v46, %v3850_v13  ;;  %v3879_v59 = vadd.f32 %v4315_v51, %v3871_v32 }
0x1792   : > { %v3872_v56 = vmul.f32 %v4314_v53, %v3864_v50 }
0x1794   : > { %v3880_v55 = vadd.f32 %v4315_v51, %v3872_v56 }
0x1796   : > { %v4331_v6 = vpack.c.bf16 %v3880_v55, %v3879_v59 }
0x1798   : > { %4332 = vst [vmem:[%s1218_s28] sm:$0xff] %v4331_v6  }
0x1799 PF: > { %s87_s15 = sadd.s32 1, %s5418_s15  }
0x179a   : > { %p84_p4 = scmp.ge.s32.totalorder %s87_s15, 4  }
0x179c   :  { %86 = sbr.rel (!%p84_p4) target bundleno = 66 (0x42), region = 277 }
0x17a1   :  { %3912 = vsyncpa [#allocation3], 1 }
0x17a2   :  { %3914 = vsyncpa [#allocation3 + $0x1], 1 }
0x17a3   :  { %3915 = vsyncpa [#allocation5], 1 }
0x17a4   :  { %3916 = vsyncpa [#allocation8], 1 }
0x17a5   :  { %3917 = vsyncpa [#allocation11], 1 }
0x17a6   :  { %3918 = vsyncpa [#allocation14], 1 }
0x17a7   :  { %3919 = vsyncpa [#allocation17], 1 }
0x17a8   :  { %3920 = vsyncpa [#allocation20], 1 }
0x17a9   :  { %3921 = vsyncpa [#allocation23], 1 }

</bundles_post_ra>
